<compile_context>
chip_gen: v6e
topology: v6e:2x2x1
jax: 0.10.0
libtpu: 0.0.40
codegen_flags: <defaults>
</compile_context>

<pallas_src>
import functools

import jax
import jax.numpy as jnp
from jax.experimental import pallas as pl
from jax.experimental.pallas import tpu as pltpu

NPAD = 128  # padded class dim (10 -> 128) so the logit store is lane-dense


def _round_up(x, m):
    return (x + m - 1) // m * m


# ----------------------------- Pallas kernel ------------------------------ #
def _oracle_model_kernel(x_ref, m1_ref, b1_ref, m2_ref, b2_ref, out_ref):
    """Fused (conv-as-dense-matmul) -> bias -> ReLU -> (pool+FC matmul) -> bias.

    x_ref:   [TB, H*W*Cin]        bf16  raw flattened NHWC images
    m1_ref:  [H*W*Cin, H*W*Cout]  bf16  linearized SAME-conv operator
    b1_ref:  [1, H*W*Cout]        f32   conv bias tiled per pixel
    m2_ref:  [H*W*Cout, NPAD]     bf16  global-avg-pool + FC head folded
    b2_ref:  [1, NPAD]            f32   FC bias (zero padded)
    out_ref: [TB, NPAD]           f32   lane-dense logits
    """
    h = jnp.dot(x_ref[...], m1_ref[...],
                preferred_element_type=jnp.float32)            # [TB, P*Cout] f32
    h = jnp.maximum(h + b1_ref[...], 0.0)                      # bias + ReLU (VPU)
    logits = jnp.dot(h.astype(m2_ref.dtype), m2_ref[...],
                     preferred_element_type=jnp.float32)       # [TB, NPAD]
    out_ref[...] = (logits + b2_ref[...]).astype(out_ref.dtype)


# ------------------------------ host wrapper ------------------------------ #
@functools.partial(jax.jit, static_argnames=("steps", "episodic"))
def oracle_forward(x_nchw, params, steps=1, episodic=False):
    """Replicates Oracle.forward.  Forward mutates no state, so the `steps`
    identical evaluations collapse into one kernel launch; episodic reset is a
    host-side state restore that does not change the computed output."""
    # TODO(synk): optimizer/model state copy & reset (copy_model_and_optimizer /
    # load_model_and_optimizer) are host-side state management with no kernel
    # equivalent; only the forward pass is implemented here.
    assert steps > 0, "tent requires >= 1 step(s) to forward and update"

    B, Cin, H, W = x_nchw.shape
    KH, KW = 3, 3
    P = H * W

    w_conv_pt = params["w_conv"]          # [Cout, Cin, KH, KW] (PyTorch layout)
    b_conv = params["b_conv"]             # [Cout]
    w_fc = params["w_fc"]                 # [Ncls, Cout]        (PyTorch layout)
    b_fc = params["b_fc"]                 # [Ncls]
    Cout = w_conv_pt.shape[0]
    num_classes = w_fc.shape[0]
    assert num_classes <= NPAD

    # --- raw input stream: NCHW -> NHWC -> flat [B, P*Cin], bf16 -------------
    x_flat = jnp.transpose(x_nchw, (0, 2, 3, 1)).reshape(B, P * Cin)
    x_flat = x_flat.astype(jnp.bfloat16)

    # --- batch tiling: 8-aligned tile, zero-padded batch (any B works) -------
    tb_cap = 128
    b8 = _round_up(B, 8)
    if b8 <= 8:
        TB = b8
    elif b8 <= 2 * tb_cap:
        TB = _round_up((b8 + 1) // 2, 8)   # >=2 tiles -> both v7x TCs get work
    else:
        TB = tb_cap
    BP = _round_up(B, TB)
    nb = BP // TB
    x_flat = jnp.pad(x_flat, ((0, BP - B), (0, 0)))

    # --- operator matrices (depend only on params; amortized per adapt step) -
    # M1[(i*W+j)*Cin+c, (h*W+w)*Cout+d] =
    #     sum_{kh,kw} [i == h+kh-1] [j == w+kw-1] * Wconv[kh, kw, c, d]
    # i.e. the SAME-padded 3x3 conv as a single dense matrix acting on the raw
    # flattened image — no patches, no spatial padding of the input needed.
    w_hwio = jnp.transpose(w_conv_pt, (2, 3, 1, 0)).astype(jnp.float32)  # [3,3,Cin,Cout]
    eh = jnp.stack([jnp.eye(H, k=1 - kh, dtype=jnp.float32) for kh in range(KH)])
    ew = jnp.stack([jnp.eye(W, k=1 - kw, dtype=jnp.float32) for kw in range(KW)])
    m1 = jnp.einsum("pih,qjw,pqcd->ijchwd", eh, ew, w_hwio)
    m1 = m1.reshape(P * Cin, P * Cout).astype(jnp.bfloat16)

    b1 = jnp.tile(b_conv.astype(jnp.float32), P).reshape(1, P * Cout)

    # M2 folds GlobalAvgPool (1/P) and the FC head; classes padded to 128 lanes.
    m2 = jnp.tile(w_fc.T.astype(jnp.float32) / P, (P, 1))               # [P*Cout, Ncls]
    m2 = jnp.pad(m2, ((0, 0), (0, NPAD - num_classes))).astype(jnp.bfloat16)
    b2 = jnp.pad(b_fc.astype(jnp.float32).reshape(1, num_classes),
                 ((0, 0), (0, NPAD - num_classes)))

    grid_spec = pltpu.PrefetchScalarGridSpec(
        num_scalar_prefetch=0,
        grid=(nb,),
        in_specs=[
            pl.BlockSpec((TB, P * Cin), lambda i: (i, 0)),        # x (batch-tiled)
            # Grid-invariant operands: constant index maps, so the pipeline
            # keeps them resident instead of re-DMA-ing them per grid step.
            pl.BlockSpec((P * Cin, P * Cout), lambda i: (0, 0)),  # conv operator
            pl.BlockSpec((1, P * Cout), lambda i: (0, 0)),        # conv bias
            pl.BlockSpec((P * Cout, NPAD), lambda i: (0, 0)),     # pool+fc operator
            pl.BlockSpec((1, NPAD), lambda i: (0, 0)),            # fc bias
        ],
        out_specs=pl.BlockSpec((TB, NPAD), lambda i: (i, 0)),     # lane-dense logits
    )

    run_model = pl.pallas_call(
        _oracle_model_kernel,
        out_shape=jax.ShapeDtypeStruct((BP, NPAD), jnp.float32),
        grid_spec=grid_spec,
        compiler_params=pltpu.CompilerParams(
            dimension_semantics=("parallel",),
            vmem_limit_bytes=40 * 1024 * 1024),
    )

    # Oracle's `for _ in range(steps)` loop: forward mutates no state, so every
    # iteration returns the identical output -> compute once (steps-x dedupe).
    logits_padded = run_model(x_flat, m1, b1, m2, b2)
    return logits_padded[:B, :num_classes]


# --------------------------------- main ----------------------------------- #
if __name__ == "__main__":
    B, Cin, H, W = 2, 4, 16, 16
    Cout, num_classes = 8, 10

    key = jax.random.PRNGKey(0)
    k_x, k_wc, k_bc, k_wf, k_bf = jax.random.split(key, 5)

    x = jax.random.normal(k_x, (B, Cin, H, W), dtype=jnp.float32)
    params = {
        "w_conv": 0.1 * jax.random.normal(k_wc, (Cout, Cin, 3, 3), jnp.float32),
        "b_conv": 0.1 * jax.random.normal(k_bc, (Cout,), jnp.float32),
        "w_fc":   0.1 * jax.random.normal(k_wf, (num_classes, Cout), jnp.float32),
        "b_fc":   0.1 * jax.random.normal(k_bf, (num_classes,), jnp.float32),
    }

    out = oracle_forward(x, params, steps=3, episodic=False)
    out = jax.block_until_ready(out)
    assert out.shape == (B, num_classes) and out.dtype == jnp.float32

    # Pure-JAX f32 reference (same math path as the PyTorch model).
    x_nhwc = jnp.transpose(x, (0, 2, 3, 1))
    ref = jax.lax.conv_general_dilated(
        x_nhwc, jnp.transpose(params["w_conv"], (2, 3, 1, 0)),
        window_strides=(1, 1), padding="SAME",
        dimension_numbers=("NHWC", "HWIO", "NHWC"))
    ref = jnp.maximum(ref + params["b_conv"], 0.0).mean(axis=(1, 2))
    ref = ref @ params["w_fc"].T + params["b_fc"]
    # bf16 inputs/operators with f32 accumulation -> relaxed tolerance.
    assert jnp.allclose(out, ref, atol=2e-2, rtol=2e-2), \
        float(jnp.max(jnp.abs(out - ref)))

    print("KERNEL_OK")
</pallas_src>

<mosaic_0001>
module attributes {stable_mosaic.version = 11 : i64} {
  func.func @_oracle_model_kernel(%arg0: i32, %arg1: memref<8x1024xbf16, #tpu.memory_space<vmem>>, %arg2: memref<1024x2048xbf16, #tpu.memory_space<vmem>>, %arg3: memref<1x2048xf32, #tpu.memory_space<vmem>>, %arg4: memref<2048x128xbf16, #tpu.memory_space<vmem>>, %arg5: memref<1x128xf32, #tpu.memory_space<vmem>>, %arg6: memref<8x128xf32, #tpu.memory_space<vmem>>) attributes {dimension_semantics = [#tpu.dimension_semantics<parallel>], iteration_bounds = array<i64: 1>, scalar_prefetch = 0 : i64, scratch_operands = 0 : i64, tpu.core_type = #tpu.core_type<tc>, window_params = [{transform_indices = @transform_0, window_bounds = array<i64: 8, 1024>}, {pipeline_mode = #tpu.pipeline_mode<synchronous>, transform_indices = @transform_1, window_bounds = array<i64: 1024, 2048>}, {pipeline_mode = #tpu.pipeline_mode<synchronous>, transform_indices = @transform_2, window_bounds = array<i64: 1, 2048>}, {pipeline_mode = #tpu.pipeline_mode<synchronous>, transform_indices = @transform_3, window_bounds = array<i64: 2048, 128>}, {pipeline_mode = #tpu.pipeline_mode<synchronous>, transform_indices = @transform_4, window_bounds = array<i64: 1, 128>}, {transform_indices = @transform_5, window_bounds = array<i64: 8, 128>}]} {
    %c0 = arith.constant 0 : index
    %c0_0 = arith.constant 0 : index
    %0 = vector.load %arg1[%c0, %c0_0] : memref<8x1024xbf16, #tpu.memory_space<vmem>>, vector<8x1024xbf16>
    %c0_1 = arith.constant 0 : index
    %c0_2 = arith.constant 0 : index
    %1 = vector.load %arg2[%c0_1, %c0_2] : memref<1024x2048xbf16, #tpu.memory_space<vmem>>, vector<1024x2048xbf16>
    %cst = arith.constant dense<0.000000e+00> : vector<8x2048xf32>
    %2 = tpu.matmul %0, %1, %cst {dimension_numbers = #tpu.dot_dimension_numbers<[1], [0], [0], [1], [0, 0, 1, 1], [], []>} : vector<8x1024xbf16>, vector<1024x2048xbf16>, vector<8x2048xf32> -> vector<8x2048xf32>
    %c0_3 = arith.constant 0 : index
    %c0_4 = arith.constant 0 : index
    %3 = vector.load %arg3[%c0_3, %c0_4] : memref<1x2048xf32, #tpu.memory_space<vmem>>, vector<1x2048xf32>
    %4 = vector.broadcast %3 : vector<1x2048xf32> to vector<8x2048xf32>
    %5 = arith.addf %2, %4 : vector<8x2048xf32>
    %cst_5 = arith.constant 0.000000e+00 : f32
    %6 = vector.broadcast %cst_5 : f32 to vector<8x2048xf32>
    %7 = arith.maximumf %5, %6 : vector<8x2048xf32>
    %8 = arith.truncf %7 : vector<8x2048xf32> to vector<8x2048xbf16>
    %c0_6 = arith.constant 0 : index
    %c0_7 = arith.constant 0 : index
    %9 = vector.load %arg4[%c0_6, %c0_7] : memref<2048x128xbf16, #tpu.memory_space<vmem>>, vector<2048x128xbf16>
    %cst_8 = arith.constant dense<0.000000e+00> : vector<8x128xf32>
    %10 = tpu.matmul %8, %9, %cst_8 {dimension_numbers = #tpu.dot_dimension_numbers<[1], [0], [0], [1], [0, 0, 1, 1], [], []>} : vector<8x2048xbf16>, vector<2048x128xbf16>, vector<8x128xf32> -> vector<8x128xf32>
    %c0_9 = arith.constant 0 : index
    %c0_10 = arith.constant 0 : index
    %11 = vector.load %arg5[%c0_9, %c0_10] : memref<1x128xf32, #tpu.memory_space<vmem>>, vector<1x128xf32>
    %12 = vector.broadcast %11 : vector<1x128xf32> to vector<8x128xf32>
    %13 = arith.addf %10, %12 : vector<8x128xf32>
    %c0_11 = arith.constant 0 : index
    %c0_12 = arith.constant 0 : index
    %14 = vector.load %arg6[%c0_11, %c0_12] : memref<8x128xf32, #tpu.memory_space<vmem>>, vector<8x128xf32>
    tpu.vector_store %arg6[%c0_11, %c0_12], %13 {strides = array<i32>} : memref<8x128xf32, #tpu.memory_space<vmem>>, vector<8x128xf32>,
    return
  }
  func.func @transform_0(%arg0: i32) -> (i32, i32) {
    %c0_i32 = arith.constant 0 : i32
    %c0_i32_0 = arith.constant 0 : i32
    return %arg0, %c0_i32 : i32, i32
  }
  func.func @transform_1(%arg0: i32) -> (i32, i32) {
    %c0_i32 = arith.constant 0 : i32
    %c0_i32_0 = arith.constant 0 : i32
    %c0_i32_1 = arith.constant 0 : i32
    return %c0_i32, %c0_i32_0 : i32, i32
  }
  func.func @transform_2(%arg0: i32) -> (i32, i32) {
    %c0_i32 = arith.constant 0 : i32
    %c0_i32_0 = arith.constant 0 : i32
    %c0_i32_1 = arith.constant 0 : i32
    return %c0_i32, %c0_i32_0 : i32, i32
  }
  func.func @transform_3(%arg0: i32) -> (i32, i32) {
    %c0_i32 = arith.constant 0 : i32
    %c0_i32_0 = arith.constant 0 : i32
    %c0_i32_1 = arith.constant 0 : i32
    return %c0_i32, %c0_i32_0 : i32, i32
  }
  func.func @transform_4(%arg0: i32) -> (i32, i32) {
    %c0_i32 = arith.constant 0 : i32
    %c0_i32_0 = arith.constant 0 : i32
    %c0_i32_1 = arith.constant 0 : i32
    return %c0_i32, %c0_i32_0 : i32, i32
  }
  func.func @transform_5(%arg0: i32) -> (i32, i32) {
    %c0_i32 = arith.constant 0 : i32
    %c0_i32_0 = arith.constant 0 : i32
    return %arg0, %c0_i32 : i32, i32
  }
}

</mosaic_0001>

<bundles_post_ra>
// kernel: tile.13
= control target key start
LH: loop header
LB: loop body
LE: loop exit
PB: predicated region body
PF: predicated region fallthrough
CT: control target
= control target key end

     0   :  { %s208_s0 = inlined_call_operand.vmem [shape: f32[8], index: 0, kind: input, shape index: {}]   ;;  %s209_s1 = inlined_call_operand.vmem [shape: f32[256,8], index: 1, kind: output, shape index: {}]  }
   0x1   :  { %v4_v0 = vld [vmem:[%s208_s0] ss:$0 sm:$0xff] }
   0x2   :  { %5 = vst [vmem:[%s209_s1] sm:$0xff] %v4_v0  ;;  %68 = vst [vmem:[%s209_s1 + $0x8] sm:$0xff] %v4_v0 }
   0x3   :  { %69 = vst [vmem:[%s209_s1 + $0x10] sm:$0xff] %v4_v0  ;;  %70 = vst [vmem:[%s209_s1 + $0x18] sm:$0xff] %v4_v0 }
   0x4   :  { %71 = vst [vmem:[%s209_s1 + $0x20] sm:$0xff] %v4_v0  ;;  %72 = vst [vmem:[%s209_s1 + $0x28] sm:$0xff] %v4_v0 }
   0x5   :  { %73 = vst [vmem:[%s209_s1 + $0x30] sm:$0xff] %v4_v0  ;;  %74 = vst [vmem:[%s209_s1 + $0x38] sm:$0xff] %v4_v0 }
   0x6   :  { %75 = vst [vmem:[%s209_s1 + $0x40] sm:$0xff] %v4_v0  ;;  %76 = vst [vmem:[%s209_s1 + $0x48] sm:$0xff] %v4_v0 }
   0x7   :  { %77 = vst [vmem:[%s209_s1 + $0x50] sm:$0xff] %v4_v0  ;;  %78 = vst [vmem:[%s209_s1 + $0x58] sm:$0xff] %v4_v0 }
   0x8   :  { %79 = vst [vmem:[%s209_s1 + $0x60] sm:$0xff] %v4_v0  ;;  %80 = vst [vmem:[%s209_s1 + $0x68] sm:$0xff] %v4_v0 }
   0x9   :  { %81 = vst [vmem:[%s209_s1 + $0x70] sm:$0xff] %v4_v0  ;;  %82 = vst [vmem:[%s209_s1 + $0x78] sm:$0xff] %v4_v0 }
   0xa   :  { %83 = vst [vmem:[%s209_s1 + $0x80] sm:$0xff] %v4_v0  ;;  %84 = vst [vmem:[%s209_s1 + $0x88] sm:$0xff] %v4_v0 }
   0xb   :  { %85 = vst [vmem:[%s209_s1 + $0x90] sm:$0xff] %v4_v0  ;;  %86 = vst [vmem:[%s209_s1 + $0x98] sm:$0xff] %v4_v0 }
   0xc   :  { %87 = vst [vmem:[%s209_s1 + $0xa0] sm:$0xff] %v4_v0  ;;  %88 = vst [vmem:[%s209_s1 + $0xa8] sm:$0xff] %v4_v0 }
   0xd   :  { %89 = vst [vmem:[%s209_s1 + $0xb0] sm:$0xff] %v4_v0  ;;  %90 = vst [vmem:[%s209_s1 + $0xb8] sm:$0xff] %v4_v0 }
   0xe   :  { %91 = vst [vmem:[%s209_s1 + $0xc0] sm:$0xff] %v4_v0  ;;  %92 = vst [vmem:[%s209_s1 + $0xc8] sm:$0xff] %v4_v0 }
   0xf   :  { %93 = vst [vmem:[%s209_s1 + $0xd0] sm:$0xff] %v4_v0  ;;  %94 = vst [vmem:[%s209_s1 + $0xd8] sm:$0xff] %v4_v0 }
  0x10   :  { %95 = vst [vmem:[%s209_s1 + $0xe0] sm:$0xff] %v4_v0  ;;  %96 = vst [vmem:[%s209_s1 + $0xe8] sm:$0xff] %v4_v0 }
  0x11   :  { %97 = vst [vmem:[%s209_s1 + $0xf0] sm:$0xff] %v4_v0  ;;  %98 = vst [vmem:[%s209_s1 + $0xf8] sm:$0xff] %v4_v0 }

// kernel: tile.14
= control target key start
LH: loop header
LB: loop body
LE: loop exit
PB: predicated region body
PF: predicated region fallthrough
CT: control target
= control target key end

     0   :  { %vm6_vm0 = vcmask 1043458   ;;  %vm10_vm1 = vcmask 1045508   ;;  %vm14_vm2 = vcmask 1047558   ;;  %s91_s6 = smov 3  ;;  %s94_s7 = smov 12  ;;  %vm16_vm3 = vcmask 64512   ;;  %s1595_s0 = inlined_call_operand.vmem [shape: f32[256,8], index: 0, kind: input, shape index: {}]   ;;  %s1596_s1 = inlined_call_operand.vmem [shape: f32[1,2048], index: 1, kind: output, shape index: {}]  }
   0x1   :  { %v900_v0 = vld [vmem:[%s1595_s0 + $0xe] ss:$16 sm:%s91_s6]   ;;  %s99_s12 = smov 48  ;;  %s104_s13 = smov 192  ;;  %vm62_vm4 = vcmask 1048512   ;;  %vm110_vm5 = vcmask 982912  }
   0x2   :  { %v901_v1 = vld [vmem:[%s1595_s0 + $0xe] ss:$16 sm:%s94_s7]   ;;  %s43_s18 = smov 3  ;;  %s46_s21 = smov 12  ;;  %vm158_vm6 = vcmask 917312   ;;  %vm206_vm7 = vcmask 851712  }
   0x3   :  { %v97_v2 = vsel %vm6_vm0, %v901_v1, %v900_v0  ;;  %v902_v3 = vld [vmem:[%s1595_s0 + $0xe] ss:$16 sm:%s99_s12]   ;;  %v892_v6 = vld [vmem:[%s1595_s0 + $0xf] ss:$16 sm:%s43_s18]   ;;  %s51_s22 = smov 48  ;;  %s56_s27 = smov 192 }
   0x4   :  { %v903_v4 = vld [vmem:[%s1595_s0 + $0xe] ss:$16 sm:%s104_s13]   ;;  %v102_v5 = vsel %vm10_vm1, %v902_v3, %v97_v2  ;;  %v893_v8 = vld [vmem:[%s1595_s0 + $0xf] ss:$16 sm:%s46_s21]   ;;  %s1042_s28 = smov 112   ;;  %s114_s2 = smov 3 }
   0x5   :  { %v107_v7 = vsel %vm14_vm2, %v903_v4, %v102_v5  ;;  %v894_v9 = vld [vmem:[%s1595_s0 + $0xf] ss:$16 sm:%s51_s22]   ;;  %v49_v10 = vsel %vm6_vm0, %v893_v8, %v892_v6  ;;  %s117_s3 = smov 12  ;;  %v904_v13 = vld [vmem:[%s1595_s0 + $0x8e] ss:$16 sm:%s114_s2]   ;;  %s122_s8 = smov 48 }
   0x6   :  { %108 = vrot.lane.b32.xlu1 %v107_v7, %s1042_s28  ;;  %v895_v11 = vld [vmem:[%s1595_s0 + $0xf] ss:$16 sm:%s56_s27]   ;;  %v54_v12 = vsel %vm10_vm1, %v894_v9, %v49_v10  ;;  %s127_s9 = smov 192  ;;  %s66_s14 = smov 3  ;;  %vm254_vm8 = vcmask 786112   ;;  %vm302_vm9 = vcmask 720512  }
   0x7   :  { %v905_v14 = vld [vmem:[%s1595_s0 + $0x8e] ss:$16 sm:%s117_s3]   ;;  %v59_v15 = vsel %vm14_vm2, %v895_v11, %v54_v12  ;;  %s69_s15 = smov 12  ;;  %s1043_s16 = smov 120   ;;  %v896_v20 = vld [vmem:[%s1595_s0 + $0x8f] ss:$16 sm:%s66_s14]  }
   0x8   :  { %v120_v16 = vsel %vm6_vm0, %v905_v14, %v904_v13  ;;  %v906_v17 = vld [vmem:[%s1595_s0 + $0x8e] ss:$16 sm:%s122_s8]   ;;  %60 = vrot.lane.b32.xlu0 %v59_v15, %s1043_s16  ;;  %s74_s19 = smov 48  ;;  %s79_s20 = smov 192  ;;  %vm350_vm10 = vcmask 654912   ;;  %vm398_vm11 = vcmask 589312  }
   0x9   :  { %v907_v18 = vld [vmem:[%s1595_s0 + $0x8e] ss:$16 sm:%s127_s9]   ;;  %v125_v19 = vsel %vm10_vm1, %v906_v17, %v120_v16  ;;  %v897_v22 = vld [vmem:[%s1595_s0 + $0x8f] ss:$16 sm:%s69_s15]   ;;  %s162_s25 = smov 3  ;;  %s170_s29 = smov 48 }
   0xa   :  { %v130_v21 = vsel %vm14_vm2, %v907_v18, %v125_v19  ;;  %v898_v23 = vld [vmem:[%s1595_s0 + $0x8f] ss:$16 sm:%s74_s19]   ;;  %v72_v24 = vsel %vm6_vm0, %v897_v22, %v896_v20  ;;  %v912_v27 = vld [vmem:[%s1595_s0 + $0x8d] ss:$16 sm:%s162_s25]   ;;  %s175_s5 = smov 192  ;;  %s139_s6 = smov 3 }
   0xb   :  { %131 = vrot.lane.b32.xlu1 %v130_v21, %s1042_s28  ;;  %v899_v25 = vld [vmem:[%s1595_s0 + $0x8f] ss:$16 sm:%s79_s20]   ;;  %s165_s28 = smov 12  ;;  %v77_v26 = vsel %vm10_vm1, %v898_v23, %v72_v24  ;;  %s142_s11 = smov 12  ;;  %vm446_vm12 = vcmask 523712   ;;  %vm494_vm13 = vcmask 458112  }
   0xc   :  { %v913_v28 = vld [vmem:[%s1595_s0 + $0x8d] ss:$16 sm:%s165_s28]   ;;  %v82_v29 = vsel %vm14_vm2, %v899_v25, %v77_v26  ;;  %s147_s12 = smov 48  ;;  %s152_s15 = smov 192  ;;  %vm542_vm14 = vcmask 392512   ;;  %vm590_vm15 = vcmask 326912  }
   0xd   :  { %v168_v30 = vsel %vm6_vm0, %v913_v28, %v912_v27  ;;  %v914_v31 = vld [vmem:[%s1595_s0 + $0x8d] ss:$16 sm:%s170_s29]   ;;  %83 = vrot.lane.b32.xlu0 %v82_v29, %s1043_s16  ;;  %s210_s20 = smov 3  ;;  %s213_s21 = smov 12 }
   0xe   :  { %v915_v32 = vld [vmem:[%s1595_s0 + $0x8d] ss:$16 sm:%s175_s5]   ;;  %v173_v33 = vsel %vm10_vm1, %v914_v31, %v168_v30  ;;  %s1044_s22 = smov 104   ;;  %s218_s25 = smov 48  ;;  %v920_v41 = vld [vmem:[%s1595_s0 + $0x8c] ss:$16 sm:%s210_s20]  }
   0xf   :  { %v908_v34 = vld [vmem:[%s1595_s0 + $0xd] ss:$16 sm:%s139_s6]   ;;  %v178_v35 = vsel %vm14_vm2, %v915_v32, %v173_v33  ;;  %s223_s26 = smov 192  ;;  %v921_v42 = vld [vmem:[%s1595_s0 + $0x8c] ss:$16 sm:%s213_s21]   ;;  %s187_s2 = smov 3 }
  0x10   :  { %v909_v36 = vld [vmem:[%s1595_s0 + $0xd] ss:$16 sm:%s142_s11]   ;;  %179 = vrot.lane.b32.xlu1 %v178_v35, %s1044_s22  ;;  %s190_s3 = smov 12  ;;  %v216_v44 = vsel %vm6_vm0, %v921_v42, %v920_v41  ;;  %s195_s8 = smov 48 }
  0x11   :  { %v910_v37 = vld [vmem:[%s1595_s0 + $0xd] ss:$16 sm:%s147_s12]   ;;  %v145_v38 = vsel %vm6_vm0, %v909_v36, %v908_v34  ;;  %v922_v45 = vld [vmem:[%s1595_s0 + $0x8c] ss:$16 sm:%s218_s25]   ;;  %s200_s9 = smov 192  ;;  %s258_s12 = smov 3 }
  0x12   :  { %v911_v39 = vld [vmem:[%s1595_s0 + $0xd] ss:$16 sm:%s152_s15]   ;;  %v150_v40 = vsel %vm10_vm1, %v910_v37, %v145_v38  ;;  %v923_v46 = vld [vmem:[%s1595_s0 + $0x8c] ss:$16 sm:%s223_s26]   ;;  %v221_v47 = vsel %vm10_vm1, %v922_v45, %v216_v44  ;;  %s261_s17 = smov 12  ;;  %s266_s18 = smov 48 }
  0x13   :  { %v155_v43 = vsel %vm14_vm2, %v911_v39, %v150_v40  ;;  %v916_v48 = vld [vmem:[%s1595_s0 + $0xc] ss:$16 sm:%s187_s2]   ;;  %v226_v49 = vsel %vm14_vm2, %v923_v46, %v221_v47  ;;  %s1045_s19 = smov 96   ;;  %s235_s23 = smov 3  ;;  %v928_v55 = vld [vmem:[%s1595_s0 + $0x8b] ss:$16 sm:%s258_s12]  }
  0x14   :  { %156 = vrot.lane.b32.xlu0 %v155_v43, %s1044_s22  ;;  %v917_v50 = vld [vmem:[%s1595_s0 + $0xc] ss:$16 sm:%s190_s3]   ;;  %227 = vrot.lane.b32.xlu1 %v226_v49, %s1045_s19  ;;  %s271_s22 = smov 192  ;;  %s238_s28 = smov 12 }
  0x15   :  { %v918_v51 = vld [vmem:[%s1595_s0 + $0xc] ss:$16 sm:%s195_s8]   ;;  %v193_v52 = vsel %vm6_vm0, %v917_v50, %v916_v48  ;;  %v929_v56 = vld [vmem:[%s1595_s0 + $0x8b] ss:$16 sm:%s261_s17]   ;;  %s243_s29 = smov 48  ;;  %s248_s5 = smov 192 }
  0x16   :  { %v919_v53 = vld [vmem:[%s1595_s0 + $0xc] ss:$16 sm:%s200_s9]   ;;  %v198_v54 = vsel %vm10_vm1, %v918_v51, %v193_v52  ;;  %v264_v58 = vsel %vm6_vm0, %v929_v56, %v928_v55  ;;  %v930_v59 = vld [vmem:[%s1595_s0 + $0x8b] ss:$16 sm:%s266_s18]   ;;  %s306_s8 = smov 3  ;;  %s309_s9 = smov 12 }
  0x17   :  { %v203_v57 = vsel %vm14_vm2, %v919_v53, %v198_v54  ;;  %v931_v60 = vld [vmem:[%s1595_s0 + $0x8b] ss:$16 sm:%s271_s22]   ;;  %v269_v61 = vsel %vm10_vm1, %v930_v59, %v264_v58  ;;  %s314_s14 = smov 48  ;;  %s319_s15 = smov 192  ;;  %v936_v5 = vld [vmem:[%s1595_s0 + $0x8a] ss:$16 sm:%s306_s8]  }
  0x18   :  { %204 = vrot.lane.b32.xlu0 %v203_v57, %s1045_s19  ;;  %v924_v62 = vld [vmem:[%s1595_s0 + $0xb] ss:$16 sm:%s235_s23]   ;;  %v274_v63 = vsel %vm14_vm2, %v931_v60, %v269_v61  ;;  %s1046_s16 = smov 88   ;;  %s283_s19 = smov 3 }
  0x19   :  { %v925_v0 = vld [vmem:[%s1595_s0 + $0xb] ss:$16 sm:%s238_s28]   ;;  %275 = vrot.lane.b32.xlu1 %v274_v63, %s1046_s16  ;;  %s286_s24 = smov 12  ;;  %s291_s25 = smov 48 }
  0x1a   :  { %v926_v1 = vld [vmem:[%s1595_s0 + $0xb] ss:$16 sm:%s243_s29]   ;;  %v241_v2 = vsel %vm6_vm0, %v925_v0, %v924_v62  ;;  %v937_v6 = vld [vmem:[%s1595_s0 + $0x8a] ss:$16 sm:%s309_s9]   ;;  %s296_s30 = smov 192  ;;  %s354_s4 = smov 3 }
  0x1b   :  { %v927_v3 = vld [vmem:[%s1595_s0 + $0xb] ss:$16 sm:%s248_s5]   ;;  %v246_v4 = vsel %vm10_vm1, %v926_v1, %v241_v2  ;;  %v312_v8 = vsel %vm6_vm0, %v937_v6, %v936_v5  ;;  %v938_v9 = vld [vmem:[%s1595_s0 + $0x8a] ss:$16 sm:%s314_s14]   ;;  %s357_s5 = smov 12  ;;  %s362_s10 = smov 48 }
  0x1c   :  { %v251_v7 = vsel %vm14_vm2, %v927_v3, %v246_v4  ;;  %v939_v10 = vld [vmem:[%s1595_s0 + $0x8a] ss:$16 sm:%s319_s15]   ;;  %v317_v11 = vsel %vm10_vm1, %v938_v9, %v312_v8  ;;  %s367_s11 = smov 192  ;;  %s1047_s12 = smov 80   ;;  %v944_v19 = vld [vmem:[%s1595_s0 + $0x89] ss:$16 sm:%s354_s4]  }
  0x1d   :  { %252 = vrot.lane.b32.xlu0 %v251_v7, %s1046_s16  ;;  %v932_v12 = vld [vmem:[%s1595_s0 + $0xa] ss:$16 sm:%s283_s19]   ;;  %v322_v13 = vsel %vm14_vm2, %v939_v10, %v317_v11  ;;  %s331_s15 = smov 3  ;;  %s334_s20 = smov 12 }
  0x1e   :  { %v933_v14 = vld [vmem:[%s1595_s0 + $0xa] ss:$16 sm:%s286_s24]   ;;  %323 = vrot.lane.b32.xlu1 %v322_v13, %s1047_s12  ;;  %s339_s21 = smov 48  ;;  %s344_s26 = smov 192 }
  0x1f   :  { %v934_v15 = vld [vmem:[%s1595_s0 + $0xa] ss:$16 sm:%s291_s25]   ;;  %v289_v16 = vsel %vm6_vm0, %v933_v14, %v932_v12  ;;  %v945_v20 = vld [vmem:[%s1595_s0 + $0x89] ss:$16 sm:%s357_s5]   ;;  %s402_s29 = smov 3  ;;  %s410_s6 = smov 48 }
  0x20   :  { %v935_v17 = vld [vmem:[%s1595_s0 + $0xa] ss:$16 sm:%s296_s30]   ;;  %v294_v18 = vsel %vm10_vm1, %v934_v15, %v289_v16  ;;  %v360_v22 = vsel %vm6_vm0, %v945_v20, %v944_v19  ;;  %v946_v23 = vld [vmem:[%s1595_s0 + $0x89] ss:$16 sm:%s362_s10]   ;;  %s405_s30 = smov 12  ;;  %s415_s7 = smov 192 }
  0x21   :  { %v299_v21 = vsel %vm14_vm2, %v935_v17, %v294_v18  ;;  %v947_v24 = vld [vmem:[%s1595_s0 + $0x89] ss:$16 sm:%s367_s11]   ;;  %v365_v25 = vsel %vm10_vm1, %v946_v23, %v360_v22  ;;  %s1048_s8 = smov 72   ;;  %s379_s11 = smov 3  ;;  %v952_v33 = vld [vmem:[%s1595_s0 + $0x88] ss:$16 sm:%s402_s29]  }
  0x22   :  { %300 = vrot.lane.b32.xlu0 %v299_v21, %s1047_s12  ;;  %v940_v26 = vld [vmem:[%s1595_s0 + $0x9] ss:$16 sm:%s331_s15]   ;;  %v370_v27 = vsel %vm14_vm2, %v947_v24, %v365_v25  ;;  %s382_s16 = smov 12  ;;  %s387_s17 = smov 48 }
  0x23   :  { %v941_v28 = vld [vmem:[%s1595_s0 + $0x9] ss:$16 sm:%s334_s20]   ;;  %371 = vrot.lane.b32.xlu1 %v370_v27, %s1048_s8  ;;  %s392_s22 = smov 192  ;;  %s450_s25 = smov 3 }
  0x24   :  { %v942_v29 = vld [vmem:[%s1595_s0 + $0x9] ss:$16 sm:%s339_s21]   ;;  %v337_v30 = vsel %vm6_vm0, %v941_v28, %v940_v26  ;;  %v953_v34 = vld [vmem:[%s1595_s0 + $0x88] ss:$16 sm:%s405_s30]   ;;  %s458_s2 = smov 48  ;;  %s463_s3 = smov 192 }
  0x25   :  { %v943_v31 = vld [vmem:[%s1595_s0 + $0x9] ss:$16 sm:%s344_s26]   ;;  %v342_v32 = vsel %vm10_vm1, %v942_v29, %v337_v30  ;;  %v408_v36 = vsel %vm6_vm0, %v953_v34, %v952_v33  ;;  %v954_v37 = vld [vmem:[%s1595_s0 + $0x88] ss:$16 sm:%s410_s6]   ;;  %s453_s26 = smov 12  ;;  %s1049_s4 = smov 64  }
  0x26   :  { %v347_v35 = vsel %vm14_vm2, %v943_v31, %v342_v32  ;;  %v955_v38 = vld [vmem:[%s1595_s0 + $0x88] ss:$16 sm:%s415_s7]   ;;  %v413_v39 = vsel %vm10_vm1, %v954_v37, %v408_v36  ;;  %s427_s7 = smov 3  ;;  %v960_v47 = vld [vmem:[%s1595_s0 + $0x87] ss:$16 sm:%s450_s25]   ;;  %s430_s12 = smov 12 }
  0x27   :  { %348 = vrot.lane.b32.xlu0 %v347_v35, %s1048_s8  ;;  %v948_v40 = vld [vmem:[%s1595_s0 + $0x8] ss:$16 sm:%s379_s11]   ;;  %v418_v41 = vsel %vm14_vm2, %v955_v38, %v413_v39  ;;  %s435_s13 = smov 48  ;;  %s440_s18 = smov 192 }
  0x28   :  { %v949_v42 = vld [vmem:[%s1595_s0 + $0x8] ss:$16 sm:%s382_s16]   ;;  %419 = vrot.lane.b32.xlu1 %v418_v41, %s1049_s4  ;;  %s498_s21 = smov 3  ;;  %s506_s27 = smov 48 }
  0x29   :  { %v950_v43 = vld [vmem:[%s1595_s0 + $0x8] ss:$16 sm:%s387_s17]   ;;  %v385_v44 = vsel %vm6_vm0, %v949_v42, %v948_v40  ;;  %v961_v48 = vld [vmem:[%s1595_s0 + $0x87] ss:$16 sm:%s453_s26]   ;;  %s511_s28 = smov 192  ;;  %s1050_s29 = smov 56  }
  0x2a   :  { %v951_v45 = vld [vmem:[%s1595_s0 + $0x8] ss:$16 sm:%s392_s22]   ;;  %v390_v46 = vsel %vm10_vm1, %v950_v43, %v385_v44  ;;  %v456_v50 = vsel %vm6_vm0, %v961_v48, %v960_v47  ;;  %v962_v51 = vld [vmem:[%s1595_s0 + $0x87] ss:$16 sm:%s458_s2]   ;;  %s501_s22 = smov 12  ;;  %s478_s8 = smov 12 }
  0x2b   :  { %v395_v49 = vsel %vm14_vm2, %v951_v45, %v390_v46  ;;  %v963_v52 = vld [vmem:[%s1595_s0 + $0x87] ss:$16 sm:%s463_s3]   ;;  %v461_v53 = vsel %vm10_vm1, %v962_v51, %v456_v50  ;;  %s475_s3 = smov 3  ;;  %v968_v61 = vld [vmem:[%s1595_s0 + $0x86] ss:$16 sm:%s498_s21]   ;;  %s483_s9 = smov 48 }
  0x2c   :  { %396 = vrot.lane.b32.xlu0 %v395_v49, %s1049_s4  ;;  %v956_v54 = vld [vmem:[%s1595_s0 + $0x7] ss:$16 sm:%s427_s7]   ;;  %v466_v55 = vsel %vm14_vm2, %v963_v52, %v461_v53  ;;  %s488_s14 = smov 192  ;;  %s546_s17 = smov 3 }
  0x2d   :  { %v957_v56 = vld [vmem:[%s1595_s0 + $0x7] ss:$16 sm:%s430_s12]   ;;  %467 = vrot.lane.b32.xlu1 %v466_v55, %s1050_s29  ;;  %s554_s23 = smov 48  ;;  %s559_s24 = smov 192 }
  0x2e   :  { %v958_v57 = vld [vmem:[%s1595_s0 + $0x7] ss:$16 sm:%s435_s13]   ;;  %v433_v58 = vsel %vm6_vm0, %v957_v56, %v956_v54  ;;  %v969_v62 = vld [vmem:[%s1595_s0 + $0x86] ss:$16 sm:%s501_s22]   ;;  %s1051_s25 = smov 48   ;;  %s526_s4 = smov 12 }
  0x2f   :  { %v959_v59 = vld [vmem:[%s1595_s0 + $0x7] ss:$16 sm:%s440_s18]   ;;  %v438_v60 = vsel %vm10_vm1, %v958_v57, %v433_v58  ;;  %v504_v0 = vsel %vm6_vm0, %v969_v62, %v968_v61  ;;  %v970_v1 = vld [vmem:[%s1595_s0 + $0x86] ss:$16 sm:%s506_s27]   ;;  %s549_s18 = smov 12  ;;  %s531_s5 = smov 48 }
  0x30   :  { %v443_v63 = vsel %vm14_vm2, %v959_v59, %v438_v60  ;;  %v971_v2 = vld [vmem:[%s1595_s0 + $0x86] ss:$16 sm:%s511_s28]   ;;  %v509_v3 = vsel %vm10_vm1, %v970_v1, %v504_v0  ;;  %s523_s28 = smov 3  ;;  %v976_v11 = vld [vmem:[%s1595_s0 + $0x85] ss:$16 sm:%s546_s17]   ;;  %s536_s10 = smov 192 }
  0x31   :  { %444 = vrot.lane.b32.xlu0 %v443_v63, %s1050_s29  ;;  %v964_v4 = vld [vmem:[%s1595_s0 + $0x6] ss:$16 sm:%s475_s3]   ;;  %v514_v5 = vsel %vm14_vm2, %v971_v2, %v509_v3  ;;  %s594_s13 = smov 3  ;;  %s602_s19 = smov 48 }
  0x32   :  { %v965_v6 = vld [vmem:[%s1595_s0 + $0x6] ss:$16 sm:%s478_s8]   ;;  %515 = vrot.lane.b32.xlu1 %v514_v5, %s1051_s25  ;;  %s607_s20 = smov 192  ;;  %s1052_s21 = smov 40  }
  0x33   :  { %v966_v7 = vld [vmem:[%s1595_s0 + $0x6] ss:$16 sm:%s483_s9]   ;;  %v481_v8 = vsel %vm6_vm0, %v965_v6, %v964_v4  ;;  %v977_v12 = vld [vmem:[%s1595_s0 + $0x85] ss:$16 sm:%s549_s18]   ;;  %s574_s29 = smov 12  ;;  %s579_s30 = smov 48 }
  0x34   :  { %v967_v9 = vld [vmem:[%s1595_s0 + $0x6] ss:$16 sm:%s488_s14]   ;;  %v486_v10 = vsel %vm10_vm1, %v966_v7, %v481_v8  ;;  %v552_v14 = vsel %vm6_vm0, %v977_v12, %v976_v11  ;;  %v978_v15 = vld [vmem:[%s1595_s0 + $0x85] ss:$16 sm:%s554_s23]   ;;  %s597_s14 = smov 12  ;;  %s584_s6 = smov 192 }
  0x35   :  { %v491_v13 = vsel %vm14_vm2, %v967_v9, %v486_v10  ;;  %v979_v16 = vld [vmem:[%s1595_s0 + $0x85] ss:$16 sm:%s559_s24]   ;;  %v557_v17 = vsel %vm10_vm1, %v978_v15, %v552_v14  ;;  %s571_s24 = smov 3  ;;  %v984_v25 = vld [vmem:[%s1595_s0 + $0x84] ss:$16 sm:%s594_s13]   ;;  %s642_s9 = smov 3 }
  0x36   :  { %492 = vrot.lane.b32.xlu0 %v491_v13, %s1051_s25  ;;  %v972_v18 = vld [vmem:[%s1595_s0 + $0x5] ss:$16 sm:%s523_s28]   ;;  %v562_v19 = vsel %vm14_vm2, %v979_v16, %v557_v17  ;;  %s650_s15 = smov 48  ;;  %s655_s16 = smov 192 }
  0x37   :  { %v973_v20 = vld [vmem:[%s1595_s0 + $0x5] ss:$16 sm:%s526_s4]   ;;  %563 = vrot.lane.b32.xlu1 %v562_v19, %s1052_s21  ;;  %s1053_s17 = smov 32   ;;  %s622_s25 = smov 12 }
  0x38   :  { %v974_v21 = vld [vmem:[%s1595_s0 + $0x5] ss:$16 sm:%s531_s5]   ;;  %v529_v22 = vsel %vm6_vm0, %v973_v20, %v972_v18  ;;  %v985_v26 = vld [vmem:[%s1595_s0 + $0x84] ss:$16 sm:%s597_s14]   ;;  %s627_s26 = smov 48  ;;  %s632_s2 = smov 192 }
  0x39   :  { %v975_v23 = vld [vmem:[%s1595_s0 + $0x5] ss:$16 sm:%s536_s10]   ;;  %v534_v24 = vsel %vm10_vm1, %v974_v21, %v529_v22  ;;  %v600_v28 = vsel %vm6_vm0, %v985_v26, %v984_v25  ;;  %v986_v29 = vld [vmem:[%s1595_s0 + $0x84] ss:$16 sm:%s602_s19]   ;;  %s645_s10 = smov 12  ;;  %s690_s5 = smov 3 }
  0x3a   :  { %v539_v27 = vsel %vm14_vm2, %v975_v23, %v534_v24  ;;  %v987_v30 = vld [vmem:[%s1595_s0 + $0x84] ss:$16 sm:%s607_s20]   ;;  %v605_v31 = vsel %vm10_vm1, %v986_v29, %v600_v28  ;;  %s619_s20 = smov 3  ;;  %v992_v39 = vld [vmem:[%s1595_s0 + $0x83] ss:$16 sm:%s642_s9]   ;;  %s698_s11 = smov 48 }
  0x3b   :  { %540 = vrot.lane.b32.xlu0 %v539_v27, %s1052_s21  ;;  %v980_v32 = vld [vmem:[%s1595_s0 + $0x4] ss:$16 sm:%s571_s24]   ;;  %v610_v33 = vsel %vm14_vm2, %v987_v30, %v605_v31  ;;  %s703_s12 = smov 192  ;;  %s1054_s13 = smov 24  }
  0x3c   :  { %v981_v34 = vld [vmem:[%s1595_s0 + $0x4] ss:$16 sm:%s574_s29]   ;;  %611 = vrot.lane.b32.xlu1 %v610_v33, %s1053_s17  ;;  %s670_s21 = smov 12  ;;  %s675_s22 = smov 48 }
  0x3d   :  { %v982_v35 = vld [vmem:[%s1595_s0 + $0x4] ss:$16 sm:%s579_s30]   ;;  %v577_v36 = vsel %vm6_vm0, %v981_v34, %v980_v32  ;;  %v993_v40 = vld [vmem:[%s1595_s0 + $0x83] ss:$16 sm:%s645_s10]   ;;  %s680_s27 = smov 192  ;;  %s738_s30 = smov 3 }
  0x3e   :  { %v983_v37 = vld [vmem:[%s1595_s0 + $0x4] ss:$16 sm:%s584_s6]   ;;  %v582_v38 = vsel %vm10_vm1, %v982_v35, %v577_v36  ;;  %v648_v42 = vsel %vm6_vm0, %v993_v40, %v992_v39  ;;  %v994_v43 = vld [vmem:[%s1595_s0 + $0x83] ss:$16 sm:%s650_s15]   ;;  %s693_s6 = smov 12  ;;  %s746_s7 = smov 48 }
  0x3f   :  { %v587_v41 = vsel %vm14_vm2, %v983_v37, %v582_v38  ;;  %v995_v44 = vld [vmem:[%s1595_s0 + $0x83] ss:$16 sm:%s655_s16]   ;;  %v653_v45 = vsel %vm10_vm1, %v994_v43, %v648_v42  ;;  %s667_s16 = smov 3  ;;  %v1000_v53 = vld [vmem:[%s1595_s0 + $0x82] ss:$16 sm:%s690_s5]   ;;  %s751_s8 = smov 192 }
  0x40   :  { %588 = vrot.lane.b32.xlu0 %v587_v41, %s1053_s17  ;;  %v988_v46 = vld [vmem:[%s1595_s0 + $0x3] ss:$16 sm:%s619_s20]   ;;  %v658_v47 = vsel %vm14_vm2, %v995_v44, %v653_v45  ;;  %s1055_s9 = smov 16   ;;  %s718_s17 = smov 12 }
  0x41   :  { %v989_v48 = vld [vmem:[%s1595_s0 + $0x3] ss:$16 sm:%s622_s25]   ;;  %659 = vrot.lane.b32.xlu1 %v658_v47, %s1054_s13  ;;  %s723_s18 = smov 48  ;;  %s728_s23 = smov 192 }
  0x42   :  { %v990_v49 = vld [vmem:[%s1595_s0 + $0x3] ss:$16 sm:%s627_s26]   ;;  %v625_v50 = vsel %vm6_vm0, %v989_v48, %v988_v46  ;;  %v1001_v54 = vld [vmem:[%s1595_s0 + $0x82] ss:$16 sm:%s693_s6]   ;;  %s8_s26 = smov 48  ;;  %s2_s3 = smov 3 }
  0x43   :  { %v991_v51 = vld [vmem:[%s1595_s0 + $0x3] ss:$16 sm:%s632_s2]   ;;  %v630_v52 = vsel %vm10_vm1, %v990_v49, %v625_v50  ;;  %v696_v56 = vsel %vm6_vm0, %v1001_v54, %v1000_v53  ;;  %v1002_v57 = vld [vmem:[%s1595_s0 + $0x82] ss:$16 sm:%s698_s11]   ;;  %s741_s2 = smov 12  ;;  %s4_s4 = smov 12 }
  0x44   :  { %v635_v55 = vsel %vm14_vm2, %v991_v51, %v630_v52  ;;  %v1003_v58 = vld [vmem:[%s1595_s0 + $0x82] ss:$16 sm:%s703_s12]   ;;  %v701_v59 = vsel %vm10_vm1, %v1002_v57, %v696_v56  ;;  %s715_s12 = smov 3  ;;  %v1008_v3 = vld [vmem:[%s1595_s0 + $0x81] ss:$16 sm:%s738_s30]   ;;  %s1056_s5 = smov 8  }
  0x45   :  { %636 = vrot.lane.b32.xlu0 %v635_v55, %s1054_s13  ;;  %v996_v60 = vld [vmem:[%s1595_s0 + $0x2] ss:$16 sm:%s667_s16]   ;;  %v706_v61 = vsel %vm14_vm2, %v1003_v58, %v701_v59  ;;  %s23_s13 = smov 12  ;;  %s28_s14 = smov 48 }
  0x46   :  { %v997_v62 = vld [vmem:[%s1595_s0 + $0x2] ss:$16 sm:%s670_s21]   ;;  %707 = vrot.lane.b32.xlu1 %v706_v61, %s1055_s9  ;;  %s33_s19 = smov 192 }
  0x47   :  { %v998_v63 = vld [vmem:[%s1595_s0 + $0x2] ss:$16 sm:%s675_s22]   ;;  %v673_v0 = vsel %vm6_vm0, %v997_v62, %v996_v60  ;;  %v1009_v4 = vld [vmem:[%s1595_s0 + $0x81] ss:$16 sm:%s741_s2]  }
  0x48   :  { %v999_v1 = vld [vmem:[%s1595_s0 + $0x2] ss:$16 sm:%s680_s27]   ;;  %v678_v2 = vsel %vm10_vm1, %v998_v63, %v673_v0  ;;  %v744_v6 = vsel %vm6_vm0, %v1009_v4, %v1008_v3  ;;  %v1010_v7 = vld [vmem:[%s1595_s0 + $0x81] ss:$16 sm:%s746_s7]   ;;  %s12_s27 = smov 192 }
  0x49   :  { %v683_v5 = vsel %vm14_vm2, %v999_v1, %v678_v2  ;;  %v1011_v8 = vld [vmem:[%s1595_s0 + $0x81] ss:$16 sm:%s751_s8]   ;;  %v749_v9 = vsel %vm10_vm1, %v1010_v7, %v744_v6  ;;  %s20_s8 = smov 3  ;;  %v9_v17 = vld [vmem:[%s1595_s0] ss:$16 sm:%s8_s26]  }
  0x4a   :  { %684 = vrot.lane.b32.xlu0 %v683_v5, %s1055_s9  ;;  %v1004_v10 = vld [vmem:[%s1595_s0 + $0x1] ss:$16 sm:%s715_s12]   ;;  %v754_v11 = vsel %vm14_vm2, %v1011_v8, %v749_v9 }
  0x4b   :  { %v1005_v12 = vld [vmem:[%s1595_s0 + $0x1] ss:$16 sm:%s718_s17]   ;;  %755 = vrot.lane.b32.xlu1 %v754_v11, %s1056_s5 }
  0x4c   :  { %v1006_v13 = vld [vmem:[%s1595_s0 + $0x1] ss:$16 sm:%s723_s18]   ;;  %v721_v14 = vsel %vm6_vm0, %v1005_v12, %v1004_v10  ;;  %v13_v18 = vld [vmem:[%s1595_s0] ss:$16 sm:%s12_s27]  }
  0x4d   :  { %v1007_v15 = vld [vmem:[%s1595_s0 + $0x1] ss:$16 sm:%s728_s23]   ;;  %v726_v16 = vsel %vm10_vm1, %v1006_v13, %v721_v14  ;;  %v3_v20 = vld [vmem:[%s1595_s0] ss:$16 sm:%s2_s3]  }
  0x4e   :  { %v731_v19 = vsel %vm14_vm2, %v1007_v15, %v726_v16  ;;  %v5_v21 = vld [vmem:[%s1595_s0] ss:$16 sm:%s4_s4]  }
  0x4f   :  { %732 = vrot.lane.b32.xlu0 %v731_v19, %s1056_s5  ;;  %v7_v22 = vsel %vm6_vm0, %v5_v21, %v3_v20  ;;  %v888_v23 = vld [vmem:[%s1595_s0 + $0x80] ss:$16 sm:%s20_s8]  }
  0x50   :  { %v11_v24 = vsel %vm10_vm1, %v9_v17, %v7_v22  ;;  %v889_v25 = vld [vmem:[%s1595_s0 + $0x80] ss:$16 sm:%s23_s13]  }
  0x51   :  { %v890_v26 = vld [vmem:[%s1595_s0 + $0x80] ss:$16 sm:%s28_s14]   ;;  %v15_v27 = vsel %vm14_vm2, %v13_v18, %v11_v24  ;;  %v26_v29 = vsel %vm6_vm0, %v889_v25, %v888_v23  ;;  %vm638_vm0 = vcmask 261312  }
  0x52   :  { %v891_v28 = vld [vmem:[%s1595_s0 + $0x80] ss:$16 sm:%s33_s19]   ;;  %17 = vst.msk [vmem:[#allocation0] ss:$8 sm:$0xf] %vm16_vm3, %v15_v27   ;;  %v31_v30 = vsel %vm10_vm1, %v890_v26, %v26_v29  ;;  %vm686_vm1 = vcmask 195712  }
  0x53   :  { %18 = vst.msk [vmem:[#allocation0] ss:$8 sm:$0xf0] %vm16_vm3, %v15_v27   ;;  %v36_v31 = vsel %vm14_vm2, %v891_v28, %v31_v30  ;;  %vm734_vm2 = vcmask 130112  }
  0x54   :  { %39 = vst.msk [vmem:[#allocation0 + $0x40] ss:$8 sm:$0xf] %vm16_vm3, %v36_v31   ;;  %41 = vst.msk [vmem:[#allocation0 + $0x40] ss:$8 sm:$0xf0] %vm16_vm3, %v36_v31  }
  0x78   :  { %v109_v32 = vpop.permute.xlu1 %108  }
  0x7a   :  { %v61_v33 = vpop.permute.xlu0 %60  }
  0x7b   :  { %63 = vst.msk [vmem:[#allocation0] ss:$8 sm:$0xf] %vm62_vm4, %v61_v33   ;;  %64 = vst.msk [vmem:[#allocation0] ss:$8 sm:$0xf0] %vm62_vm4, %v61_v33  }
  0x7c   :  { %111 = vst.msk [vmem:[#allocation0] ss:$8 sm:$0xf] %vm110_vm5, %v109_v32   ;;  %112 = vst.msk [vmem:[#allocation0] ss:$8 sm:$0xf0] %vm110_vm5, %v109_v32  }
  0x7d   :  { %v132_v34 = vpop.permute.xlu1 %131  }
  0x7f   :  { %v84_v35 = vpop.permute.xlu0 %83  }
  0x80   :  { %87 = vst.msk [vmem:[#allocation0 + $0x40] ss:$8 sm:$0xf] %vm62_vm4, %v84_v35   ;;  %89 = vst.msk [vmem:[#allocation0 + $0x40] ss:$8 sm:$0xf0] %vm62_vm4, %v84_v35  }
  0x81   :  { %135 = vst.msk [vmem:[#allocation0 + $0x40] ss:$8 sm:$0xf] %vm110_vm5, %v132_v34   ;;  %137 = vst.msk [vmem:[#allocation0 + $0x40] ss:$8 sm:$0xf0] %vm110_vm5, %v132_v34  }
  0x82   :  { %v180_v36 = vpop.permute.xlu1 %179  }
  0x83   :  { %183 = vst.msk [vmem:[#allocation0 + $0x40] ss:$8 sm:$0xf] %vm158_vm6, %v180_v36   ;;  %185 = vst.msk [vmem:[#allocation0 + $0x40] ss:$8 sm:$0xf0] %vm158_vm6, %v180_v36  }
  0x86   :  { %v157_v37 = vpop.permute.xlu0 %156   ;;  %v228_v38 = vpop.permute.xlu1 %227  }
  0x87   :  { %159 = vst.msk [vmem:[#allocation0] ss:$8 sm:$0xf] %vm158_vm6, %v157_v37   ;;  %160 = vst.msk [vmem:[#allocation0] ss:$8 sm:$0xf0] %vm158_vm6, %v157_v37  }
  0x88   :  { %231 = vst.msk [vmem:[#allocation0 + $0x40] ss:$8 sm:$0xf] %vm206_vm7, %v228_v38   ;;  %233 = vst.msk [vmem:[#allocation0 + $0x40] ss:$8 sm:$0xf0] %vm206_vm7, %v228_v38  }
  0x8a   :  { %v205_v39 = vpop.permute.xlu0 %204  }
  0x8b   :  { %207 = vst.msk [vmem:[#allocation0] ss:$8 sm:$0xf] %vm206_vm7, %v205_v39   ;;  %208 = vst.msk [vmem:[#allocation0] ss:$8 sm:$0xf0] %vm206_vm7, %v205_v39   ;;  %v276_v40 = vpop.permute.xlu1 %275  }
  0x8c   :  { %279 = vst.msk [vmem:[#allocation0 + $0x40] ss:$8 sm:$0xf] %vm254_vm8, %v276_v40   ;;  %281 = vst.msk [vmem:[#allocation0 + $0x40] ss:$8 sm:$0xf0] %vm254_vm8, %v276_v40  }
  0x8f   :  { %v253_v41 = vpop.permute.xlu0 %252  }
  0x90   :  { %255 = vst.msk [vmem:[#allocation0] ss:$8 sm:$0xf] %vm254_vm8, %v253_v41   ;;  %256 = vst.msk [vmem:[#allocation0] ss:$8 sm:$0xf0] %vm254_vm8, %v253_v41   ;;  %v324_v42 = vpop.permute.xlu1 %323  }
  0x91   :  { %327 = vst.msk [vmem:[#allocation0 + $0x40] ss:$8 sm:$0xf] %vm302_vm9, %v324_v42   ;;  %329 = vst.msk [vmem:[#allocation0 + $0x40] ss:$8 sm:$0xf0] %vm302_vm9, %v324_v42  }
  0x94   :  { %v301_v43 = vpop.permute.xlu0 %300  }
  0x95   :  { %303 = vst.msk [vmem:[#allocation0] ss:$8 sm:$0xf] %vm302_vm9, %v301_v43   ;;  %304 = vst.msk [vmem:[#allocation0] ss:$8 sm:$0xf0] %vm302_vm9, %v301_v43   ;;  %v372_v44 = vpop.permute.xlu1 %371  }
  0x96   :  { %375 = vst.msk [vmem:[#allocation0 + $0x40] ss:$8 sm:$0xf] %vm350_vm10, %v372_v44   ;;  %377 = vst.msk [vmem:[#allocation0 + $0x40] ss:$8 sm:$0xf0] %vm350_vm10, %v372_v44  }
  0x99   :  { %v349_v45 = vpop.permute.xlu0 %348  }
  0x9a   :  { %351 = vst.msk [vmem:[#allocation0] ss:$8 sm:$0xf] %vm350_vm10, %v349_v45   ;;  %352 = vst.msk [vmem:[#allocation0] ss:$8 sm:$0xf0] %vm350_vm10, %v349_v45   ;;  %v420_v46 = vpop.permute.xlu1 %419  }
  0x9b   :  { %423 = vst.msk [vmem:[#allocation0 + $0x40] ss:$8 sm:$0xf] %vm398_vm11, %v420_v46   ;;  %425 = vst.msk [vmem:[#allocation0 + $0x40] ss:$8 sm:$0xf0] %vm398_vm11, %v420_v46  }
  0x9e   :  { %v397_v47 = vpop.permute.xlu0 %396  }
  0x9f   :  { %399 = vst.msk [vmem:[#allocation0] ss:$8 sm:$0xf] %vm398_vm11, %v397_v47   ;;  %400 = vst.msk [vmem:[#allocation0] ss:$8 sm:$0xf0] %vm398_vm11, %v397_v47   ;;  %v468_v48 = vpop.permute.xlu1 %467  }
  0xa0   :  { %471 = vst.msk [vmem:[#allocation0 + $0x40] ss:$8 sm:$0xf] %vm446_vm12, %v468_v48   ;;  %473 = vst.msk [vmem:[#allocation0 + $0x40] ss:$8 sm:$0xf0] %vm446_vm12, %v468_v48  }
  0xa3   :  { %v445_v49 = vpop.permute.xlu0 %444  }
  0xa4   :  { %447 = vst.msk [vmem:[#allocation0] ss:$8 sm:$0xf] %vm446_vm12, %v445_v49   ;;  %448 = vst.msk [vmem:[#allocation0] ss:$8 sm:$0xf0] %vm446_vm12, %v445_v49   ;;  %v516_v50 = vpop.permute.xlu1 %515  }
  0xa5   :  { %519 = vst.msk [vmem:[#allocation0 + $0x40] ss:$8 sm:$0xf] %vm494_vm13, %v516_v50   ;;  %521 = vst.msk [vmem:[#allocation0 + $0x40] ss:$8 sm:$0xf0] %vm494_vm13, %v516_v50  }
  0xa8   :  { %v493_v51 = vpop.permute.xlu0 %492  }
  0xa9   :  { %495 = vst.msk [vmem:[#allocation0] ss:$8 sm:$0xf] %vm494_vm13, %v493_v51   ;;  %496 = vst.msk [vmem:[#allocation0] ss:$8 sm:$0xf0] %vm494_vm13, %v493_v51   ;;  %v564_v52 = vpop.permute.xlu1 %563  }
  0xaa   :  { %567 = vst.msk [vmem:[#allocation0 + $0x40] ss:$8 sm:$0xf] %vm542_vm14, %v564_v52   ;;  %569 = vst.msk [vmem:[#allocation0 + $0x40] ss:$8 sm:$0xf0] %vm542_vm14, %v564_v52  }
  0xad   :  { %v541_v53 = vpop.permute.xlu0 %540  }
  0xae   :  { %543 = vst.msk [vmem:[#allocation0] ss:$8 sm:$0xf] %vm542_vm14, %v541_v53   ;;  %544 = vst.msk [vmem:[#allocation0] ss:$8 sm:$0xf0] %vm542_vm14, %v541_v53   ;;  %v612_v54 = vpop.permute.xlu1 %611  }
  0xaf   :  { %615 = vst.msk [vmem:[#allocation0 + $0x40] ss:$8 sm:$0xf] %vm590_vm15, %v612_v54   ;;  %617 = vst.msk [vmem:[#allocation0 + $0x40] ss:$8 sm:$0xf0] %vm590_vm15, %v612_v54  }
  0xb2   :  { %v589_v55 = vpop.permute.xlu0 %588  }
  0xb3   :  { %591 = vst.msk [vmem:[#allocation0] ss:$8 sm:$0xf] %vm590_vm15, %v589_v55   ;;  %592 = vst.msk [vmem:[#allocation0] ss:$8 sm:$0xf0] %vm590_vm15, %v589_v55   ;;  %v660_v56 = vpop.permute.xlu1 %659  }
  0xb4   :  { %663 = vst.msk [vmem:[#allocation0 + $0x40] ss:$8 sm:$0xf] %vm638_vm0, %v660_v56   ;;  %665 = vst.msk [vmem:[#allocation0 + $0x40] ss:$8 sm:$0xf0] %vm638_vm0, %v660_v56  }
  0xb7   :  { %v637_v57 = vpop.permute.xlu0 %636  }
  0xb8   :  { %639 = vst.msk [vmem:[#allocation0] ss:$8 sm:$0xf] %vm638_vm0, %v637_v57   ;;  %640 = vst.msk [vmem:[#allocation0] ss:$8 sm:$0xf0] %vm638_vm0, %v637_v57   ;;  %v708_v58 = vpop.permute.xlu1 %707  }
  0xb9   :  { %711 = vst.msk [vmem:[#allocation0 + $0x40] ss:$8 sm:$0xf] %vm686_vm1, %v708_v58   ;;  %713 = vst.msk [vmem:[#allocation0 + $0x40] ss:$8 sm:$0xf0] %vm686_vm1, %v708_v58  }
  0xbc   :  { %v685_v59 = vpop.permute.xlu0 %684  }
  0xbd   :  { %687 = vst.msk [vmem:[#allocation0] ss:$8 sm:$0xf] %vm686_vm1, %v685_v59   ;;  %688 = vst.msk [vmem:[#allocation0] ss:$8 sm:$0xf0] %vm686_vm1, %v685_v59   ;;  %v756_v60 = vpop.permute.xlu1 %755  }
  0xbe   :  { %759 = vst.msk [vmem:[#allocation0 + $0x40] ss:$8 sm:$0xf] %vm734_vm2, %v756_v60   ;;  %761 = vst.msk [vmem:[#allocation0 + $0x40] ss:$8 sm:$0xf0] %vm734_vm2, %v756_v60  }
  0xc1   :  { %v733_v61 = vpop.permute.xlu0 %732  }
  0xc2   :  { %735 = vst.msk [vmem:[#allocation0] ss:$8 sm:$0xf] %vm734_vm2, %v733_v61   ;;  %736 = vst.msk [vmem:[#allocation0] ss:$8 sm:$0xf0] %vm734_vm2, %v733_v61  }
  0xc5   :  { %v819_v62 = vld [vmem:[#allocation0 + $0x40] sm:$0x1]  ;;  %v826_v63 = vld [vmem:[#allocation0 + $0x48] sm:$0x1]  ;;  %v833_v0 = vld [vmem:[#allocation0 + $0x50] sm:$0x1] }
  0xc6   :  { %1019 = vst [vmem:[%s1596_s1 + $0x8] sm:$0x1] %v819_v62  ;;  %1020 = vst [vmem:[%s1596_s1 + $0x9] sm:$0x1] %v826_v63  ;;  %v840_v1 = vld [vmem:[#allocation0 + $0x58] sm:$0x1] }
  0xc7   :  { %1021 = vst [vmem:[%s1596_s1 + $0xa] sm:$0x1] %v833_v0  ;;  %v847_v2 = vld [vmem:[#allocation0 + $0x60] sm:$0x1]  ;;  %v854_v3 = vld [vmem:[#allocation0 + $0x68] sm:$0x1] }
  0xc8   :  { %1022 = vst [vmem:[%s1596_s1 + $0xb] sm:$0x1] %v840_v1  ;;  %1023 = vst [vmem:[%s1596_s1 + $0xc] sm:$0x1] %v847_v2  ;;  %v861_v4 = vld [vmem:[#allocation0 + $0x70] sm:$0x1] }
  0xc9   :  { %1024 = vst [vmem:[%s1596_s1 + $0xd] sm:$0x1] %v854_v3  ;;  %v868_v5 = vld [vmem:[#allocation0 + $0x78] sm:$0x1]  ;;  %1025 = vst [vmem:[%s1596_s1 + $0xe] sm:$0x1] %v861_v4 }
  0xca   :  { %1026 = vst [vmem:[%s1596_s1 + $0xf] sm:$0x1] %v868_v5  ;;  %v766_v6 = vld [vmem:[#allocation0] sm:$0x1]  ;;  %v771_v7 = vld [vmem:[#allocation0 + $0x8] sm:$0x1] }
  0xcb   :  { %v777_v8 = vld [vmem:[#allocation0 + $0x10] sm:$0x1]  ;;  %769 = vst [vmem:[%s1596_s1] sm:$0x1] %v766_v6  ;;  %1012 = vst [vmem:[%s1596_s1 + $0x1] sm:$0x1] %v771_v7 }
  0xcc   :  { %1013 = vst [vmem:[%s1596_s1 + $0x2] sm:$0x1] %v777_v8  ;;  %v784_v9 = vld [vmem:[#allocation0 + $0x18] sm:$0x1]  ;;  %v791_v10 = vld [vmem:[#allocation0 + $0x20] sm:$0x1] }
  0xcd   :  { %v798_v11 = vld [vmem:[#allocation0 + $0x28] sm:$0x1]  ;;  %1014 = vst [vmem:[%s1596_s1 + $0x3] sm:$0x1] %v784_v9  ;;  %1015 = vst [vmem:[%s1596_s1 + $0x4] sm:$0x1] %v791_v10 }
  0xce   :  { %1016 = vst [vmem:[%s1596_s1 + $0x5] sm:$0x1] %v798_v11  ;;  %v805_v12 = vld [vmem:[#allocation0 + $0x30] sm:$0x1]  ;;  %v812_v13 = vld [vmem:[#allocation0 + $0x38] sm:$0x1] }
  0xcf   :  { %1017 = vst [vmem:[%s1596_s1 + $0x6] sm:$0x1] %v805_v12  ;;  %1018 = vst [vmem:[%s1596_s1 + $0x7] sm:$0x1] %v812_v13 }

// kernel: oracle_forward.1
= control target key start
LH: loop header
LB: loop body
LE: loop exit
PB: predicated region body
PF: predicated region fallthrough
CT: control target
= control target key end

     0   :  { %s14226_s1 = inlined_call_operand.vmem [shape: bf16[1024,2048], index: 1, kind: input, shape index: {}]   ;;  %s14227_s0 = inlined_call_operand.vmem [shape: bf16[8,1024], index: 0, kind: input, shape index: {}]   ;;  %s14228_s2 = inlined_call_operand.vmem [shape: f32[1,2048], index: 2, kind: input, shape index: {}]   ;;  %s14229_s3 = inlined_call_operand.vmem [shape: bf16[2048,128], index: 3, kind: input, shape index: {}]   ;;  %s14230_s4 = inlined_call_operand.vmem [shape: f32[1,128], index: 4, kind: input, shape index: {}]   ;;  %s14231_s5 = inlined_call_operand.vmem [shape: f32[8,128], index: 5, kind: output, shape index: {}]  }
   0x1   :  { %v137_v0 = vld [vmem:[%s14226_s1 + $0x380] sm:$0xff]  ;;  %v10578_v54 = vld [vmem:[%s14227_s0 + $0x8] sm:$0xff] }
   0x2   :  { %v145_v1 = vld [vmem:[%s14226_s1 + $0x3c0] sm:$0xff]  ;;  %v10592_v59 = vcombine.high %v10578_v54, %v10578_v54 }
   0x3   :  { %v393_v2 = vld [vmem:[%s14226_s1 + $0xb80] sm:$0xff]  ;;  %v9102_v3 = vcombine.high %v137_v0, %v145_v1  ;;  %v9101_v5 = vcombine.low %v137_v0, %v145_v1 }
   0x4   :  { %v401_v4 = vld [vmem:[%s14226_s1 + $0xbc0] sm:$0xff]  ;;  %6354 = vmatprep.mubr.bf16.mxu1 %v10592_v59 }
   0x5   :  { %v121_v6 = vld [vmem:[%s14226_s1 + $0x300] sm:$0xff]  ;;  %v9358_v8 = vcombine.high %v393_v2, %v401_v4  ;;  %v9357_v9 = vcombine.low %v393_v2, %v401_v4  ;;  %6281 = vmatprep.subr.bf16.mxu0 %v9102_v3 }
   0x6   :  { %v129_v7 = vld [vmem:[%s14226_s1 + $0x340] sm:$0xff]  ;;  %6282 = vmatpush1.bf16.msra.mxu0 %v9101_v5 }
   0x7   :  { %v9086_v10 = vcombine.high %v121_v6, %v129_v7  ;;  %v377_v11 = vld [vmem:[%s14226_s1 + $0xb00] sm:$0xff]  ;;  %6322 = vmatprep.subr.bf16.mxu1 %v9358_v8  ;;  %v9085_v18 = vcombine.low %v121_v6, %v129_v7 }
   0x8   :  { %v385_v12 = vld [vmem:[%s14226_s1 + $0xb40] sm:$0xff]  ;;  %6323 = vmatpush1.bf16.msra.mxu1 %v9357_v9 }
   0x9   :  { %v105_v13 = vld [vmem:[%s14226_s1 + $0x280] sm:$0xff]  ;;  %v9342_v14 = vcombine.high %v377_v11, %v385_v12  ;;  %6283 = vmatprep.subr.bf16.mxu0 %v9086_v10  ;;  %v9341_v19 = vcombine.low %v377_v11, %v385_v12 }
   0xa   :  { %v113_v15 = vld [vmem:[%s14226_s1 + $0x2c0] sm:$0xff]  ;;  %6284 = vmatpush1.bf16.msra.mxu0 %v9085_v18 }
   0xb   :  { %v361_v16 = vld [vmem:[%s14226_s1 + $0xa80] sm:$0xff]  ;;  %v9070_v20 = vcombine.high %v105_v13, %v113_v15  ;;  %6324 = vmatprep.subr.bf16.mxu1 %v9342_v14  ;;  %v9069_v26 = vcombine.low %v105_v13, %v113_v15 }
   0xc   :  { %v369_v17 = vld [vmem:[%s14226_s1 + $0xac0] sm:$0xff]  ;;  %6325 = vmatpush1.bf16.msra.mxu1 %v9341_v19 }
   0xd   :  { %v9326_v21 = vcombine.high %v361_v16, %v369_v17  ;;  %v89_v22 = vld [vmem:[%s14226_s1 + $0x200] sm:$0xff]  ;;  %6285 = vmatprep.subr.bf16.mxu0 %v9070_v20  ;;  %v9325_v27 = vcombine.low %v361_v16, %v369_v17 }
   0xe   :  { %v97_v23 = vld [vmem:[%s14226_s1 + $0x240] sm:$0xff]  ;;  %6286 = vmatpush1.bf16.msra.mxu0 %v9069_v26 }
   0xf   :  { %v345_v24 = vld [vmem:[%s14226_s1 + $0xa00] sm:$0xff]  ;;  %v9054_v28 = vcombine.high %v89_v22, %v97_v23  ;;  %6326 = vmatprep.subr.bf16.mxu1 %v9326_v21  ;;  %v9053_v34 = vcombine.low %v89_v22, %v97_v23 }
  0x10   :  { %v353_v25 = vld [vmem:[%s14226_s1 + $0xa40] sm:$0xff]  ;;  %6327 = vmatpush1.bf16.msra.mxu1 %v9325_v27 }
  0x11   :  { %v9310_v29 = vcombine.high %v345_v24, %v353_v25  ;;  %v73_v30 = vld [vmem:[%s14226_s1 + $0x180] sm:$0xff]  ;;  %6287 = vmatprep.subr.bf16.mxu0 %v9054_v28  ;;  %v9309_v35 = vcombine.low %v345_v24, %v353_v25 }
  0x12   :  { %v81_v31 = vld [vmem:[%s14226_s1 + $0x1c0] sm:$0xff]  ;;  %6288 = vmatpush1.bf16.msra.mxu0 %v9053_v34 }
  0x13   :  { %v329_v32 = vld [vmem:[%s14226_s1 + $0x980] sm:$0xff]  ;;  %v9038_v36 = vcombine.high %v73_v30, %v81_v31  ;;  %6328 = vmatprep.subr.bf16.mxu1 %v9310_v29  ;;  %v9037_v42 = vcombine.low %v73_v30, %v81_v31 }
  0x14   :  { %v337_v33 = vld [vmem:[%s14226_s1 + $0x9c0] sm:$0xff]  ;;  %6329 = vmatpush1.bf16.msra.mxu1 %v9309_v35 }
  0x15   :  { %v9294_v37 = vcombine.high %v329_v32, %v337_v33  ;;  %v57_v38 = vld [vmem:[%s14226_s1 + $0x100] sm:$0xff]  ;;  %6289 = vmatprep.subr.bf16.mxu0 %v9038_v36  ;;  %v9293_v43 = vcombine.low %v329_v32, %v337_v33 }
  0x16   :  { %v65_v39 = vld [vmem:[%s14226_s1 + $0x140] sm:$0xff]  ;;  %6290 = vmatpush1.bf16.msra.mxu0 %v9037_v42 }
  0x17   :  { %v313_v40 = vld [vmem:[%s14226_s1 + $0x900] sm:$0xff]  ;;  %v9022_v44 = vcombine.high %v57_v38, %v65_v39  ;;  %6330 = vmatprep.subr.bf16.mxu1 %v9294_v37  ;;  %v9021_v50 = vcombine.low %v57_v38, %v65_v39 }
  0x18   :  { %v321_v41 = vld [vmem:[%s14226_s1 + $0x940] sm:$0xff]  ;;  %6331 = vmatpush1.bf16.msra.mxu1 %v9293_v43 }
  0x19   :  { %v9278_v45 = vcombine.high %v313_v40, %v321_v41  ;;  %v41_v46 = vld [vmem:[%s14226_s1 + $0x80] sm:$0xff]  ;;  %6291 = vmatprep.subr.bf16.mxu0 %v9022_v44  ;;  %v9277_v51 = vcombine.low %v313_v40, %v321_v41 }
  0x1a   :  { %v49_v47 = vld [vmem:[%s14226_s1 + $0xc0] sm:$0xff]  ;;  %6292 = vmatpush1.bf16.msra.mxu0 %v9021_v50 }
  0x1b   :  { %v297_v48 = vld [vmem:[%s14226_s1 + $0x880] sm:$0xff]  ;;  %v9006_v52 = vcombine.high %v41_v46, %v49_v47  ;;  %6332 = vmatprep.subr.bf16.mxu1 %v9278_v45  ;;  %v9005_v62 = vcombine.low %v41_v46, %v49_v47 }
  0x1c   :  { %v305_v49 = vld [vmem:[%s14226_s1 + $0x8c0] sm:$0xff]  ;;  %6333 = vmatpush1.bf16.msra.mxu1 %v9277_v51 }
  0x1d   :  { %v10573_v53 = vld [vmem:[%s14227_s0] sm:$0xff]  ;;  %v9262_v55 = vcombine.high %v297_v48, %v305_v49  ;;  %6293 = vmatprep.subr.bf16.mxu0 %v9006_v52  ;;  %v9261_v63 = vcombine.low %v297_v48, %v305_v49 }
  0x1e   :  { %v25_v56 = vld [vmem:[%s14226_s1] sm:$0xff]  ;;  %v10588_v58 = vcombine.high %v10573_v53, %v10573_v53  ;;  %6294 = vmatpush1.bf16.msra.mxu0 %v9005_v62 }
  0x1f   :  { %v33_v57 = vld [vmem:[%s14226_s1 + $0x40] sm:$0xff]  ;;  %6334 = vmatprep.subr.bf16.mxu1 %v9262_v55 }
  0x20   :  { %v281_v60 = vld [vmem:[%s14226_s1 + $0x800] sm:$0xff]  ;;  %6313 = vmatprep.mubr.bf16.mxu0 %v10588_v58  ;;  %v8990_v0 = vcombine.high %v25_v56, %v33_v57  ;;  %v8989_v6 = vcombine.low %v25_v56, %v33_v57  ;;  %6335 = vmatpush1.bf16.msra.mxu1 %v9261_v63 }
  0x21   :  { %v289_v61 = vld [vmem:[%s14226_s1 + $0x840] sm:$0xff] }
  0x22   :  { %v9246_v1 = vcombine.high %v281_v60, %v289_v61  ;;  %v265_v2 = vld [vmem:[%s14226_s1 + $0x780] sm:$0xff]  ;;  %6295 = vmatprep.subr.bf16.mxu0 %v8990_v0  ;;  %v9245_v7 = vcombine.low %v281_v60, %v289_v61 }
  0x23   :  { %v273_v3 = vld [vmem:[%s14226_s1 + $0x7c0] sm:$0xff]  ;;  %6296 = vmatpush1.bf16.msra.mxu0 %v8989_v6 }
  0x24   :  { %v521_v4 = vld [vmem:[%s14226_s1 + $0xf80] sm:$0xff]  ;;  %v9230_v8 = vcombine.high %v265_v2, %v273_v3  ;;  %6336 = vmatprep.subr.bf16.mxu1 %v9246_v1  ;;  %v9229_v14 = vcombine.low %v265_v2, %v273_v3 }
  0x25   :  { %v529_v5 = vld [vmem:[%s14226_s1 + $0xfc0] sm:$0xff]  ;;  %6337 = vmatpush1.bf16.msra.mxu1 %v9245_v7 }
  0x26   :  { %v9486_v9 = vcombine.high %v521_v4, %v529_v5  ;;  %v249_v10 = vld [vmem:[%s14226_s1 + $0x700] sm:$0xff]  ;;  %6297 = vmatprep.subr.bf16.mxu0 %v9230_v8  ;;  %v9485_v15 = vcombine.low %v521_v4, %v529_v5 }
  0x27   :  { %v257_v11 = vld [vmem:[%s14226_s1 + $0x740] sm:$0xff]  ;;  %6298 = vmatpush2.bf16.msra.mxu0 %v9229_v14 }
  0x28   :  { %v505_v12 = vld [vmem:[%s14226_s1 + $0xf00] sm:$0xff]  ;;  %v9214_v16 = vcombine.high %v249_v10, %v257_v11  ;;  %6338 = vmatprep.subr.bf16.mxu1 %v9486_v9  ;;  %v9213_v22 = vcombine.low %v249_v10, %v257_v11 }
  0x29   :  { %v513_v13 = vld [vmem:[%s14226_s1 + $0xf40] sm:$0xff]  ;;  %6339 = vmatpush2.bf16.msra.mxu1 %v9485_v15 }
  0x2a   :  { %v9470_v17 = vcombine.high %v505_v12, %v513_v13  ;;  %v233_v18 = vld [vmem:[%s14226_s1 + $0x680] sm:$0xff]  ;;  %6299 = vmatprep.subr.bf16.mxu0 %v9214_v16  ;;  %v9469_v23 = vcombine.low %v505_v12, %v513_v13  ;;  %v10718_v16 = vcombine.low %v10573_v53, %v10573_v53 }
  0x2b   :  { %v241_v19 = vld [vmem:[%s14226_s1 + $0x6c0] sm:$0xff]  ;;  %6300 = vmatpush2.bf16.msra.mxu0 %v9213_v22 }
  0x2c   :  { %v489_v20 = vld [vmem:[%s14226_s1 + $0xe80] sm:$0xff]  ;;  %v9198_v24 = vcombine.high %v233_v18, %v241_v19  ;;  %6340 = vmatprep.subr.bf16.mxu1 %v9470_v17  ;;  %v9197_v30 = vcombine.low %v233_v18, %v241_v19  ;;  %v10729_v19 = vld [vmem:[%s14227_s0 + $0x10] sm:$0xff] }
  0x2d   :  { %v497_v21 = vld [vmem:[%s14226_s1 + $0xec0] sm:$0xff]  ;;  %6341 = vmatpush2.bf16.msra.mxu1 %v9469_v23 }
  0x2e   :  { %v9454_v25 = vcombine.high %v489_v20, %v497_v21  ;;  %v217_v26 = vld [vmem:[%s14226_s1 + $0x600] sm:$0xff]  ;;  %6301 = vmatprep.subr.bf16.mxu0 %v9198_v24  ;;  %v9453_v31 = vcombine.low %v489_v20, %v497_v21  ;;  %v10733_v20 = vcombine.low %v10578_v54, %v10578_v54  ;;  %v10738_v21 = vld [vmem:[%s14227_s0 + $0x18] sm:$0xff] }
  0x2f   :  { %v225_v27 = vld [vmem:[%s14226_s1 + $0x640] sm:$0xff]  ;;  %6302 = vmatpush2.bf16.msra.mxu0 %v9197_v30 }
  0x30   :  { %v473_v28 = vld [vmem:[%s14226_s1 + $0xe00] sm:$0xff]  ;;  %v9182_v32 = vcombine.high %v217_v26, %v225_v27  ;;  %6342 = vmatprep.subr.bf16.mxu1 %v9454_v25  ;;  %v9181_v38 = vcombine.low %v217_v26, %v225_v27  ;;  %v10748_v26 = vcombine.high %v10729_v19, %v10729_v19 }
  0x31   :  { %v481_v29 = vld [vmem:[%s14226_s1 + $0xe40] sm:$0xff]  ;;  %6343 = vmatpush2.bf16.msra.mxu1 %v9453_v31 }
  0x32   :  { %v9438_v33 = vcombine.high %v473_v28, %v481_v29  ;;  %v201_v34 = vld [vmem:[%s14226_s1 + $0x580] sm:$0xff]  ;;  %6303 = vmatprep.subr.bf16.mxu0 %v9182_v32  ;;  %v9437_v39 = vcombine.low %v473_v28, %v481_v29  ;;  %v10759_v29 = vcombine.high %v10738_v21, %v10738_v21 }
  0x33   :  { %v209_v35 = vld [vmem:[%s14226_s1 + $0x5c0] sm:$0xff]  ;;  %6304 = vmatpush2.bf16.msra.mxu0 %v9181_v38 }
  0x34   :  { %v457_v36 = vld [vmem:[%s14226_s1 + $0xd80] sm:$0xff]  ;;  %v9166_v40 = vcombine.high %v201_v34, %v209_v35  ;;  %6344 = vmatprep.subr.bf16.mxu1 %v9438_v33  ;;  %v9165_v46 = vcombine.low %v201_v34, %v209_v35 }
  0x35   :  { %v465_v37 = vld [vmem:[%s14226_s1 + $0xdc0] sm:$0xff]  ;;  %6345 = vmatpush2.bf16.msra.mxu1 %v9437_v39 }
  0x36   :  { %v9422_v41 = vcombine.high %v457_v36, %v465_v37  ;;  %v185_v42 = vld [vmem:[%s14226_s1 + $0x500] sm:$0xff]  ;;  %6305 = vmatprep.subr.bf16.mxu0 %v9166_v40  ;;  %v9421_v47 = vcombine.low %v457_v36, %v465_v37 }
  0x37   :  { %v193_v43 = vld [vmem:[%s14226_s1 + $0x540] sm:$0xff]  ;;  %6306 = vmatpush2.bf16.msra.mxu0 %v9165_v46 }
  0x38   :  { %v441_v44 = vld [vmem:[%s14226_s1 + $0xd00] sm:$0xff]  ;;  %v9150_v48 = vcombine.high %v185_v42, %v193_v43  ;;  %6346 = vmatprep.subr.bf16.mxu1 %v9422_v41  ;;  %v9149_v56 = vcombine.low %v185_v42, %v193_v43 }
  0x39   :  { %v449_v45 = vld [vmem:[%s14226_s1 + $0xd40] sm:$0xff]  ;;  %6347 = vmatpush2.bf16.msra.mxu1 %v9421_v47 }
  0x3a   :  { %v9406_v49 = vcombine.high %v441_v44, %v449_v45  ;;  %v169_v50 = vld [vmem:[%s14226_s1 + $0x480] sm:$0xff]  ;;  %6307 = vmatprep.subr.bf16.mxu0 %v9150_v48  ;;  %v9405_v57 = vcombine.low %v441_v44, %v449_v45 }
  0x3b   :  { %v177_v51 = vld [vmem:[%s14226_s1 + $0x4c0] sm:$0xff]  ;;  %6308 = vmatpush2.bf16.msra.mxu0 %v9149_v56 }
  0x3c   :  { %v425_v52 = vld [vmem:[%s14226_s1 + $0xc80] sm:$0xff]  ;;  %v9134_v60 = vcombine.high %v169_v50, %v177_v51  ;;  %6348 = vmatprep.subr.bf16.mxu1 %v9406_v49  ;;  %v9133_v2 = vcombine.low %v169_v50, %v177_v51 }
  0x3d   :  { %v433_v55 = vld [vmem:[%s14226_s1 + $0xcc0] sm:$0xff]  ;;  %6349 = vmatpush2.bf16.msra.mxu1 %v9405_v57 }
  0x3e   :  { %v9390_v61 = vcombine.high %v425_v52, %v433_v55  ;;  %v153_v62 = vld [vmem:[%s14226_s1 + $0x400] sm:$0xff]  ;;  %6309 = vmatprep.subr.bf16.mxu0 %v9134_v60  ;;  %v9389_v3 = vcombine.low %v425_v52, %v433_v55 }
  0x3f   :  { %v161_v63 = vld [vmem:[%s14226_s1 + $0x440] sm:$0xff]  ;;  %6310 = vmatpush2.bf16.msra.mxu0 %v9133_v2 }
  0x40   :  { %v409_v0 = vld [vmem:[%s14226_s1 + $0xc00] sm:$0xff]  ;;  %v9118_v4 = vcombine.high %v153_v62, %v161_v63  ;;  %6350 = vmatprep.subr.bf16.mxu1 %v9390_v61  ;;  %v9117_v10 = vcombine.low %v153_v62, %v161_v63 }
  0x41   :  { %v417_v1 = vld [vmem:[%s14226_s1 + $0xc40] sm:$0xff]  ;;  %6351 = vmatpush2.bf16.msra.mxu1 %v9389_v3 }
  0x42   :  { %v9374_v5 = vcombine.high %v409_v0, %v417_v1  ;;  %v649_v6 = vld [vmem:[%s14226_s1 + $0x1380] sm:$0xff]  ;;  %6311 = vmatprep.subr.bf16.mxu0 %v9118_v4  ;;  %v9373_v11 = vcombine.low %v409_v0, %v417_v1 }
  0x43   :  { %v657_v7 = vld [vmem:[%s14226_s1 + $0x13c0] sm:$0xff]  ;;  %6312 = vmatpush2.bf16.msra.mxu0 %v9117_v10 }
  0x44   :  { %v905_v8 = vld [vmem:[%s14226_s1 + $0x1b80] sm:$0xff]  ;;  %v9614_v12 = vcombine.high %v649_v6, %v657_v7  ;;  %6352 = vmatprep.subr.bf16.mxu1 %v9374_v5  ;;  %v9613_v53 = vcombine.low %v649_v6, %v657_v7 }
  0x45   :  { %v913_v9 = vld [vmem:[%s14226_s1 + $0x1bc0] sm:$0xff]  ;;  %6353 = vmatpush2.bf16.msra.mxu1 %v9373_v11 }
  0x46   :  { %v9870_v13 = vcombine.high %v905_v8, %v913_v9  ;;  %v633_v14 = vld [vmem:[%s14226_s1 + $0x1300] sm:$0xff]  ;;  %6363 = vmatprep.subr.bf16.mxu0 %v9614_v12  ;;  %v9869_v22 = vcombine.low %v905_v8, %v913_v9  ;;  %6314 = vmatmul.mubr.bf16.vlgmr.msra.gmra.mxu0 %v10718_v16 }
  0x47   :  { %v641_v15 = vld [vmem:[%s14226_s1 + $0x1340] sm:$0xff]  ;;  %6364 = vmatpush1.bf16.msra.mxu0 %v9613_v53  ;;  %6395 = vmatprep.mubr.bf16.mxu0 %v10748_v26 }
  0x48   :  { %v889_v17 = vld [vmem:[%s14226_s1 + $0x1b00] sm:$0xff]  ;;  %v9598_v23 = vcombine.high %v633_v14, %v641_v15  ;;  %6404 = vmatprep.subr.bf16.mxu1 %v9870_v13  ;;  %6355 = vmatmul.mubr.bf16.vlgmr.msra.gmra.mxu1 %v10733_v20  ;;  %v9597_v30 = vcombine.low %v633_v14, %v641_v15 }
  0x49   :  { %v897_v18 = vld [vmem:[%s14226_s1 + $0x1b40] sm:$0xff]  ;;  %6405 = vmatpush1.bf16.msra.mxu1 %v9869_v22  ;;  %6436 = vmatprep.mubr.bf16.mxu1 %v10759_v29 }
  0x4a   :  { %v9854_v24 = vcombine.high %v889_v17, %v897_v18  ;;  %v617_v25 = vld [vmem:[%s14226_s1 + $0x1280] sm:$0xff]  ;;  %6365 = vmatprep.subr.bf16.mxu0 %v9598_v23  ;;  %v9853_v31 = vcombine.low %v889_v17, %v897_v18 }
  0x4b   :  { %v625_v54 = vld [vmem:[%s14226_s1 + $0x12c0] sm:$0xff]  ;;  %6366 = vmatpush1.bf16.msra.mxu0 %v9597_v30 }
  0x4c   :  { %v873_v27 = vld [vmem:[%s14226_s1 + $0x1a80] sm:$0xff]  ;;  %v9582_v32 = vcombine.high %v617_v25, %v625_v54  ;;  %6406 = vmatprep.subr.bf16.mxu1 %v9854_v24  ;;  %v9581_v38 = vcombine.low %v617_v25, %v625_v54 }
  0x4d   :  { %v881_v28 = vld [vmem:[%s14226_s1 + $0x1ac0] sm:$0xff]  ;;  %6407 = vmatpush1.bf16.msra.mxu1 %v9853_v31 }
  0x4e   :  { %v9838_v33 = vcombine.high %v873_v27, %v881_v28  ;;  %v601_v34 = vld [vmem:[%s14226_s1 + $0x1200] sm:$0xff]  ;;  %6367 = vmatprep.subr.bf16.mxu0 %v9582_v32  ;;  %v9837_v39 = vcombine.low %v873_v27, %v881_v28 }
  0x4f   :  { %v609_v35 = vld [vmem:[%s14226_s1 + $0x1240] sm:$0xff]  ;;  %6368 = vmatpush1.bf16.msra.mxu0 %v9581_v38 }
  0x50   :  { %v857_v36 = vld [vmem:[%s14226_s1 + $0x1a00] sm:$0xff]  ;;  %v9566_v40 = vcombine.high %v601_v34, %v609_v35  ;;  %6408 = vmatprep.subr.bf16.mxu1 %v9838_v33  ;;  %v9565_v46 = vcombine.low %v601_v34, %v609_v35 }
  0x51   :  { %v865_v37 = vld [vmem:[%s14226_s1 + $0x1a40] sm:$0xff]  ;;  %6409 = vmatpush1.bf16.msra.mxu1 %v9837_v39 }
  0x52   :  { %v9822_v41 = vcombine.high %v857_v36, %v865_v37  ;;  %v585_v42 = vld [vmem:[%s14226_s1 + $0x1180] sm:$0xff]  ;;  %6369 = vmatprep.subr.bf16.mxu0 %v9566_v40  ;;  %v9821_v47 = vcombine.low %v857_v36, %v865_v37 }
  0x53   :  { %v593_v43 = vld [vmem:[%s14226_s1 + $0x11c0] sm:$0xff]  ;;  %6370 = vmatpush1.bf16.msra.mxu0 %v9565_v46 }
  0x54   :  { %v841_v44 = vld [vmem:[%s14226_s1 + $0x1980] sm:$0xff]  ;;  %v9550_v48 = vcombine.high %v585_v42, %v593_v43  ;;  %6410 = vmatprep.subr.bf16.mxu1 %v9822_v41  ;;  %v9549_v56 = vcombine.low %v585_v42, %v593_v43 }
  0x55   :  { %v849_v45 = vld [vmem:[%s14226_s1 + $0x19c0] sm:$0xff]  ;;  %6411 = vmatpush1.bf16.msra.mxu1 %v9821_v47 }
  0x56   :  { %v9806_v49 = vcombine.high %v841_v44, %v849_v45  ;;  %v569_v50 = vld [vmem:[%s14226_s1 + $0x1100] sm:$0xff]  ;;  %6371 = vmatprep.subr.bf16.mxu0 %v9550_v48  ;;  %v9805_v57 = vcombine.low %v841_v44, %v849_v45 }
  0x57   :  { %v577_v51 = vld [vmem:[%s14226_s1 + $0x1140] sm:$0xff]  ;;  %6372 = vmatpush1.bf16.msra.mxu0 %v9549_v56 }
  0x58   :  { %v825_v52 = vld [vmem:[%s14226_s1 + $0x1900] sm:$0xff]  ;;  %v9534_v60 = vcombine.high %v569_v50, %v577_v51  ;;  %6412 = vmatprep.subr.bf16.mxu1 %v9806_v49  ;;  %v9533_v2 = vcombine.low %v569_v50, %v577_v51 }
  0x59   :  { %v833_v55 = vld [vmem:[%s14226_s1 + $0x1940] sm:$0xff]  ;;  %6413 = vmatpush1.bf16.msra.mxu1 %v9805_v57 }
  0x5a   :  { %v9790_v61 = vcombine.high %v825_v52, %v833_v55  ;;  %v553_v62 = vld [vmem:[%s14226_s1 + $0x1080] sm:$0xff]  ;;  %6373 = vmatprep.subr.bf16.mxu0 %v9534_v60  ;;  %v9789_v3 = vcombine.low %v825_v52, %v833_v55 }
  0x5b   :  { %v561_v63 = vld [vmem:[%s14226_s1 + $0x10c0] sm:$0xff]  ;;  %6374 = vmatpush1.bf16.msra.mxu0 %v9533_v2 }
  0x5c   :  { %v809_v0 = vld [vmem:[%s14226_s1 + $0x1880] sm:$0xff]  ;;  %v9518_v4 = vcombine.high %v553_v62, %v561_v63  ;;  %6414 = vmatprep.subr.bf16.mxu1 %v9790_v61  ;;  %v9517_v10 = vcombine.low %v553_v62, %v561_v63 }
  0x5d   :  { %v817_v1 = vld [vmem:[%s14226_s1 + $0x18c0] sm:$0xff]  ;;  %6415 = vmatpush1.bf16.msra.mxu1 %v9789_v3 }
  0x5e   :  { %v9774_v5 = vcombine.high %v809_v0, %v817_v1  ;;  %v537_v6 = vld [vmem:[%s14226_s1 + $0x1000] sm:$0xff]  ;;  %6375 = vmatprep.subr.bf16.mxu0 %v9518_v4  ;;  %v9773_v11 = vcombine.low %v809_v0, %v817_v1 }
  0x5f   :  { %v545_v7 = vld [vmem:[%s14226_s1 + $0x1040] sm:$0xff]  ;;  %6376 = vmatpush1.bf16.msra.mxu0 %v9517_v10 }
  0x60   :  { %v793_v8 = vld [vmem:[%s14226_s1 + $0x1800] sm:$0xff]  ;;  %v9502_v12 = vcombine.high %v537_v6, %v545_v7  ;;  %6416 = vmatprep.subr.bf16.mxu1 %v9774_v5  ;;  %v9501_v53 = vcombine.low %v537_v6, %v545_v7 }
  0x61   :  { %v801_v9 = vld [vmem:[%s14226_s1 + $0x1840] sm:$0xff]  ;;  %6417 = vmatpush1.bf16.msra.mxu1 %v9773_v11 }
  0x62   :  { %v9758_v13 = vcombine.high %v793_v8, %v801_v9  ;;  %v777_v14 = vld [vmem:[%s14226_s1 + $0x1780] sm:$0xff]  ;;  %6377 = vmatprep.subr.bf16.mxu0 %v9502_v12  ;;  %v9757_v22 = vcombine.low %v793_v8, %v801_v9 }
  0x63   :  { %v785_v15 = vld [vmem:[%s14226_s1 + $0x17c0] sm:$0xff]  ;;  %6378 = vmatpush1.bf16.msra.mxu0 %v9501_v53 }
  0x64   :  { %v1033_v17 = vld [vmem:[%s14226_s1 + $0x1f80] sm:$0xff]  ;;  %v9742_v23 = vcombine.high %v777_v14, %v785_v15  ;;  %6418 = vmatprep.subr.bf16.mxu1 %v9758_v13  ;;  %v9741_v30 = vcombine.low %v777_v14, %v785_v15 }
  0x65   :  { %v1041_v18 = vld [vmem:[%s14226_s1 + $0x1fc0] sm:$0xff]  ;;  %6419 = vmatpush1.bf16.msra.mxu1 %v9757_v22 }
  0x66   :  { %v9998_v24 = vcombine.high %v1033_v17, %v1041_v18  ;;  %v761_v25 = vld [vmem:[%s14226_s1 + $0x1700] sm:$0xff]  ;;  %6379 = vmatprep.subr.bf16.mxu0 %v9742_v23  ;;  %v9997_v31 = vcombine.low %v1033_v17, %v1041_v18 }
  0x67   :  { %v769_v54 = vld [vmem:[%s14226_s1 + $0x1740] sm:$0xff]  ;;  %6380 = vmatpush2.bf16.msra.mxu0 %v9741_v30 }
  0x68   :  { %v1017_v27 = vld [vmem:[%s14226_s1 + $0x1f00] sm:$0xff]  ;;  %v9726_v32 = vcombine.high %v761_v25, %v769_v54  ;;  %6420 = vmatprep.subr.bf16.mxu1 %v9998_v24  ;;  %v9725_v38 = vcombine.low %v761_v25, %v769_v54  ;;  %v138_v25 = vld [vmem:[%s14226_s1 + $0x388] sm:$0xff] }
  0x69   :  { %v1025_v28 = vld [vmem:[%s14226_s1 + $0x1f40] sm:$0xff]  ;;  %6421 = vmatpush2.bf16.msra.mxu1 %v9997_v31  ;;  %v146_v54 = vld [vmem:[%s14226_s1 + $0x3c8] sm:$0xff] }
  0x6a   :  { %v9982_v33 = vcombine.high %v1017_v27, %v1025_v28  ;;  %v745_v34 = vld [vmem:[%s14226_s1 + $0x1680] sm:$0xff]  ;;  %6381 = vmatprep.subr.bf16.mxu0 %v9726_v32  ;;  %v9981_v39 = vcombine.low %v1017_v27, %v1025_v28  ;;  %v394_v27 = vld [vmem:[%s14226_s1 + $0xb88] sm:$0xff]  ;;  %v9104_v32 = vcombine.high %v138_v25, %v146_v54 }
  0x6b   :  { %v753_v35 = vld [vmem:[%s14226_s1 + $0x16c0] sm:$0xff]  ;;  %6382 = vmatpush2.bf16.msra.mxu0 %v9725_v38  ;;  %v402_v28 = vld [vmem:[%s14226_s1 + $0xbc8] sm:$0xff] }
  0x6c   :  { %v1001_v36 = vld [vmem:[%s14226_s1 + $0x1e80] sm:$0xff]  ;;  %v9710_v40 = vcombine.high %v745_v34, %v753_v35  ;;  %6422 = vmatprep.subr.bf16.mxu1 %v9982_v33  ;;  %v9709_v46 = vcombine.low %v745_v34, %v753_v35  ;;  %v9360_v33 = vcombine.high %v394_v27, %v402_v28  ;;  %v122_v34 = vld [vmem:[%s14226_s1 + $0x308] sm:$0xff] }
  0x6d   :  { %v1009_v37 = vld [vmem:[%s14226_s1 + $0x1ec0] sm:$0xff]  ;;  %6423 = vmatpush2.bf16.msra.mxu1 %v9981_v39  ;;  %v130_v35 = vld [vmem:[%s14226_s1 + $0x348] sm:$0xff]  ;;  %v10950_v39 = vcombine.low %v10738_v21, %v10738_v21 }
  0x6e   :  { %v9966_v41 = vcombine.high %v1001_v36, %v1009_v37  ;;  %v729_v42 = vld [vmem:[%s14226_s1 + $0x1600] sm:$0xff]  ;;  %6383 = vmatprep.subr.bf16.mxu0 %v9710_v40  ;;  %v9965_v47 = vcombine.low %v1001_v36, %v1009_v37  ;;  %v10940_v36 = vcombine.low %v10729_v19, %v10729_v19  ;;  %v378_v37 = vld [vmem:[%s14226_s1 + $0xb08] sm:$0xff]  ;;  %v9103_v40 = vcombine.low %v138_v25, %v146_v54 }
  0x6f   :  { %v737_v43 = vld [vmem:[%s14226_s1 + $0x1640] sm:$0xff]  ;;  %6384 = vmatpush2.bf16.msra.mxu0 %v9709_v46  ;;  %v386_v38 = vld [vmem:[%s14226_s1 + $0xb48] sm:$0xff]  ;;  %v9087_v46 = vcombine.low %v122_v34, %v130_v35 }
  0x70   :  { %v985_v44 = vld [vmem:[%s14226_s1 + $0x1e00] sm:$0xff]  ;;  %v9694_v48 = vcombine.high %v729_v42, %v737_v43  ;;  %6424 = vmatprep.subr.bf16.mxu1 %v9966_v41  ;;  %v9693_v56 = vcombine.low %v729_v42, %v737_v43  ;;  %v9359_v41 = vcombine.low %v394_v27, %v402_v28  ;;  %v9088_v42 = vcombine.high %v122_v34, %v130_v35  ;;  %v106_v43 = vld [vmem:[%s14226_s1 + $0x288] sm:$0xff] }
  0x71   :  { %v993_v45 = vld [vmem:[%s14226_s1 + $0x1e40] sm:$0xff]  ;;  %6425 = vmatpush2.bf16.msra.mxu1 %v9965_v47  ;;  %v9344_v19 = vcombine.high %v378_v37, %v386_v38  ;;  %v362_v21 = vld [vmem:[%s14226_s1 + $0xa88] sm:$0xff]  ;;  %v9343_v47 = vcombine.low %v378_v37, %v386_v38 }
  0x72   :  { %v9950_v49 = vcombine.high %v985_v44, %v993_v45  ;;  %v713_v50 = vld [vmem:[%s14226_s1 + $0x1580] sm:$0xff]  ;;  %6385 = vmatprep.subr.bf16.mxu0 %v9694_v48  ;;  %v9949_v57 = vcombine.low %v985_v44, %v993_v45  ;;  %v114_v44 = vld [vmem:[%s14226_s1 + $0x2c8] sm:$0xff] }
  0x73   :  { %v721_v51 = vld [vmem:[%s14226_s1 + $0x15c0] sm:$0xff]  ;;  %6386 = vmatpush2.bf16.msra.mxu0 %v9693_v56  ;;  %v370_v45 = vld [vmem:[%s14226_s1 + $0xac8] sm:$0xff]  ;;  %v9072_v48 = vcombine.high %v106_v43, %v114_v44  ;;  %v9071_v56 = vcombine.low %v106_v43, %v114_v44 }
  0x74   :  { %v969_v52 = vld [vmem:[%s14226_s1 + $0x1d80] sm:$0xff]  ;;  %v9678_v60 = vcombine.high %v713_v50, %v721_v51  ;;  %6426 = vmatprep.subr.bf16.mxu1 %v9950_v49  ;;  %v9677_v2 = vcombine.low %v713_v50, %v721_v51  ;;  %v9328_v49 = vcombine.high %v362_v21, %v370_v45  ;;  %v90_v50 = vld [vmem:[%s14226_s1 + $0x208] sm:$0xff] }
  0x75   :  { %v977_v55 = vld [vmem:[%s14226_s1 + $0x1dc0] sm:$0xff]  ;;  %6427 = vmatpush2.bf16.msra.mxu1 %v9949_v57  ;;  %v98_v51 = vld [vmem:[%s14226_s1 + $0x248] sm:$0xff]  ;;  %v9327_v57 = vcombine.low %v362_v21, %v370_v45 }
  0x76   :  { %v9934_v61 = vcombine.high %v969_v52, %v977_v55  ;;  %v697_v62 = vld [vmem:[%s14226_s1 + $0x1500] sm:$0xff]  ;;  %6387 = vmatprep.subr.bf16.mxu0 %v9678_v60  ;;  %v9933_v3 = vcombine.low %v969_v52, %v977_v55  ;;  %v346_v52 = vld [vmem:[%s14226_s1 + $0xa08] sm:$0xff]  ;;  %v9056_v60 = vcombine.high %v90_v50, %v98_v51 }
  0x77   :  { %v705_v63 = vld [vmem:[%s14226_s1 + $0x1540] sm:$0xff]  ;;  %6388 = vmatpush2.bf16.msra.mxu0 %v9677_v2  ;;  %v354_v55 = vld [vmem:[%s14226_s1 + $0xa48] sm:$0xff]  ;;  %v9055_v2 = vcombine.low %v90_v50, %v98_v51 }
  0x78   :  { %v953_v0 = vld [vmem:[%s14226_s1 + $0x1d00] sm:$0xff]  ;;  %v9662_v4 = vcombine.high %v697_v62, %v705_v63  ;;  %6428 = vmatprep.subr.bf16.mxu1 %v9934_v61  ;;  %v9661_v10 = vcombine.low %v697_v62, %v705_v63  ;;  %v9312_v61 = vcombine.high %v346_v52, %v354_v55  ;;  %v74_v62 = vld [vmem:[%s14226_s1 + $0x188] sm:$0xff] }
  0x79   :  { %v961_v1 = vld [vmem:[%s14226_s1 + $0x1d40] sm:$0xff]  ;;  %6429 = vmatpush2.bf16.msra.mxu1 %v9933_v3  ;;  %v82_v63 = vld [vmem:[%s14226_s1 + $0x1c8] sm:$0xff]  ;;  %v9311_v3 = vcombine.low %v346_v52, %v354_v55 }
  0x7a   :  { %v9918_v5 = vcombine.high %v953_v0, %v961_v1  ;;  %v681_v6 = vld [vmem:[%s14226_s1 + $0x1480] sm:$0xff]  ;;  %6389 = vmatprep.subr.bf16.mxu0 %v9662_v4  ;;  %v9917_v11 = vcombine.low %v953_v0, %v961_v1  ;;  %v330_v0 = vld [vmem:[%s14226_s1 + $0x988] sm:$0xff]  ;;  %v9040_v4 = vcombine.high %v74_v62, %v82_v63 }
  0x7b   :  { %v689_v7 = vld [vmem:[%s14226_s1 + $0x14c0] sm:$0xff]  ;;  %6390 = vmatpush2.bf16.msra.mxu0 %v9661_v10  ;;  %v338_v1 = vld [vmem:[%s14226_s1 + $0x9c8] sm:$0xff]  ;;  %v9039_v10 = vcombine.low %v74_v62, %v82_v63 }
  0x7c   :  { %v937_v8 = vld [vmem:[%s14226_s1 + $0x1c80] sm:$0xff]  ;;  %v9646_v12 = vcombine.high %v681_v6, %v689_v7  ;;  %6430 = vmatprep.subr.bf16.mxu1 %v9918_v5  ;;  %v9645_v53 = vcombine.low %v681_v6, %v689_v7  ;;  %v9296_v5 = vcombine.high %v330_v0, %v338_v1  ;;  %v58_v6 = vld [vmem:[%s14226_s1 + $0x108] sm:$0xff] }
  0x7d   :  { %v945_v9 = vld [vmem:[%s14226_s1 + $0x1cc0] sm:$0xff]  ;;  %6431 = vmatpush2.bf16.msra.mxu1 %v9917_v11  ;;  %v66_v7 = vld [vmem:[%s14226_s1 + $0x148] sm:$0xff]  ;;  %v9295_v11 = vcombine.low %v330_v0, %v338_v1 }
  0x7e   :  { %v9902_v13 = vcombine.high %v937_v8, %v945_v9  ;;  %v665_v14 = vld [vmem:[%s14226_s1 + $0x1400] sm:$0xff]  ;;  %6391 = vmatprep.subr.bf16.mxu0 %v9646_v12  ;;  %v9901_v22 = vcombine.low %v937_v8, %v945_v9  ;;  %v314_v8 = vld [vmem:[%s14226_s1 + $0x908] sm:$0xff]  ;;  %v9024_v12 = vcombine.high %v58_v6, %v66_v7 }
  0x7f   :  { %v673_v15 = vld [vmem:[%s14226_s1 + $0x1440] sm:$0xff]  ;;  %6392 = vmatpush2.bf16.msra.mxu0 %v9645_v53  ;;  %v322_v9 = vld [vmem:[%s14226_s1 + $0x948] sm:$0xff]  ;;  %v9023_v53 = vcombine.low %v58_v6, %v66_v7 }
  0x80   :  { %v921_v17 = vld [vmem:[%s14226_s1 + $0x1c00] sm:$0xff]  ;;  %v9630_v23 = vcombine.high %v665_v14, %v673_v15  ;;  %6432 = vmatprep.subr.bf16.mxu1 %v9902_v13  ;;  %v9629_v30 = vcombine.low %v665_v14, %v673_v15  ;;  %v9280_v13 = vcombine.high %v314_v8, %v322_v9  ;;  %v42_v14 = vld [vmem:[%s14226_s1 + $0x88] sm:$0xff] }
  0x81   :  { %v929_v18 = vld [vmem:[%s14226_s1 + $0x1c40] sm:$0xff]  ;;  %6433 = vmatpush2.bf16.msra.mxu1 %v9901_v22  ;;  %v50_v15 = vld [vmem:[%s14226_s1 + $0xc8] sm:$0xff]  ;;  %v9279_v22 = vcombine.low %v314_v8, %v322_v9 }
  0x82   :  { %v9886_v24 = vcombine.high %v921_v17, %v929_v18  ;;  %6393 = vmatprep.subr.bf16.mxu0 %v9630_v23  ;;  %v9885_v31 = vcombine.low %v921_v17, %v929_v18  ;;  %v298_v17 = vld [vmem:[%s14226_s1 + $0x888] sm:$0xff]  ;;  %v9008_v23 = vcombine.high %v42_v14, %v50_v15 }
  0x83   :  { %6394 = vmatpush2.bf16.msra.mxu0 %v9629_v30  ;;  %v306_v18 = vld [vmem:[%s14226_s1 + $0x8c8] sm:$0xff]  ;;  %v9007_v30 = vcombine.low %v42_v14, %v50_v15 }
  0x84   :  { %6434 = vmatprep.subr.bf16.mxu1 %v9886_v24  ;;  %6445 = vmatprep.subr.bf16.mxu0 %v9104_v32  ;;  %v9264_v24 = vcombine.high %v298_v17, %v306_v18  ;;  %v26_v25 = vld [vmem:[%s14226_s1 + $0x8] sm:$0xff] }
  0x85   :  { %6435 = vmatpush2.bf16.msra.mxu1 %v9885_v31  ;;  %v34_v54 = vld [vmem:[%s14226_s1 + $0x48] sm:$0xff]  ;;  %v9263_v31 = vcombine.low %v298_v17, %v306_v18 }
  0x86   :  { %6486 = vmatprep.subr.bf16.mxu1 %v9360_v33  ;;  %6396 = vmatmul.mubr.bf16.vlgmr.msra.gmra.mxu0 %v10940_v36  ;;  %v282_v27 = vld [vmem:[%s14226_s1 + $0x808] sm:$0xff]  ;;  %v8992_v32 = vcombine.high %v26_v25, %v34_v54 }
  0x87   :  { %6446 = vmatpush1.bf16.msra.mxu0 %v9103_v40  ;;  %6477 = vmatprep.mubr.bf16.mxu0 %v10588_v58  ;;  %v290_v28 = vld [vmem:[%s14226_s1 + $0x848] sm:$0xff]  ;;  %v8991_v40 = vcombine.low %v26_v25, %v34_v54 }
  0x88   :  { %6437 = vmatmul.mubr.bf16.vlgmr.msra.gmra.mxu1 %v10950_v39  ;;  %6447 = vmatprep.subr.bf16.mxu0 %v9088_v42  ;;  %v9248_v33 = vcombine.high %v282_v27, %v290_v28  ;;  %v266_v34 = vld [vmem:[%s14226_s1 + $0x788] sm:$0xff] }
  0x89   :  { %6487 = vmatpush1.bf16.msra.mxu1 %v9359_v41  ;;  %6518 = vmatprep.mubr.bf16.mxu1 %v10592_v59  ;;  %v274_v35 = vld [vmem:[%s14226_s1 + $0x7c8] sm:$0xff]  ;;  %v9247_v41 = vcombine.low %v282_v27, %v290_v28 }
  0x8a   :  { %6488 = vmatprep.subr.bf16.mxu1 %v9344_v19  ;;  %v522_v37 = vld [vmem:[%s14226_s1 + $0xf88] sm:$0xff]  ;;  %v9232_v42 = vcombine.high %v266_v34, %v274_v35 }
  0x8b   :  { %6448 = vmatpush1.bf16.msra.mxu0 %v9087_v46  ;;  %v530_v38 = vld [vmem:[%s14226_s1 + $0xfc8] sm:$0xff]  ;;  %v9231_v46 = vcombine.low %v266_v34, %v274_v35 }
  0x8c   :  { %6449 = vmatprep.subr.bf16.mxu0 %v9072_v48  ;;  %v9488_v19 = vcombine.high %v522_v37, %v530_v38  ;;  %v250_v43 = vld [vmem:[%s14226_s1 + $0x708] sm:$0xff] }
  0x8d   :  { %6489 = vmatpush1.bf16.msra.mxu1 %v9343_v47  ;;  %v258_v44 = vld [vmem:[%s14226_s1 + $0x748] sm:$0xff]  ;;  %v9487_v47 = vcombine.low %v522_v37, %v530_v38 }
  0x8e   :  { %6490 = vmatprep.subr.bf16.mxu1 %v9328_v49  ;;  %v506_v21 = vld [vmem:[%s14226_s1 + $0xf08] sm:$0xff]  ;;  %v9216_v48 = vcombine.high %v250_v43, %v258_v44 }
  0x8f   :  { %6450 = vmatpush1.bf16.msra.mxu0 %v9071_v56  ;;  %v514_v45 = vld [vmem:[%s14226_s1 + $0xf48] sm:$0xff]  ;;  %v9215_v56 = vcombine.low %v250_v43, %v258_v44 }
  0x90   :  { %6451 = vmatprep.subr.bf16.mxu0 %v9056_v60  ;;  %v9472_v49 = vcombine.high %v506_v21, %v514_v45  ;;  %v234_v50 = vld [vmem:[%s14226_s1 + $0x688] sm:$0xff] }
  0x91   :  { %6491 = vmatpush1.bf16.msra.mxu1 %v9327_v57  ;;  %v242_v51 = vld [vmem:[%s14226_s1 + $0x6c8] sm:$0xff]  ;;  %v9471_v57 = vcombine.low %v506_v21, %v514_v45 }
  0x92   :  { %6492 = vmatprep.subr.bf16.mxu1 %v9312_v61  ;;  %v490_v52 = vld [vmem:[%s14226_s1 + $0xe88] sm:$0xff]  ;;  %v9200_v60 = vcombine.high %v234_v50, %v242_v51 }
  0x93   :  { %6452 = vmatpush1.bf16.msra.mxu0 %v9055_v2  ;;  %v498_v55 = vld [vmem:[%s14226_s1 + $0xec8] sm:$0xff]  ;;  %v9199_v2 = vcombine.low %v234_v50, %v242_v51 }
  0x94   :  { %6453 = vmatprep.subr.bf16.mxu0 %v9040_v4  ;;  %v9456_v61 = vcombine.high %v490_v52, %v498_v55  ;;  %v218_v62 = vld [vmem:[%s14226_s1 + $0x608] sm:$0xff] }
  0x95   :  { %6493 = vmatpush1.bf16.msra.mxu1 %v9311_v3  ;;  %v226_v63 = vld [vmem:[%s14226_s1 + $0x648] sm:$0xff]  ;;  %v9455_v3 = vcombine.low %v490_v52, %v498_v55 }
  0x96   :  { %6494 = vmatprep.subr.bf16.mxu1 %v9296_v5  ;;  %v474_v0 = vld [vmem:[%s14226_s1 + $0xe08] sm:$0xff]  ;;  %v9184_v4 = vcombine.high %v218_v62, %v226_v63 }
  0x97   :  { %6454 = vmatpush1.bf16.msra.mxu0 %v9039_v10  ;;  %v482_v1 = vld [vmem:[%s14226_s1 + $0xe48] sm:$0xff]  ;;  %v9183_v10 = vcombine.low %v218_v62, %v226_v63 }
  0x98   :  { %6455 = vmatprep.subr.bf16.mxu0 %v9024_v12  ;;  %v9440_v5 = vcombine.high %v474_v0, %v482_v1  ;;  %v202_v6 = vld [vmem:[%s14226_s1 + $0x588] sm:$0xff] }
  0x99   :  { %6495 = vmatpush1.bf16.msra.mxu1 %v9295_v11  ;;  %v210_v7 = vld [vmem:[%s14226_s1 + $0x5c8] sm:$0xff]  ;;  %v9439_v11 = vcombine.low %v474_v0, %v482_v1 }
  0x9a   :  { %6496 = vmatprep.subr.bf16.mxu1 %v9280_v13  ;;  %v458_v8 = vld [vmem:[%s14226_s1 + $0xd88] sm:$0xff]  ;;  %v9168_v12 = vcombine.high %v202_v6, %v210_v7 }
  0x9b   :  { %6456 = vmatpush1.bf16.msra.mxu0 %v9023_v53  ;;  %v466_v9 = vld [vmem:[%s14226_s1 + $0xdc8] sm:$0xff]  ;;  %v9167_v53 = vcombine.low %v202_v6, %v210_v7 }
  0x9c   :  { %6457 = vmatprep.subr.bf16.mxu0 %v9008_v23  ;;  %v9424_v13 = vcombine.high %v458_v8, %v466_v9  ;;  %v186_v14 = vld [vmem:[%s14226_s1 + $0x508] sm:$0xff] }
  0x9d   :  { %6497 = vmatpush1.bf16.msra.mxu1 %v9279_v22  ;;  %v194_v15 = vld [vmem:[%s14226_s1 + $0x548] sm:$0xff]  ;;  %v9423_v22 = vcombine.low %v458_v8, %v466_v9 }
  0x9e   :  { %6498 = vmatprep.subr.bf16.mxu1 %v9264_v24  ;;  %v442_v17 = vld [vmem:[%s14226_s1 + $0xd08] sm:$0xff]  ;;  %v9152_v23 = vcombine.high %v186_v14, %v194_v15 }
  0x9f   :  { %6458 = vmatpush1.bf16.msra.mxu0 %v9007_v30  ;;  %v450_v18 = vld [vmem:[%s14226_s1 + $0xd48] sm:$0xff]  ;;  %v9151_v30 = vcombine.low %v186_v14, %v194_v15 }
  0xa0   :  { %6459 = vmatprep.subr.bf16.mxu0 %v8992_v32  ;;  %v9408_v24 = vcombine.high %v442_v17, %v450_v18  ;;  %v170_v25 = vld [vmem:[%s14226_s1 + $0x488] sm:$0xff] }
  0xa1   :  { %6499 = vmatpush1.bf16.msra.mxu1 %v9263_v31  ;;  %v178_v54 = vld [vmem:[%s14226_s1 + $0x4c8] sm:$0xff]  ;;  %v9407_v31 = vcombine.low %v442_v17, %v450_v18 }
  0xa2   :  { %6500 = vmatprep.subr.bf16.mxu1 %v9248_v33  ;;  %v426_v27 = vld [vmem:[%s14226_s1 + $0xc88] sm:$0xff]  ;;  %v9136_v32 = vcombine.high %v170_v25, %v178_v54 }
  0xa3   :  { %6460 = vmatpush1.bf16.msra.mxu0 %v8991_v40  ;;  %v434_v28 = vld [vmem:[%s14226_s1 + $0xcc8] sm:$0xff]  ;;  %v9135_v40 = vcombine.low %v170_v25, %v178_v54 }
  0xa4   :  { %6461 = vmatprep.subr.bf16.mxu0 %v9232_v42  ;;  %v9392_v33 = vcombine.high %v426_v27, %v434_v28  ;;  %v154_v34 = vld [vmem:[%s14226_s1 + $0x408] sm:$0xff] }
  0xa5   :  { %6501 = vmatpush1.bf16.msra.mxu1 %v9247_v41  ;;  %v162_v35 = vld [vmem:[%s14226_s1 + $0x448] sm:$0xff]  ;;  %v9391_v41 = vcombine.low %v426_v27, %v434_v28 }
  0xa6   :  { %6502 = vmatprep.subr.bf16.mxu1 %v9488_v19  ;;  %v410_v37 = vld [vmem:[%s14226_s1 + $0xc08] sm:$0xff]  ;;  %v9120_v42 = vcombine.high %v154_v34, %v162_v35 }
  0xa7   :  { %6462 = vmatpush2.bf16.msra.mxu0 %v9231_v46  ;;  %v418_v38 = vld [vmem:[%s14226_s1 + $0xc48] sm:$0xff]  ;;  %v9119_v46 = vcombine.low %v154_v34, %v162_v35 }
  0xa8   :  { %6463 = vmatprep.subr.bf16.mxu0 %v9216_v48  ;;  %v9376_v19 = vcombine.high %v410_v37, %v418_v38  ;;  %v650_v43 = vld [vmem:[%s14226_s1 + $0x1388] sm:$0xff] }
  0xa9   :  { %6503 = vmatpush2.bf16.msra.mxu1 %v9487_v47  ;;  %v658_v44 = vld [vmem:[%s14226_s1 + $0x13c8] sm:$0xff]  ;;  %v9375_v47 = vcombine.low %v410_v37, %v418_v38 }
  0xaa   :  { %6504 = vmatprep.subr.bf16.mxu1 %v9472_v49  ;;  %v906_v21 = vld [vmem:[%s14226_s1 + $0x1b88] sm:$0xff]  ;;  %v9616_v48 = vcombine.high %v650_v43, %v658_v44 }
  0xab   :  { %6464 = vmatpush2.bf16.msra.mxu0 %v9215_v56  ;;  %v914_v45 = vld [vmem:[%s14226_s1 + $0x1bc8] sm:$0xff]  ;;  %v9615_v56 = vcombine.low %v650_v43, %v658_v44 }
  0xac   :  { %6465 = vmatprep.subr.bf16.mxu0 %v9200_v60  ;;  %v9872_v49 = vcombine.high %v906_v21, %v914_v45  ;;  %v634_v50 = vld [vmem:[%s14226_s1 + $0x1308] sm:$0xff] }
  0xad   :  { %6505 = vmatpush2.bf16.msra.mxu1 %v9471_v57  ;;  %v642_v51 = vld [vmem:[%s14226_s1 + $0x1348] sm:$0xff]  ;;  %v9871_v57 = vcombine.low %v906_v21, %v914_v45 }
  0xae   :  { %6506 = vmatprep.subr.bf16.mxu1 %v9456_v61  ;;  %v890_v52 = vld [vmem:[%s14226_s1 + $0x1b08] sm:$0xff]  ;;  %v9600_v60 = vcombine.high %v634_v50, %v642_v51 }
  0xaf   :  { %6466 = vmatpush2.bf16.msra.mxu0 %v9199_v2  ;;  %v898_v55 = vld [vmem:[%s14226_s1 + $0x1b48] sm:$0xff]  ;;  %v9599_v2 = vcombine.low %v634_v50, %v642_v51 }
  0xb0   :  { %6467 = vmatprep.subr.bf16.mxu0 %v9184_v4  ;;  %v9856_v61 = vcombine.high %v890_v52, %v898_v55  ;;  %v618_v62 = vld [vmem:[%s14226_s1 + $0x1288] sm:$0xff] }
  0xb1   :  { %6507 = vmatpush2.bf16.msra.mxu1 %v9455_v3  ;;  %v626_v63 = vld [vmem:[%s14226_s1 + $0x12c8] sm:$0xff]  ;;  %v9855_v3 = vcombine.low %v890_v52, %v898_v55 }
  0xb2   :  { %6508 = vmatprep.subr.bf16.mxu1 %v9440_v5  ;;  %v874_v0 = vld [vmem:[%s14226_s1 + $0x1a88] sm:$0xff]  ;;  %v9584_v4 = vcombine.high %v618_v62, %v626_v63 }
  0xb3   :  { %6468 = vmatpush2.bf16.msra.mxu0 %v9183_v10  ;;  %v882_v1 = vld [vmem:[%s14226_s1 + $0x1ac8] sm:$0xff]  ;;  %v9583_v10 = vcombine.low %v618_v62, %v626_v63 }
  0xb4   :  { %6469 = vmatprep.subr.bf16.mxu0 %v9168_v12  ;;  %v9840_v5 = vcombine.high %v874_v0, %v882_v1  ;;  %v602_v6 = vld [vmem:[%s14226_s1 + $0x1208] sm:$0xff] }
  0xb5   :  { %6509 = vmatpush2.bf16.msra.mxu1 %v9439_v11  ;;  %v610_v7 = vld [vmem:[%s14226_s1 + $0x1248] sm:$0xff]  ;;  %v9839_v11 = vcombine.low %v874_v0, %v882_v1 }
  0xb6   :  { %6510 = vmatprep.subr.bf16.mxu1 %v9424_v13  ;;  %v858_v8 = vld [vmem:[%s14226_s1 + $0x1a08] sm:$0xff]  ;;  %v9568_v12 = vcombine.high %v602_v6, %v610_v7 }
  0xb7   :  { %6470 = vmatpush2.bf16.msra.mxu0 %v9167_v53  ;;  %v866_v9 = vld [vmem:[%s14226_s1 + $0x1a48] sm:$0xff]  ;;  %v9567_v53 = vcombine.low %v602_v6, %v610_v7 }
  0xb8   :  { %6471 = vmatprep.subr.bf16.mxu0 %v9152_v23  ;;  %v9824_v13 = vcombine.high %v858_v8, %v866_v9  ;;  %v586_v14 = vld [vmem:[%s14226_s1 + $0x1188] sm:$0xff] }
  0xb9   :  { %6511 = vmatpush2.bf16.msra.mxu1 %v9423_v22  ;;  %v594_v15 = vld [vmem:[%s14226_s1 + $0x11c8] sm:$0xff]  ;;  %v9823_v22 = vcombine.low %v858_v8, %v866_v9 }
  0xba   :  { %6512 = vmatprep.subr.bf16.mxu1 %v9408_v24  ;;  %v842_v17 = vld [vmem:[%s14226_s1 + $0x1988] sm:$0xff]  ;;  %v9552_v23 = vcombine.high %v586_v14, %v594_v15 }
  0xbb   :  { %6472 = vmatpush2.bf16.msra.mxu0 %v9151_v30  ;;  %v850_v18 = vld [vmem:[%s14226_s1 + $0x19c8] sm:$0xff]  ;;  %v9551_v30 = vcombine.low %v586_v14, %v594_v15 }
  0xbc   :  { %6473 = vmatprep.subr.bf16.mxu0 %v9136_v32  ;;  %v9808_v24 = vcombine.high %v842_v17, %v850_v18  ;;  %v570_v25 = vld [vmem:[%s14226_s1 + $0x1108] sm:$0xff] }
  0xbd   :  { %6513 = vmatpush2.bf16.msra.mxu1 %v9407_v31  ;;  %v578_v54 = vld [vmem:[%s14226_s1 + $0x1148] sm:$0xff]  ;;  %v9807_v31 = vcombine.low %v842_v17, %v850_v18 }
  0xbe   :  { %6514 = vmatprep.subr.bf16.mxu1 %v9392_v33  ;;  %v826_v27 = vld [vmem:[%s14226_s1 + $0x1908] sm:$0xff]  ;;  %v9536_v32 = vcombine.high %v570_v25, %v578_v54 }
  0xbf   :  { %6474 = vmatpush2.bf16.msra.mxu0 %v9135_v40  ;;  %v834_v28 = vld [vmem:[%s14226_s1 + $0x1948] sm:$0xff]  ;;  %v9535_v40 = vcombine.low %v570_v25, %v578_v54 }
  0xc0   :  { %6475 = vmatprep.subr.bf16.mxu0 %v9120_v42  ;;  %v9792_v33 = vcombine.high %v826_v27, %v834_v28  ;;  %v554_v34 = vld [vmem:[%s14226_s1 + $0x1088] sm:$0xff] }
  0xc1   :  { %6515 = vmatpush2.bf16.msra.mxu1 %v9391_v41  ;;  %v562_v35 = vld [vmem:[%s14226_s1 + $0x10c8] sm:$0xff]  ;;  %v9791_v41 = vcombine.low %v826_v27, %v834_v28 }
  0xc2   :  { %6516 = vmatprep.subr.bf16.mxu1 %v9376_v19  ;;  %v810_v37 = vld [vmem:[%s14226_s1 + $0x1888] sm:$0xff]  ;;  %v9520_v42 = vcombine.high %v554_v34, %v562_v35 }
  0xc3   :  { %6476 = vmatpush2.bf16.msra.mxu0 %v9119_v46  ;;  %v818_v38 = vld [vmem:[%s14226_s1 + $0x18c8] sm:$0xff]  ;;  %v9519_v46 = vcombine.low %v554_v34, %v562_v35 }
  0xc4   :  { %6527 = vmatprep.subr.bf16.mxu0 %v9616_v48  ;;  %v9776_v19 = vcombine.high %v810_v37, %v818_v38  ;;  %v538_v43 = vld [vmem:[%s14226_s1 + $0x1008] sm:$0xff] }
  0xc5   :  { %6517 = vmatpush2.bf16.msra.mxu1 %v9375_v47  ;;  %v546_v44 = vld [vmem:[%s14226_s1 + $0x1048] sm:$0xff]  ;;  %v9775_v47 = vcombine.low %v810_v37, %v818_v38 }
  0xc6   :  { %6568 = vmatprep.subr.bf16.mxu1 %v9872_v49  ;;  %6478 = vmatmul.mubr.bf16.vlgmr.msra.gmra.mxu0 %v10718_v16  ;;  %v794_v21 = vld [vmem:[%s14226_s1 + $0x1808] sm:$0xff]  ;;  %v9504_v48 = vcombine.high %v538_v43, %v546_v44 }
  0xc7   :  { %6528 = vmatpush1.bf16.msra.mxu0 %v9615_v56  ;;  %6559 = vmatprep.mubr.bf16.mxu0 %v10748_v26  ;;  %v802_v45 = vld [vmem:[%s14226_s1 + $0x1848] sm:$0xff]  ;;  %v9503_v56 = vcombine.low %v538_v43, %v546_v44 }
  0xc8   :  { %6519 = vmatmul.mubr.bf16.vlgmr.msra.gmra.mxu1 %v10733_v20  ;;  %6529 = vmatprep.subr.bf16.mxu0 %v9600_v60  ;;  %v9760_v49 = vcombine.high %v794_v21, %v802_v45  ;;  %v778_v50 = vld [vmem:[%s14226_s1 + $0x1788] sm:$0xff] }
  0xc9   :  { %6569 = vmatpush1.bf16.msra.mxu1 %v9871_v57  ;;  %6600 = vmatprep.mubr.bf16.mxu1 %v10759_v29  ;;  %v786_v51 = vld [vmem:[%s14226_s1 + $0x17c8] sm:$0xff]  ;;  %v9759_v57 = vcombine.low %v794_v21, %v802_v45 }
  0xca   :  { %6570 = vmatprep.subr.bf16.mxu1 %v9856_v61  ;;  %v1034_v52 = vld [vmem:[%s14226_s1 + $0x1f88] sm:$0xff]  ;;  %v9744_v60 = vcombine.high %v778_v50, %v786_v51 }
  0xcb   :  { %6530 = vmatpush1.bf16.msra.mxu0 %v9599_v2  ;;  %v1042_v55 = vld [vmem:[%s14226_s1 + $0x1fc8] sm:$0xff]  ;;  %v9743_v2 = vcombine.low %v778_v50, %v786_v51 }
  0xcc   :  { %6531 = vmatprep.subr.bf16.mxu0 %v9584_v4  ;;  %v10000_v61 = vcombine.high %v1034_v52, %v1042_v55  ;;  %v762_v62 = vld [vmem:[%s14226_s1 + $0x1708] sm:$0xff] }
  0xcd   :  { %6571 = vmatpush1.bf16.msra.mxu1 %v9855_v3  ;;  %v770_v63 = vld [vmem:[%s14226_s1 + $0x1748] sm:$0xff]  ;;  %v9999_v3 = vcombine.low %v1034_v52, %v1042_v55 }
  0xce   :  { %6572 = vmatprep.subr.bf16.mxu1 %v9840_v5  ;;  %v1018_v0 = vld [vmem:[%s14226_s1 + $0x1f08] sm:$0xff]  ;;  %v9728_v4 = vcombine.high %v762_v62, %v770_v63 }
  0xcf   :  { %6532 = vmatpush1.bf16.msra.mxu0 %v9583_v10  ;;  %v1026_v1 = vld [vmem:[%s14226_s1 + $0x1f48] sm:$0xff]  ;;  %v9727_v10 = vcombine.low %v762_v62, %v770_v63 }
  0xd0   :  { %6533 = vmatprep.subr.bf16.mxu0 %v9568_v12  ;;  %v9984_v5 = vcombine.high %v1018_v0, %v1026_v1  ;;  %v746_v6 = vld [vmem:[%s14226_s1 + $0x1688] sm:$0xff] }
  0xd1   :  { %6573 = vmatpush1.bf16.msra.mxu1 %v9839_v11  ;;  %v754_v7 = vld [vmem:[%s14226_s1 + $0x16c8] sm:$0xff]  ;;  %v9983_v11 = vcombine.low %v1018_v0, %v1026_v1  ;;  %v139_v0 = vld [vmem:[%s14226_s1 + $0x390] sm:$0xff] }
  0xd2   :  { %6574 = vmatprep.subr.bf16.mxu1 %v9824_v13  ;;  %v1002_v8 = vld [vmem:[%s14226_s1 + $0x1e88] sm:$0xff]  ;;  %v9712_v12 = vcombine.high %v746_v6, %v754_v7  ;;  %v147_v1 = vld [vmem:[%s14226_s1 + $0x3d0] sm:$0xff] }
  0xd3   :  { %6534 = vmatpush1.bf16.msra.mxu0 %v9567_v53  ;;  %v1010_v9 = vld [vmem:[%s14226_s1 + $0x1ec8] sm:$0xff]  ;;  %v9711_v53 = vcombine.low %v746_v6, %v754_v7  ;;  %v11338_v7 = vld [vmem:[%s14228_s2] sm:$0xff] }
  0xd4   :  { %6535 = vmatprep.subr.bf16.mxu0 %v9552_v23  ;;  %v9968_v13 = vcombine.high %v1002_v8, %v1010_v9  ;;  %v730_v14 = vld [vmem:[%s14226_s1 + $0x1608] sm:$0xff] }
  0xd5   :  { %6575 = vmatpush1.bf16.msra.mxu1 %v9823_v22  ;;  %v738_v15 = vld [vmem:[%s14226_s1 + $0x1648] sm:$0xff]  ;;  %v9967_v22 = vcombine.low %v1002_v8, %v1010_v9  ;;  %v9106_v8 = vcombine.high %v139_v0, %v147_v1 }
  0xd6   :  { %6576 = vmatprep.subr.bf16.mxu1 %v9808_v24  ;;  %v986_v17 = vld [vmem:[%s14226_s1 + $0x1e08] sm:$0xff]  ;;  %v9696_v23 = vcombine.high %v730_v14, %v738_v15 }
  0xd7   :  { %6536 = vmatpush1.bf16.msra.mxu0 %v9551_v30  ;;  %v994_v18 = vld [vmem:[%s14226_s1 + $0x1e48] sm:$0xff]  ;;  %v9695_v30 = vcombine.low %v730_v14, %v738_v15  ;;  %v387_v14 = vld [vmem:[%s14226_s1 + $0xb50] sm:$0xff] }
  0xd8   :  { %6537 = vmatprep.subr.bf16.mxu0 %v9536_v32  ;;  %v9952_v24 = vcombine.high %v986_v17, %v994_v18  ;;  %v714_v25 = vld [vmem:[%s14226_s1 + $0x1588] sm:$0xff] }
  0xd9   :  { %6577 = vmatpush1.bf16.msra.mxu1 %v9807_v31  ;;  %v722_v54 = vld [vmem:[%s14226_s1 + $0x15c8] sm:$0xff]  ;;  %v9951_v31 = vcombine.low %v986_v17, %v994_v18  ;;  %v9105_v17 = vcombine.low %v139_v0, %v147_v1 }
  0xda   :  { %6578 = vmatprep.subr.bf16.mxu1 %v9792_v33  ;;  %v970_v27 = vld [vmem:[%s14226_s1 + $0x1d88] sm:$0xff]  ;;  %v9680_v32 = vcombine.high %v714_v25, %v722_v54 }
  0xdb   :  { %6538 = vmatpush1.bf16.msra.mxu0 %v9535_v40  ;;  %v978_v28 = vld [vmem:[%s14226_s1 + $0x1dc8] sm:$0xff]  ;;  %v9679_v40 = vcombine.low %v714_v25, %v722_v54  ;;  %v115_v25 = vld [vmem:[%s14226_s1 + $0x2d0] sm:$0xff] }
  0xdc   :  { %6539 = vmatprep.subr.bf16.mxu0 %v9520_v42  ;;  %v9936_v33 = vcombine.high %v970_v27, %v978_v28  ;;  %v698_v34 = vld [vmem:[%s14226_s1 + $0x1508] sm:$0xff] }
  0xdd   :  { %6579 = vmatpush1.bf16.msra.mxu1 %v9791_v41  ;;  %v706_v35 = vld [vmem:[%s14226_s1 + $0x1548] sm:$0xff]  ;;  %v9935_v41 = vcombine.low %v970_v27, %v978_v28  ;;  %v363_v27 = vld [vmem:[%s14226_s1 + $0xa90] sm:$0xff] }
  0xde   :  { %6580 = vmatprep.subr.bf16.mxu1 %v9776_v19  ;;  %v954_v37 = vld [vmem:[%s14226_s1 + $0x1d08] sm:$0xff]  ;;  %v9664_v42 = vcombine.high %v698_v34, %v706_v35  ;;  %v371_v28 = vld [vmem:[%s14226_s1 + $0xad0] sm:$0xff] }
  0xdf   :  { %6540 = vmatpush1.bf16.msra.mxu0 %v9519_v46  ;;  %v962_v38 = vld [vmem:[%s14226_s1 + $0x1d48] sm:$0xff]  ;;  %v9663_v46 = vcombine.low %v698_v34, %v706_v35 }
  0xe0   :  { %6541 = vmatprep.subr.bf16.mxu0 %v9504_v48  ;;  %v9920_v19 = vcombine.high %v954_v37, %v962_v38  ;;  %v682_v43 = vld [vmem:[%s14226_s1 + $0x1488] sm:$0xff]  ;;  %v9919_v48 = vcombine.low %v954_v37, %v962_v38 }
  0xe1   :  { %6581 = vmatpush1.bf16.msra.mxu1 %v9775_v47  ;;  %v690_v44 = vld [vmem:[%s14226_s1 + $0x14c8] sm:$0xff]  ;;  %v1053_v47 = vlaneseq }
  0xe2   :  { %6582 = vmatprep.subr.bf16.mxu1 %v9760_v49  ;;  %v938_v21 = vld [vmem:[%s14226_s1 + $0x1c88] sm:$0xff]  ;;  %v9648_v49 = vcombine.high %v682_v43, %v690_v44 }
  0xe3   :  { %6542 = vmatpush1.bf16.msra.mxu0 %v9503_v56  ;;  %v946_v45 = vld [vmem:[%s14226_s1 + $0x1cc8] sm:$0xff] }
  0xe4   :  { %6543 = vmatprep.subr.bf16.mxu0 %v9744_v60  ;;  %v9904_v50 = vcombine.high %v938_v21, %v946_v45  ;;  %v666_v51 = vld [vmem:[%s14226_s1 + $0x1408] sm:$0xff]  ;;  %v11320_v60 = vshrl.u32 %v1053_v47, 7 }
  0xe5   :  { %6583 = vmatpush1.bf16.msra.mxu1 %v9759_v57  ;;  %v674_v52 = vld [vmem:[%s14226_s1 + $0x1448] sm:$0xff]  ;;  %v9647_v57 = vcombine.low %v682_v43, %v690_v44  ;;  %v347_v44 = vld [vmem:[%s14226_s1 + $0xa10] sm:$0xff] }
  0xe6   :  { %6584 = vmatprep.subr.bf16.mxu1 %v10000_v61  ;;  %v922_v55 = vld [vmem:[%s14226_s1 + $0x1c08] sm:$0xff]  ;;  %v9903_v61 = vcombine.low %v938_v21, %v946_v45  ;;  %v9632_v62 = vcombine.high %v666_v51, %v674_v52  ;;  %v355_v21 = vld [vmem:[%s14226_s1 + $0xa50] sm:$0xff] }
  0xe7   :  { %6544 = vmatpush2.bf16.msra.mxu0 %v9743_v2  ;;  %v930_v56 = vld [vmem:[%s14226_s1 + $0x1c48] sm:$0xff]  ;;  %v395_v2 = vld [vmem:[%s14226_s1 + $0xb90] sm:$0xff] }
  0xe8   :  { %6545 = vmatprep.subr.bf16.mxu0 %v9728_v4  ;;  %v9888_v63 = vcombine.high %v922_v55, %v930_v56  ;;  %v9631_v4 = vcombine.low %v666_v51, %v674_v52  ;;  %v9887_v6 = vcombine.low %v922_v55, %v930_v56  ;;  %v9314_v52 = vcombine.high %v347_v44, %v355_v21  ;;  %v75_v55 = vld [vmem:[%s14226_s1 + $0x190] sm:$0xff] }
  0xe9   :  { %6585 = vmatpush2.bf16.msra.mxu1 %v9999_v3  ;;  %v403_v3 = vld [vmem:[%s14226_s1 + $0xbd0] sm:$0xff] }
  0xea   :  { %6586 = vmatprep.subr.bf16.mxu1 %v9984_v5  ;;  %v1055_v5 = vsub.s32 0, %v11320_v60  ;;  %v9362_v9 = vcombine.high %v395_v2, %v403_v3  ;;  %v9361_v18 = vcombine.low %v395_v2, %v403_v3  ;;  %v83_v56 = vld [vmem:[%s14226_s1 + $0x1d0] sm:$0xff] }
  0xeb   :  { %6546 = vmatpush2.bf16.msra.mxu0 %v9727_v10  ;;  %v1059_v10 = vsub.s32 1, %v11320_v60  ;;  %v9042_v0 = vcombine.high %v75_v55, %v83_v56  ;;  %v59_v2 = vld [vmem:[%s14226_s1 + $0x110] sm:$0xff] }
  0xec   :  { %6547 = vmatprep.subr.bf16.mxu0 %v9712_v12  ;;  %v131_v12 = vld [vmem:[%s14226_s1 + $0x350] sm:$0xff]  ;;  %v1056_v15 = vrot.slane %v11338_v7, %v1055_v5 }
  0xed   :  { %6587 = vmatpush2.bf16.msra.mxu1 %v9983_v11  ;;  %v123_v11 = vld [vmem:[%s14226_s1 + $0x310] sm:$0xff] }
  0xee   :  { %6588 = vmatprep.subr.bf16.mxu1 %v9968_v13  ;;  %v379_v13 = vld [vmem:[%s14226_s1 + $0xb10] sm:$0xff] }
  0xef   :  { %6548 = vmatpush2.bf16.msra.mxu0 %v9711_v53  ;;  %v9090_v53 = vcombine.high %v123_v11, %v131_v12  ;;  %v9345_v34 = vcombine.low %v379_v13, %v387_v14  ;;  %v67_v3 = vld [vmem:[%s14226_s1 + $0x150] sm:$0xff] }
  0xf0   :  { %6549 = vmatprep.subr.bf16.mxu0 %v9696_v23  ;;  %v9346_v23 = vcombine.high %v379_v13, %v387_v14  ;;  %v43_v13 = vld [vmem:[%s14226_s1 + $0x90] sm:$0xff] }
  0xf1   :  { %6589 = vmatpush2.bf16.msra.mxu1 %v9967_v22  ;;  %v1060_v22 = vrot.slane %v11338_v7, %v1059_v10  ;;  %v51_v14 = vld [vmem:[%s14226_s1 + $0xd0] sm:$0xff] }
  0xf2   :  { %6590 = vmatprep.subr.bf16.mxu1 %v9952_v24  ;;  %v107_v24 = vld [vmem:[%s14226_s1 + $0x290] sm:$0xff] }
  0xf3   :  { %6550 = vmatpush2.bf16.msra.mxu0 %v9695_v30  ;;  %v9074_v35 = vcombine.high %v107_v24, %v115_v25  ;;  %v9073_v47 = vcombine.low %v107_v24, %v115_v25  ;;  %v27_v24 = vld [vmem:[%s14226_s1 + $0x10] sm:$0xff] }
  0xf4   :  { %6551 = vmatprep.subr.bf16.mxu0 %v9680_v32  ;;  %v9089_v32 = vcombine.low %v123_v11, %v131_v12  ;;  %v9026_v11 = vcombine.high %v59_v2, %v67_v3  ;;  %v35_v25 = vld [vmem:[%s14226_s1 + $0x50] sm:$0xff] }
  0xf5   :  { %6591 = vmatpush2.bf16.msra.mxu1 %v9951_v31 }
  0xf6   :  { %6592 = vmatprep.subr.bf16.mxu1 %v9936_v33 }
  0xf7   :  { %6552 = vmatpush2.bf16.msra.mxu0 %v9679_v40 }
  0xf8   :  { %6553 = vmatprep.subr.bf16.mxu0 %v9664_v42  ;;  %v91_v42 = vld [vmem:[%s14226_s1 + $0x210] sm:$0xff] }
  0xf9   :  { %6593 = vmatpush2.bf16.msra.mxu1 %v9935_v41  ;;  %v9330_v41 = vcombine.high %v363_v27, %v371_v28 }
  0xfa   :  { %6594 = vmatprep.subr.bf16.mxu1 %v9920_v19  ;;  %v99_v19 = vld [vmem:[%s14226_s1 + $0x250] sm:$0xff] }
  0xfb   :  { %6554 = vmatpush2.bf16.msra.mxu0 %v9663_v46 }
  0xfc   :  { %6555 = vmatprep.subr.bf16.mxu0 %v9648_v49  ;;  %v9329_v49 = vcombine.low %v363_v27, %v371_v28  ;;  %v291_v27 = vld [vmem:[%s14226_s1 + $0x850] sm:$0xff]  ;;  %v9009_v28 = vcombine.low %v43_v13, %v51_v14 }
  0xfd   :  { %6595 = vmatpush2.bf16.msra.mxu1 %v9919_v48 }
  0xfe   :  { %6596 = vmatprep.subr.bf16.mxu1 %v9904_v50  ;;  %v9058_v50 = vcombine.high %v91_v42, %v99_v19 }
  0xff   :  { %6556 = vmatpush2.bf16.msra.mxu0 %v9647_v57  ;;  %v331_v57 = vld [vmem:[%s14226_s1 + $0x990] sm:$0xff] }
 0x100   :  { %6557 = vmatprep.subr.bf16.mxu0 %v9632_v62  ;;  %v9057_v62 = vcombine.low %v91_v42, %v99_v19 }
 0x101   :  { %6597 = vmatpush2.bf16.msra.mxu1 %v9903_v61  ;;  %v339_v61 = vld [vmem:[%s14226_s1 + $0x9d0] sm:$0xff] }
 0x102   :  { %6598 = vmatprep.subr.bf16.mxu1 %v9888_v63  ;;  %v9313_v63 = vcombine.low %v347_v44, %v355_v21  ;;  %v9298_v1 = vcombine.high %v331_v57, %v339_v61  ;;  %v259_v44 = vld [vmem:[%s14226_s1 + $0x750] sm:$0xff] }
 0x103   :  { %6558 = vmatpush2.bf16.msra.mxu0 %v9631_v4  ;;  %v315_v4 = vld [vmem:[%s14226_s1 + $0x910] sm:$0xff] }
 0x104   :  { %6609 = vmatprep.subr.bf16.mxu0 %v9106_v8  ;;  %v9041_v8 = vcombine.low %v75_v55, %v83_v56  ;;  %v507_v21 = vld [vmem:[%s14226_s1 + $0xf10] sm:$0xff] }
 0x105   :  { %6599 = vmatpush2.bf16.msra.mxu1 %v9887_v6  ;;  %v323_v6 = vld [vmem:[%s14226_s1 + $0x950] sm:$0xff] }
 0x106   :  { %6650 = vmatprep.subr.bf16.mxu1 %v9362_v9  ;;  %v6315_v54 = vpop.f32.mrf.mxu0  ;;  %6560 = vmatmul.mubr.bf16.vlgmr.msra.gmra.mxu0 %v10940_v36  ;;  %v9297_v9 = vcombine.low %v331_v57, %v339_v61  ;;  %v9282_v12 = vcombine.high %v315_v4, %v323_v6  ;;  %v491_v55 = vld [vmem:[%s14226_s1 + $0xe90] sm:$0xff] }
 0x107   :  { %v6316_v30 = vadd.f32 %v6315_v54, %v1056_v15  ;;  %6610 = vmatpush1.bf16.msra.mxu0 %v9105_v17  ;;  %6641 = vmatprep.mubr.bf16.mxu0 %v10588_v58  ;;  %v299_v15 = vld [vmem:[%s14226_s1 + $0x890] sm:$0xff] }
 0x108   :  { %v6356_v31 = vpop.f32.mrf.mxu1  ;;  %6601 = vmatmul.mubr.bf16.vlgmr.msra.gmra.mxu1 %v10950_v39  ;;  %v6317_v33 = vpop.f32.mrf.mxu0  ;;  %6611 = vmatprep.subr.bf16.mxu0 %v9090_v53  ;;  %v307_v17 = vld [vmem:[%s14226_s1 + $0x8d0] sm:$0xff]  ;;  %v9281_v53 = vcombine.low %v315_v4, %v323_v6 }
 0x109   :  { %6651 = vmatpush1.bf16.msra.mxu1 %v9361_v18  ;;  %v11373_v37 = vadd.f32 %v6356_v31, %v6316_v30  ;;  %v6318_v38 = vadd.f32 %v6317_v33, %v1060_v22  ;;  %6682 = vmatprep.mubr.bf16.mxu1 %v10592_v59  ;;  %v9025_v18 = vcombine.low %v59_v2, %v67_v3  ;;  %v283_v54 = vld [vmem:[%s14226_s1 + $0x810] sm:$0xff] }
 0x10a   :  { %v6358_v40 = vpop.f32.mrf.mxu1  ;;  %6652 = vmatprep.subr.bf16.mxu1 %v9346_v23  ;;  %v6319_v43 = vpop.f32.mrf.mxu0  ;;  %v9010_v22 = vcombine.high %v43_v13, %v51_v14  ;;  %v9266_v23 = vcombine.high %v299_v15, %v307_v17  ;;  %v9265_v30 = vcombine.low %v299_v15, %v307_v17  ;;  %v8994_v31 = vcombine.high %v27_v24, %v35_v25  ;;  %v267_v33 = vld [vmem:[%s14226_s1 + $0x790] sm:$0xff] }
 0x10b   :  { %v11389_v45 = vadd.f32 %v6358_v40, %v6318_v38  ;;  %6612 = vmatpush1.bf16.msra.mxu0 %v9089_v32  ;;  %v9250_v32 = vcombine.high %v283_v54, %v291_v27  ;;  %v531_v38 = vld [vmem:[%s14226_s1 + $0xfd0] sm:$0xff]  ;;  %v8993_v40 = vcombine.low %v27_v24, %v35_v25 }
 0x10c   :  { %v6360_v46 = vpop.f32.mrf.mxu1  ;;  %v6320_v48 = vpop.f32.mrf.mxu0  ;;  %6613 = vmatprep.subr.bf16.mxu0 %v9074_v35  ;;  %v523_v35 = vld [vmem:[%s14226_s1 + $0xf90] sm:$0xff] }
 0x10d   :  { %6653 = vmatpush1.bf16.msra.mxu1 %v9345_v34  ;;  %v275_v34 = vld [vmem:[%s14226_s1 + $0x7d0] sm:$0xff]  ;;  %v9490_v19 = vcombine.high %v523_v35, %v531_v38  ;;  %v9489_v48 = vcombine.low %v523_v35, %v531_v38 }
 0x10e   :  { %v6361_v51 = vpop.f32.mrf.mxu1  ;;  %6654 = vmatprep.subr.bf16.mxu1 %v9330_v41  ;;  %v9249_v41 = vcombine.low %v283_v54, %v291_v27  ;;  %v9234_v42 = vcombine.high %v267_v33, %v275_v34  ;;  %v251_v43 = vld [vmem:[%s14226_s1 + $0x710] sm:$0xff] }
 0x10f   :  { %6614 = vmatpush1.bf16.msra.mxu0 %v9073_v47  ;;  %v515_v46 = vld [vmem:[%s14226_s1 + $0xf50] sm:$0xff]  ;;  %v9233_v47 = vcombine.low %v267_v33, %v275_v34  ;;  %v9217_v57 = vcombine.low %v251_v43, %v259_v44 }
 0x110   :  { %6615 = vmatprep.subr.bf16.mxu0 %v9058_v50  ;;  %v9474_v50 = vcombine.high %v507_v21, %v515_v46  ;;  %v235_v51 = vld [vmem:[%s14226_s1 + $0x690] sm:$0xff]  ;;  %v9473_v61 = vcombine.low %v507_v21, %v515_v46 }
 0x111   :  { %6655 = vmatpush1.bf16.msra.mxu1 %v9329_v49  ;;  %v9218_v49 = vcombine.high %v251_v43, %v259_v44  ;;  %v499_v56 = vld [vmem:[%s14226_s1 + $0xed0] sm:$0xff] }
 0x112   :  { %6656 = vmatprep.subr.bf16.mxu1 %v9314_v52  ;;  %v243_v52 = vld [vmem:[%s14226_s1 + $0x6d0] sm:$0xff]  ;;  %v9457_v6 = vcombine.low %v491_v55, %v499_v56 }
 0x113   :  { %6616 = vmatpush1.bf16.msra.mxu0 %v9057_v62  ;;  %v9202_v62 = vcombine.high %v235_v51, %v243_v52  ;;  %v475_v2 = vld [vmem:[%s14226_s1 + $0xe10] sm:$0xff]  ;;  %v9201_v4 = vcombine.low %v235_v51, %v243_v52 }
 0x114   :  { %6617 = vmatprep.subr.bf16.mxu0 %v9042_v0  ;;  %v219_v0 = vld [vmem:[%s14226_s1 + $0x610] sm:$0xff] }
 0x115   :  { %6657 = vmatpush1.bf16.msra.mxu1 %v9313_v63  ;;  %v9458_v63 = vcombine.high %v491_v55, %v499_v56  ;;  %v483_v3 = vld [vmem:[%s14226_s1 + $0xe50] sm:$0xff] }
 0x116   :  { %6658 = vmatprep.subr.bf16.mxu1 %v9298_v1  ;;  %v227_v1 = vld [vmem:[%s14226_s1 + $0x650] sm:$0xff]  ;;  %v9441_v17 = vcombine.low %v475_v2, %v483_v3 }
 0x117   :  { %6618 = vmatpush1.bf16.msra.mxu0 %v9041_v8  ;;  %v9186_v8 = vcombine.high %v219_v0, %v227_v1  ;;  %v459_v13 = vld [vmem:[%s14226_s1 + $0xd90] sm:$0xff]  ;;  %v9185_v15 = vcombine.low %v219_v0, %v227_v1 }
 0x118   :  { %6619 = vmatprep.subr.bf16.mxu0 %v9026_v11  ;;  %v203_v11 = vld [vmem:[%s14226_s1 + $0x590] sm:$0xff] }
 0x119   :  { %6659 = vmatpush1.bf16.msra.mxu1 %v9297_v9  ;;  %v9442_v9 = vcombine.high %v475_v2, %v483_v3  ;;  %v467_v14 = vld [vmem:[%s14226_s1 + $0xdd0] sm:$0xff] }
 0x11a   :  { %6660 = vmatprep.subr.bf16.mxu1 %v9282_v12  ;;  %v211_v12 = vld [vmem:[%s14226_s1 + $0x5d0] sm:$0xff]  ;;  %v9425_v27 = vcombine.low %v459_v13, %v467_v14 }
 0x11b   :  { %6620 = vmatpush1.bf16.msra.mxu0 %v9025_v18  ;;  %v9170_v18 = vcombine.high %v203_v11, %v211_v12  ;;  %v443_v24 = vld [vmem:[%s14226_s1 + $0xd10] sm:$0xff]  ;;  %v9169_v54 = vcombine.low %v203_v11, %v211_v12 }
 0x11c   :  { %6621 = vmatprep.subr.bf16.mxu0 %v9010_v22  ;;  %v187_v22 = vld [vmem:[%s14226_s1 + $0x510] sm:$0xff] }
 0x11d   :  { %6661 = vmatpush1.bf16.msra.mxu1 %v9281_v53  ;;  %v9426_v53 = vcombine.high %v459_v13, %v467_v14  ;;  %v451_v25 = vld [vmem:[%s14226_s1 + $0xd50] sm:$0xff] }
 0x11e   :  { %6662 = vmatprep.subr.bf16.mxu1 %v9266_v23  ;;  %v195_v23 = vld [vmem:[%s14226_s1 + $0x550] sm:$0xff]  ;;  %v9409_v38 = vcombine.low %v443_v24, %v451_v25 }
 0x11f   :  { %6622 = vmatpush1.bf16.msra.mxu0 %v9009_v28  ;;  %v9154_v28 = vcombine.high %v187_v22, %v195_v23  ;;  %v427_v33 = vld [vmem:[%s14226_s1 + $0xc90] sm:$0xff]  ;;  %v9153_v35 = vcombine.low %v187_v22, %v195_v23 }
 0x120   :  { %6623 = vmatprep.subr.bf16.mxu0 %v8994_v31  ;;  %v171_v31 = vld [vmem:[%s14226_s1 + $0x490] sm:$0xff] }
 0x121   :  { %6663 = vmatpush1.bf16.msra.mxu1 %v9265_v30  ;;  %v9410_v30 = vcombine.high %v443_v24, %v451_v25  ;;  %v435_v34 = vld [vmem:[%s14226_s1 + $0xcd0] sm:$0xff] }
 0x122   :  { %6664 = vmatprep.subr.bf16.mxu1 %v9250_v32  ;;  %v179_v32 = vld [vmem:[%s14226_s1 + $0x4d0] sm:$0xff]  ;;  %v9393_v46 = vcombine.low %v427_v33, %v435_v34 }
 0x123   :  { %6624 = vmatpush1.bf16.msra.mxu0 %v8993_v40  ;;  %v9138_v40 = vcombine.high %v171_v31, %v179_v32  ;;  %v411_v43 = vld [vmem:[%s14226_s1 + $0xc10] sm:$0xff]  ;;  %v9137_v21 = vcombine.low %v171_v31, %v179_v32 }
 0x124   :  { %6625 = vmatprep.subr.bf16.mxu0 %v9234_v42  ;;  %v155_v42 = vld [vmem:[%s14226_s1 + $0x410] sm:$0xff] }
 0x125   :  { %6665 = vmatpush1.bf16.msra.mxu1 %v9249_v41  ;;  %v9394_v41 = vcombine.high %v427_v33, %v435_v34  ;;  %v419_v44 = vld [vmem:[%s14226_s1 + $0xc50] sm:$0xff] }
 0x126   :  { %6666 = vmatprep.subr.bf16.mxu1 %v9490_v19  ;;  %v163_v19 = vld [vmem:[%s14226_s1 + $0x450] sm:$0xff]  ;;  %v9377_v56 = vcombine.low %v411_v43, %v419_v44 }
 0x127   :  { %6626 = vmatpush2.bf16.msra.mxu0 %v9233_v47  ;;  %v9122_v47 = vcombine.high %v155_v42, %v163_v19  ;;  %v907_v51 = vld [vmem:[%s14226_s1 + $0x1b90] sm:$0xff]  ;;  %v9121_v55 = vcombine.low %v155_v42, %v163_v19 }
 0x128   :  { %6627 = vmatprep.subr.bf16.mxu0 %v9218_v49  ;;  %v651_v49 = vld [vmem:[%s14226_s1 + $0x1390] sm:$0xff] }
 0x129   :  { %6667 = vmatpush2.bf16.msra.mxu1 %v9489_v48  ;;  %v9378_v48 = vcombine.high %v411_v43, %v419_v44  ;;  %v915_v52 = vld [vmem:[%s14226_s1 + $0x1bd0] sm:$0xff] }
 0x12a   :  { %6668 = vmatprep.subr.bf16.mxu1 %v9474_v50  ;;  %v659_v50 = vld [vmem:[%s14226_s1 + $0x13d0] sm:$0xff]  ;;  %v9873_v3 = vcombine.low %v907_v51, %v915_v52 }
 0x12b   :  { %6628 = vmatpush2.bf16.msra.mxu0 %v9217_v57  ;;  %v9618_v57 = vcombine.high %v651_v49, %v659_v50  ;;  %v891_v0 = vld [vmem:[%s14226_s1 + $0x1b10] sm:$0xff]  ;;  %v9617_v2 = vcombine.low %v651_v49, %v659_v50 }
 0x12c   :  { %6629 = vmatprep.subr.bf16.mxu0 %v9202_v62  ;;  %v635_v62 = vld [vmem:[%s14226_s1 + $0x1310] sm:$0xff] }
 0x12d   :  { %6669 = vmatpush2.bf16.msra.mxu1 %v9473_v61  ;;  %v9874_v61 = vcombine.high %v907_v51, %v915_v52  ;;  %v899_v1 = vld [vmem:[%s14226_s1 + $0x1b50] sm:$0xff] }
 0x12e   :  { %6670 = vmatprep.subr.bf16.mxu1 %v9458_v63  ;;  %v643_v63 = vld [vmem:[%s14226_s1 + $0x1350] sm:$0xff] }
 0x12f   :  { %6630 = vmatpush2.bf16.msra.mxu0 %v9201_v4  ;;  %v9602_v4 = vcombine.high %v635_v62, %v643_v63  ;;  %v875_v12 = vld [vmem:[%s14226_s1 + $0x1a90] sm:$0xff] }
 0x130   :  { %6631 = vmatprep.subr.bf16.mxu0 %v9186_v8  ;;  %v619_v8 = vld [vmem:[%s14226_s1 + $0x1290] sm:$0xff] }
 0x131   :  { %6671 = vmatpush2.bf16.msra.mxu1 %v9457_v6  ;;  %v9858_v6 = vcombine.high %v891_v0, %v899_v1  ;;  %v883_v13 = vld [vmem:[%s14226_s1 + $0x1ad0] sm:$0xff] }
 0x132   :  { %6672 = vmatprep.subr.bf16.mxu1 %v9442_v9  ;;  %v627_v9 = vld [vmem:[%s14226_s1 + $0x12d0] sm:$0xff] }
 0x133   :  { %6632 = vmatpush2.bf16.msra.mxu0 %v9185_v15  ;;  %v9586_v22 = vcombine.high %v619_v8, %v627_v9  ;;  %v9585_v33 = vcombine.low %v619_v8, %v627_v9  ;;  %v587_v42 = vld [vmem:[%s14226_s1 + $0x1190] sm:$0xff] }
 0x134   :  { %6633 = vmatprep.subr.bf16.mxu0 %v9170_v18  ;;  %v595_v19 = vld [vmem:[%s14226_s1 + $0x11d0] sm:$0xff] }
 0x135   :  { %6673 = vmatpush2.bf16.msra.mxu1 %v9441_v17  ;;  %v9601_v17 = vcombine.low %v635_v62, %v643_v63  ;;  %v843_v43 = vld [vmem:[%s14226_s1 + $0x1990] sm:$0xff] }
 0x136   :  { %6674 = vmatprep.subr.bf16.mxu1 %v9426_v53  ;;  %v9857_v53 = vcombine.low %v891_v0, %v899_v1  ;;  %v851_v44 = vld [vmem:[%s14226_s1 + $0x19d0] sm:$0xff] }
 0x137   :  { %6634 = vmatpush2.bf16.msra.mxu0 %v9169_v54  ;;  %v9842_v54 = vcombine.high %v875_v12, %v883_v13  ;;  %v571_v49 = vld [vmem:[%s14226_s1 + $0x1110] sm:$0xff] }
 0x138   :  { %6635 = vmatprep.subr.bf16.mxu0 %v9154_v28  ;;  %v579_v50 = vld [vmem:[%s14226_s1 + $0x1150] sm:$0xff] }
 0x139   :  { %6675 = vmatpush2.bf16.msra.mxu1 %v9425_v27  ;;  %v611_v27 = vld [vmem:[%s14226_s1 + $0x1250] sm:$0xff] }
 0x13a   :  { %6676 = vmatprep.subr.bf16.mxu1 %v9410_v30  ;;  %v859_v30 = vld [vmem:[%s14226_s1 + $0x1a10] sm:$0xff] }
 0x13b   :  { %6636 = vmatpush2.bf16.msra.mxu0 %v9153_v35  ;;  %v9841_v35 = vcombine.low %v875_v12, %v883_v13  ;;  %v827_v51 = vld [vmem:[%s14226_s1 + $0x1910] sm:$0xff] }
 0x13c   :  { %6637 = vmatprep.subr.bf16.mxu0 %v9138_v40  ;;  %v835_v52 = vld [vmem:[%s14226_s1 + $0x1950] sm:$0xff] }
 0x13d   :  { %6677 = vmatpush2.bf16.msra.mxu1 %v9409_v38  ;;  %v555_v62 = vld [vmem:[%s14226_s1 + $0x1090] sm:$0xff] }
 0x13e   :  { %6678 = vmatprep.subr.bf16.mxu1 %v9394_v41  ;;  %v563_v63 = vld [vmem:[%s14226_s1 + $0x10d0] sm:$0xff] }
 0x13f   :  { %6638 = vmatpush2.bf16.msra.mxu0 %v9137_v21  ;;  %v811_v0 = vld [vmem:[%s14226_s1 + $0x1890] sm:$0xff]  ;;  %v9521_v13 = vcombine.low %v555_v62, %v563_v63 }
 0x140   :  { %6639 = vmatprep.subr.bf16.mxu0 %v9122_v47  ;;  %v9554_v47 = vcombine.high %v587_v42, %v595_v19  ;;  %v819_v1 = vld [vmem:[%s14226_s1 + $0x18d0] sm:$0xff] }
 0x141   :  { %6679 = vmatpush2.bf16.msra.mxu1 %v9393_v46  ;;  %v539_v8 = vld [vmem:[%s14226_s1 + $0x1010] sm:$0xff] }
 0x142   :  { %6680 = vmatprep.subr.bf16.mxu1 %v9378_v48  ;;  %v9810_v48 = vcombine.high %v843_v43, %v851_v44  ;;  %v547_v9 = vld [vmem:[%s14226_s1 + $0x1050] sm:$0xff] }
 0x143   :  { %6640 = vmatpush2.bf16.msra.mxu0 %v9121_v55  ;;  %v9553_v55 = vcombine.low %v587_v42, %v595_v19  ;;  %v803_v12 = vld [vmem:[%s14226_s1 + $0x1850] sm:$0xff] }
 0x144   :  { %6691 = vmatprep.subr.bf16.mxu0 %v9618_v57  ;;  %v9538_v57 = vcombine.high %v571_v49, %v579_v50  ;;  %v1003_v42 = vld [vmem:[%s14226_s1 + $0x1e90] sm:$0xff] }
 0x145   :  { %6681 = vmatpush2.bf16.msra.mxu1 %v9377_v56  ;;  %v9809_v56 = vcombine.low %v843_v43, %v851_v44  ;;  %v1011_v19 = vld [vmem:[%s14226_s1 + $0x1ed0] sm:$0xff] }
 0x146   :  { %6732 = vmatprep.subr.bf16.mxu1 %v9874_v61  ;;  %v6397_v11 = vpop.f32.mrf.mxu0  ;;  %6642 = vmatmul.mubr.bf16.vlgmr.msra.gmra.mxu0 %v10718_v16  ;;  %v9794_v61 = vcombine.high %v827_v51, %v835_v52 }
 0x147   :  { %v6398_v14 = vadd.f32 %v6397_v11, %v11373_v37  ;;  %6692 = vmatpush1.bf16.msra.mxu0 %v9617_v2  ;;  %v603_v37 = vld [vmem:[%s14226_s1 + $0x1210] sm:$0xff]  ;;  %6723 = vmatprep.mubr.bf16.mxu0 %v10748_v26  ;;  %v9537_v2 = vcombine.low %v571_v49, %v579_v50 }
 0x148   :  { %v6438_v15 = vpop.f32.mrf.mxu1  ;;  %6683 = vmatmul.mubr.bf16.vlgmr.msra.gmra.mxu1 %v10733_v20  ;;  %v6399_v18 = vpop.f32.mrf.mxu0  ;;  %6693 = vmatprep.subr.bf16.mxu0 %v9602_v4  ;;  %v9570_v38 = vcombine.high %v603_v37, %v611_v27  ;;  %v9569_v21 = vcombine.low %v603_v37, %v611_v27  ;;  %v9522_v4 = vcombine.high %v555_v62, %v563_v63  ;;  %v795_v11 = vld [vmem:[%s14226_s1 + $0x1810] sm:$0xff] }
 0x149   :  { %6733 = vmatpush1.bf16.msra.mxu1 %v9873_v3  ;;  %v11574_v23 = vadd.f32 %v6438_v15, %v6398_v14  ;;  %v6400_v24 = vadd.f32 %v6399_v18, %v11389_v45  ;;  %v867_v45 = vld [vmem:[%s14226_s1 + $0x1a50] sm:$0xff]  ;;  %6764 = vmatprep.mubr.bf16.mxu1 %v10759_v29  ;;  %v9793_v3 = vcombine.low %v827_v51, %v835_v52 }
 0x14a   :  { %v6440_v25 = vpop.f32.mrf.mxu1  ;;  %6734 = vmatprep.subr.bf16.mxu1 %v9858_v6  ;;  %v6401_v28 = vpop.f32.mrf.mxu0  ;;  %v9826_v41 = vcombine.high %v859_v30, %v867_v45  ;;  %v9825_v46 = vcombine.low %v859_v30, %v867_v45  ;;  %v9778_v6 = vcombine.high %v811_v0, %v819_v1  ;;  %v9777_v14 = vcombine.low %v811_v0, %v819_v1  ;;  %v779_v18 = vld [vmem:[%s14226_s1 + $0x1790] sm:$0xff] }
 0x14b   :  { %v11591_v31 = vadd.f32 %v6440_v25, %v6400_v24  ;;  %6694 = vmatpush1.bf16.msra.mxu0 %v9601_v17  ;;  %v9506_v15 = vcombine.high %v539_v8, %v547_v9  ;;  %v9762_v17 = vcombine.high %v795_v11, %v803_v12  ;;  %v1043_v24 = vld [vmem:[%s14226_s1 + $0x1fd0] sm:$0xff]  ;;  %v9505_v25 = vcombine.low %v539_v8, %v547_v9 }
 0x14c   :  { %v6442_v32 = vpop.f32.mrf.mxu1  ;;  %v6402_v34 = vpop.f32.mrf.mxu0  ;;  %6695 = vmatprep.subr.bf16.mxu0 %v9586_v22  ;;  %v1035_v22 = vld [vmem:[%s14226_s1 + $0x1f90] sm:$0xff]  ;;  %v9969_v52 = vcombine.low %v1003_v42, %v1011_v19 }
 0x14d   :  { %6735 = vmatpush1.bf16.msra.mxu1 %v9857_v53  ;;  %v787_v53 = vld [vmem:[%s14226_s1 + $0x17d0] sm:$0xff]  ;;  %v10002_v27 = vcombine.high %v1035_v22, %v1043_v24  ;;  %v10001_v34 = vcombine.low %v1035_v22, %v1043_v24 }
 0x14e   :  { %v6443_v40 = vpop.f32.mrf.mxu1  ;;  %6736 = vmatprep.subr.bf16.mxu1 %v9842_v54  ;;  %v9761_v54 = vcombine.low %v795_v11, %v803_v12  ;;  %v9746_v37 = vcombine.high %v779_v18, %v787_v53  ;;  %v763_v28 = vld [vmem:[%s14226_s1 + $0x1710] sm:$0xff] }
 0x14f   :  { %6696 = vmatpush1.bf16.msra.mxu0 %v9585_v33  ;;  %v771_v30 = vld [vmem:[%s14226_s1 + $0x1750] sm:$0xff]  ;;  %v9745_v33 = vcombine.low %v779_v18, %v787_v53 }
 0x150   :  { %6697 = vmatprep.subr.bf16.mxu0 %v9570_v38  ;;  %v1019_v45 = vld [vmem:[%s14226_s1 + $0x1f10] sm:$0xff]  ;;  %v9729_v43 = vcombine.low %v763_v28, %v771_v30 }
 0x151   :  { %6737 = vmatpush1.bf16.msra.mxu1 %v9841_v35  ;;  %v1027_v32 = vld [vmem:[%s14226_s1 + $0x1f50] sm:$0xff]  ;;  %v9730_v35 = vcombine.high %v763_v28, %v771_v30 }
 0x152   :  { %6738 = vmatprep.subr.bf16.mxu1 %v9826_v41  ;;  %v9986_v38 = vcombine.high %v1019_v45, %v1027_v32  ;;  %v747_v40 = vld [vmem:[%s14226_s1 + $0x1690] sm:$0xff]  ;;  %v9985_v44 = vcombine.low %v1019_v45, %v1027_v32 }
 0x153   :  { %6698 = vmatpush1.bf16.msra.mxu0 %v9569_v21  ;;  %v755_v41 = vld [vmem:[%s14226_s1 + $0x16d0] sm:$0xff] }
 0x154   :  { %6699 = vmatprep.subr.bf16.mxu0 %v9554_v47  ;;  %v9714_v21 = vcombine.high %v747_v40, %v755_v41  ;;  %v731_v47 = vld [vmem:[%s14226_s1 + $0x1610] sm:$0xff]  ;;  %v9713_v51 = vcombine.low %v747_v40, %v755_v41  ;;  %v396_v40 = vld [vmem:[%s14226_s1 + $0xb98] sm:$0xff] }
 0x155   :  { %6739 = vmatpush1.bf16.msra.mxu1 %v9825_v46  ;;  %v9970_v46 = vcombine.high %v1003_v42, %v1011_v19  ;;  %v987_v49 = vld [vmem:[%s14226_s1 + $0x1e10] sm:$0xff]  ;;  %v404_v41 = vld [vmem:[%s14226_s1 + $0xbd8] sm:$0xff]  ;;  %v1063_v19 = vsub.s32 2, %v11320_v60 }
 0x156   :  { %6740 = vmatprep.subr.bf16.mxu1 %v9810_v48  ;;  %v739_v48 = vld [vmem:[%s14226_s1 + $0x1650] sm:$0xff] }
 0x157   :  { %6700 = vmatpush1.bf16.msra.mxu0 %v9553_v55  ;;  %v995_v50 = vld [vmem:[%s14226_s1 + $0x1e50] sm:$0xff]  ;;  %v9698_v55 = vcombine.high %v731_v47, %v739_v48  ;;  %v9697_v0 = vcombine.low %v731_v47, %v739_v48  ;;  %v124_v47 = vld [vmem:[%s14226_s1 + $0x318] sm:$0xff] }
 0x158   :  { %6701 = vmatprep.subr.bf16.mxu0 %v9538_v57  ;;  %v715_v57 = vld [vmem:[%s14226_s1 + $0x1590] sm:$0xff]  ;;  %v9953_v1 = vcombine.low %v987_v49, %v995_v50  ;;  %v132_v48 = vld [vmem:[%s14226_s1 + $0x358] sm:$0xff] }
 0x159   :  { %6741 = vmatpush1.bf16.msra.mxu1 %v9809_v56  ;;  %v9954_v56 = vcombine.high %v987_v49, %v995_v50  ;;  %v971_v62 = vld [vmem:[%s14226_s1 + $0x1d90] sm:$0xff]  ;;  %v380_v49 = vld [vmem:[%s14226_s1 + $0xb18] sm:$0xff] }
 0x15a   :  { %6742 = vmatprep.subr.bf16.mxu1 %v9794_v61  ;;  %v723_v61 = vld [vmem:[%s14226_s1 + $0x15d0] sm:$0xff]  ;;  %v388_v50 = vld [vmem:[%s14226_s1 + $0xb58] sm:$0xff] }
 0x15b   :  { %6702 = vmatpush1.bf16.msra.mxu0 %v9537_v2  ;;  %v979_v63 = vld [vmem:[%s14226_s1 + $0x1dd0] sm:$0xff]  ;;  %v9682_v2 = vcombine.high %v715_v57, %v723_v61  ;;  %v9681_v11 = vcombine.low %v715_v57, %v723_v61  ;;  %v9348_v61 = vcombine.high %v380_v49, %v388_v50 }
 0x15c   :  { %6703 = vmatprep.subr.bf16.mxu0 %v9522_v4  ;;  %v699_v4 = vld [vmem:[%s14226_s1 + $0x1510] sm:$0xff]  ;;  %v9937_v12 = vcombine.low %v971_v62, %v979_v63 }
 0x15d   :  { %6743 = vmatpush1.bf16.msra.mxu1 %v9793_v3  ;;  %v9938_v3 = vcombine.high %v971_v62, %v979_v63  ;;  %v955_v8 = vld [vmem:[%s14226_s1 + $0x1d10] sm:$0xff]  ;;  %v108_v62 = vld [vmem:[%s14226_s1 + $0x298] sm:$0xff] }
 0x15e   :  { %6744 = vmatprep.subr.bf16.mxu1 %v9778_v6  ;;  %v707_v6 = vld [vmem:[%s14226_s1 + $0x1550] sm:$0xff]  ;;  %v116_v63 = vld [vmem:[%s14226_s1 + $0x2d8] sm:$0xff] }
 0x15f   :  { %6704 = vmatpush1.bf16.msra.mxu0 %v9521_v13  ;;  %v963_v9 = vld [vmem:[%s14226_s1 + $0x1d50] sm:$0xff]  ;;  %v9666_v13 = vcombine.high %v699_v4, %v707_v6  ;;  %v9665_v22 = vcombine.low %v699_v4, %v707_v6  ;;  %v9091_v4 = vcombine.low %v124_v47, %v132_v48 }
 0x160   :  { %6705 = vmatprep.subr.bf16.mxu0 %v9506_v15  ;;  %v683_v15 = vld [vmem:[%s14226_s1 + $0x1490] sm:$0xff]  ;;  %v9921_v24 = vcombine.low %v955_v8, %v963_v9 }
 0x161   :  { %6745 = vmatpush1.bf16.msra.mxu1 %v9777_v14  ;;  %v9922_v14 = vcombine.high %v955_v8, %v963_v9  ;;  %v939_v18 = vld [vmem:[%s14226_s1 + $0x1c90] sm:$0xff]  ;;  %v9347_v8 = vcombine.low %v380_v49, %v388_v50  ;;  %v9076_v9 = vcombine.high %v108_v62, %v116_v63 }
 0x162   :  { %6746 = vmatprep.subr.bf16.mxu1 %v9762_v17  ;;  %v691_v17 = vld [vmem:[%s14226_s1 + $0x14d0] sm:$0xff] }
 0x163   :  { %6706 = vmatpush1.bf16.msra.mxu0 %v9505_v25  ;;  %v947_v53 = vld [vmem:[%s14226_s1 + $0x1cd0] sm:$0xff]  ;;  %v9650_v25 = vcombine.high %v683_v15, %v691_v17  ;;  %v9649_v45 = vcombine.low %v683_v15, %v691_v17  ;;  %v92_v15 = vld [vmem:[%s14226_s1 + $0x218] sm:$0xff] }
 0x164   :  { %6707 = vmatprep.subr.bf16.mxu0 %v9746_v37  ;;  %v667_v37 = vld [vmem:[%s14226_s1 + $0x1410] sm:$0xff]  ;;  %v9905_v32 = vcombine.low %v939_v18, %v947_v53  ;;  %v100_v17 = vld [vmem:[%s14226_s1 + $0x258] sm:$0xff] }
 0x165   :  { %6747 = vmatpush1.bf16.msra.mxu1 %v9761_v54  ;;  %v9906_v54 = vcombine.high %v939_v18, %v947_v53  ;;  %v923_v28 = vld [vmem:[%s14226_s1 + $0x1c10] sm:$0xff]  ;;  %v348_v53 = vld [vmem:[%s14226_s1 + $0xa18] sm:$0xff] }
 0x166   :  { %6748 = vmatprep.subr.bf16.mxu1 %v10002_v27  ;;  %v675_v27 = vld [vmem:[%s14226_s1 + $0x1450] sm:$0xff] }
 0x167   :  { %6708 = vmatpush2.bf16.msra.mxu0 %v9745_v33  ;;  %v931_v30 = vld [vmem:[%s14226_s1 + $0x1c50] sm:$0xff]  ;;  %v9634_v33 = vcombine.high %v667_v37, %v675_v27  ;;  %v9633_v42 = vcombine.low %v667_v37, %v675_v27 }
 0x168   :  { %6709 = vmatprep.subr.bf16.mxu0 %v9730_v35  ;;  %v140_v35 = vld [vmem:[%s14226_s1 + $0x398] sm:$0xff] }
 0x169   :  { %6749 = vmatpush2.bf16.msra.mxu1 %v10001_v34  ;;  %v9890_v34 = vcombine.high %v923_v28, %v931_v30 }
 0x16a   :  { %6750 = vmatprep.subr.bf16.mxu1 %v9986_v38  ;;  %v148_v38 = vld [vmem:[%s14226_s1 + $0x3d8] sm:$0xff] }
 0x16b   :  { %6710 = vmatpush2.bf16.msra.mxu0 %v9729_v43  ;;  %v9889_v43 = vcombine.low %v923_v28, %v931_v30  ;;  %v9060_v28 = vcombine.high %v92_v15, %v100_v17 }
 0x16c   :  { %6711 = vmatprep.subr.bf16.mxu0 %v9714_v21  ;;  %v9364_v21 = vcombine.high %v396_v40, %v404_v41 }
 0x16d   :  { %6751 = vmatpush2.bf16.msra.mxu1 %v9985_v44  ;;  %v9108_v44 = vcombine.high %v140_v35, %v148_v38 }
 0x16e   :  { %6752 = vmatprep.subr.bf16.mxu1 %v9970_v46  ;;  %v1067_v46 = vsub.s32 3, %v11320_v60 }
 0x16f   :  { %6712 = vmatpush2.bf16.msra.mxu0 %v9713_v51  ;;  %v1064_v51 = vrot.slane %v11338_v7, %v1063_v19 }
 0x170   :  { %6713 = vmatprep.subr.bf16.mxu0 %v9698_v55  ;;  %v9363_v55 = vcombine.low %v396_v40, %v404_v41  ;;  %v1068_v57 = vrot.slane %v11338_v7, %v1067_v46  ;;  %v372_v7 = vld [vmem:[%s14226_s1 + $0xad8] sm:$0xff] }
 0x171   :  { %6753 = vmatpush2.bf16.msra.mxu1 %v9969_v52  ;;  %v9107_v52 = vcombine.low %v140_v35, %v148_v38  ;;  %v340_v35 = vld [vmem:[%s14226_s1 + $0x9d8] sm:$0xff]  ;;  %v9059_v38 = vcombine.low %v92_v15, %v100_v17 }
 0x172   :  { %6754 = vmatprep.subr.bf16.mxu1 %v9954_v56  ;;  %v9092_v56 = vcombine.high %v124_v47, %v132_v48  ;;  %v324_v47 = vld [vmem:[%s14226_s1 + $0x958] sm:$0xff] }
 0x173   :  { %6714 = vmatpush2.bf16.msra.mxu0 %v9697_v0  ;;  %v532_v15 = vld [vmem:[%s14226_s1 + $0xfd8] sm:$0xff] }
 0x174   :  { %6715 = vmatprep.subr.bf16.mxu0 %v9682_v2 }
 0x175   :  { %6755 = vmatpush2.bf16.msra.mxu1 %v9953_v1  ;;  %v364_v1 = vld [vmem:[%s14226_s1 + $0xa98] sm:$0xff] }
 0x176   :  { %6756 = vmatprep.subr.bf16.mxu1 %v9938_v3  ;;  %v9331_v27 = vcombine.low %v364_v1, %v372_v7 }
 0x177   :  { %6716 = vmatpush2.bf16.msra.mxu0 %v9681_v11 }
 0x178   :  { %6717 = vmatprep.subr.bf16.mxu0 %v9666_v13 }
 0x179   :  { %6757 = vmatpush2.bf16.msra.mxu1 %v9937_v12 }
 0x17a   :  { %6758 = vmatprep.subr.bf16.mxu1 %v9922_v14  ;;  %v9332_v14 = vcombine.high %v364_v1, %v372_v7  ;;  %v28_v1 = vld [vmem:[%s14226_s1 + $0x18] sm:$0xff] }
 0x17b   :  { %6718 = vmatpush2.bf16.msra.mxu0 %v9665_v22  ;;  %v356_v22 = vld [vmem:[%s14226_s1 + $0xa58] sm:$0xff] }
 0x17c   :  { %6719 = vmatprep.subr.bf16.mxu0 %v9650_v25  ;;  %v9315_v40 = vcombine.low %v348_v53, %v356_v22  ;;  %v36_v7 = vld [vmem:[%s14226_s1 + $0x58] sm:$0xff] }
 0x17d   :  { %6759 = vmatpush2.bf16.msra.mxu1 %v9921_v24  ;;  %v8995_v17 = vcombine.low %v28_v1, %v36_v7 }
 0x17e   :  { %6760 = vmatprep.subr.bf16.mxu1 %v9906_v54  ;;  %v9075_v54 = vcombine.low %v108_v62, %v116_v63 }
 0x17f   :  { %6720 = vmatpush2.bf16.msra.mxu0 %v9649_v45  ;;  %v9316_v45 = vcombine.high %v348_v53, %v356_v22 }
 0x180   :  { %6721 = vmatprep.subr.bf16.mxu0 %v9634_v33  ;;  %v84_v33 = vld [vmem:[%s14226_s1 + $0x1d8] sm:$0xff] }
 0x181   :  { %6761 = vmatpush2.bf16.msra.mxu1 %v9905_v32  ;;  %v76_v32 = vld [vmem:[%s14226_s1 + $0x198] sm:$0xff] }
 0x182   :  { %6762 = vmatprep.subr.bf16.mxu1 %v9890_v34  ;;  %v332_v34 = vld [vmem:[%s14226_s1 + $0x998] sm:$0xff]  ;;  %v9044_v41 = vcombine.high %v76_v32, %v84_v33  ;;  %v9043_v48 = vcombine.low %v76_v32, %v84_v33 }
 0x183   :  { %6722 = vmatpush2.bf16.msra.mxu0 %v9633_v42  ;;  %v9300_v42 = vcombine.high %v332_v34, %v340_v35  ;;  %v9299_v49 = vcombine.low %v332_v34, %v340_v35  ;;  %v236_v33 = vld [vmem:[%s14226_s1 + $0x698] sm:$0xff] }
 0x184   :  { %6773 = vmatprep.subr.bf16.mxu0 %v9108_v44  ;;  %v68_v44 = vld [vmem:[%s14226_s1 + $0x158] sm:$0xff] }
 0x185   :  { %6763 = vmatpush2.bf16.msra.mxu1 %v9889_v43  ;;  %v60_v43 = vld [vmem:[%s14226_s1 + $0x118] sm:$0xff] }
 0x186   :  { %6814 = vmatprep.subr.bf16.mxu1 %v9364_v21  ;;  %v6479_v0 = vpop.f32.mrf.mxu0  ;;  %6724 = vmatmul.mubr.bf16.vlgmr.msra.gmra.mxu0 %v10940_v36  ;;  %v316_v21 = vld [vmem:[%s14226_s1 + $0x918] sm:$0xff]  ;;  %v9028_v50 = vcombine.high %v60_v43, %v68_v44 }
 0x187   :  { %v6480_v2 = vadd.f32 %v6479_v0, %v1064_v51  ;;  %6774 = vmatpush1.bf16.msra.mxu0 %v9107_v52  ;;  %6805 = vmatprep.mubr.bf16.mxu0 %v10588_v58  ;;  %v9284_v51 = vcombine.high %v316_v21, %v324_v47  ;;  %v44_v52 = vld [vmem:[%s14226_s1 + $0x98] sm:$0xff]  ;;  %v9283_v62 = vcombine.low %v316_v21, %v324_v47 }
 0x188   :  { %v6520_v3 = vpop.f32.mrf.mxu1  ;;  %6765 = vmatmul.mubr.bf16.vlgmr.msra.gmra.mxu1 %v10950_v39  ;;  %v6481_v6 = vpop.f32.mrf.mxu0  ;;  %6775 = vmatprep.subr.bf16.mxu0 %v9092_v56  ;;  %v300_v56 = vld [vmem:[%s14226_s1 + $0x898] sm:$0xff] }
 0x189   :  { %6815 = vmatpush1.bf16.msra.mxu1 %v9363_v55  ;;  %v11783_v11 = vadd.f32 %v6520_v3, %v6480_v2  ;;  %v6482_v12 = vadd.f32 %v6481_v6, %v1068_v57  ;;  %6846 = vmatprep.mubr.bf16.mxu1 %v10592_v59  ;;  %v52_v55 = vld [vmem:[%s14226_s1 + $0xd8] sm:$0xff] }
 0x18a   :  { %v6522_v13 = vpop.f32.mrf.mxu1  ;;  %6816 = vmatprep.subr.bf16.mxu1 %v9348_v61  ;;  %v6483_v18 = vpop.f32.mrf.mxu0  ;;  %v308_v57 = vld [vmem:[%s14226_s1 + $0x8d8] sm:$0xff]  ;;  %v9027_v61 = vcombine.low %v60_v43, %v68_v44  ;;  %v9012_v63 = vcombine.high %v44_v52, %v52_v55 }
 0x18b   :  { %v11799_v24 = vadd.f32 %v6522_v13, %v6482_v12  ;;  %6776 = vmatpush1.bf16.msra.mxu0 %v9091_v4  ;;  %v9268_v0 = vcombine.high %v300_v56, %v308_v57  ;;  %v284_v2 = vld [vmem:[%s14226_s1 + $0x818] sm:$0xff]  ;;  %v9011_v4 = vcombine.low %v44_v52, %v52_v55  ;;  %v9267_v6 = vcombine.low %v300_v56, %v308_v57 }
 0x18c   :  { %v6524_v25 = vpop.f32.mrf.mxu1  ;;  %v6484_v37 = vpop.f32.mrf.mxu0  ;;  %6777 = vmatprep.subr.bf16.mxu0 %v9076_v9  ;;  %v292_v3 = vld [vmem:[%s14226_s1 + $0x858] sm:$0xff] }
 0x18d   :  { %6817 = vmatpush1.bf16.msra.mxu1 %v9347_v8  ;;  %v8996_v8 = vcombine.high %v28_v1, %v36_v7  ;;  %v9252_v9 = vcombine.high %v284_v2, %v292_v3  ;;  %v268_v12 = vld [vmem:[%s14226_s1 + $0x798] sm:$0xff]  ;;  %v9251_v18 = vcombine.low %v284_v2, %v292_v3 }
 0x18e   :  { %v6525_v30 = vpop.f32.mrf.mxu1  ;;  %6818 = vmatprep.subr.bf16.mxu1 %v9332_v14  ;;  %v276_v13 = vld [vmem:[%s14226_s1 + $0x7d8] sm:$0xff] }
 0x18f   :  { %6778 = vmatpush1.bf16.msra.mxu0 %v9075_v54  ;;  %v524_v14 = vld [vmem:[%s14226_s1 + $0xf98] sm:$0xff]  ;;  %v9236_v53 = vcombine.high %v268_v12, %v276_v13 }
 0x190   :  { %6779 = vmatprep.subr.bf16.mxu0 %v9060_v28  ;;  %v9492_v22 = vcombine.high %v524_v14, %v532_v15  ;;  %v252_v25 = vld [vmem:[%s14226_s1 + $0x718] sm:$0xff]  ;;  %v9235_v28 = vcombine.low %v268_v12, %v276_v13  ;;  %v9491_v30 = vcombine.low %v524_v14, %v532_v15 }
 0x191   :  { %6819 = vmatpush1.bf16.msra.mxu1 %v9331_v27  ;;  %v260_v54 = vld [vmem:[%s14226_s1 + $0x758] sm:$0xff] }
 0x192   :  { %6820 = vmatprep.subr.bf16.mxu1 %v9316_v45  ;;  %v508_v37 = vld [vmem:[%s14226_s1 + $0xf18] sm:$0xff]  ;;  %v9220_v45 = vcombine.high %v252_v25, %v260_v54 }
 0x193   :  { %6780 = vmatpush1.bf16.msra.mxu0 %v9059_v38  ;;  %v516_v27 = vld [vmem:[%s14226_s1 + $0xf58] sm:$0xff] }
 0x194   :  { %6781 = vmatprep.subr.bf16.mxu0 %v9044_v41  ;;  %v9476_v32 = vcombine.high %v508_v37, %v516_v27  ;;  %v244_v34 = vld [vmem:[%s14226_s1 + $0x6d8] sm:$0xff]  ;;  %v9475_v41 = vcombine.low %v508_v37, %v516_v27 }
 0x195   :  { %6821 = vmatpush1.bf16.msra.mxu1 %v9315_v40  ;;  %v492_v35 = vld [vmem:[%s14226_s1 + $0xe98] sm:$0xff]  ;;  %v9219_v40 = vcombine.low %v252_v25, %v260_v54 }
 0x196   :  { %6822 = vmatprep.subr.bf16.mxu1 %v9300_v42  ;;  %v500_v38 = vld [vmem:[%s14226_s1 + $0xed8] sm:$0xff]  ;;  %v9204_v42 = vcombine.high %v236_v33, %v244_v34 }
 0x197   :  { %6782 = vmatpush1.bf16.msra.mxu0 %v9043_v48  ;;  %v9460_v43 = vcombine.high %v492_v35, %v500_v38  ;;  %v220_v44 = vld [vmem:[%s14226_s1 + $0x618] sm:$0xff] }
 0x198   :  { %6783 = vmatprep.subr.bf16.mxu0 %v9028_v50  ;;  %v228_v21 = vld [vmem:[%s14226_s1 + $0x658] sm:$0xff]  ;;  %v9459_v50 = vcombine.low %v492_v35, %v500_v38 }
 0x199   :  { %6823 = vmatpush1.bf16.msra.mxu1 %v9299_v49  ;;  %v476_v47 = vld [vmem:[%s14226_s1 + $0xe18] sm:$0xff]  ;;  %v9203_v49 = vcombine.low %v236_v33, %v244_v34 }
 0x19a   :  { %6824 = vmatprep.subr.bf16.mxu1 %v9284_v51  ;;  %v484_v48 = vld [vmem:[%s14226_s1 + $0xe58] sm:$0xff]  ;;  %v9188_v51 = vcombine.high %v220_v44, %v228_v21 }
 0x19b   :  { %6784 = vmatpush1.bf16.msra.mxu0 %v9027_v61  ;;  %v9444_v52 = vcombine.high %v476_v47, %v484_v48  ;;  %v204_v55 = vld [vmem:[%s14226_s1 + $0x598] sm:$0xff] }
 0x19c   :  { %6785 = vmatprep.subr.bf16.mxu0 %v9012_v63  ;;  %v212_v56 = vld [vmem:[%s14226_s1 + $0x5d8] sm:$0xff]  ;;  %v9443_v63 = vcombine.low %v476_v47, %v484_v48 }
 0x19d   :  { %6825 = vmatpush1.bf16.msra.mxu1 %v9283_v62  ;;  %v460_v57 = vld [vmem:[%s14226_s1 + $0xd98] sm:$0xff]  ;;  %v9187_v62 = vcombine.low %v220_v44, %v228_v21 }
 0x19e   :  { %6826 = vmatprep.subr.bf16.mxu1 %v9268_v0  ;;  %v468_v61 = vld [vmem:[%s14226_s1 + $0xdd8] sm:$0xff]  ;;  %v9172_v0 = vcombine.high %v204_v55, %v212_v56 }
 0x19f   :  { %6786 = vmatpush1.bf16.msra.mxu0 %v9011_v4  ;;  %v9428_v1 = vcombine.high %v460_v57, %v468_v61  ;;  %v188_v7 = vld [vmem:[%s14226_s1 + $0x518] sm:$0xff] }
 0x1a0   :  { %6787 = vmatprep.subr.bf16.mxu0 %v8996_v8  ;;  %v196_v2 = vld [vmem:[%s14226_s1 + $0x558] sm:$0xff]  ;;  %v9427_v8 = vcombine.low %v460_v57, %v468_v61 }
 0x1a1   :  { %6827 = vmatpush1.bf16.msra.mxu1 %v9267_v6  ;;  %v444_v3 = vld [vmem:[%s14226_s1 + $0xd18] sm:$0xff]  ;;  %v9171_v6 = vcombine.low %v204_v55, %v212_v56 }
 0x1a2   :  { %6828 = vmatprep.subr.bf16.mxu1 %v9252_v9  ;;  %v452_v4 = vld [vmem:[%s14226_s1 + $0xd58] sm:$0xff]  ;;  %v9156_v9 = vcombine.high %v188_v7, %v196_v2 }
 0x1a3   :  { %6788 = vmatpush1.bf16.msra.mxu0 %v8995_v17  ;;  %v9412_v12 = vcombine.high %v444_v3, %v452_v4  ;;  %v172_v13 = vld [vmem:[%s14226_s1 + $0x498] sm:$0xff] }
 0x1a4   :  { %6789 = vmatprep.subr.bf16.mxu0 %v9236_v53  ;;  %v180_v14 = vld [vmem:[%s14226_s1 + $0x4d8] sm:$0xff]  ;;  %v9411_v53 = vcombine.low %v444_v3, %v452_v4 }
 0x1a5   :  { %6829 = vmatpush1.bf16.msra.mxu1 %v9251_v18  ;;  %v428_v15 = vld [vmem:[%s14226_s1 + $0xc98] sm:$0xff]  ;;  %v9155_v18 = vcombine.low %v188_v7, %v196_v2 }
 0x1a6   :  { %6830 = vmatprep.subr.bf16.mxu1 %v9492_v22  ;;  %v436_v17 = vld [vmem:[%s14226_s1 + $0xcd8] sm:$0xff]  ;;  %v9140_v22 = vcombine.high %v172_v13, %v180_v14 }
 0x1a7   :  { %6790 = vmatpush2.bf16.msra.mxu0 %v9235_v28  ;;  %v9396_v25 = vcombine.high %v428_v15, %v436_v17  ;;  %v156_v54 = vld [vmem:[%s14226_s1 + $0x418] sm:$0xff] }
 0x1a8   :  { %6791 = vmatprep.subr.bf16.mxu0 %v9220_v45  ;;  %v164_v37 = vld [vmem:[%s14226_s1 + $0x458] sm:$0xff]  ;;  %v9395_v45 = vcombine.low %v428_v15, %v436_v17 }
 0x1a9   :  { %6831 = vmatpush2.bf16.msra.mxu1 %v9491_v30  ;;  %v412_v27 = vld [vmem:[%s14226_s1 + $0xc18] sm:$0xff]  ;;  %v9139_v30 = vcombine.low %v172_v13, %v180_v14 }
 0x1aa   :  { %6832 = vmatprep.subr.bf16.mxu1 %v9476_v32  ;;  %v420_v28 = vld [vmem:[%s14226_s1 + $0xc58] sm:$0xff]  ;;  %v9124_v32 = vcombine.high %v156_v54, %v164_v37 }
 0x1ab   :  { %6792 = vmatpush2.bf16.msra.mxu0 %v9219_v40  ;;  %v9380_v33 = vcombine.high %v412_v27, %v420_v28  ;;  %v652_v34 = vld [vmem:[%s14226_s1 + $0x1398] sm:$0xff] }
 0x1ac   :  { %6793 = vmatprep.subr.bf16.mxu0 %v9204_v42  ;;  %v660_v35 = vld [vmem:[%s14226_s1 + $0x13d8] sm:$0xff]  ;;  %v9379_v42 = vcombine.low %v412_v27, %v420_v28 }
 0x1ad   :  { %6833 = vmatpush2.bf16.msra.mxu1 %v9475_v41  ;;  %v908_v38 = vld [vmem:[%s14226_s1 + $0x1b98] sm:$0xff]  ;;  %v9123_v41 = vcombine.low %v156_v54, %v164_v37 }
 0x1ae   :  { %6834 = vmatprep.subr.bf16.mxu1 %v9460_v43  ;;  %v916_v40 = vld [vmem:[%s14226_s1 + $0x1bd8] sm:$0xff]  ;;  %v9620_v43 = vcombine.high %v652_v34, %v660_v35 }
 0x1af   :  { %6794 = vmatpush2.bf16.msra.mxu0 %v9203_v49  ;;  %v9876_v44 = vcombine.high %v908_v38, %v916_v40  ;;  %v636_v21 = vld [vmem:[%s14226_s1 + $0x1318] sm:$0xff] }
 0x1b0   :  { %6795 = vmatprep.subr.bf16.mxu0 %v9188_v51  ;;  %v644_v47 = vld [vmem:[%s14226_s1 + $0x1358] sm:$0xff]  ;;  %v9875_v51 = vcombine.low %v908_v38, %v916_v40 }
 0x1b1   :  { %6835 = vmatpush2.bf16.msra.mxu1 %v9459_v50  ;;  %v892_v48 = vld [vmem:[%s14226_s1 + $0x1b18] sm:$0xff]  ;;  %v9619_v50 = vcombine.low %v652_v34, %v660_v35  ;;  %v9603_v7 = vcombine.low %v636_v21, %v644_v47 }
 0x1b2   :  { %6836 = vmatprep.subr.bf16.mxu1 %v9444_v52  ;;  %v900_v49 = vld [vmem:[%s14226_s1 + $0x1b58] sm:$0xff]  ;;  %v9604_v52 = vcombine.high %v636_v21, %v644_v47 }
 0x1b3   :  { %6796 = vmatpush2.bf16.msra.mxu0 %v9187_v62  ;;  %v9860_v55 = vcombine.high %v892_v48, %v900_v49  ;;  %v620_v56 = vld [vmem:[%s14226_s1 + $0x1298] sm:$0xff]  ;;  %v9859_v3 = vcombine.low %v892_v48, %v900_v49 }
 0x1b4   :  { %6797 = vmatprep.subr.bf16.mxu0 %v9172_v0  ;;  %v628_v57 = vld [vmem:[%s14226_s1 + $0x12d8] sm:$0xff] }
 0x1b5   :  { %6837 = vmatpush2.bf16.msra.mxu1 %v9443_v63  ;;  %v876_v62 = vld [vmem:[%s14226_s1 + $0x1a98] sm:$0xff]  ;;  %v9588_v4 = vcombine.high %v620_v56, %v628_v57 }
 0x1b6   :  { %6838 = vmatprep.subr.bf16.mxu1 %v9428_v1  ;;  %v884_v63 = vld [vmem:[%s14226_s1 + $0x1ad8] sm:$0xff] }
 0x1b7   :  { %6798 = vmatpush2.bf16.msra.mxu0 %v9171_v6  ;;  %v612_v13 = vld [vmem:[%s14226_s1 + $0x1258] sm:$0xff] }
 0x1b8   :  { %6799 = vmatprep.subr.bf16.mxu0 %v9156_v9  ;;  %v860_v15 = vld [vmem:[%s14226_s1 + $0x1a18] sm:$0xff] }
 0x1b9   :  { %6839 = vmatpush2.bf16.msra.mxu1 %v9427_v8  ;;  %v588_v28 = vld [vmem:[%s14226_s1 + $0x1198] sm:$0xff] }
 0x1ba   :  { %6840 = vmatprep.subr.bf16.mxu1 %v9412_v12  ;;  %v9844_v12 = vcombine.high %v876_v62, %v884_v63  ;;  %v572_v40 = vld [vmem:[%s14226_s1 + $0x1118] sm:$0xff] }
 0x1bb   :  { %6800 = vmatpush2.bf16.msra.mxu0 %v9155_v18  ;;  %v556_v49 = vld [vmem:[%s14226_s1 + $0x1098] sm:$0xff] }
 0x1bc   :  { %6801 = vmatprep.subr.bf16.mxu0 %v9140_v22 }
 0x1bd   :  { %6841 = vmatpush2.bf16.msra.mxu1 %v9411_v53  ;;  %v9587_v53 = vcombine.low %v620_v56, %v628_v57 }
 0x1be   :  { %6842 = vmatprep.subr.bf16.mxu1 %v9396_v25  ;;  %v9843_v25 = vcombine.low %v876_v62, %v884_v63  ;;  %v540_v62 = vld [vmem:[%s14226_s1 + $0x1018] sm:$0xff] }
 0x1bf   :  { %6802 = vmatpush2.bf16.msra.mxu0 %v9139_v30  ;;  %v596_v30 = vld [vmem:[%s14226_s1 + $0x11d8] sm:$0xff] }
 0x1c0   :  { %6803 = vmatprep.subr.bf16.mxu0 %v9124_v32  ;;  %v852_v32 = vld [vmem:[%s14226_s1 + $0x19d8] sm:$0xff]  ;;  %v9556_v35 = vcombine.high %v588_v28, %v596_v30 }
 0x1c1   :  { %6843 = vmatpush2.bf16.msra.mxu1 %v9395_v45  ;;  %v844_v45 = vld [vmem:[%s14226_s1 + $0x1998] sm:$0xff] }
 0x1c2   :  { %6844 = vmatprep.subr.bf16.mxu1 %v9380_v33  ;;  %v9812_v38 = vcombine.high %v844_v45, %v852_v32  ;;  %v9811_v21 = vcombine.low %v844_v45, %v852_v32  ;;  %v548_v63 = vld [vmem:[%s14226_s1 + $0x1058] sm:$0xff] }
 0x1c3   :  { %6804 = vmatpush2.bf16.msra.mxu0 %v9123_v41  ;;  %v580_v41 = vld [vmem:[%s14226_s1 + $0x1158] sm:$0xff] }
 0x1c4   :  { %6855 = vmatprep.subr.bf16.mxu0 %v9620_v43  ;;  %v836_v43 = vld [vmem:[%s14226_s1 + $0x1958] sm:$0xff]  ;;  %v9540_v47 = vcombine.high %v572_v40, %v580_v41 }
 0x1c5   :  { %6845 = vmatpush2.bf16.msra.mxu1 %v9379_v42  ;;  %v828_v42 = vld [vmem:[%s14226_s1 + $0x1918] sm:$0xff] }
 0x1c6   :  { %6896 = vmatprep.subr.bf16.mxu1 %v9876_v44  ;;  %v6561_v61 = vpop.f32.mrf.mxu0  ;;  %6806 = vmatmul.mubr.bf16.vlgmr.msra.gmra.mxu0 %v10718_v16  ;;  %v9555_v44 = vcombine.low %v588_v28, %v596_v30  ;;  %v9796_v48 = vcombine.high %v828_v42, %v836_v43  ;;  %v9795_v56 = vcombine.low %v828_v42, %v836_v43  ;;  %v748_v30 = vld [vmem:[%s14226_s1 + $0x1698] sm:$0xff] }
 0x1c7   :  { %v6562_v0 = vadd.f32 %v6561_v61, %v11783_v11  ;;  %6856 = vmatpush1.bf16.msra.mxu0 %v9619_v50  ;;  %v604_v11 = vld [vmem:[%s14226_s1 + $0x1218] sm:$0xff]  ;;  %6887 = vmatprep.mubr.bf16.mxu0 %v10748_v26 }
 0x1c8   :  { %v6602_v1 = vpop.f32.mrf.mxu1  ;;  %6847 = vmatmul.mubr.bf16.vlgmr.msra.gmra.mxu1 %v10733_v20  ;;  %v6563_v2 = vpop.f32.mrf.mxu0  ;;  %6857 = vmatprep.subr.bf16.mxu0 %v9604_v52  ;;  %v9572_v54 = vcombine.high %v604_v11, %v612_v13  ;;  %v9571_v33 = vcombine.low %v604_v11, %v612_v13  ;;  %v564_v50 = vld [vmem:[%s14226_s1 + $0x10d8] sm:$0xff]  ;;  %v9507_v13 = vcombine.low %v540_v62, %v548_v63 }
 0x1c9   :  { %6897 = vmatpush1.bf16.msra.mxu1 %v9875_v51  ;;  %v11984_v6 = vadd.f32 %v6602_v1, %v6562_v0  ;;  %v6564_v8 = vadd.f32 %v6563_v2, %v11799_v24  ;;  %v868_v24 = vld [vmem:[%s14226_s1 + $0x1a58] sm:$0xff]  ;;  %6928 = vmatprep.mubr.bf16.mxu1 %v10759_v29  ;;  %v9524_v57 = vcombine.high %v556_v49, %v564_v50 }
 0x1ca   :  { %v6604_v9 = vpop.f32.mrf.mxu1  ;;  %6898 = vmatprep.subr.bf16.mxu1 %v9860_v55  ;;  %v6565_v14 = vpop.f32.mrf.mxu0  ;;  %v9828_v27 = vcombine.high %v860_v15, %v868_v24  ;;  %v9827_v34 = vcombine.low %v860_v15, %v868_v24  ;;  %v812_v51 = vld [vmem:[%s14226_s1 + $0x1898] sm:$0xff]  ;;  %v9539_v55 = vcombine.low %v572_v40, %v580_v41 }
 0x1cb   :  { %v12001_v17 = vadd.f32 %v6604_v9, %v6564_v8  ;;  %6858 = vmatpush1.bf16.msra.mxu0 %v9603_v7  ;;  %v820_v52 = vld [vmem:[%s14226_s1 + $0x18d8] sm:$0xff]  ;;  %v9523_v7 = vcombine.low %v556_v49, %v564_v50 }
 0x1cc   :  { %v6606_v18 = vpop.f32.mrf.mxu1  ;;  %v6566_v22 = vpop.f32.mrf.mxu0  ;;  %6859 = vmatprep.subr.bf16.mxu0 %v9588_v4  ;;  %v9780_v61 = vcombine.high %v812_v51, %v820_v52  ;;  %v796_v0 = vld [vmem:[%s14226_s1 + $0x1818] sm:$0xff]  ;;  %v9779_v2 = vcombine.low %v812_v51, %v820_v52 }
 0x1cd   :  { %6899 = vmatpush1.bf16.msra.mxu1 %v9859_v3  ;;  %v804_v1 = vld [vmem:[%s14226_s1 + $0x1858] sm:$0xff]  ;;  %v9508_v3 = vcombine.high %v540_v62, %v548_v63 }
 0x1ce   :  { %v6607_v37 = vpop.f32.mrf.mxu1  ;;  %6900 = vmatprep.subr.bf16.mxu1 %v9844_v12  ;;  %v9764_v4 = vcombine.high %v796_v0, %v804_v1  ;;  %v780_v8 = vld [vmem:[%s14226_s1 + $0x1798] sm:$0xff]  ;;  %v9763_v14 = vcombine.low %v796_v0, %v804_v1 }
 0x1cf   :  { %6860 = vmatpush1.bf16.msra.mxu0 %v9587_v53  ;;  %v788_v9 = vld [vmem:[%s14226_s1 + $0x17d8] sm:$0xff] }
 0x1d0   :  { %6861 = vmatprep.subr.bf16.mxu0 %v9572_v54  ;;  %v1036_v12 = vld [vmem:[%s14226_s1 + $0x1f98] sm:$0xff]  ;;  %v9748_v15 = vcombine.high %v780_v8, %v788_v9  ;;  %v9747_v54 = vcombine.low %v780_v8, %v788_v9 }
 0x1d1   :  { %6901 = vmatpush1.bf16.msra.mxu1 %v9843_v25  ;;  %v1044_v11 = vld [vmem:[%s14226_s1 + $0x1fd8] sm:$0xff] }
 0x1d2   :  { %6902 = vmatprep.subr.bf16.mxu1 %v9828_v27  ;;  %v10004_v24 = vcombine.high %v1036_v12, %v1044_v11  ;;  %v764_v18 = vld [vmem:[%s14226_s1 + $0x1718] sm:$0xff]  ;;  %v10003_v37 = vcombine.low %v1036_v12, %v1044_v11 }
 0x1d3   :  { %6862 = vmatpush1.bf16.msra.mxu0 %v9571_v33  ;;  %v772_v53 = vld [vmem:[%s14226_s1 + $0x1758] sm:$0xff] }
 0x1d4   :  { %6863 = vmatprep.subr.bf16.mxu0 %v9556_v35  ;;  %v1020_v22 = vld [vmem:[%s14226_s1 + $0x1f18] sm:$0xff]  ;;  %v9732_v27 = vcombine.high %v764_v18, %v772_v53 }
 0x1d5   :  { %6903 = vmatpush1.bf16.msra.mxu1 %v9827_v34  ;;  %v1028_v25 = vld [vmem:[%s14226_s1 + $0x1f58] sm:$0xff]  ;;  %v9731_v34 = vcombine.low %v764_v18, %v772_v53 }
 0x1d6   :  { %6904 = vmatprep.subr.bf16.mxu1 %v9812_v38  ;;  %v9988_v28 = vcombine.high %v1020_v22, %v1028_v25  ;;  %v756_v45 = vld [vmem:[%s14226_s1 + $0x16d8] sm:$0xff]  ;;  %v9987_v35 = vcombine.low %v1020_v22, %v1028_v25 }
 0x1d7   :  { %6864 = vmatpush1.bf16.msra.mxu0 %v9555_v44  ;;  %v1004_v32 = vld [vmem:[%s14226_s1 + $0x1e98] sm:$0xff]  ;;  %v9716_v38 = vcombine.high %v748_v30, %v756_v45 }
 0x1d8   :  { %6865 = vmatprep.subr.bf16.mxu0 %v9540_v47  ;;  %v1012_v33 = vld [vmem:[%s14226_s1 + $0x1ed8] sm:$0xff] }
 0x1d9   :  { %6905 = vmatpush1.bf16.msra.mxu1 %v9811_v21  ;;  %v9972_v40 = vcombine.high %v1004_v32, %v1012_v33  ;;  %v732_v41 = vld [vmem:[%s14226_s1 + $0x1618] sm:$0xff]  ;;  %v9715_v21 = vcombine.low %v748_v30, %v756_v45  ;;  %v9971_v47 = vcombine.low %v1004_v32, %v1012_v33  ;;  %v141_v45 = vld [vmem:[%s14226_s1 + $0x3a0] sm:$0xff] }
 0x1da   :  { %6906 = vmatprep.subr.bf16.mxu1 %v9796_v48  ;;  %v740_v42 = vld [vmem:[%s14226_s1 + $0x1658] sm:$0xff]  ;;  %v149_v32 = vld [vmem:[%s14226_s1 + $0x3e0] sm:$0xff] }
 0x1db   :  { %6866 = vmatpush1.bf16.msra.mxu0 %v9539_v55  ;;  %v988_v43 = vld [vmem:[%s14226_s1 + $0x1e18] sm:$0xff]  ;;  %v9700_v48 = vcombine.high %v732_v41, %v740_v42  ;;  %v397_v33 = vld [vmem:[%s14226_s1 + $0xba0] sm:$0xff] }
 0x1dc   :  { %6867 = vmatprep.subr.bf16.mxu0 %v9524_v57  ;;  %v996_v44 = vld [vmem:[%s14226_s1 + $0x1e58] sm:$0xff] }
 0x1dd   :  { %6907 = vmatpush1.bf16.msra.mxu1 %v9795_v56  ;;  %v9956_v49 = vcombine.high %v988_v43, %v996_v44  ;;  %v716_v50 = vld [vmem:[%s14226_s1 + $0x1598] sm:$0xff]  ;;  %v9699_v56 = vcombine.low %v732_v41, %v740_v42  ;;  %v9955_v57 = vcombine.low %v988_v43, %v996_v44  ;;  %v9110_v41 = vcombine.high %v141_v45, %v149_v32  ;;  %v125_v44 = vld [vmem:[%s14226_s1 + $0x320] sm:$0xff] }
 0x1de   :  { %6908 = vmatprep.subr.bf16.mxu1 %v9780_v61  ;;  %v724_v51 = vld [vmem:[%s14226_s1 + $0x15d8] sm:$0xff]  ;;  %v1075_v43 = vsub.s32 5, %v11320_v60 }
 0x1df   :  { %6868 = vmatpush1.bf16.msra.mxu0 %v9523_v7  ;;  %v972_v52 = vld [vmem:[%s14226_s1 + $0x1d98] sm:$0xff]  ;;  %v9684_v61 = vcombine.high %v716_v50, %v724_v51 }
 0x1e0   :  { %6869 = vmatprep.subr.bf16.mxu0 %v9508_v3  ;;  %v980_v55 = vld [vmem:[%s14226_s1 + $0x1dd8] sm:$0xff] }
 0x1e1   :  { %6909 = vmatpush1.bf16.msra.mxu1 %v9779_v2  ;;  %v9940_v62 = vcombine.high %v972_v52, %v980_v55  ;;  %v700_v63 = vld [vmem:[%s14226_s1 + $0x1518] sm:$0xff]  ;;  %v9683_v2 = vcombine.low %v716_v50, %v724_v51  ;;  %v9939_v3 = vcombine.low %v972_v52, %v980_v55  ;;  %v9109_v51 = vcombine.low %v141_v45, %v149_v32 }
 0x1e2   :  { %6910 = vmatprep.subr.bf16.mxu1 %v9764_v4  ;;  %v708_v0 = vld [vmem:[%s14226_s1 + $0x1558] sm:$0xff] }
 0x1e3   :  { %6870 = vmatpush1.bf16.msra.mxu0 %v9507_v13  ;;  %v956_v1 = vld [vmem:[%s14226_s1 + $0x1d18] sm:$0xff]  ;;  %v9668_v4 = vcombine.high %v700_v63, %v708_v0 }
 0x1e4   :  { %6871 = vmatprep.subr.bf16.mxu0 %v9748_v15  ;;  %v964_v7 = vld [vmem:[%s14226_s1 + $0x1d58] sm:$0xff] }
 0x1e5   :  { %6911 = vmatpush1.bf16.msra.mxu1 %v9763_v14  ;;  %v9924_v8 = vcombine.high %v956_v1, %v964_v7  ;;  %v684_v9 = vld [vmem:[%s14226_s1 + $0x1498] sm:$0xff]  ;;  %v9667_v14 = vcombine.low %v700_v63, %v708_v0  ;;  %v9923_v15 = vcombine.low %v956_v1, %v964_v7  ;;  %v365_v0 = vld [vmem:[%s14226_s1 + $0xaa0] sm:$0xff] }
 0x1e6   :  { %6912 = vmatprep.subr.bf16.mxu1 %v10004_v24  ;;  %v692_v12 = vld [vmem:[%s14226_s1 + $0x14d8] sm:$0xff]  ;;  %v373_v1 = vld [vmem:[%s14226_s1 + $0xae0] sm:$0xff] }
 0x1e7   :  { %6872 = vmatpush2.bf16.msra.mxu0 %v9747_v54  ;;  %v940_v11 = vld [vmem:[%s14226_s1 + $0x1c98] sm:$0xff]  ;;  %v9652_v24 = vcombine.high %v684_v9, %v692_v12 }
 0x1e8   :  { %6873 = vmatprep.subr.bf16.mxu0 %v9732_v27  ;;  %v948_v13 = vld [vmem:[%s14226_s1 + $0x1cd8] sm:$0xff] }
 0x1e9   :  { %6913 = vmatpush2.bf16.msra.mxu1 %v10003_v37  ;;  %v9908_v18 = vcombine.high %v940_v11, %v948_v13  ;;  %v668_v53 = vld [vmem:[%s14226_s1 + $0x1418] sm:$0xff]  ;;  %v9651_v37 = vcombine.low %v684_v9, %v692_v12  ;;  %v9907_v27 = vcombine.low %v940_v11, %v948_v13 }
 0x1ea   :  { %6914 = vmatprep.subr.bf16.mxu1 %v9988_v28  ;;  %v676_v22 = vld [vmem:[%s14226_s1 + $0x1458] sm:$0xff] }
 0x1eb   :  { %6874 = vmatpush2.bf16.msra.mxu0 %v9731_v34  ;;  %v924_v25 = vld [vmem:[%s14226_s1 + $0x1c18] sm:$0xff]  ;;  %v9636_v28 = vcombine.high %v668_v53, %v676_v22  ;;  %v405_v34 = vld [vmem:[%s14226_s1 + $0xbe0] sm:$0xff] }
 0x1ec   :  { %6875 = vmatprep.subr.bf16.mxu0 %v9716_v38  ;;  %v932_v54 = vld [vmem:[%s14226_s1 + $0x1c58] sm:$0xff]  ;;  %v1071_v38 = vsub.s32 4, %v11320_v60  ;;  %v9366_v42 = vcombine.high %v397_v33, %v405_v34  ;;  %v9365_v52 = vcombine.low %v397_v33, %v405_v34  ;;  %v77_v33 = vld [vmem:[%s14226_s1 + $0x1a0] sm:$0xff] }
 0x1ed   :  { %6915 = vmatpush2.bf16.msra.mxu1 %v9987_v35  ;;  %v9892_v30 = vcombine.high %v924_v25, %v932_v54  ;;  %v9635_v35 = vcombine.low %v668_v53, %v676_v22  ;;  %v349_v53 = vld [vmem:[%s14226_s1 + $0xa20] sm:$0xff] }
 0x1ee   :  { %6916 = vmatprep.subr.bf16.mxu1 %v9972_v40  ;;  %v9891_v40 = vcombine.low %v924_v25, %v932_v54  ;;  %v357_v22 = vld [vmem:[%s14226_s1 + $0xa60] sm:$0xff] }
 0x1ef   :  { %6876 = vmatpush2.bf16.msra.mxu0 %v9715_v21  ;;  %v133_v21 = vld [vmem:[%s14226_s1 + $0x360] sm:$0xff]  ;;  %v9318_v32 = vcombine.high %v349_v53, %v357_v22 }
 0x1f0   :  { %6877 = vmatprep.subr.bf16.mxu0 %v9700_v48  ;;  %v389_v48 = vld [vmem:[%s14226_s1 + $0xb60] sm:$0xff]  ;;  %v9094_v55 = vcombine.high %v125_v44, %v133_v21 }
 0x1f1   :  { %6917 = vmatpush2.bf16.msra.mxu1 %v9971_v47  ;;  %v381_v47 = vld [vmem:[%s14226_s1 + $0xb20] sm:$0xff] }
 0x1f2   :  { %6918 = vmatprep.subr.bf16.mxu1 %v9956_v49  ;;  %v12176_v49 = vld [vmem:[%s14228_s2] sm:$0xff] }
 0x1f3   :  { %6878 = vmatpush2.bf16.msra.mxu0 %v9699_v56  ;;  %v1072_v50 = vrot.slane %v12176_v49, %v1071_v38  ;;  %v1076_v56 = vrot.slane %v12176_v49, %v1075_v43  ;;  %v85_v34 = vld [vmem:[%s14226_s1 + $0x1e0] sm:$0xff] }
 0x1f4   :  { %6879 = vmatprep.subr.bf16.mxu0 %v9684_v61  ;;  %v109_v61 = vld [vmem:[%s14226_s1 + $0x2a0] sm:$0xff] }
 0x1f5   :  { %6919 = vmatpush2.bf16.msra.mxu1 %v9955_v57  ;;  %v9350_v57 = vcombine.high %v381_v47, %v389_v48 }
 0x1f6   :  { %6920 = vmatprep.subr.bf16.mxu1 %v9940_v62  ;;  %v117_v62 = vld [vmem:[%s14226_s1 + $0x2e0] sm:$0xff] }
 0x1f7   :  { %6880 = vmatpush2.bf16.msra.mxu0 %v9683_v2  ;;  %v9078_v9 = vcombine.high %v109_v61, %v117_v62 }
 0x1f8   :  { %6881 = vmatprep.subr.bf16.mxu0 %v9668_v4 }
 0x1f9   :  { %6921 = vmatpush2.bf16.msra.mxu1 %v9939_v3  ;;  %v9093_v3 = vcombine.low %v125_v44, %v133_v21  ;;  %v9046_v44 = vcombine.high %v77_v33, %v85_v34 }
 0x1fa   :  { %6922 = vmatprep.subr.bf16.mxu1 %v9924_v8  ;;  %v9349_v8 = vcombine.low %v381_v47, %v389_v48  ;;  %v61_v47 = vld [vmem:[%s14226_s1 + $0x120] sm:$0xff] }
 0x1fb   :  { %6882 = vmatpush2.bf16.msra.mxu0 %v9667_v14  ;;  %v9334_v14 = vcombine.high %v365_v0, %v373_v1  ;;  %v69_v48 = vld [vmem:[%s14226_s1 + $0x160] sm:$0xff] }
 0x1fc   :  { %6883 = vmatprep.subr.bf16.mxu0 %v9652_v24  ;;  %v101_v24 = vld [vmem:[%s14226_s1 + $0x260] sm:$0xff] }
 0x1fd   :  { %6923 = vmatpush2.bf16.msra.mxu1 %v9923_v15  ;;  %v93_v15 = vld [vmem:[%s14226_s1 + $0x220] sm:$0xff] }
 0x1fe   :  { %6924 = vmatprep.subr.bf16.mxu1 %v9908_v18 }
 0x1ff   :  { %6884 = vmatpush2.bf16.msra.mxu0 %v9651_v37  ;;  %v9077_v37 = vcombine.low %v109_v61, %v117_v62  ;;  %v45_v61 = vld [vmem:[%s14226_s1 + $0xa0] sm:$0xff] }
 0x200   :  { %6885 = vmatprep.subr.bf16.mxu0 %v9636_v28  ;;  %v9333_v28 = vcombine.low %v365_v0, %v373_v1  ;;  %v53_v62 = vld [vmem:[%s14226_s1 + $0xe0] sm:$0xff]  ;;  %v9029_v1 = vcombine.low %v61_v47, %v69_v48 }
 0x201   :  { %6925 = vmatpush2.bf16.msra.mxu1 %v9907_v27  ;;  %v309_v0 = vld [vmem:[%s14226_s1 + $0x8e0] sm:$0xff] }
 0x202   :  { %6926 = vmatprep.subr.bf16.mxu1 %v9892_v30  ;;  %v9062_v30 = vcombine.high %v93_v15, %v101_v24 }
 0x203   :  { %6886 = vmatpush2.bf16.msra.mxu0 %v9635_v35  ;;  %v333_v35 = vld [vmem:[%s14226_s1 + $0x9a0] sm:$0xff] }
 0x204   :  { %6937 = vmatprep.subr.bf16.mxu0 %v9110_v41  ;;  %v9061_v41 = vcombine.low %v93_v15, %v101_v24 }
 0x205   :  { %6927 = vmatpush2.bf16.msra.mxu1 %v9891_v40  ;;  %v341_v40 = vld [vmem:[%s14226_s1 + $0x9e0] sm:$0xff] }
 0x206   :  { %6978 = vmatprep.subr.bf16.mxu1 %v9366_v42  ;;  %v6643_v63 = vpop.f32.mrf.mxu0  ;;  %6888 = vmatmul.mubr.bf16.vlgmr.msra.gmra.mxu0 %v10940_v36  ;;  %v9317_v42 = vcombine.low %v349_v53, %v357_v22  ;;  %v9302_v21 = vcombine.high %v333_v35, %v341_v40  ;;  %v277_v53 = vld [vmem:[%s14226_s1 + $0x7e0] sm:$0xff] }
 0x207   :  { %v6644_v7 = vadd.f32 %v6643_v63, %v1072_v50  ;;  %6938 = vmatpush1.bf16.msra.mxu0 %v9109_v51  ;;  %6969 = vmatprep.mubr.bf16.mxu0 %v10588_v58  ;;  %v317_v50 = vld [vmem:[%s14226_s1 + $0x920] sm:$0xff] }
 0x208   :  { %v6684_v2 = vpop.f32.mrf.mxu1  ;;  %6929 = vmatmul.mubr.bf16.vlgmr.msra.gmra.mxu1 %v10950_v39  ;;  %v6645_v4 = vpop.f32.mrf.mxu0  ;;  %6939 = vmatprep.subr.bf16.mxu0 %v9094_v55  ;;  %v325_v51 = vld [vmem:[%s14226_s1 + $0x960] sm:$0xff]  ;;  %v9301_v55 = vcombine.low %v333_v35, %v341_v40 }
 0x209   :  { %6979 = vmatpush1.bf16.msra.mxu1 %v9365_v52  ;;  %v12198_v12 = vadd.f32 %v6684_v2, %v6644_v7  ;;  %v6646_v11 = vadd.f32 %v6645_v4, %v1076_v56  ;;  %7010 = vmatprep.mubr.bf16.mxu1 %v10592_v59  ;;  %v9045_v52 = vcombine.low %v77_v33, %v85_v34  ;;  %v301_v63 = vld [vmem:[%s14226_s1 + $0x8a0] sm:$0xff] }
 0x20a   :  { %v6686_v13 = vpop.f32.mrf.mxu1  ;;  %6980 = vmatprep.subr.bf16.mxu1 %v9350_v57  ;;  %v6647_v18 = vpop.f32.mrf.mxu0  ;;  %v9030_v56 = vcombine.high %v61_v47, %v69_v48  ;;  %v9286_v57 = vcombine.high %v317_v50, %v325_v51  ;;  %v9285_v7 = vcombine.low %v317_v50, %v325_v51  ;;  %v9014_v2 = vcombine.high %v45_v61, %v53_v62  ;;  %v29_v4 = vld [vmem:[%s14226_s1 + $0x20] sm:$0xff] }
 0x20b   :  { %v12214_v25 = vadd.f32 %v6686_v13, %v6646_v11  ;;  %6940 = vmatpush1.bf16.msra.mxu0 %v9093_v3  ;;  %v9270_v3 = vcombine.high %v301_v63, %v309_v0  ;;  %v293_v11 = vld [vmem:[%s14226_s1 + $0x860] sm:$0xff]  ;;  %v9013_v13 = vcombine.low %v45_v61, %v53_v62 }
 0x20c   :  { %v6688_v54 = vpop.f32.mrf.mxu1  ;;  %v6648_v27 = vpop.f32.mrf.mxu0  ;;  %6941 = vmatprep.subr.bf16.mxu0 %v9078_v9  ;;  %v285_v9 = vld [vmem:[%s14226_s1 + $0x820] sm:$0xff] }
 0x20d   :  { %6981 = vmatpush1.bf16.msra.mxu1 %v9349_v8  ;;  %v37_v8 = vld [vmem:[%s14226_s1 + $0x60] sm:$0xff]  ;;  %v9254_v24 = vcombine.high %v285_v9, %v293_v11  ;;  %v9253_v27 = vcombine.low %v285_v9, %v293_v11 }
 0x20e   :  { %v6689_v45 = vpop.f32.mrf.mxu1  ;;  %6982 = vmatprep.subr.bf16.mxu1 %v9334_v14  ;;  %v9269_v14 = vcombine.low %v301_v63, %v309_v0  ;;  %v8998_v15 = vcombine.high %v29_v4, %v37_v8  ;;  %v269_v18 = vld [vmem:[%s14226_s1 + $0x7a0] sm:$0xff] }
 0x20f   :  { %6942 = vmatpush1.bf16.msra.mxu0 %v9077_v37  ;;  %v525_v22 = vld [vmem:[%s14226_s1 + $0xfa0] sm:$0xff]  ;;  %v8997_v37 = vcombine.low %v29_v4, %v37_v8  ;;  %v9237_v35 = vcombine.low %v269_v18, %v277_v53 }
 0x210   :  { %6943 = vmatprep.subr.bf16.mxu0 %v9062_v30  ;;  %v533_v54 = vld [vmem:[%s14226_s1 + $0xfe0] sm:$0xff] }
 0x211   :  { %6983 = vmatpush1.bf16.msra.mxu1 %v9333_v28  ;;  %v9238_v28 = vcombine.high %v269_v18, %v277_v53  ;;  %v9494_v30 = vcombine.high %v525_v22, %v533_v54  ;;  %v253_v45 = vld [vmem:[%s14226_s1 + $0x720] sm:$0xff]  ;;  %v9493_v40 = vcombine.low %v525_v22, %v533_v54 }
 0x212   :  { %6984 = vmatprep.subr.bf16.mxu1 %v9318_v32  ;;  %v261_v32 = vld [vmem:[%s14226_s1 + $0x760] sm:$0xff] }
 0x213   :  { %6944 = vmatpush1.bf16.msra.mxu0 %v9061_v41  ;;  %v509_v33 = vld [vmem:[%s14226_s1 + $0xf20] sm:$0xff]  ;;  %v9222_v41 = vcombine.high %v253_v45, %v261_v32  ;;  %v9221_v50 = vcombine.low %v253_v45, %v261_v32 }
 0x214   :  { %6945 = vmatprep.subr.bf16.mxu0 %v9046_v44  ;;  %v517_v34 = vld [vmem:[%s14226_s1 + $0xf60] sm:$0xff] }
 0x215   :  { %6985 = vmatpush1.bf16.msra.mxu1 %v9317_v42  ;;  %v9478_v42 = vcombine.high %v509_v33, %v517_v34  ;;  %v237_v44 = vld [vmem:[%s14226_s1 + $0x6a0] sm:$0xff]  ;;  %v9477_v51 = vcombine.low %v509_v33, %v517_v34 }
 0x216   :  { %6986 = vmatprep.subr.bf16.mxu1 %v9302_v21  ;;  %v245_v21 = vld [vmem:[%s14226_s1 + $0x6e0] sm:$0xff] }
 0x217   :  { %6946 = vmatpush1.bf16.msra.mxu0 %v9045_v52  ;;  %v493_v47 = vld [vmem:[%s14226_s1 + $0xea0] sm:$0xff]  ;;  %v9206_v52 = vcombine.high %v237_v44, %v245_v21  ;;  %v9205_v63 = vcombine.low %v237_v44, %v245_v21 }
 0x218   :  { %6947 = vmatprep.subr.bf16.mxu0 %v9030_v56  ;;  %v501_v48 = vld [vmem:[%s14226_s1 + $0xee0] sm:$0xff] }
 0x219   :  { %6987 = vmatpush1.bf16.msra.mxu1 %v9301_v55  ;;  %v9462_v55 = vcombine.high %v493_v47, %v501_v48  ;;  %v221_v56 = vld [vmem:[%s14226_s1 + $0x620] sm:$0xff]  ;;  %v9461_v0 = vcombine.low %v493_v47, %v501_v48 }
 0x21a   :  { %6988 = vmatprep.subr.bf16.mxu1 %v9286_v57  ;;  %v229_v57 = vld [vmem:[%s14226_s1 + $0x660] sm:$0xff] }
 0x21b   :  { %6948 = vmatpush1.bf16.msra.mxu0 %v9029_v1  ;;  %v477_v61 = vld [vmem:[%s14226_s1 + $0xe20] sm:$0xff]  ;;  %v9190_v1 = vcombine.high %v221_v56, %v229_v57  ;;  %v9189_v9 = vcombine.low %v221_v56, %v229_v57 }
 0x21c   :  { %6949 = vmatprep.subr.bf16.mxu0 %v9014_v2  ;;  %v485_v62 = vld [vmem:[%s14226_s1 + $0xe60] sm:$0xff] }
 0x21d   :  { %6989 = vmatpush1.bf16.msra.mxu1 %v9285_v7  ;;  %v9446_v7 = vcombine.high %v477_v61, %v485_v62  ;;  %v205_v2 = vld [vmem:[%s14226_s1 + $0x5a0] sm:$0xff]  ;;  %v9445_v11 = vcombine.low %v477_v61, %v485_v62 }
 0x21e   :  { %6990 = vmatprep.subr.bf16.mxu1 %v9270_v3  ;;  %v213_v3 = vld [vmem:[%s14226_s1 + $0x5e0] sm:$0xff] }
 0x21f   :  { %6950 = vmatpush1.bf16.msra.mxu0 %v9013_v13  ;;  %v461_v4 = vld [vmem:[%s14226_s1 + $0xda0] sm:$0xff]  ;;  %v9174_v13 = vcombine.high %v205_v2, %v213_v3  ;;  %v9173_v22 = vcombine.low %v205_v2, %v213_v3 }
 0x220   :  { %6951 = vmatprep.subr.bf16.mxu0 %v8998_v15  ;;  %v469_v8 = vld [vmem:[%s14226_s1 + $0xde0] sm:$0xff] }
 0x221   :  { %6991 = vmatpush1.bf16.msra.mxu1 %v9269_v14  ;;  %v9430_v14 = vcombine.high %v461_v4, %v469_v8  ;;  %v189_v15 = vld [vmem:[%s14226_s1 + $0x520] sm:$0xff]  ;;  %v9429_v54 = vcombine.low %v461_v4, %v469_v8 }
 0x222   :  { %6992 = vmatprep.subr.bf16.mxu1 %v9254_v24  ;;  %v197_v24 = vld [vmem:[%s14226_s1 + $0x560] sm:$0xff] }
 0x223   :  { %6952 = vmatpush1.bf16.msra.mxu0 %v8997_v37  ;;  %v445_v18 = vld [vmem:[%s14226_s1 + $0xd20] sm:$0xff]  ;;  %v9158_v37 = vcombine.high %v189_v15, %v197_v24  ;;  %v9157_v33 = vcombine.low %v189_v15, %v197_v24 }
 0x224   :  { %6953 = vmatprep.subr.bf16.mxu0 %v9238_v28  ;;  %v453_v53 = vld [vmem:[%s14226_s1 + $0xd60] sm:$0xff] }
 0x225   :  { %6993 = vmatpush1.bf16.msra.mxu1 %v9253_v27  ;;  %v9414_v27 = vcombine.high %v445_v18, %v453_v53  ;;  %v173_v28 = vld [vmem:[%s14226_s1 + $0x4a0] sm:$0xff]  ;;  %v9413_v34 = vcombine.low %v445_v18, %v453_v53 }
 0x226   :  { %6994 = vmatprep.subr.bf16.mxu1 %v9494_v30  ;;  %v181_v30 = vld [vmem:[%s14226_s1 + $0x4e0] sm:$0xff] }
 0x227   :  { %6954 = vmatpush2.bf16.msra.mxu0 %v9237_v35  ;;  %v429_v45 = vld [vmem:[%s14226_s1 + $0xca0] sm:$0xff]  ;;  %v9142_v35 = vcombine.high %v173_v28, %v181_v30  ;;  %v9141_v47 = vcombine.low %v173_v28, %v181_v30 }
 0x228   :  { %6955 = vmatprep.subr.bf16.mxu0 %v9222_v41  ;;  %v437_v32 = vld [vmem:[%s14226_s1 + $0xce0] sm:$0xff] }
 0x229   :  { %6995 = vmatpush2.bf16.msra.mxu1 %v9493_v40  ;;  %v9398_v40 = vcombine.high %v429_v45, %v437_v32  ;;  %v157_v41 = vld [vmem:[%s14226_s1 + $0x420] sm:$0xff]  ;;  %v9397_v48 = vcombine.low %v429_v45, %v437_v32 }
 0x22a   :  { %6996 = vmatprep.subr.bf16.mxu1 %v9478_v42  ;;  %v165_v42 = vld [vmem:[%s14226_s1 + $0x460] sm:$0xff] }
 0x22b   :  { %6956 = vmatpush2.bf16.msra.mxu0 %v9221_v50  ;;  %v413_v44 = vld [vmem:[%s14226_s1 + $0xc20] sm:$0xff]  ;;  %v9126_v50 = vcombine.high %v157_v41, %v165_v42  ;;  %v9125_v61 = vcombine.low %v157_v41, %v165_v42 }
 0x22c   :  { %6957 = vmatprep.subr.bf16.mxu0 %v9206_v52  ;;  %v421_v21 = vld [vmem:[%s14226_s1 + $0xc60] sm:$0xff] }
 0x22d   :  { %6997 = vmatpush2.bf16.msra.mxu1 %v9477_v51  ;;  %v9382_v51 = vcombine.high %v413_v44, %v421_v21  ;;  %v653_v52 = vld [vmem:[%s14226_s1 + $0x13a0] sm:$0xff]  ;;  %v9381_v62 = vcombine.low %v413_v44, %v421_v21 }
 0x22e   :  { %6998 = vmatprep.subr.bf16.mxu1 %v9462_v55  ;;  %v661_v55 = vld [vmem:[%s14226_s1 + $0x13e0] sm:$0xff] }
 0x22f   :  { %6958 = vmatpush2.bf16.msra.mxu0 %v9205_v63  ;;  %v909_v56 = vld [vmem:[%s14226_s1 + $0x1ba0] sm:$0xff]  ;;  %v9622_v63 = vcombine.high %v653_v52, %v661_v55  ;;  %v9621_v4 = vcombine.low %v653_v52, %v661_v55 }
 0x230   :  { %6959 = vmatprep.subr.bf16.mxu0 %v9190_v1  ;;  %v917_v57 = vld [vmem:[%s14226_s1 + $0x1be0] sm:$0xff] }
 0x231   :  { %6999 = vmatpush2.bf16.msra.mxu1 %v9461_v0  ;;  %v9878_v0 = vcombine.high %v909_v56, %v917_v57  ;;  %v637_v1 = vld [vmem:[%s14226_s1 + $0x1320] sm:$0xff]  ;;  %v9877_v8 = vcombine.low %v909_v56, %v917_v57 }
 0x232   :  { %7000 = vmatprep.subr.bf16.mxu1 %v9446_v7  ;;  %v645_v7 = vld [vmem:[%s14226_s1 + $0x1360] sm:$0xff] }
 0x233   :  { %6960 = vmatpush2.bf16.msra.mxu0 %v9189_v9  ;;  %v893_v2 = vld [vmem:[%s14226_s1 + $0x1b20] sm:$0xff]  ;;  %v9606_v9 = vcombine.high %v637_v1, %v645_v7 }
 0x234   :  { %6961 = vmatprep.subr.bf16.mxu0 %v9174_v13  ;;  %v901_v3 = vld [vmem:[%s14226_s1 + $0x1b60] sm:$0xff] }
 0x235   :  { %7001 = vmatpush2.bf16.msra.mxu1 %v9445_v11  ;;  %v9862_v11 = vcombine.high %v893_v2, %v901_v3  ;;  %v621_v13 = vld [vmem:[%s14226_s1 + $0x12a0] sm:$0xff] }
 0x236   :  { %7002 = vmatprep.subr.bf16.mxu1 %v9430_v14  ;;  %v629_v14 = vld [vmem:[%s14226_s1 + $0x12e0] sm:$0xff] }
 0x237   :  { %6962 = vmatpush2.bf16.msra.mxu0 %v9173_v22  ;;  %v877_v24 = vld [vmem:[%s14226_s1 + $0x1aa0] sm:$0xff]  ;;  %v9590_v28 = vcombine.high %v621_v13, %v629_v14  ;;  %v9589_v44 = vcombine.low %v621_v13, %v629_v14 }
 0x238   :  { %6963 = vmatprep.subr.bf16.mxu0 %v9158_v37  ;;  %v885_v18 = vld [vmem:[%s14226_s1 + $0x1ae0] sm:$0xff] }
 0x239   :  { %7003 = vmatpush2.bf16.msra.mxu1 %v9429_v54  ;;  %v9605_v54 = vcombine.low %v637_v1, %v645_v7  ;;  %v589_v52 = vld [vmem:[%s14226_s1 + $0x11a0] sm:$0xff] }
 0x23a   :  { %7004 = vmatprep.subr.bf16.mxu1 %v9414_v27  ;;  %v9861_v27 = vcombine.low %v893_v2, %v901_v3  ;;  %v597_v55 = vld [vmem:[%s14226_s1 + $0x11e0] sm:$0xff] }
 0x23b   :  { %6964 = vmatpush2.bf16.msra.mxu0 %v9157_v33  ;;  %v9846_v33 = vcombine.high %v877_v24, %v885_v18  ;;  %v845_v56 = vld [vmem:[%s14226_s1 + $0x19a0] sm:$0xff] }
 0x23c   :  { %6965 = vmatprep.subr.bf16.mxu0 %v9142_v35  ;;  %v853_v57 = vld [vmem:[%s14226_s1 + $0x19e0] sm:$0xff] }
 0x23d   :  { %7005 = vmatpush2.bf16.msra.mxu1 %v9413_v34  ;;  %v613_v34 = vld [vmem:[%s14226_s1 + $0x1260] sm:$0xff] }
 0x23e   :  { %7006 = vmatprep.subr.bf16.mxu1 %v9398_v40  ;;  %v861_v40 = vld [vmem:[%s14226_s1 + $0x1a20] sm:$0xff] }
 0x23f   :  { %6966 = vmatpush2.bf16.msra.mxu0 %v9141_v47  ;;  %v9845_v47 = vcombine.low %v877_v24, %v885_v18  ;;  %v573_v1 = vld [vmem:[%s14226_s1 + $0x1120] sm:$0xff] }
 0x240   :  { %6967 = vmatprep.subr.bf16.mxu0 %v9126_v50  ;;  %v581_v7 = vld [vmem:[%s14226_s1 + $0x1160] sm:$0xff] }
 0x241   :  { %7007 = vmatpush2.bf16.msra.mxu1 %v9397_v48  ;;  %v829_v2 = vld [vmem:[%s14226_s1 + $0x1920] sm:$0xff]  ;;  %v9541_v18 = vcombine.low %v573_v1, %v581_v7 }
 0x242   :  { %7008 = vmatprep.subr.bf16.mxu1 %v9382_v51  ;;  %v837_v3 = vld [vmem:[%s14226_s1 + $0x1960] sm:$0xff] }
 0x243   :  { %6968 = vmatpush2.bf16.msra.mxu0 %v9125_v61  ;;  %v557_v13 = vld [vmem:[%s14226_s1 + $0x10a0] sm:$0xff] }
 0x244   :  { %7019 = vmatprep.subr.bf16.mxu0 %v9622_v63  ;;  %v9558_v63 = vcombine.high %v589_v52, %v597_v55  ;;  %v565_v14 = vld [vmem:[%s14226_s1 + $0x10e0] sm:$0xff] }
 0x245   :  { %7009 = vmatpush2.bf16.msra.mxu1 %v9381_v62  ;;  %v821_v24 = vld [vmem:[%s14226_s1 + $0x18e0] sm:$0xff] }
 0x246   :  { %7060 = vmatprep.subr.bf16.mxu1 %v9878_v0  ;;  %v6725_v15 = vpop.f32.mrf.mxu0  ;;  %6970 = vmatmul.mubr.bf16.vlgmr.msra.gmra.mxu0 %v10718_v16  ;;  %v9814_v0 = vcombine.high %v845_v56, %v853_v57 }
 0x247   :  { %v6726_v53 = vadd.f32 %v6725_v15, %v12198_v12  ;;  %7020 = vmatpush1.bf16.msra.mxu0 %v9621_v4  ;;  %v605_v12 = vld [vmem:[%s14226_s1 + $0x1220] sm:$0xff]  ;;  %7051 = vmatprep.mubr.bf16.mxu0 %v10748_v26  ;;  %v9557_v4 = vcombine.low %v589_v52, %v597_v55 }
 0x248   :  { %v6766_v22 = vpop.f32.mrf.mxu1  ;;  %7011 = vmatmul.mubr.bf16.vlgmr.msra.gmra.mxu1 %v10733_v20  ;;  %v6727_v37 = vpop.f32.mrf.mxu0  ;;  %7021 = vmatprep.subr.bf16.mxu0 %v9606_v9  ;;  %v9574_v48 = vcombine.high %v605_v12, %v613_v34  ;;  %v9573_v61 = vcombine.low %v605_v12, %v613_v34  ;;  %v9542_v9 = vcombine.high %v573_v1, %v581_v7  ;;  %v813_v15 = vld [vmem:[%s14226_s1 + $0x18a0] sm:$0xff] }
 0x249   :  { %7061 = vmatpush1.bf16.msra.mxu1 %v9877_v8  ;;  %v12399_v30 = vadd.f32 %v6766_v22, %v6726_v53  ;;  %v6728_v45 = vadd.f32 %v6727_v37, %v12214_v25  ;;  %v869_v25 = vld [vmem:[%s14226_s1 + $0x1a60] sm:$0xff]  ;;  %7092 = vmatprep.mubr.bf16.mxu1 %v10759_v29  ;;  %v9813_v8 = vcombine.low %v845_v56, %v853_v57 }
 0x24a   :  { %v6768_v32 = vpop.f32.mrf.mxu1  ;;  %7062 = vmatprep.subr.bf16.mxu1 %v9862_v11  ;;  %v6729_v35 = vpop.f32.mrf.mxu0  ;;  %v9830_v51 = vcombine.high %v861_v40, %v869_v25  ;;  %v9829_v62 = vcombine.low %v861_v40, %v869_v25  ;;  %v9798_v11 = vcombine.high %v829_v2, %v837_v3  ;;  %v9797_v53 = vcombine.low %v829_v2, %v837_v3  ;;  %v541_v37 = vld [vmem:[%s14226_s1 + $0x1020] sm:$0xff] }
 0x24b   :  { %v12416_v41 = vadd.f32 %v6768_v32, %v6728_v45  ;;  %7022 = vmatpush1.bf16.msra.mxu0 %v9605_v54  ;;  %v9526_v22 = vcombine.high %v557_v13, %v565_v14  ;;  %v9782_v54 = vcombine.high %v813_v15, %v821_v24  ;;  %v805_v45 = vld [vmem:[%s14226_s1 + $0x1860] sm:$0xff]  ;;  %v9525_v32 = vcombine.low %v557_v13, %v565_v14 }
 0x24c   :  { %v6770_v42 = vpop.f32.mrf.mxu1  ;;  %v6730_v21 = vpop.f32.mrf.mxu0  ;;  %7023 = vmatprep.subr.bf16.mxu0 %v9590_v28  ;;  %v797_v28 = vld [vmem:[%s14226_s1 + $0x1820] sm:$0xff] }
 0x24d   :  { %7063 = vmatpush1.bf16.msra.mxu1 %v9861_v27  ;;  %v549_v27 = vld [vmem:[%s14226_s1 + $0x1060] sm:$0xff]  ;;  %v9766_v34 = vcombine.high %v797_v28, %v805_v45  ;;  %v9765_v21 = vcombine.low %v797_v28, %v805_v45 }
 0x24e   :  { %v6771_v50 = vpop.f32.mrf.mxu1  ;;  %7064 = vmatprep.subr.bf16.mxu1 %v9846_v33  ;;  %v9781_v33 = vcombine.low %v813_v15, %v821_v24  ;;  %v9510_v12 = vcombine.high %v541_v37, %v549_v27  ;;  %v781_v35 = vld [vmem:[%s14226_s1 + $0x17a0] sm:$0xff] }
 0x24f   :  { %7024 = vmatpush1.bf16.msra.mxu0 %v9589_v44  ;;  %v789_v40 = vld [vmem:[%s14226_s1 + $0x17e0] sm:$0xff]  ;;  %v9509_v44 = vcombine.low %v541_v37, %v549_v27 }
 0x250   :  { %7025 = vmatprep.subr.bf16.mxu0 %v9574_v48  ;;  %v1037_v25 = vld [vmem:[%s14226_s1 + $0x1fa0] sm:$0xff]  ;;  %v9749_v56 = vcombine.low %v781_v35, %v789_v40 }
 0x251   :  { %7065 = vmatpush1.bf16.msra.mxu1 %v9845_v47  ;;  %v1045_v42 = vld [vmem:[%s14226_s1 + $0x1fe0] sm:$0xff]  ;;  %v9750_v47 = vcombine.high %v781_v35, %v789_v40 }
 0x252   :  { %7066 = vmatprep.subr.bf16.mxu1 %v9830_v51  ;;  %v10006_v48 = vcombine.high %v1037_v25, %v1045_v42  ;;  %v765_v50 = vld [vmem:[%s14226_s1 + $0x1720] sm:$0xff]  ;;  %v10005_v57 = vcombine.low %v1037_v25, %v1045_v42 }
 0x253   :  { %7026 = vmatpush1.bf16.msra.mxu0 %v9573_v61  ;;  %v773_v51 = vld [vmem:[%s14226_s1 + $0x1760] sm:$0xff] }
 0x254   :  { %7027 = vmatprep.subr.bf16.mxu0 %v9558_v63  ;;  %v1021_v52 = vld [vmem:[%s14226_s1 + $0x1f20] sm:$0xff]  ;;  %v9734_v61 = vcombine.high %v765_v50, %v773_v51  ;;  %v9733_v2 = vcombine.low %v765_v50, %v773_v51 }
 0x255   :  { %7067 = vmatpush1.bf16.msra.mxu1 %v9829_v62  ;;  %v1029_v55 = vld [vmem:[%s14226_s1 + $0x1f60] sm:$0xff] }
 0x256   :  { %7068 = vmatprep.subr.bf16.mxu1 %v9814_v0  ;;  %v9990_v62 = vcombine.high %v1021_v52, %v1029_v55  ;;  %v749_v63 = vld [vmem:[%s14226_s1 + $0x16a0] sm:$0xff]  ;;  %v9989_v3 = vcombine.low %v1021_v52, %v1029_v55 }
 0x257   :  { %7028 = vmatpush1.bf16.msra.mxu0 %v9557_v4  ;;  %v757_v0 = vld [vmem:[%s14226_s1 + $0x16e0] sm:$0xff] }
 0x258   :  { %7029 = vmatprep.subr.bf16.mxu0 %v9542_v9  ;;  %v1005_v1 = vld [vmem:[%s14226_s1 + $0x1ea0] sm:$0xff]  ;;  %v9718_v4 = vcombine.high %v749_v63, %v757_v0  ;;  %v9717_v15 = vcombine.low %v749_v63, %v757_v0 }
 0x259   :  { %7069 = vmatpush1.bf16.msra.mxu1 %v9813_v8  ;;  %v1013_v7 = vld [vmem:[%s14226_s1 + $0x1ee0] sm:$0xff] }
 0x25a   :  { %7070 = vmatprep.subr.bf16.mxu1 %v9798_v11  ;;  %v9974_v8 = vcombine.high %v1005_v1, %v1013_v7  ;;  %v733_v9 = vld [vmem:[%s14226_s1 + $0x1620] sm:$0xff]  ;;  %v9973_v24 = vcombine.low %v1005_v1, %v1013_v7 }
 0x25b   :  { %7030 = vmatpush1.bf16.msra.mxu0 %v9541_v18  ;;  %v741_v11 = vld [vmem:[%s14226_s1 + $0x1660] sm:$0xff] }
 0x25c   :  { %7031 = vmatprep.subr.bf16.mxu0 %v9526_v22  ;;  %v989_v13 = vld [vmem:[%s14226_s1 + $0x1e20] sm:$0xff]  ;;  %v9702_v18 = vcombine.high %v733_v9, %v741_v11  ;;  %v9701_v28 = vcombine.low %v733_v9, %v741_v11  ;;  %v398_v9 = vld [vmem:[%s14226_s1 + $0xba8] sm:$0xff] }
 0x25d   :  { %7071 = vmatpush1.bf16.msra.mxu1 %v9797_v53  ;;  %v997_v14 = vld [vmem:[%s14226_s1 + $0x1e60] sm:$0xff]  ;;  %v406_v11 = vld [vmem:[%s14226_s1 + $0xbe8] sm:$0xff] }
 0x25e   :  { %7072 = vmatprep.subr.bf16.mxu1 %v9782_v54  ;;  %v9958_v53 = vcombine.high %v989_v13, %v997_v14  ;;  %v717_v22 = vld [vmem:[%s14226_s1 + $0x15a0] sm:$0xff]  ;;  %v9957_v45 = vcombine.low %v989_v13, %v997_v14  ;;  %v1079_v14 = vsub.s32 6, %v11320_v60 }
 0x25f   :  { %7032 = vmatpush1.bf16.msra.mxu0 %v9525_v32  ;;  %v725_v54 = vld [vmem:[%s14226_s1 + $0x15e0] sm:$0xff] }
 0x260   :  { %7033 = vmatprep.subr.bf16.mxu0 %v9510_v12  ;;  %v973_v37 = vld [vmem:[%s14226_s1 + $0x1da0] sm:$0xff]  ;;  %v9686_v32 = vcombine.high %v717_v22, %v725_v54  ;;  %v9685_v25 = vcombine.low %v717_v22, %v725_v54  ;;  %v126_v22 = vld [vmem:[%s14226_s1 + $0x328] sm:$0xff] }
 0x261   :  { %7073 = vmatpush1.bf16.msra.mxu1 %v9781_v33  ;;  %v981_v27 = vld [vmem:[%s14226_s1 + $0x1de0] sm:$0xff]  ;;  %v134_v54 = vld [vmem:[%s14226_s1 + $0x368] sm:$0xff] }
 0x262   :  { %7074 = vmatprep.subr.bf16.mxu1 %v9766_v34  ;;  %v9942_v33 = vcombine.high %v973_v37, %v981_v27  ;;  %v701_v12 = vld [vmem:[%s14226_s1 + $0x1520] sm:$0xff]  ;;  %v9941_v42 = vcombine.low %v973_v37, %v981_v27  ;;  %v382_v37 = vld [vmem:[%s14226_s1 + $0xb28] sm:$0xff] }
 0x263   :  { %7034 = vmatpush1.bf16.msra.mxu0 %v9509_v44  ;;  %v709_v34 = vld [vmem:[%s14226_s1 + $0x1560] sm:$0xff]  ;;  %v390_v27 = vld [vmem:[%s14226_s1 + $0xb68] sm:$0xff] }
 0x264   :  { %7035 = vmatprep.subr.bf16.mxu0 %v9750_v47  ;;  %v957_v35 = vld [vmem:[%s14226_s1 + $0x1d20] sm:$0xff]  ;;  %v9670_v44 = vcombine.high %v701_v12, %v709_v34  ;;  %v9669_v52 = vcombine.low %v701_v12, %v709_v34  ;;  %v9352_v34 = vcombine.high %v382_v37, %v390_v27 }
 0x265   :  { %7075 = vmatpush1.bf16.msra.mxu1 %v9765_v21  ;;  %v965_v40 = vld [vmem:[%s14226_s1 + $0x1d60] sm:$0xff] }
 0x266   :  { %7076 = vmatprep.subr.bf16.mxu1 %v10006_v48  ;;  %v9926_v21 = vcombine.high %v957_v35, %v965_v40  ;;  %v685_v47 = vld [vmem:[%s14226_s1 + $0x14a0] sm:$0xff]  ;;  %v9925_v55 = vcombine.low %v957_v35, %v965_v40  ;;  %v110_v35 = vld [vmem:[%s14226_s1 + $0x2a8] sm:$0xff] }
 0x267   :  { %7036 = vmatpush2.bf16.msra.mxu0 %v9749_v56  ;;  %v693_v48 = vld [vmem:[%s14226_s1 + $0x14e0] sm:$0xff]  ;;  %v118_v40 = vld [vmem:[%s14226_s1 + $0x2e8] sm:$0xff] }
 0x268   :  { %7037 = vmatprep.subr.bf16.mxu0 %v9734_v61  ;;  %v941_v50 = vld [vmem:[%s14226_s1 + $0x1ca0] sm:$0xff]  ;;  %v9654_v56 = vcombine.high %v685_v47, %v693_v48  ;;  %v9653_v1 = vcombine.low %v685_v47, %v693_v48  ;;  %v9095_v47 = vcombine.low %v126_v22, %v134_v54 }
 0x269   :  { %7077 = vmatpush2.bf16.msra.mxu1 %v10005_v57  ;;  %v949_v51 = vld [vmem:[%s14226_s1 + $0x1ce0] sm:$0xff] }
 0x26a   :  { %7078 = vmatprep.subr.bf16.mxu1 %v9990_v62  ;;  %v9910_v57 = vcombine.high %v941_v50, %v949_v51  ;;  %v669_v61 = vld [vmem:[%s14226_s1 + $0x1420] sm:$0xff]  ;;  %v9909_v7 = vcombine.low %v941_v50, %v949_v51  ;;  %v9351_v50 = vcombine.low %v382_v37, %v390_v27  ;;  %v9080_v51 = vcombine.high %v110_v35, %v118_v40 }
 0x26b   :  { %7038 = vmatpush2.bf16.msra.mxu0 %v9733_v2  ;;  %v677_v62 = vld [vmem:[%s14226_s1 + $0x1460] sm:$0xff] }
 0x26c   :  { %7039 = vmatprep.subr.bf16.mxu0 %v9718_v4  ;;  %v925_v63 = vld [vmem:[%s14226_s1 + $0x1c20] sm:$0xff]  ;;  %v9638_v2 = vcombine.high %v669_v61, %v677_v62  ;;  %v142_v4 = vld [vmem:[%s14226_s1 + $0x3a8] sm:$0xff]  ;;  %v9637_v13 = vcombine.low %v669_v61, %v677_v62 }
 0x26d   :  { %7079 = vmatpush2.bf16.msra.mxu1 %v9989_v3  ;;  %v933_v0 = vld [vmem:[%s14226_s1 + $0x1c60] sm:$0xff]  ;;  %v94_v61 = vld [vmem:[%s14226_s1 + $0x228] sm:$0xff] }
 0x26e   :  { %7080 = vmatprep.subr.bf16.mxu1 %v9974_v8  ;;  %v9894_v3 = vcombine.high %v925_v63, %v933_v0  ;;  %v150_v8 = vld [vmem:[%s14226_s1 + $0x3e8] sm:$0xff] }
 0x26f   :  { %7040 = vmatpush2.bf16.msra.mxu0 %v9717_v15  ;;  %v9893_v15 = vcombine.low %v925_v63, %v933_v0  ;;  %v102_v62 = vld [vmem:[%s14226_s1 + $0x268] sm:$0xff] }
 0x270   :  { %7041 = vmatprep.subr.bf16.mxu0 %v9702_v18  ;;  %v9368_v18 = vcombine.high %v398_v9, %v406_v11  ;;  %v350_v0 = vld [vmem:[%s14226_s1 + $0xa28] sm:$0xff] }
 0x271   :  { %7081 = vmatpush2.bf16.msra.mxu1 %v9973_v24  ;;  %v9112_v24 = vcombine.high %v142_v4, %v150_v8 }
 0x272   :  { %7082 = vmatprep.subr.bf16.mxu1 %v9958_v53  ;;  %v1083_v53 = vsub.s32 7, %v11320_v60 }
 0x273   :  { %7042 = vmatpush2.bf16.msra.mxu0 %v9701_v28  ;;  %v1080_v28 = vrot.slane %v12176_v49, %v1079_v14 }
 0x274   :  { %7043 = vmatprep.subr.bf16.mxu0 %v9686_v32  ;;  %v9367_v32 = vcombine.low %v398_v9, %v406_v11  ;;  %v1084_v12 = vrot.slane %v12176_v49, %v1083_v53  ;;  %v374_v49 = vld [vmem:[%s14226_s1 + $0xae8] sm:$0xff]  ;;  %v9064_v9 = vcombine.high %v94_v61, %v102_v62 }
 0x275   :  { %7083 = vmatpush2.bf16.msra.mxu1 %v9957_v45  ;;  %v9111_v45 = vcombine.low %v142_v4, %v150_v8 }
 0x276   :  { %7084 = vmatprep.subr.bf16.mxu1 %v9942_v33  ;;  %v9096_v33 = vcombine.high %v126_v22, %v134_v54  ;;  %v342_v22 = vld [vmem:[%s14226_s1 + $0x9e8] sm:$0xff]  ;;  %v9063_v54 = vcombine.low %v94_v61, %v102_v62 }
 0x277   :  { %7044 = vmatpush2.bf16.msra.mxu0 %v9685_v25  ;;  %v294_v61 = vld [vmem:[%s14226_s1 + $0x868] sm:$0xff] }
 0x278   :  { %7045 = vmatprep.subr.bf16.mxu0 %v9670_v44 }
 0x279   :  { %7085 = vmatpush2.bf16.msra.mxu1 %v9941_v42  ;;  %v366_v42 = vld [vmem:[%s14226_s1 + $0xaa8] sm:$0xff] }
 0x27a   :  { %7086 = vmatprep.subr.bf16.mxu1 %v9926_v21  ;;  %v9335_v8 = vcombine.low %v366_v42, %v374_v49 }
 0x27b   :  { %7046 = vmatpush2.bf16.msra.mxu0 %v9669_v52 }
 0x27c   :  { %7047 = vmatprep.subr.bf16.mxu0 %v9654_v56 }
 0x27d   :  { %7087 = vmatpush2.bf16.msra.mxu1 %v9925_v55 }
 0x27e   :  { %7088 = vmatprep.subr.bf16.mxu1 %v9910_v57  ;;  %v9336_v57 = vcombine.high %v366_v42, %v374_v49  ;;  %v46_v42 = vld [vmem:[%s14226_s1 + $0xa8] sm:$0xff] }
 0x27f   :  { %7048 = vmatpush2.bf16.msra.mxu0 %v9653_v1  ;;  %v358_v1 = vld [vmem:[%s14226_s1 + $0xa68] sm:$0xff] }
 0x280   :  { %7049 = vmatprep.subr.bf16.mxu0 %v9638_v2  ;;  %v9319_v37 = vcombine.low %v350_v0, %v358_v1  ;;  %v54_v49 = vld [vmem:[%s14226_s1 + $0xe8] sm:$0xff] }
 0x281   :  { %7089 = vmatpush2.bf16.msra.mxu1 %v9909_v7  ;;  %v9015_v62 = vcombine.low %v46_v42, %v54_v49 }
 0x282   :  { %7090 = vmatprep.subr.bf16.mxu1 %v9894_v3  ;;  %v9079_v3 = vcombine.low %v110_v35, %v118_v40 }
 0x283   :  { %7050 = vmatpush2.bf16.msra.mxu0 %v9637_v13  ;;  %v9320_v13 = vcombine.high %v350_v0, %v358_v1 }
 0x284   :  { %7101 = vmatprep.subr.bf16.mxu0 %v9112_v24  ;;  %v86_v24 = vld [vmem:[%s14226_s1 + $0x1e8] sm:$0xff] }
 0x285   :  { %7091 = vmatpush2.bf16.msra.mxu1 %v9893_v15  ;;  %v78_v15 = vld [vmem:[%s14226_s1 + $0x1a8] sm:$0xff] }
 0x286   :  { %7142 = vmatprep.subr.bf16.mxu1 %v9368_v18  ;;  %v6807_v25 = vpop.f32.mrf.mxu0  ;;  %7052 = vmatmul.mubr.bf16.vlgmr.msra.gmra.mxu0 %v10940_v36  ;;  %v334_v18 = vld [vmem:[%s14226_s1 + $0x9a8] sm:$0xff]  ;;  %v9048_v27 = vcombine.high %v78_v15, %v86_v24 }
 0x287   :  { %v6808_v44 = vadd.f32 %v6807_v25, %v1080_v28  ;;  %7102 = vmatpush1.bf16.msra.mxu0 %v9111_v45  ;;  %7133 = vmatprep.mubr.bf16.mxu0 %v10588_v58  ;;  %v9304_v28 = vcombine.high %v334_v18, %v342_v22  ;;  %v62_v45 = vld [vmem:[%s14226_s1 + $0x128] sm:$0xff]  ;;  %v9303_v35 = vcombine.low %v334_v18, %v342_v22 }
 0x288   :  { %v6848_v21 = vpop.f32.mrf.mxu1  ;;  %7093 = vmatmul.mubr.bf16.vlgmr.msra.gmra.mxu1 %v10950_v39  ;;  %v6809_v48 = vpop.f32.mrf.mxu0  ;;  %7103 = vmatprep.subr.bf16.mxu0 %v9096_v33  ;;  %v318_v33 = vld [vmem:[%s14226_s1 + $0x928] sm:$0xff] }
 0x289   :  { %7143 = vmatpush1.bf16.msra.mxu1 %v9367_v32  ;;  %v12608_v52 = vadd.f32 %v6848_v21, %v6808_v44  ;;  %v6810_v55 = vadd.f32 %v6809_v48, %v1084_v12  ;;  %7174 = vmatprep.mubr.bf16.mxu1 %v10592_v59  ;;  %v70_v32 = vld [vmem:[%s14226_s1 + $0x168] sm:$0xff] }
 0x28a   :  { %v6850_v56 = vpop.f32.mrf.mxu1  ;;  %7144 = vmatprep.subr.bf16.mxu1 %v9352_v34  ;;  %v6811_v63 = vpop.f32.mrf.mxu0  ;;  %v326_v12 = vld [vmem:[%s14226_s1 + $0x968] sm:$0xff]  ;;  %v9047_v34 = vcombine.low %v78_v15, %v86_v24  ;;  %v9032_v40 = vcombine.high %v62_v45, %v70_v32 }
 0x28b   :  { %v12624_v7 = vadd.f32 %v6850_v56, %v6810_v55  ;;  %7104 = vmatpush1.bf16.msra.mxu0 %v9095_v47  ;;  %v9288_v25 = vcombine.high %v318_v33, %v326_v12  ;;  %v302_v44 = vld [vmem:[%s14226_s1 + $0x8a8] sm:$0xff]  ;;  %v9031_v47 = vcombine.low %v62_v45, %v70_v32  ;;  %v9287_v48 = vcombine.low %v318_v33, %v326_v12 }
 0x28c   :  { %v6852_v2 = vpop.f32.mrf.mxu1  ;;  %v6812_v4 = vpop.f32.mrf.mxu0  ;;  %7105 = vmatprep.subr.bf16.mxu0 %v9080_v51  ;;  %v310_v21 = vld [vmem:[%s14226_s1 + $0x8e8] sm:$0xff] }
 0x28d   :  { %7145 = vmatpush1.bf16.msra.mxu1 %v9351_v50  ;;  %v9016_v50 = vcombine.high %v46_v42, %v54_v49  ;;  %v9272_v51 = vcombine.high %v302_v44, %v310_v21  ;;  %v30_v55 = vld [vmem:[%s14226_s1 + $0x28] sm:$0xff]  ;;  %v9271_v63 = vcombine.low %v302_v44, %v310_v21 }
 0x28e   :  { %v6853_v11 = vpop.f32.mrf.mxu1  ;;  %7146 = vmatprep.subr.bf16.mxu1 %v9336_v57  ;;  %v38_v56 = vld [vmem:[%s14226_s1 + $0x68] sm:$0xff] }
 0x28f   :  { %7106 = vmatpush1.bf16.msra.mxu0 %v9079_v3  ;;  %v286_v57 = vld [vmem:[%s14226_s1 + $0x828] sm:$0xff]  ;;  %v9000_v0 = vcombine.high %v30_v55, %v38_v56 }
 0x290   :  { %7107 = vmatprep.subr.bf16.mxu0 %v9064_v9  ;;  %v9256_v1 = vcombine.high %v286_v57, %v294_v61  ;;  %v270_v2 = vld [vmem:[%s14226_s1 + $0x7a8] sm:$0xff]  ;;  %v8999_v9 = vcombine.low %v30_v55, %v38_v56  ;;  %v9255_v11 = vcombine.low %v286_v57, %v294_v61 }
 0x291   :  { %7147 = vmatpush1.bf16.msra.mxu1 %v9335_v8  ;;  %v278_v3 = vld [vmem:[%s14226_s1 + $0x7e8] sm:$0xff] }
 0x292   :  { %7148 = vmatprep.subr.bf16.mxu1 %v9320_v13  ;;  %v526_v4 = vld [vmem:[%s14226_s1 + $0xfa8] sm:$0xff]  ;;  %v9240_v13 = vcombine.high %v270_v2, %v278_v3 }
 0x293   :  { %7108 = vmatpush1.bf16.msra.mxu0 %v9063_v54  ;;  %v534_v8 = vld [vmem:[%s14226_s1 + $0xfe8] sm:$0xff] }
 0x294   :  { %7109 = vmatprep.subr.bf16.mxu0 %v9048_v27  ;;  %v9496_v15 = vcombine.high %v526_v4, %v534_v8  ;;  %v254_v24 = vld [vmem:[%s14226_s1 + $0x728] sm:$0xff]  ;;  %v9495_v27 = vcombine.low %v526_v4, %v534_v8 }
 0x295   :  { %7149 = vmatpush1.bf16.msra.mxu1 %v9319_v37  ;;  %v262_v18 = vld [vmem:[%s14226_s1 + $0x768] sm:$0xff]  ;;  %v9239_v37 = vcombine.low %v270_v2, %v278_v3 }
 0x296   :  { %7150 = vmatprep.subr.bf16.mxu1 %v9304_v28  ;;  %v510_v22 = vld [vmem:[%s14226_s1 + $0xf28] sm:$0xff]  ;;  %v9224_v28 = vcombine.high %v254_v24, %v262_v18 }
 0x297   :  { %7110 = vmatpush1.bf16.msra.mxu0 %v9047_v34  ;;  %v518_v54 = vld [vmem:[%s14226_s1 + $0xf68] sm:$0xff] }
 0x298   :  { %7111 = vmatprep.subr.bf16.mxu0 %v9032_v40  ;;  %v9480_v45 = vcombine.high %v510_v22, %v518_v54  ;;  %v238_v32 = vld [vmem:[%s14226_s1 + $0x6a8] sm:$0xff]  ;;  %v9479_v40 = vcombine.low %v510_v22, %v518_v54 }
 0x299   :  { %7151 = vmatpush1.bf16.msra.mxu1 %v9303_v35  ;;  %v246_v33 = vld [vmem:[%s14226_s1 + $0x6e8] sm:$0xff]  ;;  %v9223_v35 = vcombine.low %v254_v24, %v262_v18 }
 0x29a   :  { %7152 = vmatprep.subr.bf16.mxu1 %v9288_v25  ;;  %v494_v12 = vld [vmem:[%s14226_s1 + $0xea8] sm:$0xff]  ;;  %v9208_v25 = vcombine.high %v238_v32, %v246_v33 }
 0x29b   :  { %7112 = vmatpush1.bf16.msra.mxu0 %v9031_v47  ;;  %v502_v34 = vld [vmem:[%s14226_s1 + $0xee8] sm:$0xff] }
 0x29c   :  { %7113 = vmatprep.subr.bf16.mxu0 %v9016_v50  ;;  %v9464_v42 = vcombine.high %v494_v12, %v502_v34  ;;  %v222_v49 = vld [vmem:[%s14226_s1 + $0x628] sm:$0xff]  ;;  %v9463_v50 = vcombine.low %v494_v12, %v502_v34 }
 0x29d   :  { %7153 = vmatpush1.bf16.msra.mxu1 %v9287_v48  ;;  %v230_v44 = vld [vmem:[%s14226_s1 + $0x668] sm:$0xff]  ;;  %v9207_v48 = vcombine.low %v238_v32, %v246_v33 }
 0x29e   :  { %7154 = vmatprep.subr.bf16.mxu1 %v9272_v51  ;;  %v478_v21 = vld [vmem:[%s14226_s1 + $0xe28] sm:$0xff]  ;;  %v9192_v51 = vcombine.high %v222_v49, %v230_v44 }
 0x29f   :  { %7114 = vmatpush1.bf16.msra.mxu0 %v9015_v62  ;;  %v486_v47 = vld [vmem:[%s14226_s1 + $0xe68] sm:$0xff] }
 0x2a0   :  { %7115 = vmatprep.subr.bf16.mxu0 %v9000_v0  ;;  %v9448_v55 = vcombine.high %v478_v21, %v486_v47  ;;  %v206_v56 = vld [vmem:[%s14226_s1 + $0x5a8] sm:$0xff]  ;;  %v9447_v0 = vcombine.low %v478_v21, %v486_v47 }
 0x2a1   :  { %7155 = vmatpush1.bf16.msra.mxu1 %v9271_v63  ;;  %v214_v57 = vld [vmem:[%s14226_s1 + $0x5e8] sm:$0xff]  ;;  %v9191_v63 = vcombine.low %v222_v49, %v230_v44 }
 0x2a2   :  { %7156 = vmatprep.subr.bf16.mxu1 %v9256_v1  ;;  %v462_v61 = vld [vmem:[%s14226_s1 + $0xda8] sm:$0xff]  ;;  %v9176_v1 = vcombine.high %v206_v56, %v214_v57 }
 0x2a3   :  { %7116 = vmatpush1.bf16.msra.mxu0 %v8999_v9  ;;  %v470_v62 = vld [vmem:[%s14226_s1 + $0xde8] sm:$0xff] }
 0x2a4   :  { %7117 = vmatprep.subr.bf16.mxu0 %v9240_v13  ;;  %v9432_v2 = vcombine.high %v462_v61, %v470_v62  ;;  %v190_v3 = vld [vmem:[%s14226_s1 + $0x528] sm:$0xff]  ;;  %v9431_v13 = vcombine.low %v462_v61, %v470_v62 }
 0x2a5   :  { %7157 = vmatpush1.bf16.msra.mxu1 %v9255_v11  ;;  %v198_v4 = vld [vmem:[%s14226_s1 + $0x568] sm:$0xff]  ;;  %v9175_v11 = vcombine.low %v206_v56, %v214_v57 }
 0x2a6   :  { %7158 = vmatprep.subr.bf16.mxu1 %v9496_v15  ;;  %v446_v8 = vld [vmem:[%s14226_s1 + $0xd28] sm:$0xff]  ;;  %v9160_v15 = vcombine.high %v190_v3, %v198_v4 }
 0x2a7   :  { %7118 = vmatpush2.bf16.msra.mxu0 %v9239_v37  ;;  %v454_v9 = vld [vmem:[%s14226_s1 + $0xd68] sm:$0xff] }
 0x2a8   :  { %7119 = vmatprep.subr.bf16.mxu0 %v9224_v28  ;;  %v9416_v24 = vcombine.high %v446_v8, %v454_v9  ;;  %v174_v18 = vld [vmem:[%s14226_s1 + $0x4a8] sm:$0xff]  ;;  %v9415_v28 = vcombine.low %v446_v8, %v454_v9 }
 0x2a9   :  { %7159 = vmatpush2.bf16.msra.mxu1 %v9495_v27  ;;  %v182_v22 = vld [vmem:[%s14226_s1 + $0x4e8] sm:$0xff]  ;;  %v9159_v27 = vcombine.low %v190_v3, %v198_v4 }
 0x2aa   :  { %7160 = vmatprep.subr.bf16.mxu1 %v9480_v45  ;;  %v430_v54 = vld [vmem:[%s14226_s1 + $0xca8] sm:$0xff]  ;;  %v9144_v45 = vcombine.high %v174_v18, %v182_v22 }
 0x2ab   :  { %7120 = vmatpush2.bf16.msra.mxu0 %v9223_v35  ;;  %v438_v37 = vld [vmem:[%s14226_s1 + $0xce8] sm:$0xff] }
 0x2ac   :  { %7121 = vmatprep.subr.bf16.mxu0 %v9208_v25  ;;  %v9400_v32 = vcombine.high %v430_v54, %v438_v37  ;;  %v158_v33 = vld [vmem:[%s14226_s1 + $0x428] sm:$0xff]  ;;  %v9399_v25 = vcombine.low %v430_v54, %v438_v37 }
 0x2ad   :  { %7161 = vmatpush2.bf16.msra.mxu1 %v9479_v40  ;;  %v166_v12 = vld [vmem:[%s14226_s1 + $0x468] sm:$0xff]  ;;  %v9143_v40 = vcombine.low %v174_v18, %v182_v22 }
 0x2ae   :  { %7162 = vmatprep.subr.bf16.mxu1 %v9464_v42  ;;  %v414_v34 = vld [vmem:[%s14226_s1 + $0xc28] sm:$0xff]  ;;  %v9128_v42 = vcombine.high %v158_v33, %v166_v12 }
 0x2af   :  { %7122 = vmatpush2.bf16.msra.mxu0 %v9207_v48  ;;  %v422_v35 = vld [vmem:[%s14226_s1 + $0xc68] sm:$0xff] }
 0x2b0   :  { %7123 = vmatprep.subr.bf16.mxu0 %v9192_v51  ;;  %v9384_v49 = vcombine.high %v414_v34, %v422_v35  ;;  %v654_v44 = vld [vmem:[%s14226_s1 + $0x13a8] sm:$0xff]  ;;  %v9383_v51 = vcombine.low %v414_v34, %v422_v35 }
 0x2b1   :  { %7163 = vmatpush2.bf16.msra.mxu1 %v9463_v50  ;;  %v662_v21 = vld [vmem:[%s14226_s1 + $0x13e8] sm:$0xff]  ;;  %v9127_v50 = vcombine.low %v158_v33, %v166_v12 }
 0x2b2   :  { %7164 = vmatprep.subr.bf16.mxu1 %v9448_v55  ;;  %v910_v47 = vld [vmem:[%s14226_s1 + $0x1ba8] sm:$0xff]  ;;  %v9624_v55 = vcombine.high %v654_v44, %v662_v21 }
 0x2b3   :  { %7124 = vmatpush2.bf16.msra.mxu0 %v9191_v63  ;;  %v918_v48 = vld [vmem:[%s14226_s1 + $0x1be8] sm:$0xff] }
 0x2b4   :  { %7125 = vmatprep.subr.bf16.mxu0 %v9176_v1  ;;  %v9880_v56 = vcombine.high %v910_v47, %v918_v48  ;;  %v638_v57 = vld [vmem:[%s14226_s1 + $0x1328] sm:$0xff]  ;;  %v9879_v1 = vcombine.low %v910_v47, %v918_v48 }
 0x2b5   :  { %7165 = vmatpush2.bf16.msra.mxu1 %v9447_v0  ;;  %v646_v61 = vld [vmem:[%s14226_s1 + $0x1368] sm:$0xff]  ;;  %v9623_v0 = vcombine.low %v654_v44, %v662_v21 }
 0x2b6   :  { %7166 = vmatprep.subr.bf16.mxu1 %v9432_v2  ;;  %v894_v62 = vld [vmem:[%s14226_s1 + $0x1b28] sm:$0xff]  ;;  %v9608_v2 = vcombine.high %v638_v57, %v646_v61  ;;  %v9607_v18 = vcombine.low %v638_v57, %v646_v61 }
 0x2b7   :  { %7126 = vmatpush2.bf16.msra.mxu0 %v9175_v11  ;;  %v902_v63 = vld [vmem:[%s14226_s1 + $0x1b68] sm:$0xff] }
 0x2b8   :  { %7127 = vmatprep.subr.bf16.mxu0 %v9160_v15  ;;  %v9864_v3 = vcombine.high %v894_v62, %v902_v63  ;;  %v622_v4 = vld [vmem:[%s14226_s1 + $0x12a8] sm:$0xff]  ;;  %v9863_v54 = vcombine.low %v894_v62, %v902_v63 }
 0x2b9   :  { %7167 = vmatpush2.bf16.msra.mxu1 %v9431_v13  ;;  %v630_v8 = vld [vmem:[%s14226_s1 + $0x12e8] sm:$0xff] }
 0x2ba   :  { %7168 = vmatprep.subr.bf16.mxu1 %v9416_v24  ;;  %v878_v11 = vld [vmem:[%s14226_s1 + $0x1aa8] sm:$0xff]  ;;  %v9592_v37 = vcombine.high %v622_v4, %v630_v8 }
 0x2bb   :  { %7128 = vmatpush2.bf16.msra.mxu0 %v9159_v27  ;;  %v886_v13 = vld [vmem:[%s14226_s1 + $0x1ae8] sm:$0xff] }
 0x2bc   :  { %7129 = vmatprep.subr.bf16.mxu0 %v9144_v45  ;;  %v614_v33 = vld [vmem:[%s14226_s1 + $0x1268] sm:$0xff] }
 0x2bd   :  { %7169 = vmatpush2.bf16.msra.mxu1 %v9415_v28  ;;  %v862_v34 = vld [vmem:[%s14226_s1 + $0x1a28] sm:$0xff] }
 0x2be   :  { %7170 = vmatprep.subr.bf16.mxu1 %v9400_v32  ;;  %v9848_v32 = vcombine.high %v878_v11, %v886_v13  ;;  %v590_v48 = vld [vmem:[%s14226_s1 + $0x11a8] sm:$0xff] }
 0x2bf   :  { %7130 = vmatpush2.bf16.msra.mxu0 %v9143_v40  ;;  %v574_v63 = vld [vmem:[%s14226_s1 + $0x1128] sm:$0xff] }
 0x2c0   :  { %7131 = vmatprep.subr.bf16.mxu0 %v9128_v42 }
 0x2c1   :  { %7171 = vmatpush2.bf16.msra.mxu1 %v9399_v25  ;;  %v9591_v25 = vcombine.low %v622_v4, %v630_v8 }
 0x2c2   :  { %7172 = vmatprep.subr.bf16.mxu1 %v9384_v49  ;;  %v9847_v49 = vcombine.low %v878_v11, %v886_v13  ;;  %v558_v11 = vld [vmem:[%s14226_s1 + $0x10a8] sm:$0xff] }
 0x2c3   :  { %7132 = vmatpush2.bf16.msra.mxu0 %v9127_v50  ;;  %v598_v50 = vld [vmem:[%s14226_s1 + $0x11e8] sm:$0xff] }
 0x2c4   :  { %7183 = vmatprep.subr.bf16.mxu0 %v9624_v55  ;;  %v854_v55 = vld [vmem:[%s14226_s1 + $0x19e8] sm:$0xff]  ;;  %v9560_v61 = vcombine.high %v590_v48, %v598_v50 }
 0x2c5   :  { %7173 = vmatpush2.bf16.msra.mxu1 %v9383_v51  ;;  %v846_v51 = vld [vmem:[%s14226_s1 + $0x19a8] sm:$0xff] }
 0x2c6   :  { %7224 = vmatprep.subr.bf16.mxu1 %v9880_v56  ;;  %v6889_v9 = vpop.f32.mrf.mxu0  ;;  %7134 = vmatmul.mubr.bf16.vlgmr.msra.gmra.mxu0 %v10718_v16  ;;  %v9816_v62 = vcombine.high %v846_v51, %v854_v55  ;;  %v9815_v4 = vcombine.low %v846_v51, %v854_v55  ;;  %v566_v13 = vld [vmem:[%s14226_s1 + $0x10e8] sm:$0xff] }
 0x2c7   :  { %v6890_v15 = vadd.f32 %v6889_v9, %v12608_v52  ;;  %7184 = vmatpush1.bf16.msra.mxu0 %v9623_v0  ;;  %v606_v52 = vld [vmem:[%s14226_s1 + $0x1228] sm:$0xff]  ;;  %7215 = vmatprep.mubr.bf16.mxu0 %v10748_v26 }
 0x2c8   :  { %v6930_v24 = vpop.f32.mrf.mxu1  ;;  %7175 = vmatmul.mubr.bf16.vlgmr.msra.gmra.mxu1 %v10733_v20  ;;  %v6891_v22 = vpop.f32.mrf.mxu0  ;;  %7185 = vmatprep.subr.bf16.mxu0 %v9608_v2  ;;  %v9576_v44 = vcombine.high %v606_v52, %v614_v33  ;;  %v9575_v56 = vcombine.low %v606_v52, %v614_v33  ;;  %v582_v0 = vld [vmem:[%s14226_s1 + $0x1168] sm:$0xff]  ;;  %v9527_v33 = vcombine.low %v558_v11, %v566_v13 }
 0x2c9   :  { %7225 = vmatpush1.bf16.msra.mxu1 %v9879_v1  ;;  %v12809_v27 = vadd.f32 %v6930_v24, %v6890_v15  ;;  %v6892_v28 = vadd.f32 %v6891_v22, %v12624_v7  ;;  %v870_v7 = vld [vmem:[%s14226_s1 + $0x1a68] sm:$0xff]  ;;  %7256 = vmatprep.mubr.bf16.mxu1 %v10759_v29  ;;  %v9544_v8 = vcombine.high %v574_v63, %v582_v0 }
 0x2ca   :  { %v6932_v45 = vpop.f32.mrf.mxu1  ;;  %7226 = vmatprep.subr.bf16.mxu1 %v9864_v3  ;;  %v6893_v12 = vpop.f32.mrf.mxu0  ;;  %v9832_v47 = vcombine.high %v862_v34, %v870_v7  ;;  %v9831_v57 = vcombine.low %v862_v34, %v870_v7  ;;  %v830_v1 = vld [vmem:[%s14226_s1 + $0x1928] sm:$0xff]  ;;  %v9559_v3 = vcombine.low %v590_v48, %v598_v50 }
 0x2cb   :  { %v12826_v35 = vadd.f32 %v6932_v45, %v6892_v28  ;;  %7186 = vmatpush1.bf16.msra.mxu0 %v9607_v18  ;;  %v838_v2 = vld [vmem:[%s14226_s1 + $0x1968] sm:$0xff]  ;;  %v9543_v18 = vcombine.low %v574_v63, %v582_v0 }
 0x2cc   :  { %v6934_v40 = vpop.f32.mrf.mxu1  ;;  %v6894_v42 = vpop.f32.mrf.mxu0  ;;  %7187 = vmatprep.subr.bf16.mxu0 %v9592_v37  ;;  %v9800_v9 = vcombine.high %v830_v1, %v838_v2  ;;  %v814_v15 = vld [vmem:[%s14226_s1 + $0x18a8] sm:$0xff]  ;;  %v9799_v22 = vcombine.low %v830_v1, %v838_v2 }
 0x2cd   :  { %7227 = vmatpush1.bf16.msra.mxu1 %v9863_v54  ;;  %v822_v24 = vld [vmem:[%s14226_s1 + $0x18e8] sm:$0xff]  ;;  %v9528_v54 = vcombine.high %v558_v11, %v566_v13 }
 0x2ce   :  { %v6935_v21 = vpop.f32.mrf.mxu1  ;;  %7228 = vmatprep.subr.bf16.mxu1 %v9848_v32  ;;  %v9784_v37 = vcombine.high %v814_v15, %v822_v24  ;;  %v542_v28 = vld [vmem:[%s14226_s1 + $0x1028] sm:$0xff]  ;;  %v9783_v12 = vcombine.low %v814_v15, %v822_v24 }
 0x2cf   :  { %7188 = vmatpush1.bf16.msra.mxu0 %v9591_v25  ;;  %v550_v45 = vld [vmem:[%s14226_s1 + $0x1068] sm:$0xff] }
 0x2d0   :  { %7189 = vmatprep.subr.bf16.mxu0 %v9576_v44  ;;  %v798_v32 = vld [vmem:[%s14226_s1 + $0x1828] sm:$0xff]  ;;  %v9512_v34 = vcombine.high %v542_v28, %v550_v45  ;;  %v9511_v44 = vcombine.low %v542_v28, %v550_v45 }
 0x2d1   :  { %7229 = vmatpush1.bf16.msra.mxu1 %v9847_v49  ;;  %v806_v52 = vld [vmem:[%s14226_s1 + $0x1868] sm:$0xff] }
 0x2d2   :  { %7230 = vmatprep.subr.bf16.mxu1 %v9832_v47  ;;  %v9768_v7 = vcombine.high %v798_v32, %v806_v52  ;;  %v782_v40 = vld [vmem:[%s14226_s1 + $0x17a8] sm:$0xff]  ;;  %v9767_v21 = vcombine.low %v798_v32, %v806_v52 }
 0x2d3   :  { %7190 = vmatpush1.bf16.msra.mxu0 %v9575_v56  ;;  %v790_v25 = vld [vmem:[%s14226_s1 + $0x17e8] sm:$0xff] }
 0x2d4   :  { %7191 = vmatprep.subr.bf16.mxu0 %v9560_v61  ;;  %v1038_v42 = vld [vmem:[%s14226_s1 + $0x1fa8] sm:$0xff]  ;;  %v9752_v47 = vcombine.high %v782_v40, %v790_v25 }
 0x2d5   :  { %7231 = vmatpush1.bf16.msra.mxu1 %v9831_v57  ;;  %v1046_v49 = vld [vmem:[%s14226_s1 + $0x1fe8] sm:$0xff]  ;;  %v9751_v57 = vcombine.low %v782_v40, %v790_v25 }
 0x2d6   :  { %7232 = vmatprep.subr.bf16.mxu1 %v9816_v62  ;;  %v10008_v48 = vcombine.high %v1038_v42, %v1046_v49  ;;  %v766_v50 = vld [vmem:[%s14226_s1 + $0x1728] sm:$0xff]  ;;  %v10007_v61 = vcombine.low %v1038_v42, %v1046_v49 }
 0x2d7   :  { %7192 = vmatpush1.bf16.msra.mxu0 %v9559_v3  ;;  %v774_v51 = vld [vmem:[%s14226_s1 + $0x1768] sm:$0xff] }
 0x2d8   :  { %7193 = vmatprep.subr.bf16.mxu0 %v9544_v8  ;;  %v1022_v55 = vld [vmem:[%s14226_s1 + $0x1f28] sm:$0xff]  ;;  %v9736_v62 = vcombine.high %v766_v50, %v774_v51 }
 0x2d9   :  { %7233 = vmatpush1.bf16.msra.mxu1 %v9815_v4  ;;  %v1030_v56 = vld [vmem:[%s14226_s1 + $0x1f68] sm:$0xff]  ;;  %v9735_v4 = vcombine.low %v766_v50, %v774_v51 }
 0x2da   :  { %7234 = vmatprep.subr.bf16.mxu1 %v9800_v9  ;;  %v9992_v63 = vcombine.high %v1022_v55, %v1030_v56  ;;  %v750_v0 = vld [vmem:[%s14226_s1 + $0x16a8] sm:$0xff]  ;;  %v9991_v8 = vcombine.low %v1022_v55, %v1030_v56 }
 0x2db   :  { %7194 = vmatpush1.bf16.msra.mxu0 %v9543_v18  ;;  %v758_v1 = vld [vmem:[%s14226_s1 + $0x16e8] sm:$0xff] }
 0x2dc   :  { %7195 = vmatprep.subr.bf16.mxu0 %v9528_v54  ;;  %v1006_v2 = vld [vmem:[%s14226_s1 + $0x1ea8] sm:$0xff]  ;;  %v9720_v9 = vcombine.high %v750_v0, %v758_v1 }
 0x2dd   :  { %7235 = vmatpush1.bf16.msra.mxu1 %v9799_v22  ;;  %v1014_v3 = vld [vmem:[%s14226_s1 + $0x1ee8] sm:$0xff]  ;;  %v9719_v22 = vcombine.low %v750_v0, %v758_v1 }
 0x2de   :  { %7236 = vmatprep.subr.bf16.mxu1 %v9784_v37  ;;  %v9976_v11 = vcombine.high %v1006_v2, %v1014_v3  ;;  %v734_v13 = vld [vmem:[%s14226_s1 + $0x1628] sm:$0xff]  ;;  %v9975_v54 = vcombine.low %v1006_v2, %v1014_v3 }
 0x2df   :  { %7196 = vmatpush1.bf16.msra.mxu0 %v9527_v33  ;;  %v742_v15 = vld [vmem:[%s14226_s1 + $0x1668] sm:$0xff] }
 0x2e0   :  { %7197 = vmatprep.subr.bf16.mxu0 %v9512_v34  ;;  %v990_v24 = vld [vmem:[%s14226_s1 + $0x1e28] sm:$0xff]  ;;  %v9704_v37 = vcombine.high %v734_v13, %v742_v15 }
 0x2e1   :  { %7237 = vmatpush1.bf16.msra.mxu1 %v9783_v12  ;;  %v998_v18 = vld [vmem:[%s14226_s1 + $0x1e68] sm:$0xff]  ;;  %v9703_v12 = vcombine.low %v734_v13, %v742_v15  ;;  %v143_v15 = vld [vmem:[%s14226_s1 + $0x3b0] sm:$0xff] }
 0x2e2   :  { %7238 = vmatprep.subr.bf16.mxu1 %v9768_v7  ;;  %v9960_v28 = vcombine.high %v990_v24, %v998_v18  ;;  %v718_v45 = vld [vmem:[%s14226_s1 + $0x15a8] sm:$0xff]  ;;  %v9959_v34 = vcombine.low %v990_v24, %v998_v18  ;;  %v151_v24 = vld [vmem:[%s14226_s1 + $0x3f0] sm:$0xff] }
 0x2e3   :  { %7198 = vmatpush1.bf16.msra.mxu0 %v9511_v44  ;;  %v726_v32 = vld [vmem:[%s14226_s1 + $0x15e8] sm:$0xff]  ;;  %v399_v18 = vld [vmem:[%s14226_s1 + $0xbb0] sm:$0xff] }
 0x2e4   :  { %7199 = vmatprep.subr.bf16.mxu0 %v9752_v47  ;;  %v974_v52 = vld [vmem:[%s14226_s1 + $0x1da8] sm:$0xff]  ;;  %v9688_v7 = vcombine.high %v718_v45, %v726_v32 }
 0x2e5   :  { %7239 = vmatpush1.bf16.msra.mxu1 %v9767_v21  ;;  %v982_v33 = vld [vmem:[%s14226_s1 + $0x1de8] sm:$0xff]  ;;  %v9687_v21 = vcombine.low %v718_v45, %v726_v32  ;;  %v9114_v45 = vcombine.high %v143_v15, %v151_v24 }
 0x2e6   :  { %7240 = vmatprep.subr.bf16.mxu1 %v10008_v48  ;;  %v9944_v40 = vcombine.high %v974_v52, %v982_v33  ;;  %v702_v25 = vld [vmem:[%s14226_s1 + $0x1528] sm:$0xff]  ;;  %v9943_v47 = vcombine.low %v974_v52, %v982_v33  ;;  %v127_v52 = vld [vmem:[%s14226_s1 + $0x330] sm:$0xff] }
 0x2e7   :  { %7200 = vmatpush2.bf16.msra.mxu0 %v9751_v57  ;;  %v710_v42 = vld [vmem:[%s14226_s1 + $0x1568] sm:$0xff]  ;;  %v135_v33 = vld [vmem:[%s14226_s1 + $0x370] sm:$0xff] }
 0x2e8   :  { %7201 = vmatprep.subr.bf16.mxu0 %v9736_v62  ;;  %v958_v49 = vld [vmem:[%s14226_s1 + $0x1d28] sm:$0xff]  ;;  %v9672_v48 = vcombine.high %v702_v25, %v710_v42 }
 0x2e9   :  { %7241 = vmatpush2.bf16.msra.mxu1 %v10007_v61  ;;  %v966_v44 = vld [vmem:[%s14226_s1 + $0x1d68] sm:$0xff]  ;;  %v9671_v61 = vcombine.low %v702_v25, %v710_v42  ;;  %v9098_v42 = vcombine.high %v127_v52, %v135_v33 }
 0x2ea   :  { %7242 = vmatprep.subr.bf16.mxu1 %v9992_v63  ;;  %v9928_v50 = vcombine.high %v958_v49, %v966_v44  ;;  %v686_v51 = vld [vmem:[%s14226_s1 + $0x14a8] sm:$0xff]  ;;  %v9927_v62 = vcombine.low %v958_v49, %v966_v44 }
 0x2eb   :  { %7202 = vmatpush2.bf16.msra.mxu0 %v9735_v4  ;;  %v694_v55 = vld [vmem:[%s14226_s1 + $0x14e8] sm:$0xff] }
 0x2ec   :  { %7203 = vmatprep.subr.bf16.mxu0 %v9720_v9  ;;  %v942_v56 = vld [vmem:[%s14226_s1 + $0x1ca8] sm:$0xff]  ;;  %v9656_v63 = vcombine.high %v686_v51, %v694_v55 }
 0x2ed   :  { %7243 = vmatpush2.bf16.msra.mxu1 %v9991_v8  ;;  %v950_v57 = vld [vmem:[%s14226_s1 + $0x1ce8] sm:$0xff]  ;;  %v9655_v8 = vcombine.low %v686_v51, %v694_v55  ;;  %v9097_v55 = vcombine.low %v127_v52, %v135_v33  ;;  %v335_v52 = vld [vmem:[%s14226_s1 + $0x9b0] sm:$0xff] }
 0x2ee   :  { %7244 = vmatprep.subr.bf16.mxu1 %v9976_v11  ;;  %v9912_v0 = vcombine.high %v942_v56, %v950_v57  ;;  %v670_v1 = vld [vmem:[%s14226_s1 + $0x1428] sm:$0xff]  ;;  %v9911_v9 = vcombine.low %v942_v56, %v950_v57  ;;  %v343_v33 = vld [vmem:[%s14226_s1 + $0x9f0] sm:$0xff] }
 0x2ef   :  { %7204 = vmatpush2.bf16.msra.mxu0 %v9719_v22  ;;  %v678_v2 = vld [vmem:[%s14226_s1 + $0x1468] sm:$0xff]  ;;  %v407_v22 = vld [vmem:[%s14226_s1 + $0xbf0] sm:$0xff] }
 0x2f0   :  { %7205 = vmatprep.subr.bf16.mxu0 %v9704_v37  ;;  %v926_v3 = vld [vmem:[%s14226_s1 + $0x1c28] sm:$0xff]  ;;  %v9640_v11 = vcombine.high %v670_v1, %v678_v2  ;;  %v9370_v32 = vcombine.high %v399_v18, %v407_v22  ;;  %v9369_v25 = vcombine.low %v399_v18, %v407_v22 }
 0x2f1   :  { %7245 = vmatpush2.bf16.msra.mxu1 %v9975_v54  ;;  %v934_v4 = vld [vmem:[%s14226_s1 + $0x1c68] sm:$0xff]  ;;  %v9639_v54 = vcombine.low %v670_v1, %v678_v2  ;;  %v95_v2 = vld [vmem:[%s14226_s1 + $0x230] sm:$0xff] }
 0x2f2   :  { %7246 = vmatprep.subr.bf16.mxu1 %v9960_v28  ;;  %v9896_v13 = vcombine.high %v926_v3, %v934_v4  ;;  %v9895_v37 = vcombine.low %v926_v3, %v934_v4  ;;  %v12987_v28 = vld [vmem:[%s14228_s2 + $0x8] sm:$0xff]  ;;  %v103_v3 = vld [vmem:[%s14226_s1 + $0x270] sm:$0xff] }
 0x2f3   :  { %7206 = vmatpush2.bf16.msra.mxu0 %v9703_v12  ;;  %v383_v12 = vld [vmem:[%s14226_s1 + $0xb30] sm:$0xff]  ;;  %v1092_v49 = vrot.slane %v12987_v28, %v1059_v10  ;;  %v9066_v22 = vcombine.high %v95_v2, %v103_v3 }
 0x2f4   :  { %7207 = vmatprep.subr.bf16.mxu0 %v9688_v7  ;;  %v1088_v7 = vrot.slane %v12987_v28, %v1055_v5  ;;  %v375_v10 = vld [vmem:[%s14226_s1 + $0xaf0] sm:$0xff] }
 0x2f5   :  { %7247 = vmatpush2.bf16.msra.mxu1 %v9959_v34  ;;  %v391_v34 = vld [vmem:[%s14226_s1 + $0xb70] sm:$0xff] }
 0x2f6   :  { %7248 = vmatprep.subr.bf16.mxu1 %v9944_v40  ;;  %v9113_v40 = vcombine.low %v143_v15, %v151_v24  ;;  %v9354_v44 = vcombine.high %v383_v12, %v391_v34  ;;  %v9353_v57 = vcombine.low %v383_v12, %v391_v34  ;;  %v9065_v12 = vcombine.low %v95_v2, %v103_v3  ;;  %v287_v2 = vld [vmem:[%s14226_s1 + $0x830] sm:$0xff] }
 0x2f7   :  { %7208 = vmatpush2.bf16.msra.mxu0 %v9687_v21  ;;  %v111_v21 = vld [vmem:[%s14226_s1 + $0x2b0] sm:$0xff] }
 0x2f8   :  { %7209 = vmatprep.subr.bf16.mxu0 %v9672_v48  ;;  %v367_v48 = vld [vmem:[%s14226_s1 + $0xab0] sm:$0xff] }
 0x2f9   :  { %7249 = vmatpush2.bf16.msra.mxu1 %v9943_v47  ;;  %v119_v47 = vld [vmem:[%s14226_s1 + $0x2f0] sm:$0xff]  ;;  %v9338_v1 = vcombine.high %v367_v48, %v375_v10  ;;  %v9337_v18 = vcombine.low %v367_v48, %v375_v10 }
 0x2fa   :  { %7250 = vmatprep.subr.bf16.mxu1 %v9928_v50  ;;  %v9081_v15 = vcombine.low %v111_v21, %v119_v47  ;;  %v47_v10 = vld [vmem:[%s14226_s1 + $0xb0] sm:$0xff] }
 0x2fb   :  { %7210 = vmatpush2.bf16.msra.mxu0 %v9671_v61  ;;  %v9082_v61 = vcombine.high %v111_v21, %v119_v47  ;;  %v9305_v47 = vcombine.low %v335_v52, %v343_v33  ;;  %v295_v3 = vld [vmem:[%s14226_s1 + $0x870] sm:$0xff] }
 0x2fc   :  { %7211 = vmatprep.subr.bf16.mxu0 %v9656_v63 }
 0x2fd   :  { %7251 = vmatpush2.bf16.msra.mxu1 %v9927_v62 }
 0x2fe   :  { %7252 = vmatprep.subr.bf16.mxu1 %v9912_v0 }
 0x2ff   :  { %7212 = vmatpush2.bf16.msra.mxu0 %v9655_v8  ;;  %v351_v8 = vld [vmem:[%s14226_s1 + $0xa30] sm:$0xff] }
 0x300   :  { %7213 = vmatprep.subr.bf16.mxu0 %v9640_v11 }
 0x301   :  { %7253 = vmatpush2.bf16.msra.mxu1 %v9911_v9  ;;  %v359_v9 = vld [vmem:[%s14226_s1 + $0xa70] sm:$0xff] }
 0x302   :  { %7254 = vmatprep.subr.bf16.mxu1 %v9896_v13  ;;  %v9321_v34 = vcombine.low %v351_v8, %v359_v9 }
 0x303   :  { %7214 = vmatpush2.bf16.msra.mxu0 %v9639_v54 }
 0x304   :  { %7265 = vmatprep.subr.bf16.mxu0 %v9114_v45  ;;  %v79_v45 = vld [vmem:[%s14226_s1 + $0x1b0] sm:$0xff] }
 0x305   :  { %7255 = vmatpush2.bf16.msra.mxu1 %v9895_v37  ;;  %v9322_v37 = vcombine.high %v351_v8, %v359_v9 }
 0x306   :  { %7306 = vmatprep.subr.bf16.mxu1 %v9370_v32  ;;  %v6971_v5 = vpop.f32.mrf.mxu0  ;;  %7216 = vmatmul.mubr.bf16.vlgmr.msra.gmra.mxu0 %v10940_v36  ;;  %v87_v32 = vld [vmem:[%s14226_s1 + $0x1f0] sm:$0xff] }
 0x307   :  { %v6972_v50 = vadd.f32 %v6971_v5, %v1088_v7  ;;  %7266 = vmatpush1.bf16.msra.mxu0 %v9113_v40  ;;  %7297 = vmatprep.mubr.bf16.mxu0 %v10588_v58  ;;  %v9050_v7 = vcombine.high %v79_v45, %v87_v32  ;;  %v9306_v40 = vcombine.high %v335_v52, %v343_v33  ;;  %v255_v52 = vld [vmem:[%s14226_s1 + $0x730] sm:$0xff] }
 0x308   :  { %v7012_v51 = vpop.f32.mrf.mxu1  ;;  %7257 = vmatmul.mubr.bf16.vlgmr.msra.gmra.mxu1 %v10950_v39  ;;  %v6973_v56 = vpop.f32.mrf.mxu0  ;;  %7267 = vmatprep.subr.bf16.mxu0 %v9098_v42  ;;  %v71_v42 = vld [vmem:[%s14226_s1 + $0x170] sm:$0xff]  ;;  %v9049_v21 = vcombine.low %v79_v45, %v87_v32 }
 0x309   :  { %7307 = vmatpush1.bf16.msra.mxu1 %v9369_v25  ;;  %v13021_v62 = vadd.f32 %v7012_v51, %v6972_v50  ;;  %v6974_v63 = vadd.f32 %v6973_v56, %v1092_v49  ;;  %7338 = vmatprep.mubr.bf16.mxu1 %v10592_v59  ;;  %v63_v25 = vld [vmem:[%s14226_s1 + $0x130] sm:$0xff] }
 0x30a   :  { %v7014_v0 = vpop.f32.mrf.mxu1  ;;  %7308 = vmatprep.subr.bf16.mxu1 %v9354_v44  ;;  %v6975_v4 = vpop.f32.mrf.mxu0  ;;  %v319_v49 = vld [vmem:[%s14226_s1 + $0x930] sm:$0xff]  ;;  %v9034_v5 = vcombine.high %v63_v25, %v71_v42  ;;  %v9033_v56 = vcombine.low %v63_v25, %v71_v42 }
 0x30b   :  { %v13037_v11 = vadd.f32 %v7014_v0, %v6974_v63  ;;  %7268 = vmatpush1.bf16.msra.mxu0 %v9097_v55  ;;  %v327_v44 = vld [vmem:[%s14226_s1 + $0x970] sm:$0xff] }
 0x30c   :  { %v7016_v13 = vpop.f32.mrf.mxu1  ;;  %v6976_v24 = vpop.f32.mrf.mxu0  ;;  %7269 = vmatprep.subr.bf16.mxu0 %v9082_v61  ;;  %v9290_v48 = vcombine.high %v319_v49, %v327_v44  ;;  %v55_v50 = vld [vmem:[%s14226_s1 + $0xf0] sm:$0xff] }
 0x30d   :  { %7309 = vmatpush1.bf16.msra.mxu1 %v9353_v57  ;;  %v303_v51 = vld [vmem:[%s14226_s1 + $0x8b0] sm:$0xff]  ;;  %v9289_v57 = vcombine.low %v319_v49, %v327_v44  ;;  %v9018_v61 = vcombine.high %v47_v10, %v55_v50  ;;  %v9017_v4 = vcombine.low %v47_v10, %v55_v50  ;;  %v9258_v13 = vcombine.high %v287_v2, %v295_v3 }
 0x30e   :  { %v7017_v54 = vpop.f32.mrf.mxu1  ;;  %7310 = vmatprep.subr.bf16.mxu1 %v9338_v1  ;;  %v311_v55 = vld [vmem:[%s14226_s1 + $0x8f0] sm:$0xff] }
 0x30f   :  { %7270 = vmatpush1.bf16.msra.mxu0 %v9081_v15  ;;  %v9274_v63 = vcombine.high %v303_v51, %v311_v55  ;;  %v31_v0 = vld [vmem:[%s14226_s1 + $0x30] sm:$0xff]  ;;  %v9273_v8 = vcombine.low %v303_v51, %v311_v55 }
 0x310   :  { %7271 = vmatprep.subr.bf16.mxu0 %v9066_v22  ;;  %v39_v1 = vld [vmem:[%s14226_s1 + $0x70] sm:$0xff] }
 0x311   :  { %7311 = vmatpush1.bf16.msra.mxu1 %v9337_v18  ;;  %v9002_v9 = vcombine.high %v31_v0, %v39_v1  ;;  %v271_v15 = vld [vmem:[%s14226_s1 + $0x7b0] sm:$0xff]  ;;  %v9001_v54 = vcombine.low %v31_v0, %v39_v1 }
 0x312   :  { %7312 = vmatprep.subr.bf16.mxu1 %v9322_v37  ;;  %v279_v24 = vld [vmem:[%s14226_s1 + $0x7f0] sm:$0xff]  ;;  %v9257_v37 = vcombine.low %v287_v2, %v295_v3 }
 0x313   :  { %7272 = vmatpush1.bf16.msra.mxu0 %v9065_v12  ;;  %v527_v18 = vld [vmem:[%s14226_s1 + $0xfb0] sm:$0xff]  ;;  %v9242_v45 = vcombine.high %v271_v15, %v279_v24 }
 0x314   :  { %7273 = vmatprep.subr.bf16.mxu0 %v9050_v7  ;;  %v535_v22 = vld [vmem:[%s14226_s1 + $0xff0] sm:$0xff]  ;;  %v9241_v7 = vcombine.low %v271_v15, %v279_v24 }
 0x315   :  { %7313 = vmatpush1.bf16.msra.mxu1 %v9321_v34  ;;  %v9498_v32 = vcombine.high %v527_v18, %v535_v22  ;;  %v263_v33 = vld [vmem:[%s14226_s1 + $0x770] sm:$0xff] }
 0x316   :  { %7314 = vmatprep.subr.bf16.mxu1 %v9306_v40  ;;  %v511_v12 = vld [vmem:[%s14226_s1 + $0xf30] sm:$0xff]  ;;  %v9497_v40 = vcombine.low %v527_v18, %v535_v22  ;;  %v9226_v25 = vcombine.high %v255_v52, %v263_v33 }
 0x317   :  { %7274 = vmatpush1.bf16.msra.mxu0 %v9049_v21  ;;  %v519_v34 = vld [vmem:[%s14226_s1 + $0xf70] sm:$0xff] }
 0x318   :  { %7275 = vmatprep.subr.bf16.mxu0 %v9034_v5  ;;  %v9482_v42 = vcombine.high %v511_v12, %v519_v34  ;;  %v239_v49 = vld [vmem:[%s14226_s1 + $0x6b0] sm:$0xff]  ;;  %v9225_v5 = vcombine.low %v255_v52, %v263_v33 }
 0x319   :  { %7315 = vmatpush1.bf16.msra.mxu1 %v9305_v47  ;;  %v247_v44 = vld [vmem:[%s14226_s1 + $0x6f0] sm:$0xff] }
 0x31a   :  { %7316 = vmatprep.subr.bf16.mxu1 %v9290_v48  ;;  %v495_v21 = vld [vmem:[%s14226_s1 + $0xeb0] sm:$0xff]  ;;  %v9481_v48 = vcombine.low %v511_v12, %v519_v34  ;;  %v9210_v10 = vcombine.high %v239_v49, %v247_v44 }
 0x31b   :  { %7276 = vmatpush1.bf16.msra.mxu0 %v9033_v56  ;;  %v503_v47 = vld [vmem:[%s14226_s1 + $0xef0] sm:$0xff] }
 0x31c   :  { %7277 = vmatprep.subr.bf16.mxu0 %v9018_v61  ;;  %v9466_v50 = vcombine.high %v495_v21, %v503_v47  ;;  %v223_v51 = vld [vmem:[%s14226_s1 + $0x630] sm:$0xff]  ;;  %v9209_v61 = vcombine.low %v239_v49, %v247_v44 }
 0x31d   :  { %7317 = vmatpush1.bf16.msra.mxu1 %v9289_v57  ;;  %v231_v55 = vld [vmem:[%s14226_s1 + $0x670] sm:$0xff] }
 0x31e   :  { %7318 = vmatprep.subr.bf16.mxu1 %v9274_v63  ;;  %v479_v56 = vld [vmem:[%s14226_s1 + $0xe30] sm:$0xff]  ;;  %v9465_v63 = vcombine.low %v495_v21, %v503_v47  ;;  %v9194_v0 = vcombine.high %v223_v51, %v231_v55 }
 0x31f   :  { %7278 = vmatpush1.bf16.msra.mxu0 %v9017_v4  ;;  %v487_v57 = vld [vmem:[%s14226_s1 + $0xe70] sm:$0xff] }
 0x320   :  { %7279 = vmatprep.subr.bf16.mxu0 %v9002_v9  ;;  %v9450_v1 = vcombine.high %v479_v56, %v487_v57  ;;  %v207_v2 = vld [vmem:[%s14226_s1 + $0x5b0] sm:$0xff]  ;;  %v9193_v9 = vcombine.low %v223_v51, %v231_v55 }
 0x321   :  { %7319 = vmatpush1.bf16.msra.mxu1 %v9273_v8  ;;  %v215_v3 = vld [vmem:[%s14226_s1 + $0x5f0] sm:$0xff] }
 0x322   :  { %7320 = vmatprep.subr.bf16.mxu1 %v9258_v13  ;;  %v463_v4 = vld [vmem:[%s14226_s1 + $0xdb0] sm:$0xff]  ;;  %v9449_v13 = vcombine.low %v479_v56, %v487_v57  ;;  %v9178_v15 = vcombine.high %v207_v2, %v215_v3 }
 0x323   :  { %7280 = vmatpush1.bf16.msra.mxu0 %v9001_v54  ;;  %v471_v8 = vld [vmem:[%s14226_s1 + $0xdf0] sm:$0xff] }
 0x324   :  { %7281 = vmatprep.subr.bf16.mxu0 %v9242_v45  ;;  %v9434_v24 = vcombine.high %v463_v4, %v471_v8  ;;  %v191_v18 = vld [vmem:[%s14226_s1 + $0x530] sm:$0xff]  ;;  %v9177_v45 = vcombine.low %v207_v2, %v215_v3 }
 0x325   :  { %7321 = vmatpush1.bf16.msra.mxu1 %v9257_v37  ;;  %v199_v22 = vld [vmem:[%s14226_s1 + $0x570] sm:$0xff] }
 0x326   :  { %7322 = vmatprep.subr.bf16.mxu1 %v9498_v32  ;;  %v447_v54 = vld [vmem:[%s14226_s1 + $0xd30] sm:$0xff]  ;;  %v9433_v32 = vcombine.low %v463_v4, %v471_v8  ;;  %v9162_v52 = vcombine.high %v191_v18, %v199_v22 }
 0x327   :  { %7282 = vmatpush2.bf16.msra.mxu0 %v9241_v7  ;;  %v455_v37 = vld [vmem:[%s14226_s1 + $0xd70] sm:$0xff] }
 0x328   :  { %7283 = vmatprep.subr.bf16.mxu0 %v9226_v25  ;;  %v9418_v33 = vcombine.high %v447_v54, %v455_v37  ;;  %v175_v12 = vld [vmem:[%s14226_s1 + $0x4b0] sm:$0xff]  ;;  %v9161_v25 = vcombine.low %v191_v18, %v199_v22 }
 0x329   :  { %7323 = vmatpush2.bf16.msra.mxu1 %v9497_v40  ;;  %v183_v34 = vld [vmem:[%s14226_s1 + $0x4f0] sm:$0xff] }
 0x32a   :  { %7324 = vmatprep.subr.bf16.mxu1 %v9482_v42  ;;  %v431_v7 = vld [vmem:[%s14226_s1 + $0xcb0] sm:$0xff]  ;;  %v9417_v42 = vcombine.low %v447_v54, %v455_v37  ;;  %v9146_v49 = vcombine.high %v175_v12, %v183_v34 }
 0x32b   :  { %7284 = vmatpush2.bf16.msra.mxu0 %v9225_v5  ;;  %v439_v40 = vld [vmem:[%s14226_s1 + $0xcf0] sm:$0xff] }
 0x32c   :  { %7285 = vmatprep.subr.bf16.mxu0 %v9210_v10  ;;  %v9402_v44 = vcombine.high %v431_v7, %v439_v40  ;;  %v159_v21 = vld [vmem:[%s14226_s1 + $0x430] sm:$0xff]  ;;  %v9145_v10 = vcombine.low %v175_v12, %v183_v34 }
 0x32d   :  { %7325 = vmatpush2.bf16.msra.mxu1 %v9481_v48  ;;  %v167_v47 = vld [vmem:[%s14226_s1 + $0x470] sm:$0xff] }
 0x32e   :  { %7326 = vmatprep.subr.bf16.mxu1 %v9466_v50  ;;  %v415_v5 = vld [vmem:[%s14226_s1 + $0xc30] sm:$0xff]  ;;  %v9401_v50 = vcombine.low %v431_v7, %v439_v40  ;;  %v9130_v51 = vcombine.high %v159_v21, %v167_v47 }
 0x32f   :  { %7286 = vmatpush2.bf16.msra.mxu0 %v9209_v61  ;;  %v423_v48 = vld [vmem:[%s14226_s1 + $0xc70] sm:$0xff] }
 0x330   :  { %7287 = vmatprep.subr.bf16.mxu0 %v9194_v0  ;;  %v9386_v55 = vcombine.high %v415_v5, %v423_v48  ;;  %v655_v56 = vld [vmem:[%s14226_s1 + $0x13b0] sm:$0xff]  ;;  %v9129_v0 = vcombine.low %v159_v21, %v167_v47 }
 0x331   :  { %7327 = vmatpush2.bf16.msra.mxu1 %v9465_v63  ;;  %v663_v57 = vld [vmem:[%s14226_s1 + $0x13f0] sm:$0xff] }
 0x332   :  { %7328 = vmatprep.subr.bf16.mxu1 %v9450_v1  ;;  %v911_v61 = vld [vmem:[%s14226_s1 + $0x1bb0] sm:$0xff]  ;;  %v9385_v1 = vcombine.low %v415_v5, %v423_v48  ;;  %v9626_v2 = vcombine.high %v655_v56, %v663_v57 }
 0x333   :  { %7288 = vmatpush2.bf16.msra.mxu0 %v9193_v9  ;;  %v919_v63 = vld [vmem:[%s14226_s1 + $0x1bf0] sm:$0xff] }
 0x334   :  { %7289 = vmatprep.subr.bf16.mxu0 %v9178_v15  ;;  %v9882_v3 = vcombine.high %v911_v61, %v919_v63  ;;  %v639_v4 = vld [vmem:[%s14226_s1 + $0x1330] sm:$0xff]  ;;  %v9625_v15 = vcombine.low %v655_v56, %v663_v57 }
 0x335   :  { %7329 = vmatpush2.bf16.msra.mxu1 %v9449_v13  ;;  %v647_v8 = vld [vmem:[%s14226_s1 + $0x1370] sm:$0xff] }
 0x336   :  { %7330 = vmatprep.subr.bf16.mxu1 %v9434_v24  ;;  %v895_v9 = vld [vmem:[%s14226_s1 + $0x1b30] sm:$0xff]  ;;  %v9881_v24 = vcombine.low %v911_v61, %v919_v63  ;;  %v9610_v18 = vcombine.high %v639_v4, %v647_v8  ;;  %v9609_v34 = vcombine.low %v639_v4, %v647_v8 }
 0x337   :  { %7290 = vmatpush2.bf16.msra.mxu0 %v9177_v45  ;;  %v903_v13 = vld [vmem:[%s14226_s1 + $0x1b70] sm:$0xff] }
 0x338   :  { %7291 = vmatprep.subr.bf16.mxu0 %v9162_v52  ;;  %v9866_v22 = vcombine.high %v895_v9, %v903_v13  ;;  %v623_v54 = vld [vmem:[%s14226_s1 + $0x12b0] sm:$0xff]  ;;  %v9865_v40 = vcombine.low %v895_v9, %v903_v13 }
 0x339   :  { %7331 = vmatpush2.bf16.msra.mxu1 %v9433_v32  ;;  %v631_v37 = vld [vmem:[%s14226_s1 + $0x12f0] sm:$0xff] }
 0x33a   :  { %7332 = vmatprep.subr.bf16.mxu1 %v9418_v33  ;;  %v879_v32 = vld [vmem:[%s14226_s1 + $0x1ab0] sm:$0xff] }
 0x33b   :  { %7292 = vmatpush2.bf16.msra.mxu0 %v9161_v25  ;;  %v887_v52 = vld [vmem:[%s14226_s1 + $0x1af0] sm:$0xff]  ;;  %v9594_v25 = vcombine.high %v623_v54, %v631_v37 }
 0x33c   :  { %7293 = vmatprep.subr.bf16.mxu0 %v9146_v49  ;;  %v9850_v21 = vcombine.high %v879_v32, %v887_v52  ;;  %v615_v47 = vld [vmem:[%s14226_s1 + $0x1270] sm:$0xff]  ;;  %v9849_v56 = vcombine.low %v879_v32, %v887_v52 }
 0x33d   :  { %7333 = vmatpush2.bf16.msra.mxu1 %v9417_v42  ;;  %v863_v48 = vld [vmem:[%s14226_s1 + $0x1a30] sm:$0xff] }
 0x33e   :  { %7334 = vmatprep.subr.bf16.mxu1 %v9402_v44  ;;  %v559_v52 = vld [vmem:[%s14226_s1 + $0x10b0] sm:$0xff] }
 0x33f   :  { %7294 = vmatpush2.bf16.msra.mxu0 %v9145_v10 }
 0x340   :  { %7295 = vmatprep.subr.bf16.mxu0 %v9130_v51  ;;  %v9593_v51 = vcombine.low %v623_v54, %v631_v37 }
 0x341   :  { %7335 = vmatpush2.bf16.msra.mxu1 %v9401_v50 }
 0x342   :  { %7336 = vmatprep.subr.bf16.mxu1 %v9386_v55 }
 0x343   :  { %7296 = vmatpush2.bf16.msra.mxu0 %v9129_v0  ;;  %v591_v0 = vld [vmem:[%s14226_s1 + $0x11b0] sm:$0xff] }
 0x344   :  { %7347 = vmatprep.subr.bf16.mxu0 %v9626_v2  ;;  %v847_v2 = vld [vmem:[%s14226_s1 + $0x19b0] sm:$0xff] }
 0x345   :  { %7337 = vmatpush2.bf16.msra.mxu1 %v9385_v1  ;;  %v599_v1 = vld [vmem:[%s14226_s1 + $0x11f0] sm:$0xff] }
 0x346   :  { %7388 = vmatprep.subr.bf16.mxu1 %v9882_v3  ;;  %v7053_v45 = vpop.f32.mrf.mxu0  ;;  %7298 = vmatmul.mubr.bf16.vlgmr.msra.gmra.mxu0 %v10718_v16  ;;  %v855_v3 = vld [vmem:[%s14226_s1 + $0x19f0] sm:$0xff]  ;;  %v9562_v9 = vcombine.high %v591_v0, %v599_v1  ;;  %v9561_v54 = vcombine.low %v591_v0, %v599_v1 }
 0x347   :  { %v7054_v33 = vadd.f32 %v7053_v45, %v13021_v62  ;;  %7348 = vmatpush1.bf16.msra.mxu0 %v9625_v15  ;;  %v607_v62 = vld [vmem:[%s14226_s1 + $0x1230] sm:$0xff]  ;;  %7379 = vmatprep.mubr.bf16.mxu0 %v10748_v26  ;;  %v9818_v13 = vcombine.high %v847_v2, %v855_v3  ;;  %v9817_v37 = vcombine.low %v847_v2, %v855_v3 }
 0x348   :  { %v7094_v12 = vpop.f32.mrf.mxu1  ;;  %7339 = vmatmul.mubr.bf16.vlgmr.msra.gmra.mxu1 %v10733_v20  ;;  %v7055_v7 = vpop.f32.mrf.mxu0  ;;  %7349 = vmatprep.subr.bf16.mxu0 %v9610_v18  ;;  %v9578_v57 = vcombine.high %v607_v62, %v615_v47  ;;  %v9577_v4 = vcombine.low %v607_v62, %v615_v47  ;;  %v575_v15 = vld [vmem:[%s14226_s1 + $0x1130] sm:$0xff] }
 0x349   :  { %7389 = vmatpush1.bf16.msra.mxu1 %v9881_v24  ;;  %v13222_v42 = vadd.f32 %v7094_v12, %v7054_v33  ;;  %v7056_v49 = vadd.f32 %v7055_v7, %v13037_v11  ;;  %v871_v11 = vld [vmem:[%s14226_s1 + $0x1a70] sm:$0xff]  ;;  %7420 = vmatprep.mubr.bf16.mxu1 %v10759_v29 }
 0x34a   :  { %v7096_v44 = vpop.f32.mrf.mxu1  ;;  %7390 = vmatprep.subr.bf16.mxu1 %v9866_v22  ;;  %v7057_v5 = vpop.f32.mrf.mxu0  ;;  %v9834_v63 = vcombine.high %v863_v48, %v871_v11  ;;  %v9833_v8 = vcombine.low %v863_v48, %v871_v11  ;;  %v583_v24 = vld [vmem:[%s14226_s1 + $0x1170] sm:$0xff] }
 0x34b   :  { %v13239_v10 = vadd.f32 %v7096_v44, %v7056_v49  ;;  %7350 = vmatpush1.bf16.msra.mxu0 %v9609_v34  ;;  %v831_v18 = vld [vmem:[%s14226_s1 + $0x1930] sm:$0xff]  ;;  %v9546_v45 = vcombine.high %v575_v15, %v583_v24  ;;  %v9545_v7 = vcombine.low %v575_v15, %v583_v24 }
 0x34c   :  { %v7098_v50 = vpop.f32.mrf.mxu1  ;;  %v7058_v55 = vpop.f32.mrf.mxu0  ;;  %7351 = vmatprep.subr.bf16.mxu0 %v9594_v25  ;;  %v839_v22 = vld [vmem:[%s14226_s1 + $0x1970] sm:$0xff] }
 0x34d   :  { %7391 = vmatpush1.bf16.msra.mxu1 %v9865_v40  ;;  %v9802_v32 = vcombine.high %v831_v18, %v839_v22  ;;  %v567_v33 = vld [vmem:[%s14226_s1 + $0x10f0] sm:$0xff]  ;;  %v9801_v40 = vcombine.low %v831_v18, %v839_v22 }
 0x34e   :  { %v7099_v61 = vpop.f32.mrf.mxu1  ;;  %7392 = vmatprep.subr.bf16.mxu1 %v9850_v21  ;;  %v815_v12 = vld [vmem:[%s14226_s1 + $0x18b0] sm:$0xff]  ;;  %v9530_v25 = vcombine.high %v559_v52, %v567_v33  ;;  %v9529_v5 = vcombine.low %v559_v52, %v567_v33 }
 0x34f   :  { %7352 = vmatpush1.bf16.msra.mxu0 %v9593_v51  ;;  %v823_v34 = vld [vmem:[%s14226_s1 + $0x18f0] sm:$0xff] }
 0x350   :  { %7353 = vmatprep.subr.bf16.mxu0 %v9578_v57  ;;  %v9786_v49 = vcombine.high %v815_v12, %v823_v34  ;;  %v543_v44 = vld [vmem:[%s14226_s1 + $0x1030] sm:$0xff]  ;;  %v9785_v48 = vcombine.low %v815_v12, %v823_v34 }
 0x351   :  { %7393 = vmatpush1.bf16.msra.mxu1 %v9849_v56  ;;  %v551_v21 = vld [vmem:[%s14226_s1 + $0x1070] sm:$0xff] }
 0x352   :  { %7394 = vmatprep.subr.bf16.mxu1 %v9834_v63  ;;  %v799_v62 = vld [vmem:[%s14226_s1 + $0x1830] sm:$0xff]  ;;  %v9514_v11 = vcombine.high %v543_v44, %v551_v21  ;;  %v9513_v61 = vcombine.low %v543_v44, %v551_v21 }
 0x353   :  { %7354 = vmatpush1.bf16.msra.mxu0 %v9577_v4  ;;  %v807_v47 = vld [vmem:[%s14226_s1 + $0x1870] sm:$0xff] }
 0x354   :  { %7355 = vmatprep.subr.bf16.mxu0 %v9562_v9  ;;  %v9770_v50 = vcombine.high %v799_v62, %v807_v47  ;;  %v783_v51 = vld [vmem:[%s14226_s1 + $0x17b0] sm:$0xff]  ;;  %v9769_v63 = vcombine.low %v799_v62, %v807_v47 }
 0x355   :  { %7395 = vmatpush1.bf16.msra.mxu1 %v9833_v8  ;;  %v791_v55 = vld [vmem:[%s14226_s1 + $0x17f0] sm:$0xff] }
 0x356   :  { %7396 = vmatprep.subr.bf16.mxu1 %v9818_v13  ;;  %v1039_v56 = vld [vmem:[%s14226_s1 + $0x1fb0] sm:$0xff]  ;;  %v9754_v0 = vcombine.high %v783_v51, %v791_v55  ;;  %v9753_v9 = vcombine.low %v783_v51, %v791_v55 }
 0x357   :  { %7356 = vmatpush1.bf16.msra.mxu0 %v9561_v54  ;;  %v1047_v57 = vld [vmem:[%s14226_s1 + $0x1ff0] sm:$0xff] }
 0x358   :  { %7357 = vmatprep.subr.bf16.mxu0 %v9546_v45  ;;  %v10010_v1 = vcombine.high %v1039_v56, %v1047_v57  ;;  %v767_v2 = vld [vmem:[%s14226_s1 + $0x1730] sm:$0xff]  ;;  %v10009_v13 = vcombine.low %v1039_v56, %v1047_v57 }
 0x359   :  { %7397 = vmatpush1.bf16.msra.mxu1 %v9817_v37  ;;  %v775_v3 = vld [vmem:[%s14226_s1 + $0x1770] sm:$0xff] }
 0x35a   :  { %7398 = vmatprep.subr.bf16.mxu1 %v9802_v32  ;;  %v1023_v4 = vld [vmem:[%s14226_s1 + $0x1f30] sm:$0xff]  ;;  %v9738_v15 = vcombine.high %v767_v2, %v775_v3  ;;  %v9737_v45 = vcombine.low %v767_v2, %v775_v3 }
 0x35b   :  { %7358 = vmatpush1.bf16.msra.mxu0 %v9545_v7  ;;  %v1031_v8 = vld [vmem:[%s14226_s1 + $0x1f70] sm:$0xff] }
 0x35c   :  { %7359 = vmatprep.subr.bf16.mxu0 %v9530_v25  ;;  %v9994_v24 = vcombine.high %v1023_v4, %v1031_v8  ;;  %v751_v18 = vld [vmem:[%s14226_s1 + $0x16b0] sm:$0xff]  ;;  %v9993_v32 = vcombine.low %v1023_v4, %v1031_v8 }
 0x35d   :  { %7399 = vmatpush1.bf16.msra.mxu1 %v9801_v40  ;;  %v759_v22 = vld [vmem:[%s14226_s1 + $0x16f0] sm:$0xff] }
 0x35e   :  { %7400 = vmatprep.subr.bf16.mxu1 %v9786_v49  ;;  %v1007_v54 = vld [vmem:[%s14226_s1 + $0x1eb0] sm:$0xff]  ;;  %v9722_v52 = vcombine.high %v751_v18, %v759_v22  ;;  %v9721_v25 = vcombine.low %v751_v18, %v759_v22 }
 0x35f   :  { %7360 = vmatpush1.bf16.msra.mxu0 %v9529_v5  ;;  %v1015_v37 = vld [vmem:[%s14226_s1 + $0x1ef0] sm:$0xff] }
 0x360   :  { %7361 = vmatprep.subr.bf16.mxu0 %v9514_v11  ;;  %v9978_v33 = vcombine.high %v1007_v54, %v1015_v37  ;;  %v735_v12 = vld [vmem:[%s14226_s1 + $0x1630] sm:$0xff]  ;;  %v9977_v49 = vcombine.low %v1007_v54, %v1015_v37 }
 0x361   :  { %7401 = vmatpush1.bf16.msra.mxu1 %v9785_v48  ;;  %v743_v34 = vld [vmem:[%s14226_s1 + $0x1670] sm:$0xff] }
 0x362   :  { %7402 = vmatprep.subr.bf16.mxu1 %v9770_v50  ;;  %v991_v7 = vld [vmem:[%s14226_s1 + $0x1e30] sm:$0xff]  ;;  %v9706_v44 = vcombine.high %v735_v12, %v743_v34  ;;  %v9705_v11 = vcombine.low %v735_v12, %v743_v34 }
 0x363   :  { %7362 = vmatpush1.bf16.msra.mxu0 %v9513_v61  ;;  %v999_v40 = vld [vmem:[%s14226_s1 + $0x1e70] sm:$0xff] }
 0x364   :  { %7363 = vmatprep.subr.bf16.mxu0 %v9754_v0  ;;  %v9962_v21 = vcombine.high %v991_v7, %v999_v40  ;;  %v719_v62 = vld [vmem:[%s14226_s1 + $0x15b0] sm:$0xff]  ;;  %v9961_v50 = vcombine.low %v991_v7, %v999_v40  ;;  %v144_v7 = vld [vmem:[%s14226_s1 + $0x3b8] sm:$0xff] }
 0x365   :  { %7403 = vmatpush1.bf16.msra.mxu1 %v9769_v63  ;;  %v727_v47 = vld [vmem:[%s14226_s1 + $0x15f0] sm:$0xff]  ;;  %v152_v40 = vld [vmem:[%s14226_s1 + $0x3f8] sm:$0xff] }
 0x366   :  { %7404 = vmatprep.subr.bf16.mxu1 %v10010_v1  ;;  %v975_v5 = vld [vmem:[%s14226_s1 + $0x1db0] sm:$0xff]  ;;  %v9690_v51 = vcombine.high %v719_v62, %v727_v47  ;;  %v9689_v0 = vcombine.low %v719_v62, %v727_v47  ;;  %v9116_v62 = vcombine.high %v144_v7, %v152_v40 }
 0x367   :  { %7364 = vmatpush2.bf16.msra.mxu0 %v9753_v9  ;;  %v983_v48 = vld [vmem:[%s14226_s1 + $0x1df0] sm:$0xff] }
 0x368   :  { %7365 = vmatprep.subr.bf16.mxu0 %v9738_v15  ;;  %v9946_v55 = vcombine.high %v975_v5, %v983_v48  ;;  %v703_v56 = vld [vmem:[%s14226_s1 + $0x1530] sm:$0xff]  ;;  %v9945_v1 = vcombine.low %v975_v5, %v983_v48  ;;  %v128_v5 = vld [vmem:[%s14226_s1 + $0x338] sm:$0xff] }
 0x369   :  { %7405 = vmatpush2.bf16.msra.mxu1 %v10009_v13  ;;  %v711_v57 = vld [vmem:[%s14226_s1 + $0x1570] sm:$0xff]  ;;  %v136_v48 = vld [vmem:[%s14226_s1 + $0x378] sm:$0xff] }
 0x36a   :  { %7406 = vmatprep.subr.bf16.mxu1 %v9994_v24  ;;  %v959_v61 = vld [vmem:[%s14226_s1 + $0x1d30] sm:$0xff]  ;;  %v9674_v2 = vcombine.high %v703_v56, %v711_v57  ;;  %v9673_v15 = vcombine.low %v703_v56, %v711_v57  ;;  %v9100_v57 = vcombine.high %v128_v5, %v136_v48 }
 0x36b   :  { %7366 = vmatpush2.bf16.msra.mxu0 %v9737_v45  ;;  %v967_v63 = vld [vmem:[%s14226_s1 + $0x1d70] sm:$0xff] }
 0x36c   :  { %7367 = vmatprep.subr.bf16.mxu0 %v9722_v52  ;;  %v9930_v3 = vcombine.high %v959_v61, %v967_v63  ;;  %v687_v4 = vld [vmem:[%s14226_s1 + $0x14b0] sm:$0xff]  ;;  %v9929_v24 = vcombine.low %v959_v61, %v967_v63  ;;  %v112_v61 = vld [vmem:[%s14226_s1 + $0x2b8] sm:$0xff] }
 0x36d   :  { %7407 = vmatpush2.bf16.msra.mxu1 %v9993_v32  ;;  %v695_v8 = vld [vmem:[%s14226_s1 + $0x14f0] sm:$0xff]  ;;  %v120_v63 = vld [vmem:[%s14226_s1 + $0x2f8] sm:$0xff] }
 0x36e   :  { %7408 = vmatprep.subr.bf16.mxu1 %v9978_v33  ;;  %v943_v9 = vld [vmem:[%s14226_s1 + $0x1cb0] sm:$0xff]  ;;  %v9658_v18 = vcombine.high %v687_v4, %v695_v8  ;;  %v9657_v52 = vcombine.low %v687_v4, %v695_v8 }
 0x36f   :  { %7368 = vmatpush2.bf16.msra.mxu0 %v9721_v25  ;;  %v951_v13 = vld [vmem:[%s14226_s1 + $0x1cf0] sm:$0xff]  ;;  %v400_v25 = vld [vmem:[%s14226_s1 + $0xbb8] sm:$0xff] }
 0x370   :  { %7369 = vmatprep.subr.bf16.mxu0 %v9706_v44  ;;  %v9914_v22 = vcombine.high %v943_v9, %v951_v13  ;;  %v671_v54 = vld [vmem:[%s14226_s1 + $0x1430] sm:$0xff]  ;;  %v9913_v33 = vcombine.low %v943_v9, %v951_v13  ;;  %v9099_v9 = vcombine.low %v128_v5, %v136_v48  ;;  %v64_v5 = vld [vmem:[%s14226_s1 + $0x138] sm:$0xff] }
 0x371   :  { %7409 = vmatpush2.bf16.msra.mxu1 %v9977_v49  ;;  %v679_v37 = vld [vmem:[%s14226_s1 + $0x1470] sm:$0xff]  ;;  %v408_v49 = vld [vmem:[%s14226_s1 + $0xbf8] sm:$0xff] }
 0x372   :  { %7410 = vmatprep.subr.bf16.mxu1 %v9962_v21  ;;  %v927_v45 = vld [vmem:[%s14226_s1 + $0x1c30] sm:$0xff]  ;;  %v9642_v12 = vcombine.high %v671_v54, %v679_v37  ;;  %v9641_v44 = vcombine.low %v671_v54, %v679_v37  ;;  %v9372_v47 = vcombine.high %v400_v25, %v408_v49  ;;  %v9371_v56 = vcombine.low %v400_v25, %v408_v49  ;;  %v88_v49 = vld [vmem:[%s14226_s1 + $0x1f8] sm:$0xff] }
 0x373   :  { %7370 = vmatpush2.bf16.msra.mxu0 %v9705_v11  ;;  %v935_v32 = vld [vmem:[%s14226_s1 + $0x1c70] sm:$0xff]  ;;  %v384_v11 = vld [vmem:[%s14226_s1 + $0xb38] sm:$0xff] }
 0x374   :  { %7371 = vmatprep.subr.bf16.mxu0 %v9690_v51  ;;  %v9898_v34 = vcombine.high %v927_v45, %v935_v32  ;;  %v9897_v21 = vcombine.low %v927_v45, %v935_v32  ;;  %v1096_v51 = vrot.slane %v12987_v28, %v1063_v19  ;;  %v368_v19 = vld [vmem:[%s14226_s1 + $0xab8] sm:$0xff] }
 0x375   :  { %7411 = vmatpush2.bf16.msra.mxu1 %v9961_v50  ;;  %v392_v50 = vld [vmem:[%s14226_s1 + $0xb78] sm:$0xff] }
 0x376   :  { %7412 = vmatprep.subr.bf16.mxu1 %v9946_v55  ;;  %v9115_v55 = vcombine.low %v144_v7, %v152_v40  ;;  %v9355_v13 = vcombine.low %v384_v11, %v392_v50  ;;  %v352_v32 = vld [vmem:[%s14226_s1 + $0xa38] sm:$0xff] }
 0x377   :  { %7372 = vmatpush2.bf16.msra.mxu0 %v9689_v0  ;;  %v1100_v0 = vrot.slane %v12987_v28, %v1067_v46  ;;  %v96_v46 = vld [vmem:[%s14226_s1 + $0x238] sm:$0xff] }
 0x378   :  { %7373 = vmatprep.subr.bf16.mxu0 %v9674_v2 }
 0x379   :  { %7413 = vmatpush2.bf16.msra.mxu1 %v9945_v1  ;;  %v9356_v1 = vcombine.high %v384_v11, %v392_v50  ;;  %v72_v50 = vld [vmem:[%s14226_s1 + $0x178] sm:$0xff] }
 0x37a   :  { %7414 = vmatprep.subr.bf16.mxu1 %v9930_v3  ;;  %v376_v3 = vld [vmem:[%s14226_s1 + $0xaf8] sm:$0xff] }
 0x37b   :  { %7374 = vmatpush2.bf16.msra.mxu0 %v9673_v15  ;;  %v9084_v15 = vcombine.high %v112_v61, %v120_v63  ;;  %v9340_v37 = vcombine.high %v368_v19, %v376_v3  ;;  %v9339_v40 = vcombine.low %v368_v19, %v376_v3  ;;  %v312_v3 = vld [vmem:[%s14226_s1 + $0x8f8] sm:$0xff] }
 0x37c   :  { %7375 = vmatprep.subr.bf16.mxu0 %v9658_v18 }
 0x37d   :  { %7415 = vmatpush2.bf16.msra.mxu1 %v9929_v24  ;;  %v104_v24 = vld [vmem:[%s14226_s1 + $0x278] sm:$0xff] }
 0x37e   :  { %7416 = vmatprep.subr.bf16.mxu1 %v9914_v22  ;;  %v9068_v25 = vcombine.high %v96_v46, %v104_v24 }
 0x37f   :  { %7376 = vmatpush2.bf16.msra.mxu0 %v9657_v52  ;;  %v360_v52 = vld [vmem:[%s14226_s1 + $0xa78] sm:$0xff] }
 0x380   :  { %7377 = vmatprep.subr.bf16.mxu0 %v9642_v12  ;;  %v9323_v48 = vcombine.low %v352_v32, %v360_v52 }
 0x381   :  { %7417 = vmatpush2.bf16.msra.mxu1 %v9913_v33 }
 0x382   :  { %7418 = vmatprep.subr.bf16.mxu1 %v9898_v34  ;;  %v9083_v34 = vcombine.low %v112_v61, %v120_v63  ;;  %v48_v61 = vld [vmem:[%s14226_s1 + $0xb8] sm:$0xff] }
 0x383   :  { %7378 = vmatpush2.bf16.msra.mxu0 %v9641_v44 }
 0x384   :  { %7429 = vmatprep.subr.bf16.mxu0 %v9116_v62  ;;  %v344_v62 = vld [vmem:[%s14226_s1 + $0x9f8] sm:$0xff] }
 0x385   :  { %7419 = vmatpush2.bf16.msra.mxu1 %v9897_v21  ;;  %v336_v21 = vld [vmem:[%s14226_s1 + $0x9b8] sm:$0xff] }
 0x386   :  { %7470 = vmatprep.subr.bf16.mxu1 %v9372_v47  ;;  %v7135_v2 = vpop.f32.mrf.mxu0  ;;  %7380 = vmatmul.mubr.bf16.vlgmr.msra.gmra.mxu0 %v10940_v36  ;;  %v9067_v47 = vcombine.low %v96_v46, %v104_v24  ;;  %v9307_v63 = vcombine.low %v336_v21, %v344_v62  ;;  %v296_v24 = vld [vmem:[%s14226_s1 + $0x878] sm:$0xff] }
 0x387   :  { %v7136_v4 = vadd.f32 %v7135_v2, %v1096_v51  ;;  %7430 = vmatpush1.bf16.msra.mxu0 %v9115_v55  ;;  %7461 = vmatprep.mubr.bf16.mxu0 %v10588_v58  ;;  %v80_v58 = vld [vmem:[%s14226_s1 + $0x1b8] sm:$0xff]  ;;  %v9308_v51 = vcombine.high %v336_v21, %v344_v62 }
 0x388   :  { %v7176_v8 = vpop.f32.mrf.mxu1  ;;  %7421 = vmatmul.mubr.bf16.vlgmr.msra.gmra.mxu1 %v10950_v39  ;;  %v7137_v28 = vpop.f32.mrf.mxu0  ;;  %7431 = vmatprep.subr.bf16.mxu0 %v9100_v57  ;;  %v9052_v11 = vcombine.high %v80_v58, %v88_v49  ;;  %v320_v55 = vld [vmem:[%s14226_s1 + $0x938] sm:$0xff]  ;;  %v9051_v57 = vcombine.low %v80_v58, %v88_v49 }
 0x389   :  { %7471 = vmatpush1.bf16.msra.mxu1 %v9371_v56  ;;  %v13435_v18 = vadd.f32 %v7176_v8, %v7136_v4  ;;  %v7138_v22 = vadd.f32 %v7137_v28, %v1100_v0  ;;  %7502 = vmatprep.mubr.bf16.mxu1 %v10592_v59  ;;  %v9324_v59 = vcombine.high %v352_v32, %v360_v52  ;;  %v328_v56 = vld [vmem:[%s14226_s1 + $0x978] sm:$0xff] }
 0x38a   :  { %v7178_v54 = vpop.f32.mrf.mxu1  ;;  %7472 = vmatprep.subr.bf16.mxu1 %v9356_v1  ;;  %v7139_v45 = vpop.f32.mrf.mxu0  ;;  %v9036_v0 = vcombine.high %v64_v5, %v72_v50  ;;  %v56_v1 = vld [vmem:[%s14226_s1 + $0xf8] sm:$0xff]  ;;  %v9292_v19 = vcombine.high %v320_v55, %v328_v56  ;;  %v9035_v4 = vcombine.low %v64_v5, %v72_v50 }
 0x38b   :  { %v13445_v33 = vadd.f32 %v7178_v54, %v7138_v22  ;;  %7432 = vmatpush1.bf16.msra.mxu0 %v9099_v9  ;;  %v304_v2 = vld [vmem:[%s14226_s1 + $0x8b8] sm:$0xff]  ;;  %v9291_v9 = vcombine.low %v320_v55, %v328_v56  ;;  %v9020_v46 = vcombine.high %v48_v61, %v56_v1  ;;  %v9019_v22 = vcombine.low %v48_v61, %v56_v1 }
 0x38c   :  { %v7180_v12 = vpop.f32.mrf.mxu1  ;;  %v7140_v7 = vpop.f32.mrf.mxu0  ;;  %7433 = vmatprep.subr.bf16.mxu0 %v9084_v15  ;;  %v32_v8 = vld [vmem:[%s14226_s1 + $0x38] sm:$0xff] }
 0x38d   :  { %7473 = vmatpush1.bf16.msra.mxu1 %v9355_v13  ;;  %v40_v28 = vld [vmem:[%s14226_s1 + $0x78] sm:$0xff]  ;;  %v9276_v13 = vcombine.high %v304_v2, %v312_v3 }
 0x38e   :  { %v7181_v44 = vpop.f32.mrf.mxu1  ;;  %7474 = vmatprep.subr.bf16.mxu1 %v9340_v37  ;;  %v288_v15 = vld [vmem:[%s14226_s1 + $0x838] sm:$0xff]  ;;  %v9275_v37 = vcombine.low %v304_v2, %v312_v3  ;;  %v9004_v45 = vcombine.high %v32_v8, %v40_v28  ;;  %v9003_v58 = vcombine.low %v32_v8, %v40_v28 }
 0x38f   :  { %7434 = vmatpush1.bf16.msra.mxu0 %v9083_v34  ;;  %v272_v54 = vld [vmem:[%s14226_s1 + $0x7b8] sm:$0xff]  ;;  %v9260_v52 = vcombine.high %v288_v15, %v296_v24 }
 0x390   :  { %7435 = vmatprep.subr.bf16.mxu0 %v9068_v25  ;;  %v280_v32 = vld [vmem:[%s14226_s1 + $0x7f8] sm:$0xff] }
 0x391   :  { %7475 = vmatpush1.bf16.msra.mxu1 %v9339_v40  ;;  %v528_v12 = vld [vmem:[%s14226_s1 + $0xfb8] sm:$0xff]  ;;  %v9259_v40 = vcombine.low %v288_v15, %v296_v24  ;;  %v9244_v25 = vcombine.high %v272_v54, %v280_v32  ;;  %v9243_v62 = vcombine.low %v272_v54, %v280_v32 }
 0x392   :  { %7476 = vmatprep.subr.bf16.mxu1 %v9324_v59  ;;  %v536_v34 = vld [vmem:[%s14226_s1 + $0xff8] sm:$0xff] }
 0x393   :  { %7436 = vmatpush1.bf16.msra.mxu0 %v9067_v47  ;;  %v256_v7 = vld [vmem:[%s14226_s1 + $0x738] sm:$0xff]  ;;  %v9500_v44 = vcombine.high %v528_v12, %v536_v34  ;;  %v9499_v5 = vcombine.low %v528_v12, %v536_v34 }
 0x394   :  { %7437 = vmatprep.subr.bf16.mxu0 %v9052_v11  ;;  %v264_v49 = vld [vmem:[%s14226_s1 + $0x778] sm:$0xff] }
 0x395   :  { %7477 = vmatpush1.bf16.msra.mxu1 %v9323_v48  ;;  %v512_v59 = vld [vmem:[%s14226_s1 + $0xf38] sm:$0xff]  ;;  %v9228_v48 = vcombine.high %v256_v7, %v264_v49  ;;  %v9227_v56 = vcombine.low %v256_v7, %v264_v49 }
 0x396   :  { %7478 = vmatprep.subr.bf16.mxu1 %v9308_v51  ;;  %v520_v21 = vld [vmem:[%s14226_s1 + $0xf78] sm:$0xff] }
 0x397   :  { %7438 = vmatpush1.bf16.msra.mxu0 %v9051_v57  ;;  %v240_v47 = vld [vmem:[%s14226_s1 + $0x6b8] sm:$0xff]  ;;  %v9484_v50 = vcombine.high %v512_v59, %v520_v21  ;;  %v9483_v61 = vcombine.low %v512_v59, %v520_v21 }
 0x398   :  { %7439 = vmatprep.subr.bf16.mxu0 %v9036_v0  ;;  %v248_v11 = vld [vmem:[%s14226_s1 + $0x6f8] sm:$0xff] }
 0x399   :  { %7479 = vmatpush1.bf16.msra.mxu1 %v9307_v63  ;;  %v496_v51 = vld [vmem:[%s14226_s1 + $0xeb8] sm:$0xff]  ;;  %v9212_v63 = vcombine.high %v240_v47, %v248_v11  ;;  %v9211_v3 = vcombine.low %v240_v47, %v248_v11 }
 0x39a   :  { %7480 = vmatprep.subr.bf16.mxu1 %v9292_v19  ;;  %v504_v55 = vld [vmem:[%s14226_s1 + $0xef8] sm:$0xff] }
 0x39b   :  { %7440 = vmatpush1.bf16.msra.mxu0 %v9035_v4  ;;  %v224_v57 = vld [vmem:[%s14226_s1 + $0x638] sm:$0xff]  ;;  %v9468_v1 = vcombine.high %v496_v51, %v504_v55  ;;  %v9467_v8 = vcombine.low %v496_v51, %v504_v55 }
 0x39c   :  { %7441 = vmatprep.subr.bf16.mxu0 %v9020_v46  ;;  %v232_v0 = vld [vmem:[%s14226_s1 + $0x678] sm:$0xff] }
 0x39d   :  { %7481 = vmatpush1.bf16.msra.mxu1 %v9291_v9  ;;  %v480_v19 = vld [vmem:[%s14226_s1 + $0xe38] sm:$0xff]  ;;  %v9196_v9 = vcombine.high %v224_v57, %v232_v0  ;;  %v9195_v24 = vcombine.low %v224_v57, %v232_v0 }
 0x39e   :  { %7482 = vmatprep.subr.bf16.mxu1 %v9276_v13  ;;  %v488_v2 = vld [vmem:[%s14226_s1 + $0xe78] sm:$0xff] }
 0x39f   :  { %7442 = vmatpush1.bf16.msra.mxu0 %v9019_v22  ;;  %v208_v4 = vld [vmem:[%s14226_s1 + $0x5b8] sm:$0xff]  ;;  %v9452_v28 = vcombine.high %v480_v19, %v488_v2  ;;  %v9451_v54 = vcombine.low %v480_v19, %v488_v2 }
 0x3a0   :  { %7443 = vmatprep.subr.bf16.mxu0 %v9004_v45  ;;  %v216_v46 = vld [vmem:[%s14226_s1 + $0x5f8] sm:$0xff] }
 0x3a1   :  { %7483 = vmatpush1.bf16.msra.mxu1 %v9275_v37  ;;  %v464_v13 = vld [vmem:[%s14226_s1 + $0xdb8] sm:$0xff]  ;;  %v9180_v37 = vcombine.high %v208_v4, %v216_v46  ;;  %v9179_v34 = vcombine.low %v208_v4, %v216_v46 }
 0x3a2   :  { %7484 = vmatprep.subr.bf16.mxu1 %v9260_v52  ;;  %v472_v15 = vld [vmem:[%s14226_s1 + $0xdf8] sm:$0xff] }
 0x3a3   :  { %7444 = vmatpush1.bf16.msra.mxu0 %v9003_v58  ;;  %v192_v22 = vld [vmem:[%s14226_s1 + $0x538] sm:$0xff]  ;;  %v9436_v32 = vcombine.high %v464_v13, %v472_v15  ;;  %v9435_v7 = vcombine.low %v464_v13, %v472_v15 }
 0x3a4   :  { %7445 = vmatprep.subr.bf16.mxu0 %v9244_v25  ;;  %v200_v45 = vld [vmem:[%s14226_s1 + $0x578] sm:$0xff] }
 0x3a5   :  { %7485 = vmatpush1.bf16.msra.mxu1 %v9259_v40  ;;  %v448_v52 = vld [vmem:[%s14226_s1 + $0xd38] sm:$0xff]  ;;  %v9164_v40 = vcombine.high %v192_v22, %v200_v45  ;;  %v9163_v21 = vcombine.low %v192_v22, %v200_v45 }
 0x3a6   :  { %7486 = vmatprep.subr.bf16.mxu1 %v9500_v44  ;;  %v456_v12 = vld [vmem:[%s14226_s1 + $0xd78] sm:$0xff] }
 0x3a7   :  { %7446 = vmatpush2.bf16.msra.mxu0 %v9243_v62  ;;  %v176_v58 = vld [vmem:[%s14226_s1 + $0x4b8] sm:$0xff]  ;;  %v9420_v49 = vcombine.high %v448_v52, %v456_v12  ;;  %v9419_v47 = vcombine.low %v448_v52, %v456_v12 }
 0x3a8   :  { %7447 = vmatprep.subr.bf16.mxu0 %v9228_v48  ;;  %v184_v25 = vld [vmem:[%s14226_s1 + $0x4f8] sm:$0xff] }
 0x3a9   :  { %7487 = vmatpush2.bf16.msra.mxu1 %v9499_v5  ;;  %v432_v44 = vld [vmem:[%s14226_s1 + $0xcb8] sm:$0xff]  ;;  %v9148_v5 = vcombine.high %v176_v58, %v184_v25  ;;  %v9147_v55 = vcombine.low %v176_v58, %v184_v25 }
 0x3aa   :  { %7488 = vmatprep.subr.bf16.mxu1 %v9484_v50  ;;  %v440_v59 = vld [vmem:[%s14226_s1 + $0xcf8] sm:$0xff] }
 0x3ab   :  { %7448 = vmatpush2.bf16.msra.mxu0 %v9227_v56  ;;  %v160_v62 = vld [vmem:[%s14226_s1 + $0x438] sm:$0xff]  ;;  %v9404_v11 = vcombine.high %v432_v44, %v440_v59  ;;  %v9403_v57 = vcombine.low %v432_v44, %v440_v59 }
 0x3ac   :  { %7449 = vmatprep.subr.bf16.mxu0 %v9212_v63  ;;  %v168_v48 = vld [vmem:[%s14226_s1 + $0x478] sm:$0xff] }
 0x3ad   :  { %7489 = vmatpush2.bf16.msra.mxu1 %v9483_v61  ;;  %v416_v50 = vld [vmem:[%s14226_s1 + $0xc38] sm:$0xff]  ;;  %v9132_v61 = vcombine.high %v160_v62, %v168_v48  ;;  %v9131_v2 = vcombine.low %v160_v62, %v168_v48 }
 0x3ae   :  { %7490 = vmatprep.subr.bf16.mxu1 %v9468_v1  ;;  %v424_v51 = vld [vmem:[%s14226_s1 + $0xc78] sm:$0xff] }
 0x3af   :  { %7450 = vmatpush2.bf16.msra.mxu0 %v9211_v3  ;;  %v656_v56 = vld [vmem:[%s14226_s1 + $0x13b8] sm:$0xff]  ;;  %v9388_v0 = vcombine.high %v416_v50, %v424_v51  ;;  %v9387_v4 = vcombine.low %v416_v50, %v424_v51 }
 0x3b0   :  { %7451 = vmatprep.subr.bf16.mxu0 %v9196_v9  ;;  %v664_v63 = vld [vmem:[%s14226_s1 + $0x13f8] sm:$0xff] }
 0x3b1   :  { %7491 = vmatpush2.bf16.msra.mxu1 %v9467_v8  ;;  %v912_v1 = vld [vmem:[%s14226_s1 + $0x1bb8] sm:$0xff]  ;;  %v9628_v8 = vcombine.high %v656_v56, %v664_v63  ;;  %v9627_v15 = vcombine.low %v656_v56, %v664_v63 }
 0x3b2   :  { %7492 = vmatprep.subr.bf16.mxu1 %v9452_v28  ;;  %v920_v19 = vld [vmem:[%s14226_s1 + $0x1bf8] sm:$0xff] }
 0x3b3   :  { %7452 = vmatpush2.bf16.msra.mxu0 %v9195_v24  ;;  %v640_v3 = vld [vmem:[%s14226_s1 + $0x1338] sm:$0xff]  ;;  %v9884_v46 = vcombine.high %v912_v1, %v920_v19  ;;  %v9883_v22 = vcombine.low %v912_v1, %v920_v19 }
 0x3b4   :  { %7453 = vmatprep.subr.bf16.mxu0 %v9180_v37  ;;  %v648_v9 = vld [vmem:[%s14226_s1 + $0x1378] sm:$0xff] }
 0x3b5   :  { %7493 = vmatpush2.bf16.msra.mxu1 %v9451_v54  ;;  %v896_v28 = vld [vmem:[%s14226_s1 + $0x1b38] sm:$0xff]  ;;  %v9612_v54 = vcombine.high %v640_v3, %v648_v9 }
 0x3b6   :  { %7494 = vmatprep.subr.bf16.mxu1 %v9436_v32  ;;  %v904_v13 = vld [vmem:[%s14226_s1 + $0x1b78] sm:$0xff] }
 0x3b7   :  { %7454 = vmatpush2.bf16.msra.mxu0 %v9179_v34  ;;  %v624_v24 = vld [vmem:[%s14226_s1 + $0x12b8] sm:$0xff]  ;;  %v9868_v45 = vcombine.high %v896_v28, %v904_v13  ;;  %v9867_v25 = vcombine.low %v896_v28, %v904_v13 }
 0x3b8   :  { %7455 = vmatprep.subr.bf16.mxu0 %v9164_v40  ;;  %v632_v37 = vld [vmem:[%s14226_s1 + $0x12f8] sm:$0xff] }
 0x3b9   :  { %7495 = vmatpush2.bf16.msra.mxu1 %v9435_v7  ;;  %v880_v52 = vld [vmem:[%s14226_s1 + $0x1ab8] sm:$0xff]  ;;  %v9611_v7 = vcombine.low %v640_v3, %v648_v9 }
 0x3ba   :  { %7496 = vmatprep.subr.bf16.mxu1 %v9420_v49  ;;  %v888_v12 = vld [vmem:[%s14226_s1 + $0x1af8] sm:$0xff]  ;;  %v9596_v49 = vcombine.high %v624_v24, %v632_v37 }
 0x3bb   :  { %7456 = vmatpush2.bf16.msra.mxu0 %v9163_v21  ;;  %v608_v40 = vld [vmem:[%s14226_s1 + $0x1238] sm:$0xff]  ;;  %v9852_v21 = vcombine.high %v880_v52, %v888_v12  ;;  %v9851_v51 = vcombine.low %v880_v52, %v888_v12 }
 0x3bc   :  { %7457 = vmatprep.subr.bf16.mxu0 %v9148_v5  ;;  %v616_v44 = vld [vmem:[%s14226_s1 + $0x1278] sm:$0xff] }
 0x3bd   :  { %7497 = vmatpush2.bf16.msra.mxu1 %v9419_v47  ;;  %v864_v47 = vld [vmem:[%s14226_s1 + $0x1a38] sm:$0xff] }
 0x3be   :  { %7498 = vmatprep.subr.bf16.mxu1 %v9404_v11  ;;  %v872_v5 = vld [vmem:[%s14226_s1 + $0x1a78] sm:$0xff] }
 0x3bf   :  { %7458 = vmatpush2.bf16.msra.mxu0 %v9147_v55  ;;  %v9580_v55 = vcombine.high %v608_v40, %v616_v44  ;;  %v600_v56 = vld [vmem:[%s14226_s1 + $0x11f8] sm:$0xff]  ;;  %v9835_v19 = vcombine.low %v864_v47, %v872_v5 }
 0x3c0   :  { %7459 = vmatprep.subr.bf16.mxu0 %v9132_v61  ;;  %v848_v61 = vld [vmem:[%s14226_s1 + $0x19b8] sm:$0xff] }
 0x3c1   :  { %7499 = vmatpush2.bf16.msra.mxu1 %v9403_v57  ;;  %v856_v63 = vld [vmem:[%s14226_s1 + $0x19f8] sm:$0xff] }
 0x3c2   :  { %7500 = vmatprep.subr.bf16.mxu1 %v9388_v0  ;;  %v9579_v0 = vcombine.low %v608_v40, %v616_v44  ;;  %v576_v1 = vld [vmem:[%s14226_s1 + $0x1138] sm:$0xff]  ;;  %v9819_v13 = vcombine.low %v848_v61, %v856_v63 }
 0x3c3   :  { %7460 = vmatpush2.bf16.msra.mxu0 %v9131_v2  ;;  %v584_v3 = vld [vmem:[%s14226_s1 + $0x1178] sm:$0xff] }
 0x3c4   :  { %7511 = vmatprep.subr.bf16.mxu0 %v9628_v8  ;;  %v832_v8 = vld [vmem:[%s14226_s1 + $0x1938] sm:$0xff] }
 0x3c5   :  { %7501 = vmatpush2.bf16.msra.mxu1 %v9387_v4  ;;  %v9820_v4 = vcombine.high %v848_v61, %v856_v63  ;;  %v840_v9 = vld [vmem:[%s14226_s1 + $0x1978] sm:$0xff] }
 0x3c6   :  { %7552 = vmatprep.subr.bf16.mxu1 %v9884_v46  ;;  %v7217_v32 = vpop.f32.mrf.mxu0  ;;  %7462 = vmatmul.mubr.bf16.vlgmr.msra.gmra.mxu0 %v10718_v16  ;;  %v560_v28 = vld [vmem:[%s14226_s1 + $0x10b8] sm:$0xff]  ;;  %v9803_v52 = vcombine.low %v832_v8, %v840_v9 }
 0x3c7   :  { %v7218_v34 = vadd.f32 %v7217_v32, %v13435_v18  ;;  %7512 = vmatpush1.bf16.msra.mxu0 %v9627_v15  ;;  %7543 = vmatprep.mubr.bf16.mxu0 %v10748_v26  ;;  %v592_v26 = vld [vmem:[%s14226_s1 + $0x11b8] sm:$0xff]  ;;  %v9548_v15 = vcombine.high %v576_v1, %v584_v3 }
 0x3c8   :  { %v7258_v58 = vpop.f32.mrf.mxu1  ;;  %7503 = vmatmul.mubr.bf16.vlgmr.msra.gmra.mxu1 %v10733_v20  ;;  %v7219_v16 = vpop.f32.mrf.mxu0  ;;  %7513 = vmatprep.subr.bf16.mxu0 %v9612_v54  ;;  %v9564_v2 = vcombine.high %v592_v26, %v600_v56  ;;  %v9563_v46 = vcombine.low %v592_v26, %v600_v56  ;;  %v816_v54 = vld [vmem:[%s14226_s1 + $0x18b8] sm:$0xff] }
 0x3c9   :  { %7553 = vmatpush1.bf16.msra.mxu1 %v9883_v22  ;;  %v13636_v59 = vadd.f32 %v7258_v58, %v7218_v34  ;;  %v7220_v18 = vadd.f32 %v7219_v16, %v13445_v33  ;;  %7584 = vmatprep.mubr.bf16.mxu1 %v10759_v29  ;;  %v9595_v33 = vcombine.low %v624_v24, %v632_v37  ;;  %v568_v24 = vld [vmem:[%s14226_s1 + $0x10f8] sm:$0xff] }
 0x3ca   :  { %v7260_v20 = vpop.f32.mrf.mxu1  ;;  %7554 = vmatprep.subr.bf16.mxu1 %v9868_v45  ;;  %v7221_v62 = vpop.f32.mrf.mxu0  ;;  %v9836_v29 = vcombine.high %v864_v47, %v872_v5  ;;  %v9804_v22 = vcombine.high %v832_v8, %v840_v9  ;;  %v824_v37 = vld [vmem:[%s14226_s1 + $0x18f8] sm:$0xff]  ;;  %v9547_v45 = vcombine.low %v576_v1, %v584_v3  ;;  %v9532_v12 = vcombine.high %v560_v28, %v568_v24 }
 0x3cb   :  { %v13647_v48 = vadd.f32 %v7260_v20, %v7220_v18  ;;  %7514 = vmatpush1.bf16.msra.mxu0 %v9611_v7  ;;  %v544_v32 = vld [vmem:[%s14226_s1 + $0x1038] sm:$0xff]  ;;  %v9788_v58 = vcombine.high %v816_v54, %v824_v37  ;;  %v9531_v16 = vcombine.low %v560_v28, %v568_v24 }
 0x3cc   :  { %v7262_v11 = vpop.f32.mrf.mxu1  ;;  %v7222_v50 = vpop.f32.mrf.mxu0  ;;  %7515 = vmatprep.subr.bf16.mxu0 %v9596_v49  ;;  %v552_v34 = vld [vmem:[%s14226_s1 + $0x1078] sm:$0xff]  ;;  %v9787_v49 = vcombine.low %v816_v54, %v824_v37 }
 0x3cd   :  { %7555 = vmatpush1.bf16.msra.mxu1 %v9867_v25  ;;  %v800_v7 = vld [vmem:[%s14226_s1 + $0x1838] sm:$0xff]  ;;  %v9516_v44 = vcombine.high %v544_v32, %v552_v34  ;;  %v9515_v47 = vcombine.low %v544_v32, %v552_v34 }
 0x3ce   :  { %v7263_v57 = vpop.f32.mrf.mxu1  ;;  %7556 = vmatprep.subr.bf16.mxu1 %v9852_v21  ;;  %v808_v40 = vld [vmem:[%s14226_s1 + $0x1878] sm:$0xff] }
 0x3cf   :  { %7516 = vmatpush1.bf16.msra.mxu0 %v9595_v33  ;;  %v784_v25 = vld [vmem:[%s14226_s1 + $0x17b8] sm:$0xff]  ;;  %v9772_v20 = vcombine.high %v800_v7, %v808_v40  ;;  %v9771_v11 = vcombine.low %v800_v7, %v808_v40 }
 0x3d0   :  { %7517 = vmatprep.subr.bf16.mxu0 %v9580_v55  ;;  %v792_v18 = vld [vmem:[%s14226_s1 + $0x17f8] sm:$0xff] }
 0x3d1   :  { %7557 = vmatpush1.bf16.msra.mxu1 %v9851_v51  ;;  %v1040_v21 = vld [vmem:[%s14226_s1 + $0x1fb8] sm:$0xff]  ;;  %v9756_v33 = vcombine.high %v784_v25, %v792_v18  ;;  %v9755_v56 = vcombine.low %v784_v25, %v792_v18 }
 0x3d2   :  { %7558 = vmatprep.subr.bf16.mxu1 %v9836_v29  ;;  %v1048_v62 = vld [vmem:[%s14226_s1 + $0x1ff8] sm:$0xff] }
 0x3d3   :  { %7518 = vmatpush1.bf16.msra.mxu0 %v9579_v0  ;;  %v768_v5 = vld [vmem:[%s14226_s1 + $0x1738] sm:$0xff]  ;;  %v10012_v50 = vcombine.high %v1040_v21, %v1048_v62  ;;  %v10011_v29 = vcombine.low %v1040_v21, %v1048_v62 }
 0x3d4   :  { %7519 = vmatprep.subr.bf16.mxu0 %v9564_v2  ;;  %v776_v26 = vld [vmem:[%s14226_s1 + $0x1778] sm:$0xff] }
 0x3d5   :  { %7559 = vmatpush1.bf16.msra.mxu1 %v9835_v19  ;;  %v1024_v51 = vld [vmem:[%s14226_s1 + $0x1f38] sm:$0xff]  ;;  %v9740_v61 = vcombine.high %v768_v5, %v776_v26  ;;  %v9739_v2 = vcombine.low %v768_v5, %v776_v26 }
 0x3d6   :  { %7560 = vmatprep.subr.bf16.mxu1 %v9820_v4  ;;  %v1032_v55 = vld [vmem:[%s14226_s1 + $0x1f78] sm:$0xff] }
 0x3d7   :  { %7520 = vmatpush1.bf16.msra.mxu0 %v9563_v46  ;;  %v752_v57 = vld [vmem:[%s14226_s1 + $0x16b8] sm:$0xff]  ;;  %v9996_v0 = vcombine.high %v1024_v51, %v1032_v55  ;;  %v9995_v8 = vcombine.low %v1024_v51, %v1032_v55 }
 0x3d8   :  { %7521 = vmatprep.subr.bf16.mxu0 %v9548_v15  ;;  %v760_v63 = vld [vmem:[%s14226_s1 + $0x16f8] sm:$0xff] }
 0x3d9   :  { %7561 = vmatpush1.bf16.msra.mxu1 %v9819_v13  ;;  %v1008_v1 = vld [vmem:[%s14226_s1 + $0x1eb8] sm:$0xff]  ;;  %v9724_v9 = vcombine.high %v752_v57, %v760_v63  ;;  %v9723_v15 = vcombine.low %v752_v57, %v760_v63 }
 0x3da   :  { %7562 = vmatprep.subr.bf16.mxu1 %v9804_v22  ;;  %v1016_v19 = vld [vmem:[%s14226_s1 + $0x1ef8] sm:$0xff] }
 0x3db   :  { %7522 = vmatpush1.bf16.msra.mxu0 %v9547_v45  ;;  %v736_v3 = vld [vmem:[%s14226_s1 + $0x1638] sm:$0xff]  ;;  %v9980_v28 = vcombine.high %v1008_v1, %v1016_v19  ;;  %v9979_v54 = vcombine.low %v1008_v1, %v1016_v19 }
 0x3dc   :  { %7523 = vmatprep.subr.bf16.mxu0 %v9532_v12  ;;  %v744_v4 = vld [vmem:[%s14226_s1 + $0x1678] sm:$0xff] }
 0x3dd   :  { %7563 = vmatpush1.bf16.msra.mxu1 %v9803_v52  ;;  %v992_v46 = vld [vmem:[%s14226_s1 + $0x1e38] sm:$0xff]  ;;  %v9708_v37 = vcombine.high %v736_v3, %v744_v4  ;;  %v9707_v12 = vcombine.low %v736_v3, %v744_v4 }
 0x3de   :  { %7564 = vmatprep.subr.bf16.mxu1 %v9788_v58  ;;  %v1000_v13 = vld [vmem:[%s14226_s1 + $0x1e78] sm:$0xff] }
 0x3df   :  { %7524 = vmatpush1.bf16.msra.mxu0 %v9531_v16  ;;  %v720_v24 = vld [vmem:[%s14226_s1 + $0x15b8] sm:$0xff]  ;;  %v9964_v52 = vcombine.high %v992_v46, %v1000_v13  ;;  %v9963_v7 = vcombine.low %v992_v46, %v1000_v13  ;;  %v13804_v46 = vld [vmem:[%s14228_s2 + $0x8] sm:$0xff] }
 0x3e0   :  { %7525 = vmatprep.subr.bf16.mxu0 %v9516_v44  ;;  %v728_v22 = vld [vmem:[%s14226_s1 + $0x15f8] sm:$0xff] }
 0x3e1   :  { %7565 = vmatpush1.bf16.msra.mxu1 %v9787_v49  ;;  %v976_v45 = vld [vmem:[%s14226_s1 + $0x1db8] sm:$0xff]  ;;  %v9692_v40 = vcombine.high %v720_v24, %v728_v22  ;;  %v9691_v44 = vcombine.low %v720_v24, %v728_v22  ;;  %v10331_v22 = vld [vmem:[%s14229_s3 + $0xf0] sm:$0xff]  }
 0x3e2   :  { %7566 = vmatprep.subr.bf16.mxu1 %v9772_v20  ;;  %v984_v32 = vld [vmem:[%s14226_s1 + $0x1df8] sm:$0xff] }
 0x3e3   :  { %7526 = vmatpush1.bf16.msra.mxu0 %v9515_v47  ;;  %v704_v34 = vld [vmem:[%s14226_s1 + $0x1538] sm:$0xff]  ;;  %v9948_v49 = vcombine.high %v976_v45, %v984_v32  ;;  %v9947_v21 = vcombine.low %v976_v45, %v984_v32 }
 0x3e4   :  { %7527 = vmatprep.subr.bf16.mxu0 %v9756_v33  ;;  %v712_v58 = vld [vmem:[%s14226_s1 + $0x1578] sm:$0xff] }
 0x3e5   :  { %7567 = vmatpush1.bf16.msra.mxu1 %v9771_v11  ;;  %v960_v16 = vld [vmem:[%s14226_s1 + $0x1d38] sm:$0xff]  ;;  %v9676_v62 = vcombine.high %v704_v34, %v712_v58  ;;  %v9675_v33 = vcombine.low %v704_v34, %v712_v58  ;;  %v10335_v58 = vld [vmem:[%s14229_s3 + $0xe8] sm:$0xff]  }
 0x3e6   :  { %7568 = vmatprep.subr.bf16.mxu1 %v10012_v50  ;;  %v968_v25 = vld [vmem:[%s14226_s1 + $0x1d78] sm:$0xff] }
 0x3e7   :  { %7528 = vmatpush2.bf16.msra.mxu0 %v9755_v56  ;;  %v688_v18 = vld [vmem:[%s14226_s1 + $0x14b8] sm:$0xff]  ;;  %v9932_v11 = vcombine.high %v960_v16, %v968_v25  ;;  %v9931_v51 = vcombine.low %v960_v16, %v968_v25  ;;  %v10336_v25 = vld [vmem:[%s14229_s3 + $0x28] sm:$0xff]  }
 0x3e8   :  { %7529 = vmatprep.subr.bf16.mxu0 %v9740_v61  ;;  %v696_v20 = vld [vmem:[%s14226_s1 + $0x14f8] sm:$0xff] }
 0x3e9   :  { %7569 = vmatpush2.bf16.msra.mxu1 %v10011_v29  ;;  %v944_v47 = vld [vmem:[%s14226_s1 + $0x1cb8] sm:$0xff]  ;;  %v9660_v55 = vcombine.high %v688_v18, %v696_v20  ;;  %v9659_v61 = vcombine.low %v688_v18, %v696_v20  ;;  %v10338_v18 = vld [vmem:[%s14229_s3 + $0x60] sm:$0xff]  }
 0x3ea   :  { %7570 = vmatprep.subr.bf16.mxu1 %v9996_v0  ;;  %v952_v5 = vld [vmem:[%s14226_s1 + $0x1cf8] sm:$0xff] }
 0x3eb   :  { %7530 = vmatpush2.bf16.msra.mxu0 %v9739_v2  ;;  %v672_v26 = vld [vmem:[%s14226_s1 + $0x1438] sm:$0xff]  ;;  %v9916_v29 = vcombine.high %v944_v47, %v952_v5  ;;  %v9915_v63 = vcombine.low %v944_v47, %v952_v5  ;;  %v10341_v47 = vld [vmem:[%s14229_s3 + $0xa0] sm:$0xff]  }
 0x3ec   :  { %7531 = vmatprep.subr.bf16.mxu0 %v9724_v9  ;;  %v680_v50 = vld [vmem:[%s14226_s1 + $0x1478] sm:$0xff]  ;;  %v7596_v9 = vmax.f32 %v12001_v17, 0.0  ;;  %v1108_v17 = vrot.slane %v13804_v46, %v1075_v43  ;;  %v10332_v43 = vld [vmem:[%s14229_s3 + $0x30] sm:$0xff]  }
 0x3ed   :  { %7571 = vmatpush2.bf16.msra.mxu1 %v9995_v8  ;;  %v928_v56 = vld [vmem:[%s14226_s1 + $0x1c38] sm:$0xff]  ;;  %v9644_v0 = vcombine.high %v672_v26, %v680_v50  ;;  %v9643_v19 = vcombine.low %v672_v26, %v680_v50  ;;  %v7594_v8 = vmax.f32 %v11591_v31, 0.0  ;;  %v10346_v50 = vld [vmem:[%s14229_s3 + $0x50] sm:$0xff]  }
 0x3ee   :  { %7572 = vmatprep.subr.bf16.mxu1 %v9980_v28  ;;  %v936_v57 = vld [vmem:[%s14226_s1 + $0x1c78] sm:$0xff]  ;;  %v1104_v28 = vrot.slane %v13804_v46, %v1071_v38 }
 0x3ef   :  { %7532 = vmatpush2.bf16.msra.mxu0 %v9723_v15  ;;  %v9900_v1 = vcombine.high %v928_v56, %v936_v57  ;;  %v9899_v2 = vcombine.low %v928_v56, %v936_v57  ;;  %v10326_v3 = vld [vmem:[%s14229_s3 + $0x78] sm:$0xff]   ;;  %v10330_v15 = vld [vmem:[%s14229_s3 + $0x70] sm:$0xff]   ;;  %v7610_v38 = vpack.c.bf16 %v7594_v8, %v7594_v8  ;;  %v10350_v57 = vld [vmem:[%s14229_s3 + $0x48] sm:$0xff]   ;;  %v7595_v8 = vmax.f32 %v11984_v6, 0.0 }
 0x3f0   :  { %7533 = vmatprep.subr.bf16.mxu0 %v9708_v37  ;;  %v10327_v4 = vld [vmem:[%s14229_s3 + $0xf8] sm:$0xff]   ;;  %v10349_v56 = vld [vmem:[%s14229_s3 + $0x90] sm:$0xff]  }
 0x3f1   :  { %7573 = vmatpush2.bf16.msra.mxu1 %v9979_v54  ;;  %v10328_v13 = vld [vmem:[%s14229_s3 + $0x38] sm:$0xff]   ;;  %v7612_v54 = vpack.c.bf16 %v7596_v9, %v7596_v9 }
 0x3f2   :  { %7574 = vmatprep.subr.bf16.mxu1 %v9964_v52  ;;  %v10329_v31 = vld [vmem:[%s14229_s3 + $0xb8] sm:$0xff]   ;;  %v10334_v52 = vld [vmem:[%s14229_s3 + $0x68] sm:$0xff]  }
 0x3f3   :  { %7534 = vmatpush2.bf16.msra.mxu0 %v9707_v12  ;;  %v10342_v5 = vld [vmem:[%s14229_s3 + $0x58] sm:$0xff]  }
 0x3f4   :  { %7535 = vmatprep.subr.bf16.mxu0 %v9692_v40  ;;  %v10345_v26 = vld [vmem:[%s14229_s3 + $0x98] sm:$0xff]  }
 0x3f5   :  { %7575 = vmatpush2.bf16.msra.mxu1 %v9963_v7  ;;  %v10359_v9 = vld [vmem:[%s14229_s3 + $0x1f8] sm:$0xff]  }
 0x3f6   :  { %7576 = vmatprep.subr.bf16.mxu1 %v9948_v49  ;;  %v10361_v6 = vld [vmem:[%s14229_s3 + $0x1b8] sm:$0xff]  }
 0x3f7   :  { %7536 = vmatpush2.bf16.msra.mxu0 %v9691_v44  ;;  %v10337_v44 = vld [vmem:[%s14229_s3 + $0xa8] sm:$0xff]  }
 0x3f8   :  { %7537 = vmatprep.subr.bf16.mxu0 %v9676_v62  ;;  %v10340_v62 = vld [vmem:[%s14229_s3 + $0x20] sm:$0xff]  }
 0x3f9   :  { %7577 = vmatpush2.bf16.msra.mxu1 %v9947_v21  ;;  %v10339_v21 = vld [vmem:[%s14229_s3 + $0xe0] sm:$0xff]  }
 0x3fa   :  { %7578 = vmatprep.subr.bf16.mxu1 %v9932_v11  ;;  %v10343_v11 = vld [vmem:[%s14229_s3 + $0xd8] sm:$0xff]  }
 0x3fb   :  { %7538 = vmatpush2.bf16.msra.mxu0 %v9675_v33  ;;  %v10344_v33 = vld [vmem:[%s14229_s3 + $0x18] sm:$0xff]  }
 0x3fc   :  { %7539 = vmatprep.subr.bf16.mxu0 %v9660_v55  ;;  %v10348_v55 = vld [vmem:[%s14229_s3 + $0x10] sm:$0xff]  }
 0x3fd   :  { %7579 = vmatpush2.bf16.msra.mxu1 %v9931_v51  ;;  %v10347_v51 = vld [vmem:[%s14229_s3 + $0xd0] sm:$0xff]  }
 0x3fe   :  { %7580 = vmatprep.subr.bf16.mxu1 %v9916_v29  ;;  %v10351_v29 = vld [vmem:[%s14229_s3 + $0xc8] sm:$0xff]  }
 0x3ff   :  { %7540 = vmatpush2.bf16.msra.mxu0 %v9659_v61  ;;  %v10352_v61 = vld [vmem:[%s14229_s3 + $0x8] sm:$0xff]  }
 0x400   :  { %7541 = vmatprep.subr.bf16.mxu0 %v9644_v0  ;;  %v10354_v0 = vld [vmem:[%s14229_s3 + $0x40] sm:$0xff]  }
 0x401   :  { %7581 = vmatpush2.bf16.msra.mxu1 %v9915_v63  ;;  %v10353_v63 = vld [vmem:[%s14229_s3 + $0x88] sm:$0xff]  }
 0x402   :  { %7582 = vmatprep.subr.bf16.mxu1 %v9900_v1  ;;  %v10355_v1 = vld [vmem:[%s14229_s3 + $0xc0] sm:$0xff]  }
 0x403   :  { %7542 = vmatpush2.bf16.msra.mxu0 %v9643_v19  ;;  %v10356_v19 = vld [vmem:[%s14229_s3] sm:$0xff]  }
 0x404   :  { %10142 = vmatprep.subr.bf16.mxu0 %v10326_v3  ;;  %v10357_v3 = vld [vmem:[%s14229_s3 + $0x80] sm:$0xff]  }
 0x405   :  { %7583 = vmatpush2.bf16.msra.mxu1 %v9899_v2  ;;  %v7593_v2 = vmax.f32 %v11574_v23, 0.0  ;;  %v7600_v23 = vmax.f32 %v12826_v35, 0.0  ;;  %v10363_v35 = vld [vmem:[%s14229_s3 + $0x1f0] sm:$0xff]  }
 0x406   :  { %10164 = vmatprep.subr.bf16.mxu1 %v10327_v4  ;;  %v7299_v24 = vpop.f32.mrf.mxu0  ;;  %7544 = vmatmul.mubr.bf16.vlgmr.msra.gmra.mxu0 %v10940_v36  ;;  %v10333_v36 = vld [vmem:[%s14229_s3 + $0xb0] sm:$0xff]   ;;  %v10358_v4 = vld [vmem:[%s14229_s3 + $0x178] sm:$0xff]  }
 0x407   :  { %v7300_v37 = vadd.f32 %v7299_v24, %v1104_v28  ;;  %10143 = vmatpush3.bf16.msra.mxu0 %v10328_v13  ;;  %8688 = vmatprep.mubr.bf16.mxu0 %v7610_v38  ;;  %v7598_v28 = vmax.f32 %v12416_v41, 0.0  ;;  %v10360_v13 = vld [vmem:[%s14229_s3 + $0x138] sm:$0xff]   ;;  %v10362_v41 = vld [vmem:[%s14229_s3 + $0x170] sm:$0xff]   ;;  %v7616_v38 = vpack.c.bf16 %v7600_v23, %v7600_v23  ;;  %v10399_v23 = vld [vmem:[%s14229_s3 + $0x2e8] sm:$0xff]  }
 0x408   :  { %v7340_v45 = vpop.f32.mrf.mxu1  ;;  %7585 = vmatmul.mubr.bf16.vlgmr.msra.gmra.mxu1 %v10950_v39  ;;  %v7301_v32 = vpop.f32.mrf.mxu0  ;;  %10144 = vmatprep.subr.bf16.mxu0 %v10330_v15  ;;  %v10364_v24 = vld [vmem:[%s14229_s3 + $0x130] sm:$0xff]  }
 0x409   :  { %10165 = vmatpush3.bf16.msra.mxu1 %v10329_v31  ;;  %v13835_v12 = vadd.f32 %v7340_v45, %v7300_v37  ;;  %8728 = vmatprep.mubr.bf16.mxu1 %v7612_v54  ;;  %v7302_v39 = vadd.f32 %v7301_v32, %v1108_v17  ;;  %v7609_v31 = vpack.c.bf16 %v7593_v2, %v7593_v2  ;;  %v10366_v54 = vld [vmem:[%s14229_s3 + $0x168] sm:$0xff]   ;;  %v10370_v32 = vld [vmem:[%s14229_s3 + $0x160] sm:$0xff]  }
 0x40a   :  { %v7342_v34 = vpop.f32.mrf.mxu1  ;;  %v7303_v7 = vpop.f32.mrf.mxu0  ;;  %10166 = vmatprep.subr.bf16.mxu1 %v10331_v22  ;;  %v7611_v17 = vpack.c.bf16 %v7595_v8, %v7595_v8  ;;  %v7614_v15 = vpack.c.bf16 %v7598_v28, %v7598_v28  ;;  %v10365_v22 = vld [vmem:[%s14229_s3 + $0x1b0] sm:$0xff]   ;;  %v10367_v37 = vld [vmem:[%s14229_s3 + $0x1e8] sm:$0xff]  }
 0x40b   :  { %v13840_v40 = vadd.f32 %v7342_v34, %v7302_v39  ;;  %10145 = vmatpush3.bf16.msra.mxu0 %v10332_v43  ;;  %v10368_v45 = vld [vmem:[%s14229_s3 + $0x128] sm:$0xff]   ;;  %v10373_v39 = vld [vmem:[%s14229_s3 + $0x1a0] sm:$0xff]   ;;  %v10374_v34 = vld [vmem:[%s14229_s3 + $0x158] sm:$0xff]  }
 0x40c   :  { %v7344_v16 = vpop.f32.mrf.mxu1  ;;  %v7304_v49 = vpop.f32.mrf.mxu0  ;;  %10146 = vmatprep.subr.bf16.mxu0 %v10334_v52  ;;  %v10369_v43 = vld [vmem:[%s14229_s3 + $0x1a8] sm:$0xff]   ;;  %v10372_v52 = vld [vmem:[%s14229_s3 + $0x120] sm:$0xff]   ;;  %v10376_v7 = vld [vmem:[%s14229_s3 + $0x118] sm:$0xff]  }
 0x40d   :  { %10167 = vmatpush3.bf16.msra.mxu1 %v10333_v36  ;;  %v10371_v36 = vld [vmem:[%s14229_s3 + $0x1e0] sm:$0xff]   ;;  %v10377_v16 = vld [vmem:[%s14229_s3 + $0x198] sm:$0xff]   ;;  %v10379_v49 = vld [vmem:[%s14229_s3 + $0x1d0] sm:$0xff]  }
 0x40e   :  { %v7345_v20 = vpop.f32.mrf.mxu1  ;;  %10168 = vmatprep.subr.bf16.mxu1 %v10335_v58  ;;  %v10375_v58 = vld [vmem:[%s14229_s3 + $0x1d8] sm:$0xff]   ;;  %v10397_v8 = vld [vmem:[%s14229_s3 + $0x2b0] sm:$0xff]  }
 0x40f   :  { %10147 = vmatpush3.bf16.msra.mxu0 %v10336_v25  ;;  %v10378_v25 = vld [vmem:[%s14229_s3 + $0x150] sm:$0xff]   ;;  %v10382_v20 = vld [vmem:[%s14229_s3 + $0x148] sm:$0xff]  }
 0x410   :  { %10148 = vmatprep.subr.bf16.mxu0 %v10338_v18  ;;  %v10381_v18 = vld [vmem:[%s14229_s3 + $0x190] sm:$0xff]  }
 0x411   :  { %10169 = vmatpush3.bf16.msra.mxu1 %v10337_v44  ;;  %v10380_v44 = vld [vmem:[%s14229_s3 + $0x110] sm:$0xff]  }
 0x412   :  { %10170 = vmatprep.subr.bf16.mxu1 %v10339_v21  ;;  %v10383_v21 = vld [vmem:[%s14229_s3 + $0x1c8] sm:$0xff]  }
 0x413   :  { %10149 = vmatpush3.bf16.msra.mxu0 %v10340_v62  ;;  %v10384_v62 = vld [vmem:[%s14229_s3 + $0x108] sm:$0xff]  }
 0x414   :  { %10150 = vmatprep.subr.bf16.mxu0 %v10342_v5  ;;  %v10386_v5 = vld [vmem:[%s14229_s3 + $0x140] sm:$0xff]  }
 0x415   :  { %10171 = vmatpush3.bf16.msra.mxu1 %v10341_v47  ;;  %v10385_v47 = vld [vmem:[%s14229_s3 + $0x188] sm:$0xff]  }
 0x416   :  { %10172 = vmatprep.subr.bf16.mxu1 %v10343_v11  ;;  %v10387_v11 = vld [vmem:[%s14229_s3 + $0x1c0] sm:$0xff]  }
 0x417   :  { %10151 = vmatpush3.bf16.msra.mxu0 %v10344_v33  ;;  %v10388_v33 = vld [vmem:[%s14229_s3 + $0x100] sm:$0xff]  }
 0x418   :  { %10152 = vmatprep.subr.bf16.mxu0 %v10346_v50  ;;  %v10389_v50 = vld [vmem:[%s14229_s3 + $0x180] sm:$0xff]  }
 0x419   :  { %10173 = vmatpush3.bf16.msra.mxu1 %v10345_v26  ;;  %v7597_v26 = vmax.f32 %v12399_v30, 0.0  ;;  %v7604_v30 = vmax.f32 %v13647_v48, 0.0 }
 0x41a   :  { %10174 = vmatprep.subr.bf16.mxu1 %v10347_v51  ;;  %v10390_v51 = vld [vmem:[%s14229_s3 + $0x278] sm:$0xff]  }
 0x41b   :  { %10153 = vmatpush3.bf16.msra.mxu0 %v10348_v55  ;;  %v7599_v55 = vmax.f32 %v12809_v27, 0.0  ;;  %v10393_v27 = vld [vmem:[%s14229_s3 + $0x2b8] sm:$0xff]  }
 0x41c   :  { %10154 = vmatprep.subr.bf16.mxu0 %v10350_v57  ;;  %v7602_v57 = vmax.f32 %v13239_v10, 0.0  ;;  %v10394_v10 = vld [vmem:[%s14229_s3 + $0x270] sm:$0xff]  }
 0x41d   :  { %10175 = vmatpush3.bf16.msra.mxu1 %v10349_v56  ;;  %v10391_v56 = vld [vmem:[%s14229_s3 + $0x2f8] sm:$0xff]  }
 0x41e   :  { %10176 = vmatprep.subr.bf16.mxu1 %v10351_v29  ;;  %v10392_v29 = vld [vmem:[%s14229_s3 + $0x238] sm:$0xff]  }
 0x41f   :  { %10155 = vmatpush3.bf16.msra.mxu0 %v10352_v61  ;;  %v7613_v61 = vpack.c.bf16 %v7597_v26, %v7597_v26  ;;  %v10424_v26 = vld [vmem:[%s14229_s3 + $0x370] sm:$0xff]  }
 0x420   :  { %10156 = vmatprep.subr.bf16.mxu0 %v10354_v0  ;;  %v7618_v0 = vpack.c.bf16 %v7602_v57, %v7602_v57  ;;  %v10426_v57 = vld [vmem:[%s14229_s3 + $0x368] sm:$0xff]  }
 0x421   :  { %10177 = vmatpush3.bf16.msra.mxu1 %v10353_v63  ;;  %v7615_v63 = vpack.c.bf16 %v7599_v55, %v7599_v55  ;;  %v10440_v55 = vld [vmem:[%s14229_s3 + $0x3f0] sm:$0xff]  }
 0x422   :  { %10178 = vmatprep.subr.bf16.mxu1 %v10355_v1  ;;  %v10395_v1 = vld [vmem:[%s14229_s3 + $0x2f0] sm:$0xff]  }
 0x423   :  { %10157 = vmatpush3.bf16.msra.mxu0 %v10356_v19  ;;  %v7620_v19 = vpack.c.bf16 %v7604_v30, %v7604_v30  ;;  %v10441_v30 = vld [vmem:[%s14229_s3 + $0x3b0] sm:$0xff]  }
 0x424   :  { %10186 = vmatprep.subr.bf16.mxu0 %v10358_v4 }
 0x425   :  { %10179 = vmatpush3.bf16.msra.mxu1 %v10357_v3  ;;  %v10396_v3 = vld [vmem:[%s14229_s3 + $0x230] sm:$0xff]  }
 0x426   :  { %10208 = vmatprep.subr.bf16.mxu1 %v10359_v9  ;;  %8689 = vmatmul.mubr.bf16.vlgmr.msra.gmra.mxu0 %v7609_v31  ;;  %v10398_v9 = vld [vmem:[%s14229_s3 + $0x268] sm:$0xff]  }
 0x427   :  { %10187 = vmatpush3.bf16.msra.mxu0 %v10360_v13  ;;  %8768 = vmatprep.mubr.bf16.mxu0 %v7614_v15  ;;  %v10402_v15 = vld [vmem:[%s14229_s3 + $0x260] sm:$0xff]  }
 0x428   :  { %8729 = vmatmul.mubr.bf16.vlgmr.msra.gmra.mxu1 %v7611_v17  ;;  %10188 = vmatprep.subr.bf16.mxu0 %v10362_v41  ;;  %v10401_v41 = vld [vmem:[%s14229_s3 + $0x2a8] sm:$0xff]  }
 0x429   :  { %10209 = vmatpush3.bf16.msra.mxu1 %v10361_v6  ;;  %8808 = vmatprep.mubr.bf16.mxu1 %v7616_v38  ;;  %v10400_v6 = vld [vmem:[%s14229_s3 + $0x228] sm:$0xff]   ;;  %v10403_v38 = vld [vmem:[%s14229_s3 + $0x2e0] sm:$0xff]  }
 0x42a   :  { %10210 = vmatprep.subr.bf16.mxu1 %v10363_v35 }
 0x42b   :  { %10189 = vmatpush3.bf16.msra.mxu0 %v10364_v24  ;;  %v10404_v24 = vld [vmem:[%s14229_s3 + $0x220] sm:$0xff]  }
 0x42c   :  { %10190 = vmatprep.subr.bf16.mxu0 %v10366_v54  ;;  %v10406_v54 = vld [vmem:[%s14229_s3 + $0x258] sm:$0xff]  }
 0x42d   :  { %10211 = vmatpush3.bf16.msra.mxu1 %v10365_v22  ;;  %v10405_v22 = vld [vmem:[%s14229_s3 + $0x2a0] sm:$0xff]  }
 0x42e   :  { %10212 = vmatprep.subr.bf16.mxu1 %v10367_v37  ;;  %v10407_v37 = vld [vmem:[%s14229_s3 + $0x2d8] sm:$0xff]  }
 0x42f   :  { %10191 = vmatpush3.bf16.msra.mxu0 %v10368_v45  ;;  %v10408_v45 = vld [vmem:[%s14229_s3 + $0x218] sm:$0xff]  }
 0x430   :  { %10192 = vmatprep.subr.bf16.mxu0 %v10370_v32  ;;  %v10410_v32 = vld [vmem:[%s14229_s3 + $0x250] sm:$0xff]  }
 0x431   :  { %10213 = vmatpush3.bf16.msra.mxu1 %v10369_v43  ;;  %v10409_v43 = vld [vmem:[%s14229_s3 + $0x298] sm:$0xff]  }
 0x432   :  { %10214 = vmatprep.subr.bf16.mxu1 %v10371_v36  ;;  %v10411_v36 = vld [vmem:[%s14229_s3 + $0x2d0] sm:$0xff]  }
 0x433   :  { %10193 = vmatpush3.bf16.msra.mxu0 %v10372_v52  ;;  %v10412_v52 = vld [vmem:[%s14229_s3 + $0x210] sm:$0xff]  }
 0x434   :  { %10194 = vmatprep.subr.bf16.mxu0 %v10374_v34  ;;  %v10414_v34 = vld [vmem:[%s14229_s3 + $0x248] sm:$0xff]  }
 0x435   :  { %10215 = vmatpush3.bf16.msra.mxu1 %v10373_v39  ;;  %v10413_v39 = vld [vmem:[%s14229_s3 + $0x290] sm:$0xff]  }
 0x436   :  { %10216 = vmatprep.subr.bf16.mxu1 %v10375_v58  ;;  %v10415_v58 = vld [vmem:[%s14229_s3 + $0x2c8] sm:$0xff]  }
 0x437   :  { %10195 = vmatpush3.bf16.msra.mxu0 %v10376_v7 }
 0x438   :  { %10196 = vmatprep.subr.bf16.mxu0 %v10378_v25  ;;  %v10417_v25 = vld [vmem:[%s14229_s3 + $0x288] sm:$0xff]  }
 0x439   :  { %10217 = vmatpush3.bf16.msra.mxu1 %v10377_v16  ;;  %v10416_v16 = vld [vmem:[%s14229_s3 + $0x208] sm:$0xff]  }
 0x43a   :  { %10218 = vmatprep.subr.bf16.mxu1 %v10379_v49  ;;  %v10418_v49 = vld [vmem:[%s14229_s3 + $0x240] sm:$0xff]  }
 0x43b   :  { %10197 = vmatpush3.bf16.msra.mxu0 %v10380_v44 }
 0x43c   :  { %10198 = vmatprep.subr.bf16.mxu0 %v10382_v20  ;;  %v7601_v20 = vmax.f32 %v13222_v42, 0.0  ;;  %v10423_v42 = vld [vmem:[%s14229_s3 + $0x338] sm:$0xff]  }
 0x43d   :  { %10219 = vmatpush3.bf16.msra.mxu1 %v10381_v18  ;;  %v10420_v18 = vld [vmem:[%s14229_s3 + $0x200] sm:$0xff]  }
 0x43e   :  { %10220 = vmatprep.subr.bf16.mxu1 %v10383_v21  ;;  %v10421_v21 = vld [vmem:[%s14229_s3 + $0x280] sm:$0xff]  }
 0x43f   :  { %10199 = vmatpush3.bf16.msra.mxu0 %v10384_v62  ;;  %v10422_v62 = vld [vmem:[%s14229_s3 + $0x378] sm:$0xff]  }
 0x440   :  { %10200 = vmatprep.subr.bf16.mxu0 %v10386_v5  ;;  %v10438_v5 = vld [vmem:[%s14229_s3 + $0x3f8] sm:$0xff]  }
 0x441   :  { %10221 = vmatpush3.bf16.msra.mxu1 %v10385_v47  ;;  %v7603_v47 = vmax.f32 %v13636_v59, 0.0  ;;  %v10439_v59 = vld [vmem:[%s14229_s3 + $0x3b8] sm:$0xff]  }
 0x442   :  { %10222 = vmatprep.subr.bf16.mxu1 %v10387_v11 }
 0x443   :  { %10201 = vmatpush3.bf16.msra.mxu0 %v10388_v33  ;;  %v7617_v33 = vpack.c.bf16 %v7601_v20, %v7601_v20 }
 0x444   :  { %10230 = vmatprep.subr.bf16.mxu0 %v10390_v51 }
 0x445   :  { %10223 = vmatpush3.bf16.msra.mxu1 %v10389_v50  ;;  %v7619_v50 = vpack.c.bf16 %v7603_v47, %v7603_v47 }
 0x446   :  { %10252 = vmatprep.subr.bf16.mxu1 %v10391_v56  ;;  %v14027_v48 = vpop.f32.mrf.mxu0  ;;  %8769 = vmatmul.mubr.bf16.vlgmr.msra.gmra.mxu0 %v7613_v61  ;;  %v10425_v56 = vld [vmem:[%s14229_s3 + $0x330] sm:$0xff]   ;;  %v10427_v61 = vld [vmem:[%s14229_s3 + $0x328] sm:$0xff]  }
 0x447   :  { %10231 = vmatpush3.bf16.msra.mxu0 %v10392_v29  ;;  %8848 = vmatprep.mubr.bf16.mxu0 %v7618_v0  ;;  %v10442_v29 = vld [vmem:[%s14229_s3 + $0x3e8] sm:$0xff]   ;;  %v10429_v0 = vld [vmem:[%s14229_s3 + $0x320] sm:$0xff]  }
 0x448   :  { %v14032_v2 = vpop.f32.mrf.mxu1  ;;  %8809 = vmatmul.mubr.bf16.vlgmr.msra.gmra.mxu1 %v7615_v63  ;;  %v7383_v4 = vpop.f32.mrf.mxu0  ;;  %10232 = vmatprep.subr.bf16.mxu0 %v10394_v10  ;;  %v10443_v63 = vld [vmem:[%s14229_s3 + $0x3a8] sm:$0xff]   ;;  %v10444_v10 = vld [vmem:[%s14229_s3 + $0x3e0] sm:$0xff]  }
 0x449   :  { %10253 = vmatpush3.bf16.msra.mxu1 %v10393_v27  ;;  %8888 = vmatprep.mubr.bf16.mxu1 %v7620_v19  ;;  %v7384_v7 = vadd.f32 %v7383_v4, %v13840_v40  ;;  %v10419_v40 = vld [vmem:[%s14229_s3 + $0x2c0] sm:$0xff]   ;;  %v10431_v4 = vld [vmem:[%s14229_s3 + $0x318] sm:$0xff]  }
 0x44a   :  { %v7424_v28 = vpop.f32.mrf.mxu1  ;;  %v7385_v13 = vpop.f32.mrf.mxu0  ;;  %10254 = vmatprep.subr.bf16.mxu1 %v10395_v1  ;;  %v10428_v27 = vld [vmem:[%s14229_s3 + $0x360] sm:$0xff]   ;;  %v10430_v1 = vld [vmem:[%s14229_s3 + $0x358] sm:$0xff]  }
 0x44b   :  { %10233 = vmatpush3.bf16.msra.mxu0 %v10396_v3  ;;  %v7425_v44 = vadd.f32 %v7424_v28, %v7384_v7  ;;  %v10445_v19 = vld [vmem:[%s14229_s3 + $0x3a0] sm:$0xff]   ;;  %v10446_v3 = vld [vmem:[%s14229_s3 + $0x3d8] sm:$0xff]   ;;  %v10448_v28 = vld [vmem:[%s14229_s3 + $0x3d0] sm:$0xff]   ;;  %v7382_v13 = vadd.f32 %v14027_v48, %v13835_v12 }
 0x44c   :  { %v7426_v31 = vpop.f32.mrf.mxu1  ;;  %v7386_v17 = vpop.f32.mrf.mxu0  ;;  %10234 = vmatprep.subr.bf16.mxu0 %v10398_v9  ;;  %v10447_v9 = vld [vmem:[%s14229_s3 + $0x398] sm:$0xff]   ;;  %v10435_v12 = vld [vmem:[%s14229_s3 + $0x308] sm:$0xff]  }
 0x44d   :  { %10255 = vmatpush3.bf16.msra.mxu1 %v10397_v8  ;;  %v7606_v11 = vmax.f32 %v7425_v44, 0.0  ;;  %v10432_v8 = vld [vmem:[%s14229_s3 + $0x350] sm:$0xff]   ;;  %v10434_v31 = vld [vmem:[%s14229_s3 + $0x348] sm:$0xff]   ;;  %v7423_v48 = vadd.f32 %v14032_v2, %v7382_v13  ;;  %v10437_v2 = vld [vmem:[%s14229_s3 + $0x300] sm:$0xff]  }
 0x44e   :  { %v7427_v35 = vpop.f32.mrf.mxu1  ;;  %10256 = vmatprep.subr.bf16.mxu1 %v10399_v23  ;;  %v10433_v23 = vld [vmem:[%s14229_s3 + $0x310] sm:$0xff]   ;;  %v10450_v17 = vld [vmem:[%s14229_s3 + $0x3c8] sm:$0xff]  }
 0x44f   :  { %10235 = vmatpush3.bf16.msra.mxu0 %v10400_v6  ;;  %v7622_v51 = vpack.c.bf16 %v7606_v11, %v7606_v11  ;;  %v10449_v6 = vld [vmem:[%s14229_s3 + $0x390] sm:$0xff]   ;;  %v10452_v35 = vld [vmem:[%s14229_s3 + $0x3c0] sm:$0xff]  }
 0x450   :  { %10236 = vmatprep.subr.bf16.mxu0 %v10402_v15  ;;  %v10451_v15 = vld [vmem:[%s14229_s3 + $0x388] sm:$0xff]  }
 0x451   :  { %10257 = vmatpush3.bf16.msra.mxu1 %v10401_v41  ;;  %v10436_v41 = vld [vmem:[%s14229_s3 + $0x340] sm:$0xff]  }
 0x452   :  { %10258 = vmatprep.subr.bf16.mxu1 %v10403_v38  ;;  %v7605_v38 = vmax.f32 %v7423_v48, 0.0 }
 0x453   :  { %10237 = vmatpush3.bf16.msra.mxu0 %v10404_v24  ;;  %v10453_v24 = vld [vmem:[%s14229_s3 + $0x380] sm:$0xff]  }
 0x454   :  { %10238 = vmatprep.subr.bf16.mxu0 %v10406_v54 }
 0x455   :  { %10259 = vmatpush3.bf16.msra.mxu1 %v10405_v22  ;;  %v7621_v22 = vpack.c.bf16 %v7605_v38, %v7605_v38 }
 0x456   :  { %10260 = vmatprep.subr.bf16.mxu1 %v10407_v37 }
 0x457   :  { %10239 = vmatpush3.bf16.msra.mxu0 %v10408_v45 }
 0x458   :  { %10240 = vmatprep.subr.bf16.mxu0 %v10410_v32 }
 0x459   :  { %10261 = vmatpush3.bf16.msra.mxu1 %v10409_v43 }
 0x45a   :  { %10262 = vmatprep.subr.bf16.mxu1 %v10411_v36 }
 0x45b   :  { %10241 = vmatpush3.bf16.msra.mxu0 %v10412_v52 }
 0x45c   :  { %10242 = vmatprep.subr.bf16.mxu0 %v10414_v34  ;;  %v1112_v34 = vrot.slane %v13804_v46, %v1079_v14 }
 0x45d   :  { %10263 = vmatpush3.bf16.msra.mxu1 %v10413_v39 }
 0x45e   :  { %10264 = vmatprep.subr.bf16.mxu1 %v10415_v58  ;;  %v1116_v58 = vrot.slane %v13804_v46, %v1083_v53 }
 0x45f   :  { %10243 = vmatpush3.bf16.msra.mxu0 %v10416_v16 }
 0x460   :  { %10244 = vmatprep.subr.bf16.mxu0 %v10418_v49 }
 0x461   :  { %10265 = vmatpush3.bf16.msra.mxu1 %v10417_v25 }
 0x462   :  { %10266 = vmatprep.subr.bf16.mxu1 %v10419_v40 }
 0x463   :  { %10245 = vmatpush3.bf16.msra.mxu0 %v10420_v18 }
 0x464   :  { %10274 = vmatprep.subr.bf16.mxu0 %v10422_v62 }
 0x465   :  { %10267 = vmatpush3.bf16.msra.mxu1 %v10421_v21 }
 0x466   :  { %10296 = vmatprep.subr.bf16.mxu1 %v10438_v5  ;;  %8849 = vmatmul.mubr.bf16.vlgmr.msra.gmra.mxu0 %v7617_v33 }
 0x467   :  { %10275 = vmatpush3.bf16.msra.mxu0 %v10423_v42  ;;  %8928 = vmatprep.mubr.bf16.mxu0 %v7622_v51  ;;  %v10013_v51 = vld [vmem:[%s14230_s4] ss:$0 sm:$0xff] }
 0x468   :  { %8889 = vmatmul.mubr.bf16.vlgmr.msra.gmra.mxu1 %v7619_v50  ;;  %10276 = vmatprep.subr.bf16.mxu0 %v10424_v26 }
 0x469   :  { %10297 = vmatpush3.bf16.msra.mxu1 %v10439_v59 }
 0x46a   :  { %10298 = vmatprep.subr.bf16.mxu1 %v10440_v55 }
 0x46b   :  { %10277 = vmatpush3.bf16.msra.mxu0 %v10425_v56 }
 0x46c   :  { %10278 = vmatprep.subr.bf16.mxu0 %v10426_v57 }
 0x46d   :  { %10299 = vmatpush3.bf16.msra.mxu1 %v10441_v30 }
 0x46e   :  { %10300 = vmatprep.subr.bf16.mxu1 %v10442_v29 }
 0x46f   :  { %10279 = vmatpush3.bf16.msra.mxu0 %v10427_v61 }
 0x470   :  { %10280 = vmatprep.subr.bf16.mxu0 %v10428_v27 }
 0x471   :  { %10301 = vmatpush3.bf16.msra.mxu1 %v10443_v63 }
 0x472   :  { %10302 = vmatprep.subr.bf16.mxu1 %v10444_v10 }
 0x473   :  { %10281 = vmatpush3.bf16.msra.mxu0 %v10429_v0 }
 0x474   :  { %10282 = vmatprep.subr.bf16.mxu0 %v10430_v1 }
 0x475   :  { %10303 = vmatpush3.bf16.msra.mxu1 %v10445_v19 }
 0x476   :  { %10304 = vmatprep.subr.bf16.mxu1 %v10446_v3 }
 0x477   :  { %10283 = vmatpush3.bf16.msra.mxu0 %v10431_v4 }
 0x478   :  { %10284 = vmatprep.subr.bf16.mxu0 %v10432_v8 }
 0x479   :  { %10305 = vmatpush3.bf16.msra.mxu1 %v10447_v9 }
 0x47a   :  { %10306 = vmatprep.subr.bf16.mxu1 %v10448_v28 }
 0x47b   :  { %10285 = vmatpush3.bf16.msra.mxu0 %v10433_v23 }
 0x47c   :  { %10286 = vmatprep.subr.bf16.mxu0 %v10434_v31 }
 0x47d   :  { %10307 = vmatpush3.bf16.msra.mxu1 %v10449_v6 }
 0x47e   :  { %10308 = vmatprep.subr.bf16.mxu1 %v10450_v17 }
 0x47f   :  { %10287 = vmatpush3.bf16.msra.mxu0 %v10435_v12 }
 0x480   :  { %10288 = vmatprep.subr.bf16.mxu0 %v10436_v41 }
 0x481   :  { %10309 = vmatpush3.bf16.msra.mxu1 %v10451_v15 }
 0x482   :  { %10310 = vmatprep.subr.bf16.mxu1 %v10452_v35 }
 0x483   :  { %10289 = vmatpush3.bf16.msra.mxu0 %v10437_v2 }
 0x485   :  { %10311 = vmatpush3.bf16.msra.mxu1 %v10453_v24 }
 0x486   :  { %v7463_v54 = vpop.f32.mrf.mxu0  ;;  %8929 = vmatmul.mubr.bf16.vlgmr.msra.gmra.mxu0 %v7621_v22 }
 0x487   :  { %v7464_v7 = vadd.f32 %v7463_v54, %v1112_v34 }
 0x488   :  { %v7504_v37 = vpop.f32.mrf.mxu1  ;;  %v7465_v45 = vpop.f32.mrf.mxu0 }
 0x489   :  { %v7466_v16 = vadd.f32 %v7465_v45, %v1116_v58  ;;  %v7505_v25 = vadd.f32 %v7504_v37, %v7464_v7 }
 0x48a   :  { %v7506_v43 = vpop.f32.mrf.mxu1  ;;  %v7467_v32 = vpop.f32.mrf.mxu0 }
 0x48b   :  { %v7507_v40 = vadd.f32 %v7506_v43, %v7466_v16 }
 0x48c   :  { %v7508_v36 = vpop.f32.mrf.mxu1  ;;  %v7468_v52 = vpop.f32.mrf.mxu0 }
 0x48e   :  { %v7509_v39 = vpop.f32.mrf.mxu1 }
 0x4c6   :  { %v7545_v49 = vpop.f32.mrf.mxu0 }
 0x4c7   :  { %v7546_v44 = vadd.f32 %v7545_v49, %v7505_v25 }
 0x4c8   :  { %v7586_v18 = vpop.f32.mrf.mxu1  ;;  %v7547_v20 = vpop.f32.mrf.mxu0 }
 0x4c9   :  { %v7587_v21 = vadd.f32 %v7586_v18, %v7546_v44  ;;  %v7548_v62 = vadd.f32 %v7547_v20, %v7507_v40 }
 0x4ca   :  { %v7588_v47 = vpop.f32.mrf.mxu1  ;;  %v7549_v5 = vpop.f32.mrf.mxu0 }
 0x4cb   :  { %v7589_v11 = vadd.f32 %v7588_v47, %v7548_v62  ;;  %v7607_v33 = vmax.f32 %v7587_v21, 0.0 }
 0x4cc   :  { %v7590_v42 = vpop.f32.mrf.mxu1  ;;  %v7550_v14 = vpop.f32.mrf.mxu0 }
 0x4cd   :  { %v7608_v26 = vmax.f32 %v7589_v11, 0.0  ;;  %v7623_v53 = vpack.c.bf16 %v7607_v33, %v7607_v33 }
 0x4ce   :  { %v7591_v60 = vpop.f32.mrf.mxu1 }
 0x4cf   :  { %v7624_v50 = vpack.c.bf16 %v7608_v26, %v7608_v26 }
 0x4d1   :  { %8968 = vmatprep.mubr.bf16.mxu1 %v7624_v50 }
 0x4d2   :  { %8969 = vmatmul.mubr.bf16.vlgmr.msra.gmra.mxu1 %v7623_v53 }
 0x4e6   :  { %v10158_v46 = vpop.f32.mrf.mxu0 }
 0x4e8   :  { %v10180_v59 = vpop.f32.mrf.mxu1  ;;  %v10159_v55 = vpop.f32.mrf.mxu0 }
 0x4e9   :  { %v10160_v56 = vadd.f32 %v10159_v55, %v10158_v46 }
 0x4ea   :  { %v10181_v57 = vpop.f32.mrf.mxu1  ;;  %v10161_v29 = vpop.f32.mrf.mxu0 }
 0x4eb   :  { %v10182_v30 = vadd.f32 %v10181_v57, %v10180_v59  ;;  %v8691_v61 = vadd.f32 %v10160_v56, %v10013_v51 }
 0x4ec   :  { %v10183_v27 = vpop.f32.mrf.mxu1  ;;  %v10162_v63 = vpop.f32.mrf.mxu0 }
 0x4ed   :  { %v8731_v10 = vadd.f32 %v10182_v30, %v8691_v61 }
 0x4ee   :  { %v10184_v0 = vpop.f32.mrf.mxu1 }
 0x506   :  { %v10202_v1 = vpop.f32.mrf.mxu0 }
 0x508   :  { %v10224_v19 = vpop.f32.mrf.mxu1  ;;  %v10203_v3 = vpop.f32.mrf.mxu0 }
 0x509   :  { %v10204_v4 = vadd.f32 %v10203_v3, %v10202_v1 }
 0x50a   :  { %v10225_v8 = vpop.f32.mrf.mxu1  ;;  %v10205_v28 = vpop.f32.mrf.mxu0 }
 0x50b   :  { %v10226_v9 = vadd.f32 %v10225_v8, %v10224_v19  ;;  %v8771_v23 = vadd.f32 %v10204_v4, %v8731_v10 }
 0x50c   :  { %v10227_v13 = vpop.f32.mrf.mxu1  ;;  %v10206_v31 = vpop.f32.mrf.mxu0 }
 0x50d   :  { %v8811_v6 = vadd.f32 %v10226_v9, %v8771_v23 }
 0x50e   :  { %v10228_v17 = vpop.f32.mrf.mxu1 }
 0x526   :  { %v10246_v12 = vpop.f32.mrf.mxu0 }
 0x528   :  { %v10268_v48 = vpop.f32.mrf.mxu1  ;;  %v10247_v41 = vpop.f32.mrf.mxu0 }
 0x529   :  { %v10248_v15 = vadd.f32 %v10247_v41, %v10246_v12 }
 0x52a   :  { %v10269_v35 = vpop.f32.mrf.mxu1  ;;  %v10249_v38 = vpop.f32.mrf.mxu0 }
 0x52b   :  { %v10270_v2 = vadd.f32 %v10269_v35, %v10268_v48  ;;  %v8851_v24 = vadd.f32 %v10248_v15, %v8811_v6 }
 0x52c   :  { %v10271_v22 = vpop.f32.mrf.mxu1  ;;  %v10250_v54 = vpop.f32.mrf.mxu0 }
 0x52d   :  { %v8891_v37 = vadd.f32 %v10270_v2, %v8851_v24 }
 0x52e   :  { %v10272_v45 = vpop.f32.mrf.mxu1 }
 0x546   :  { %v10290_v43 = vpop.f32.mrf.mxu0 }
 0x548   :  { %v10291_v32 = vpop.f32.mrf.mxu0 }
 0x549   :  { %v10292_v36 = vadd.f32 %v10291_v32, %v10290_v43 }
 0x54a   :  { %v10293_v52 = vpop.f32.mrf.mxu0 }
 0x54b   :  { %v8931_v39 = vadd.f32 %v10292_v36, %v8891_v37 }
 0x54c   :  { %v10294_v34 = vpop.f32.mrf.mxu0 }
 0x592   :  { %v10312_v58 = vpop.f32.mrf.mxu1 }
 0x594   :  { %v10313_v7 = vpop.f32.mrf.mxu1 }
 0x595   :  { %v10314_v16 = vadd.f32 %v10313_v7, %v10312_v58 }
 0x596   :  { %v10315_v25 = vpop.f32.mrf.mxu1 }
 0x597   :  { %v8971_v49 = vadd.f32 %v10314_v16, %v8931_v39 }
 0x598   :  { %v10316_v40 = vpop.f32.mrf.mxu1 }
 0x599   :  { %8976 = vst [vmem:[%s14231_s5] sm:$0xff] %v8971_v49 }

</bundles_post_ra>
